<compile_context>
chip_gen: v5e
topology: v5e:2x2
jax: 0.10.0
libtpu: 0.0.40
codegen_flags: <defaults>
</compile_context>

<pallas_src>
import math
from functools import partial

import jax
import jax.numpy as jnp
from jax.experimental import pallas as pl
from jax.experimental.pallas import tpu as pltpu


def _gelu_exact(v):
    # nn.GELU() default: 0.5 * v * (1 + erf(v / sqrt(2)))
    return 0.5 * v * (1.0 + jax.lax.erf(v * (1.0 / math.sqrt(2.0))))


# ----------------------------- fused Pallas kernel -----------------------------

def _smlp_fused_kernel(x_ref, g_ref, b_ref, ww1_ref, ww2_ref,
                       kh1_ref, kh2_ref, kc1_ref, kc2_ref, o_ref,
                       *, use_bf16_matmul: bool):
    # x_ref block: (1, C*H, W).  Everything below is 2-D with W on lanes.
    x = x_ref[0].astype(jnp.float32)                       # (CH, W)

    # LayerNorm over W (biased variance, eps=1e-5) + affine.
    mu = jnp.mean(x, axis=-1, keepdims=True)
    var = jnp.mean(jnp.square(x - mu), axis=-1, keepdims=True)
    xn = (x - mu) * jax.lax.rsqrt(var + 1e-5)
    xn = xn * g_ref[...] + b_ref[...]                      # (CH, W)

    if use_bf16_matmul:
        def mm(a, b):
            return jnp.dot(a.astype(jnp.bfloat16), b.astype(jnp.bfloat16),
                           preferred_element_type=jnp.float32)
    else:
        def mm(a, b):
            return jnp.dot(a, b, preferred_element_type=jnp.float32)

    # W-mixer: right-multiply (weights pre-transposed to (in, out)).
    x2 = mm(_gelu_exact(mm(xn, ww1_ref[...])), ww2_ref[...])          # (CH, W)
    # H-mixer: left-multiply with kron(I_C, Wh1) / kron(I_C, Wh2).
    x1 = mm(kh2_ref[...], _gelu_exact(mm(kh1_ref[...], xn)))          # (CH, W)
    # C-mixer: left-multiply with kron(Wc1, I_H) / kron(Wc2, I_H).
    x0 = mm(kc2_ref[...], _gelu_exact(mm(kc1_ref[...], xn)))          # (CH, W)

    # Fused 3-way add in the epilogue -> single store.
    o_ref[0] = (x0 + x1 + x2).astype(o_ref.dtype)


# ----------------------------- wrapper -----------------------------

def smlp_forward(x, params, *, use_bf16_matmul=False):
    """x: (B, C, H, W) float32.  params: PyTorch-convention weights (out, in)."""
    B, C, H, W = x.shape
    CH = C * H
    Ec = params["c1"].shape[0]
    Eh = params["h1"].shape[0]
    Ew = params["w1"].shape[0]

    # Fold H-/C-mixers into block-structured left-matmul weights so the kernel
    # never transposes and W stays the lane dim.  Computed once per call,
    # outside the kernel (tiny: a few hundred KiB).
    eyeC = jnp.eye(C, dtype=jnp.float32)
    eyeH = jnp.eye(H, dtype=jnp.float32)
    kh1 = jnp.kron(eyeC, params["h1"])     # (C*Eh, C*H)
    kh2 = jnp.kron(eyeC, params["h2"])     # (C*H, C*Eh)
    kc1 = jnp.kron(params["c1"], eyeH)     # (Ec*H, C*H)
    kc2 = jnp.kron(params["c2"], eyeH)     # (C*H, Ec*H)
    ww1 = params["w1"].T                   # (W, Ew)
    ww2 = params["w2"].T                   # (Ew, W)
    g2 = params["gamma"].reshape(1, W)
    b2 = params["beta"].reshape(1, W)

    x3 = x.reshape(B, CH, W)               # contiguous view; no data movement

    # TODO(synk): output lane width is W(=32)<128 (masked stores); fully
    # lane-dense stores would need an in-kernel lane reshape, skipped for
    # lowering robustness — per-step traffic is only ~16 KiB.
    out = pl.pallas_call(
        partial(_smlp_fused_kernel, use_bf16_matmul=use_bf16_matmul),
        out_shape=jax.ShapeDtypeStruct((B, CH, W), x.dtype),
        grid=(B,),
        in_specs=[
            pl.BlockSpec((1, CH, W), lambda b: (b, 0, 0)),     # x slab
            pl.BlockSpec((1, W), lambda b: (0, 0)),            # gamma
            pl.BlockSpec((1, W), lambda b: (0, 0)),            # beta
            pl.BlockSpec((W, Ew), lambda b: (0, 0)),            # ww1
            pl.BlockSpec((Ew, W), lambda b: (0, 0)),            # ww2
            pl.BlockSpec((C * Eh, CH), lambda b: (0, 0)),        # kh1
            pl.BlockSpec((CH, C * Eh), lambda b: (0, 0)),        # kh2
            pl.BlockSpec((Ec * H, CH), lambda b: (0, 0)),        # kc1
            pl.BlockSpec((CH, Ec * H), lambda b: (0, 0)),        # kc2
        ],
        out_specs=pl.BlockSpec((1, CH, W), lambda b: (b, 0, 0)),
        compiler_params=pltpu.CompilerParams(
            dimension_semantics=("parallel",)),
    )(x3, g2, b2, ww1, ww2, kh1, kh2, kc1, kc2)
    return out.reshape(B, C, H, W)


# ----------------------------- params & reference -----------------------------

def init_params(key, in_shape, expansion_factor=2):
    """Deterministic init mimicking nn.Linear's U(-1/sqrt(fan_in), 1/sqrt(fan_in)).
    Weights stored in PyTorch (out, in) convention."""
    C, H, W = in_shape
    ks = jax.random.split(key, 6)

    def lin(k, fan_out, fan_in):
        bound = 1.0 / math.sqrt(fan_in)
        return jax.random.uniform(k, (fan_out, fan_in), jnp.float32, -bound, bound)

    e = expansion_factor
    return {
        "c1": lin(ks[0], e * C, C), "c2": lin(ks[1], C, e * C),
        "h1": lin(ks[2], e * H, H), "h2": lin(ks[3], H, e * H),
        "w1": lin(ks[4], e * W, W), "w2": lin(ks[5], W, e * W),
        "gamma": jnp.ones((W,), jnp.float32),
        "beta": jnp.zeros((W,), jnp.float32),
    }


def smlp_reference(x, params):
    """Pure-JAX reference matching the PyTorch module (f32, high precision)."""
    hp = jax.lax.Precision.HIGHEST
    mu = jnp.mean(x, axis=-1, keepdims=True)
    var = jnp.mean(jnp.square(x - mu), axis=-1, keepdims=True)
    xn = (x - mu) * jax.lax.rsqrt(var + 1e-5) * params["gamma"] + params["beta"]
    g = _gelu_exact
    x2 = jnp.einsum("bchw,ew->bche", xn, params["w1"], precision=hp)
    x2 = jnp.einsum("bche,we->bchw", g(x2), params["w2"], precision=hp)
    x1 = jnp.einsum("bchw,eh->bcew", xn, params["h1"], precision=hp)
    x1 = jnp.einsum("bcew,he->bchw", g(x1), params["h2"], precision=hp)
    x0 = jnp.einsum("bchw,ec->behw", xn, params["c1"], precision=hp)
    x0 = jnp.einsum("behw,ce->bchw", g(x0), params["c2"], precision=hp)
    return x0 + x1 + x2


if __name__ == "__main__":
    B, C, H, W = 2, 8, 16, 32          # in_shape = (C, H, W) = (8, 16, 32)
    key = jax.random.PRNGKey(0)
    kx, kp = jax.random.split(key)
    x = jax.random.normal(kx, (B, C, H, W), jnp.float32)
    params = init_params(kp, (C, H, W), expansion_factor=2)

    fwd = jax.jit(partial(smlp_forward, use_bf16_matmul=False))
    y = fwd(x, params)
    jax.block_until_ready(y)
    assert y.shape == (B, C, H, W) and y.dtype == jnp.float32

    y_ref = smlp_reference(x, params)
    max_err = float(jnp.max(jnp.abs(y - y_ref)))
    assert jnp.allclose(y, y_ref, rtol=1e-2, atol=1e-2), max_err

    print("KERNEL_OK")
</pallas_src>

<mosaic_0001>
module attributes {stable_mosaic.version = 11 : i64} {
  func.func @_smlp_fused_kernel(%arg0: i32, %arg1: memref<1x128x32xf32, #tpu.memory_space<vmem>>, %arg2: memref<1x32xf32, #tpu.memory_space<vmem>>, %arg3: memref<1x32xf32, #tpu.memory_space<vmem>>, %arg4: memref<32x64xf32, #tpu.memory_space<vmem>>, %arg5: memref<64x32xf32, #tpu.memory_space<vmem>>, %arg6: memref<256x128xf32, #tpu.memory_space<vmem>>, %arg7: memref<128x256xf32, #tpu.memory_space<vmem>>, %arg8: memref<256x128xf32, #tpu.memory_space<vmem>>, %arg9: memref<128x256xf32, #tpu.memory_space<vmem>>, %arg10: memref<1x128x32xf32, #tpu.memory_space<vmem>>) attributes {dimension_semantics = [#tpu.dimension_semantics<parallel>], iteration_bounds = array<i64: 2>, scalar_prefetch = 0 : i64, scratch_operands = 0 : i64, tpu.core_type = #tpu.core_type<tc>, window_params = [{transform_indices = @transform_0, window_bounds = array<i64: 1, 128, 32>}, {pipeline_mode = #tpu.pipeline_mode<synchronous>, transform_indices = @transform_1, window_bounds = array<i64: 1, 32>}, {pipeline_mode = #tpu.pipeline_mode<synchronous>, transform_indices = @transform_2, window_bounds = array<i64: 1, 32>}, {pipeline_mode = #tpu.pipeline_mode<synchronous>, transform_indices = @transform_3, window_bounds = array<i64: 32, 64>}, {pipeline_mode = #tpu.pipeline_mode<synchronous>, transform_indices = @transform_4, window_bounds = array<i64: 64, 32>}, {pipeline_mode = #tpu.pipeline_mode<synchronous>, transform_indices = @transform_5, window_bounds = array<i64: 256, 128>}, {pipeline_mode = #tpu.pipeline_mode<synchronous>, transform_indices = @transform_6, window_bounds = array<i64: 128, 256>}, {pipeline_mode = #tpu.pipeline_mode<synchronous>, transform_indices = @transform_7, window_bounds = array<i64: 256, 128>}, {pipeline_mode = #tpu.pipeline_mode<synchronous>, transform_indices = @transform_8, window_bounds = array<i64: 128, 256>}, {transform_indices = @transform_9, window_bounds = array<i64: 1, 128, 32>}]} {
    %c0 = arith.constant 0 : index
    %c0_0 = arith.constant 0 : index
    %c0_1 = arith.constant 0 : index
    %0 = vector.load %arg1[%c0, %c0_0, %c0_1] : memref<1x128x32xf32, #tpu.memory_space<vmem>>, vector<1x128x32xf32>
    %1 = vector.shape_cast %0 : vector<1x128x32xf32> to vector<128x32xf32>
    %cst = arith.constant dense<0.000000e+00> : vector<128xf32>
    %2 = vector.multi_reduction <add>, %1, %cst [1] : vector<128x32xf32> to vector<128xf32>
    %3 = vector.shape_cast %2 : vector<128xf32> to vector<128x1xf32>
    %cst_2 = arith.constant 3.200000e+01 : f32
    %4 = vector.broadcast %cst_2 : f32 to vector<128x1xf32>
    %5 = arith.divf %3, %4 : vector<128x1xf32>
    %6 = vector.broadcast %5 : vector<128x1xf32> to vector<128x32xf32>
    %7 = arith.subf %1, %6 : vector<128x32xf32>
    %8 = arith.mulf %7, %7 : vector<128x32xf32>
    %cst_3 = arith.constant dense<0.000000e+00> : vector<128xf32>
    %9 = vector.multi_reduction <add>, %8, %cst_3 [1] : vector<128x32xf32> to vector<128xf32>
    %10 = vector.shape_cast %9 : vector<128xf32> to vector<128x1xf32>
    %cst_4 = arith.constant 3.200000e+01 : f32
    %11 = vector.broadcast %cst_4 : f32 to vector<128x1xf32>
    %12 = arith.divf %10, %11 : vector<128x1xf32>
    %13 = vector.broadcast %5 : vector<128x1xf32> to vector<128x32xf32>
    %14 = arith.subf %1, %13 : vector<128x32xf32>
    %cst_5 = arith.constant 9.99999974E-6 : f32
    %15 = vector.broadcast %cst_5 : f32 to vector<128x1xf32>
    %16 = arith.addf %12, %15 : vector<128x1xf32>
    %17 = math.rsqrt %16 : vector<128x1xf32>
    %18 = vector.broadcast %17 : vector<128x1xf32> to vector<128x32xf32>
    %19 = arith.mulf %14, %18 : vector<128x32xf32>
    %c0_6 = arith.constant 0 : index
    %c0_7 = arith.constant 0 : index
    %20 = vector.load %arg2[%c0_6, %c0_7] : memref<1x32xf32, #tpu.memory_space<vmem>>, vector<1x32xf32>
    %21 = vector.broadcast %20 : vector<1x32xf32> to vector<128x32xf32>
    %22 = arith.mulf %19, %21 : vector<128x32xf32>
    %c0_8 = arith.constant 0 : index
    %c0_9 = arith.constant 0 : index
    %23 = vector.load %arg3[%c0_8, %c0_9] : memref<1x32xf32, #tpu.memory_space<vmem>>, vector<1x32xf32>
    %24 = vector.broadcast %23 : vector<1x32xf32> to vector<128x32xf32>
    %25 = arith.addf %22, %24 : vector<128x32xf32>
    %c0_10 = arith.constant 0 : index
    %c0_11 = arith.constant 0 : index
    %26 = vector.load %arg4[%c0_10, %c0_11] : memref<32x64xf32, #tpu.memory_space<vmem>>, vector<32x64xf32>
    %cst_12 = arith.constant dense<0.000000e+00> : vector<128x64xf32>
    %27 = tpu.matmul %25, %26, %cst_12 {dimension_numbers = #tpu.dot_dimension_numbers<[1], [0], [0], [1], [0, 0, 1, 1], [], []>} : vector<128x32xf32>, vector<32x64xf32>, vector<128x64xf32> -> vector<128x64xf32>
    %cst_13 = arith.constant 5.000000e-01 : f32
    %28 = vector.broadcast %cst_13 : f32 to vector<128x64xf32>
    %29 = arith.mulf %28, %27 : vector<128x64xf32>
    %cst_14 = arith.constant 0.707106769 : f32
    %30 = vector.broadcast %cst_14 : f32 to vector<128x64xf32>
    %31 = arith.mulf %27, %30 : vector<128x64xf32>
    %32 = math.erf %31 : vector<128x64xf32>
    %cst_15 = arith.constant 1.000000e+00 : f32
    %33 = vector.broadcast %cst_15 : f32 to vector<128x64xf32>
    %34 = arith.addf %33, %32 : vector<128x64xf32>
    %35 = arith.mulf %29, %34 : vector<128x64xf32>
    %c0_16 = arith.constant 0 : index
    %c0_17 = arith.constant 0 : index
    %36 = vector.load %arg5[%c0_16, %c0_17] : memref<64x32xf32, #tpu.memory_space<vmem>>, vector<64x32xf32>
    %cst_18 = arith.constant dense<0.000000e+00> : vector<128x32xf32>
    %37 = tpu.matmul %35, %36, %cst_18 {dimension_numbers = #tpu.dot_dimension_numbers<[1], [0], [0], [1], [0, 0, 1, 1], [], []>} : vector<128x64xf32>, vector<64x32xf32>, vector<128x32xf32> -> vector<128x32xf32>
    %c0_19 = arith.constant 0 : index
    %c0_20 = arith.constant 0 : index
    %38 = vector.load %arg7[%c0_19, %c0_20] : memref<128x256xf32, #tpu.memory_space<vmem>>, vector<128x256xf32>
    %c0_21 = arith.constant 0 : index
    %c0_22 = arith.constant 0 : index
    %39 = vector.load %arg6[%c0_21, %c0_22] : memref<256x128xf32, #tpu.memory_space<vmem>>, vector<256x128xf32>
    %cst_23 = arith.constant dense<0.000000e+00> : vector<256x32xf32>
    %40 = tpu.matmul %39, %25, %cst_23 {dimension_numbers = #tpu.dot_dimension_numbers<[1], [0], [0], [1], [0, 0, 1, 1], [], []>} : vector<256x128xf32>, vector<128x32xf32>, vector<256x32xf32> -> vector<256x32xf32>
    %cst_24 = arith.constant 5.000000e-01 : f32
    %41 = vector.broadcast %cst_24 : f32 to vector<256x32xf32>
    %42 = arith.mulf %41, %40 : vector<256x32xf32>
    %cst_25 = arith.constant 0.707106769 : f32
    %43 = vector.broadcast %cst_25 : f32 to vector<256x32xf32>
    %44 = arith.mulf %40, %43 : vector<256x32xf32>
    %45 = math.erf %44 : vector<256x32xf32>
    %cst_26 = arith.constant 1.000000e+00 : f32
    %46 = vector.broadcast %cst_26 : f32 to vector<256x32xf32>
    %47 = arith.addf %46, %45 : vector<256x32xf32>
    %48 = arith.mulf %42, %47 : vector<256x32xf32>
    %cst_27 = arith.constant dense<0.000000e+00> : vector<128x32xf32>
    %49 = tpu.matmul %38, %48, %cst_27 {dimension_numbers = #tpu.dot_dimension_numbers<[1], [0], [0], [1], [0, 0, 1, 1], [], []>} : vector<128x256xf32>, vector<256x32xf32>, vector<128x32xf32> -> vector<128x32xf32>
    %c0_28 = arith.constant 0 : index
    %c0_29 = arith.constant 0 : index
    %50 = vector.load %arg9[%c0_28, %c0_29] : memref<128x256xf32, #tpu.memory_space<vmem>>, vector<128x256xf32>
    %c0_30 = arith.constant 0 : index
    %c0_31 = arith.constant 0 : index
    %51 = vector.load %arg8[%c0_30, %c0_31] : memref<256x128xf32, #tpu.memory_space<vmem>>, vector<256x128xf32>
    %cst_32 = arith.constant dense<0.000000e+00> : vector<256x32xf32>
    %52 = tpu.matmul %51, %25, %cst_32 {dimension_numbers = #tpu.dot_dimension_numbers<[1], [0], [0], [1], [0, 0, 1, 1], [], []>} : vector<256x128xf32>, vector<128x32xf32>, vector<256x32xf32> -> vector<256x32xf32>
    %cst_33 = arith.constant 5.000000e-01 : f32
    %53 = vector.broadcast %cst_33 : f32 to vector<256x32xf32>
    %54 = arith.mulf %53, %52 : vector<256x32xf32>
    %cst_34 = arith.constant 0.707106769 : f32
    %55 = vector.broadcast %cst_34 : f32 to vector<256x32xf32>
    %56 = arith.mulf %52, %55 : vector<256x32xf32>
    %57 = math.erf %56 : vector<256x32xf32>
    %cst_35 = arith.constant 1.000000e+00 : f32
    %58 = vector.broadcast %cst_35 : f32 to vector<256x32xf32>
    %59 = arith.addf %58, %57 : vector<256x32xf32>
    %60 = arith.mulf %54, %59 : vector<256x32xf32>
    %cst_36 = arith.constant dense<0.000000e+00> : vector<128x32xf32>
    %61 = tpu.matmul %50, %60, %cst_36 {dimension_numbers = #tpu.dot_dimension_numbers<[1], [0], [0], [1], [0, 0, 1, 1], [], []>} : vector<128x256xf32>, vector<256x32xf32>, vector<128x32xf32> -> vector<128x32xf32>
    %62 = arith.addf %61, %49 : vector<128x32xf32>
    %63 = arith.addf %62, %37 : vector<128x32xf32>
    %c0_37 = arith.constant 0 : index
    %c0_38 = arith.constant 0 : index
    %c0_39 = arith.constant 0 : index
    %64 = vector.load %arg10[%c0_37, %c0_38, %c0_39] : memref<1x128x32xf32, #tpu.memory_space<vmem>>, vector<1x128x32xf32>
    %65 = vector.shape_cast %64 : vector<1x128x32xf32> to vector<128x32xf32>
    %66 = vector.shape_cast %63 : vector<128x32xf32> to vector<1x128x32xf32>
    tpu.vector_store %arg10[%c0_37, %c0_38, %c0_39], %66 {strides = array<i32>} : memref<1x128x32xf32, #tpu.memory_space<vmem>>, vector<1x128x32xf32>,
    return
  }
  func.func @transform_0(%arg0: i32) -> (i32, i32, i32) {
    %c0_i32 = arith.constant 0 : i32
    %c0_i32_0 = arith.constant 0 : i32
    %c0_i32_1 = arith.constant 0 : i32
    return %arg0, %c0_i32, %c0_i32_0 : i32, i32, i32
  }
  func.func @transform_1(%arg0: i32) -> (i32, i32) {
    %c0_i32 = arith.constant 0 : i32
    %c0_i32_0 = arith.constant 0 : i32
    %c0_i32_1 = arith.constant 0 : i32
    return %c0_i32, %c0_i32_0 : i32, i32
  }
  func.func @transform_2(%arg0: i32) -> (i32, i32) {
    %c0_i32 = arith.constant 0 : i32
    %c0_i32_0 = arith.constant 0 : i32
    %c0_i32_1 = arith.constant 0 : i32
    return %c0_i32, %c0_i32_0 : i32, i32
  }
  func.func @transform_3(%arg0: i32) -> (i32, i32) {
    %c0_i32 = arith.constant 0 : i32
    %c0_i32_0 = arith.constant 0 : i32
    %c0_i32_1 = arith.constant 0 : i32
    return %c0_i32, %c0_i32_0 : i32, i32
  }
  func.func @transform_4(%arg0: i32) -> (i32, i32) {
    %c0_i32 = arith.constant 0 : i32
    %c0_i32_0 = arith.constant 0 : i32
    %c0_i32_1 = arith.constant 0 : i32
    return %c0_i32, %c0_i32_0 : i32, i32
  }
  func.func @transform_5(%arg0: i32) -> (i32, i32) {
    %c0_i32 = arith.constant 0 : i32
    %c0_i32_0 = arith.constant 0 : i32
    %c0_i32_1 = arith.constant 0 : i32
    return %c0_i32, %c0_i32_0 : i32, i32
  }
  func.func @transform_6(%arg0: i32) -> (i32, i32) {
    %c0_i32 = arith.constant 0 : i32
    %c0_i32_0 = arith.constant 0 : i32
    %c0_i32_1 = arith.constant 0 : i32
    return %c0_i32, %c0_i32_0 : i32, i32
  }
  func.func @transform_7(%arg0: i32) -> (i32, i32) {
    %c0_i32 = arith.constant 0 : i32
    %c0_i32_0 = arith.constant 0 : i32
    %c0_i32_1 = arith.constant 0 : i32
    return %c0_i32, %c0_i32_0 : i32, i32
  }
  func.func @transform_8(%arg0: i32) -> (i32, i32) {
    %c0_i32 = arith.constant 0 : i32
    %c0_i32_0 = arith.constant 0 : i32
    %c0_i32_1 = arith.constant 0 : i32
    return %c0_i32, %c0_i32_0 : i32, i32
  }
  func.func @transform_9(%arg0: i32) -> (i32, i32, i32) {
    %c0_i32 = arith.constant 0 : i32
    %c0_i32_0 = arith.constant 0 : i32
    %c0_i32_1 = arith.constant 0 : i32
    return %arg0, %c0_i32, %c0_i32_0 : i32, i32, i32
  }
}

</mosaic_0001>

<bundles_post_ra>
// kernel: smlp_forward.1
= control target key start
LH: loop header
LB: loop body
LE: loop exit
PB: predicated region body
PF: predicated region fallthrough
CT: control target
= control target key end

     0   :  { %14 = vsyncpa [#allocation3], 0  ;;  %s10107_s0 = inlined_call_operand.vmem [shape: f32[2,128,32], index: 0, kind: input, shape index: {}]   ;;  %s10108_s1 = inlined_call_operand.vmem [shape: f32[1,32], index: 1, kind: input, shape index: {}]   ;;  %s10109_s2 = inlined_call_operand.vmem [shape: f32[1,32], index: 2, kind: input, shape index: {}]   ;;  %s10110_s3 = inlined_call_operand.vmem [shape: f32[32,64], index: 3, kind: input, shape index: {}]   ;;  %s10111_s4 = inlined_call_operand.vmem [shape: f32[64,32], index: 4, kind: input, shape index: {}]   ;;  %s10112_s5 = inlined_call_operand.vmem [shape: f32[256,128], index: 5, kind: input, shape index: {}]   ;;  %s10113_s6 = inlined_call_operand.vmem [shape: f32[128,256], index: 6, kind: input, shape index: {}]   ;;  %s10114_s7 = inlined_call_operand.vmem [shape: f32[256,128], index: 7, kind: input, shape index: {}]   ;;  %s10115_s8 = inlined_call_operand.vmem [shape: f32[128,256], index: 8, kind: input, shape index: {}]   ;;  %s10116_s9 = inlined_call_operand.hbm [shape: f32[2,128,32], index: 9, kind: output, shape index: {}]  }
   0x1   :  { %16 = vsyncpa [#allocation3 + $0x1], 0  ;;  %s5725_s30 = smov 0   ;;  %s5727_s10 = smov 0  }
   0x2   :  { %s5729_s11 = smov 0   ;;  %s5731_s12 = smov 0  }
   0x3 LB: > { %s5746_s13 = sadd.s32 4294967295, %s5670_s12   ;;  %s5230_s14 = sadd.s32 4294967294, %s5670_s12   ;;  %s5670_s12 = sphi %s5731_s12, %s10697_s12   ;;  %s5666_s11 = sphi %s5729_s11, %s10696_s11   ;;  %s5662_s10 = sphi %s5727_s10, %s10695_s10   ;;  %s5658_s30 = sphi %s5725_s30, %s10694_s30  }
   0x4   : > { %s5750_s15 = sadd.s32 1, %s5670_s12   ;;  %s223_s16 = sadd.s32 1, %s5666_s11 }
   0x5   : > { %s220_s17 = ssub.s32 %s5670_s12, %s5750_s15  ;;  %p233_p0 = scmp.ne.s32.totalorder %s5666_s11, %s5662_s10 }
   0x6   : > { %p221_p1 = scmp.eq.s32.totalorder %s220_s17, 0  ;;  %p234_p2 = scmp.eq.s32.totalorder %s5746_s13, 1 }
   0x7   : > { %p239_p3 = scmp.ne.s32.totalorder %s5662_s10, %s5658_s30  ;;  %p240_p4 = scmp.eq.s32.totalorder %s5230_s14, 1 }
   0x8   : > { %s5761_s18 = scalar_select %p221_p1, %s5666_s11, %s223_s16  }
   0x9   : > { %p5763_p5 = por %p234_p2, %p233_p0  ;;  %p5767_p6 = por %p240_p4, %p239_p3 }
   0xa   : > { %p5233_p7 = scmp.ge.s32.totalorder %s5670_s12, 1  ;;  %p290_p8 = scmp.lt.s32.totalorder %s5670_s12, 3 }
   0xc   : > { %p291_p9 = pnand %p5233_p7, %p290_p8 }
   0xe   : > { %294 = sbr.rel (%p291_p9) target bundleno = 1819 (0x71b), region = 56 }
  0x13   : > { %p326_p10 = scmp.lt.s32.totalorder %s5746_s13, 1  ;;  %vm10216_vm0 = vcmask 261120   ;;  %v5672_v14 = vmov 32.0   ;;  %s323_s28 = sand.u32 1, %s5662_s10  }
  0x14   : > { %5412 = vrcp.f32 %v5672_v14  ;;  %s5234_s29 = sshll.u32 %s323_s28, 7  ;;  %s5355_s16 = sshll.u32 %s5746_s13, 7 }
  0x15   : > { %s327_s21 = scalar_select %p326_p10, %s5746_s13, 1 }
  0x16   : > { %s10004_s14 = scalar_lea.vmem [#allocation2], %s5234_s29  ;;  %s5153_s13 = scalar_lea.sflag [#allocation3], %s323_s28 }
  0x17   : > { %s5354_s22 = sshll.u32 %s327_s21, 7  ;;  %s5164_s21 = scalar_lea.hbm %s10116_s9, %s5355_s16 }
  0x18   : > { %s5778_s25 = scalar_lea.vmem %s10107_s0, %s5354_s22  ;;  %s5165_s22 = sshll.u32 %s10004_s14, 4  ;;  %s5166_s22 = int_to_ptr.vmem [resolvable:$true] %s5165_s22 }
  0x19   : > { %v342_v0 = vld [vmem:[%s5778_s25 + $0x58] sm:$0xff]  ;;  %v340_v1 = vld [vmem:[%s5778_s25 + $0x48] sm:$0xff]  ;;  %v343_v6 = vld [vmem:[%s5778_s25 + $0x60] sm:$0xff]  ;;  %s5167_s23 = sshll.u32 %s5164_s21, 4  ;;  %s5628_s16 = scalar_lea.hbm %s10116_s9, 256  ;;  %s5168_s23 = int_to_ptr.hbm [resolvable:$true] %s5167_s23 }
  0x1a   : > { %v344_v2 = vld [vmem:[%s5778_s25 + $0x68] sm:$0xff]  ;;  %v381_v3 = vsel %vm10216_vm0, %v342_v0, 0.0  ;;  %v375_v4 = vsel %vm10216_vm0, %v340_v1, 0.0  ;;  %v341_v7 = vld [vmem:[%s5778_s25 + $0x50] sm:$0xff]  ;;  %v384_v9 = vsel %vm10216_vm0, %v343_v6, 0.0  ;;  %v346_v12 = vld [vmem:[%s5778_s25 + $0x78] sm:$0xff]  ;;  %v5413_v15 = vpop.eup %5412 }
  0x1b   : > { %v387_v5 = vsel %vm10216_vm0, %v344_v2, 0.0  ;;  %382 = vadd.xlane.f32.xlu1 %v381_v3  ;;  %376 = vadd.xlane.f32.xlu0 %v375_v4  ;;  %v345_v8 = vld [vmem:[%s5778_s25 + $0x70] sm:$0xff]  ;;  %v378_v10 = vsel %vm10216_vm0, %v341_v7, 0.0  ;;  %v393_v13 = vsel %vm10216_vm0, %v346_v12, 0.0  ;;  %v397_v16 = vmul.f32 32.0, %v5413_v15  ;;  %v5842_v57 = vld [vmem:[%s5778_s25 + $0x8] sm:$0xff] }
  0x1c   : > { %388 = vadd.xlane.f32.xlu2 %v387_v5  ;;  %v390_v11 = vsel %vm10216_vm0, %v345_v8, 0.0  ;;  %vm401_vm1 = vweird.f32 %v5413_v15  ;;  %v5839_v56 = vld [vmem:[%s5778_s25 + $0x10] sm:$0xff]  ;;  %v5845_v58 = vld [vmem:[%s5778_s25] sm:$0xff]  ;;  %v351_v60 = vsel %vm10216_vm0, %v5842_v57, 0.0  ;;  %v5857_v63 = vld [vmem:[%s5778_s25 + $0x28] sm:$0xff]  ;;  %s5622_s24 = sshra.s32 %s5168_s23, 4  ;;  %s5623_s24 = int_to_ptr.hbm [resolvable:$true] %s5622_s24 }
  0x1d   : > { %v398_v17 = vsub.f32 1.0, %v397_v16  ;;  %v354_v59 = vsel %vm10216_vm0, %v5839_v56, 0.0  ;;  %v348_v61 = vsel %vm10216_vm0, %v5845_v58, 0.0  ;;  %v5854_v62 = vld [vmem:[%s5778_s25 + $0x20] sm:$0xff]  ;;  %v5869_v4 = vld [vmem:[%s5778_s25 + $0x30] sm:$0xff]  ;;  %s5624_s26 = scalar_lea.hbm %s5623_s24, 128  ;;  %p5629_p0 = scmp.lt.s32.totalorder %s5623_s24, %s10116_s9 }
  0x1e   : > { %v366_v5 = vsel %vm10216_vm0, %v5869_v4, 0.0  ;;  %v1572_v16 = vld [vmem:[%s10111_s4 + $0x20] sm:$0xff]  ;;  %p5625_p11 = scmp.ne.s32.totalorder %s5623_s24, %s5624_s26  ;;  %p5630_p1 = scmp.lt.s32.totalorder %s5628_s16, %s5624_s26 }
  0x1f   : > { %v399_v18 = vmul.f32 %v5413_v15, %v398_v17 }
  0x20   : > { %p5626_p12 = pnand %p5625_p11, %p5763_p5  ;;  %p5631_p2 = por %p5630_p1, %p5629_p0 }
  0x21   : > { %v400_v19 = vadd.f32 %v5413_v15, %v399_v18 }
  0x22   : > { %p5627_p13 = pneg %p5626_p12 }
  0x23   : > { %385 = vadd.xlane.f32.xlu1 %v384_v9  ;;  %379 = vadd.xlane.f32.xlu0 %v378_v10  ;;  %v5794_v20 = vsel %vm401_vm1, %v5413_v15, %v400_v19  ;;  %v747_v9 = vld [vmem:[%s10110_s3] sm:$0xff]  ;;  %v1573_v15 = vld [vmem:[%s10111_s4 + $0x28] sm:$0xff] }
  0x24   : > { %391 = vadd.xlane.f32.xlu2 %v390_v11  ;;  %v1575_v11 = vld [vmem:[%s10111_s4 + $0x38] sm:$0xff]  ;;  %p5632_p3 = pnand %p5631_p2, %p5627_p13 }
  0x25   : > { %1633 = vmatpush.msra.mxu1 %v1575_v11  ;;  %5360 = vmatpush.msra.mxu2 %v1575_v11 }
  0x2b   : > { %394 = vadd.xlane.f32.xlu1 %v393_v13  ;;  %v1574_v13 = vld [vmem:[%s10111_s4 + $0x30] sm:$0xff] }
  0x2c   : > { %1634 = vmatpush.msra.mxu1 %v1574_v13  ;;  %5361 = vmatpush.msra.mxu2 %v1574_v13 }
  0x2e   : > { %1635 = vmatpush.msra.mxu1 %v1573_v15  ;;  %5362 = vmatpush.msra.mxu2 %v1573_v15  ;;  %v5962_v15 = vld [vmem:[%s10109_s2] ss:$0 sm:$0xff] }
  0x30   : > { %1636 = vmatpush.msra.mxu1 %v1572_v16  ;;  %5363 = vmatpush.msra.mxu2 %v1572_v16 }
  0x8e   : > { %v383_v21 = vpop.xlane.xlu1 %382  ;;  %v377_v22 = vpop.xlane.xlu0 %376 }
  0x8f   : > { %v414_v23 = vmul.f32 %v5794_v20, %v383_v21  ;;  %v412_v24 = vmul.f32 %v5794_v20, %v377_v22  ;;  %v389_v25 = vpop.xlane.xlu2 %388 }
  0x90   : > { %v416_v36 = vmul.f32 %v5794_v20, %v389_v25 }
  0x91   : > { %v5798_v26 = vsub.f32 %v340_v1, %v412_v24  ;;  %v5800_v27 = vsub.f32 %v342_v0, %v414_v23  ;;  %v5860_v0 = vld [vmem:[%s5778_s25 + $0x18] sm:$0xff]  ;;  %v360_v1 = vsel %vm10216_vm0, %v5854_v62, 0.0  ;;  %v1570_v24 = vld [vmem:[%s10111_s4 + $0x10] sm:$0xff] }
  0x92   : > { %v5822_v44 = vsub.f32 %v344_v2, %v416_v36  ;;  %v363_v2 = vsel %vm10216_vm0, %v5857_v63, 0.0  ;;  %v357_v3 = vsel %vm10216_vm0, %v5860_v0, 0.0  ;;  %v1571_v23 = vld [vmem:[%s10111_s4 + $0x18] sm:$0xff] }
  0x93   : > { %v444_v28 = vmul.f32 %v5798_v26, %v5798_v26  ;;  %v446_v35 = vmul.f32 %v5800_v27, %v5800_v27  ;;  %1637 = vmatpush.msra.mxu1 %v1571_v23  ;;  %5364 = vmatpush.msra.mxu2 %v1571_v23 }
  0x94   : > { %v448_v50 = vmul.f32 %v5822_v44, %v5822_v44 }
  0x95   : > { %v478_v29 = vsel %vm10216_vm0, %v444_v28, 0.0  ;;  %v484_v42 = vsel %vm10216_vm0, %v446_v35, 0.0  ;;  %1638 = vmatpush.msra.mxu1 %v1570_v24  ;;  %5365 = vmatpush.msra.mxu2 %v1570_v24 }
  0x96   : > { %v386_v30 = vpop.xlane.xlu1 %385  ;;  %479 = vadd.xlane.f32.xlu0 %v478_v29  ;;  %v380_v31 = vpop.xlane.xlu0 %379  ;;  %v490_v54 = vsel %vm10216_vm0, %v448_v50, 0.0 }
  0x97   : > { %v415_v32 = vmul.f32 %v5794_v20, %v386_v30  ;;  %v413_v33 = vmul.f32 %v5794_v20, %v380_v31  ;;  %v392_v34 = vpop.xlane.xlu2 %391 }
  0x98   : > { %v417_v37 = vmul.f32 %v5794_v20, %v392_v34  ;;  %v1568_v34 = vld [vmem:[%s10111_s4] sm:$0xff] }
  0x99   : > { %v5811_v38 = vsub.f32 %v343_v6, %v415_v32  ;;  %v5813_v39 = vsub.f32 %v341_v7, %v413_v33  ;;  %v750_v6 = vld [vmem:[%s10110_s3 + $0x18] sm:$0xff]  ;;  %v749_v7 = vld [vmem:[%s10110_s3 + $0x10] sm:$0xff]  ;;  %v1569_v33 = vld [vmem:[%s10111_s4 + $0x8] sm:$0xff] }
  0x9a   : > { %v5815_v40 = vsub.f32 %v345_v8, %v417_v37  ;;  %5356 = vmatpush.msra.mxu3 %v750_v6  ;;  %811 = vmatpush.msra.mxu0 %v750_v6  ;;  %v748_v8 = vld [vmem:[%s10110_s3 + $0x8] sm:$0xff] }
  0x9b   : > { %v447_v41 = vmul.f32 %v5811_v38, %v5811_v38  ;;  %v445_v43 = vmul.f32 %v5813_v39, %v5813_v39  ;;  %1639 = vmatpush.msra.mxu1 %v1569_v33  ;;  %5366 = vmatpush.msra.mxu2 %v1569_v33 }
  0x9c   : > { %v449_v49 = vmul.f32 %v5815_v40, %v5815_v40  ;;  %5357 = vmatpush.msra.mxu3 %v749_v7  ;;  %812 = vmatpush.msra.mxu0 %v749_v7 }
  0x9d   : > { %v487_v45 = vsel %vm10216_vm0, %v447_v41, 0.0  ;;  %v481_v46 = vsel %vm10216_vm0, %v445_v43, 0.0  ;;  %1640 = vmatpush.msra.mxu1 %v1568_v34  ;;  %5367 = vmatpush.msra.mxu2 %v1568_v34 }
  0x9e   : > { %488 = vadd.xlane.f32.xlu1 %v487_v45  ;;  %v395_v47 = vpop.xlane.xlu1 %394  ;;  %485 = vadd.xlane.f32.xlu0 %v484_v42  ;;  %v493_v53 = vsel %vm10216_vm0, %v449_v49, 0.0 }
  0x9f   : > { %v418_v48 = vmul.f32 %v5794_v20, %v395_v47  ;;  %482 = vadd.xlane.f32.xlu2 %v481_v46  ;;  %5358 = vmatpush.msra.mxu3 %v748_v8 }
  0xa0   : > { %813 = vmatpush.msra.mxu0 %v748_v8 }
  0xa1   : > { %v5831_v51 = vsub.f32 %v346_v12, %v418_v48  ;;  %5359 = vmatpush.msra.mxu3 %v747_v9 }
  0xa2   : > { %814 = vmatpush.msra.mxu0 %v747_v9 }
  0xa3   : > { %v450_v52 = vmul.f32 %v5831_v51, %v5831_v51 }
  0xa5   : > { %v496_v55 = vsel %vm10216_vm0, %v450_v52, 0.0 }
  0xa6   : > { %497 = vadd.xlane.f32.xlu1 %v496_v55  ;;  %494 = vadd.xlane.f32.xlu0 %v493_v53 }
  0xa7   : > { %491 = vadd.xlane.f32.xlu2 %v490_v54 }
  0xae   : > { %355 = vadd.xlane.f32.xlu1 %v354_v59  ;;  %352 = vadd.xlane.f32.xlu0 %v351_v60 }
  0xaf   : > { %349 = vadd.xlane.f32.xlu2 %v348_v61 }
  0xb6   : > { %361 = vadd.xlane.f32.xlu0 %v360_v1  ;;  %364 = vadd.xlane.f32.xlu1 %v363_v2 }
  0xb7   : > { %358 = vadd.xlane.f32.xlu2 %v357_v3  ;;  %v5948_v3 = vld [vmem:[%s10108_s1] ss:$0 sm:$0xff] }
  0xbe   : > { %367 = vadd.xlane.f32.xlu0 %v366_v5 }
 0x109   : > { %v480_v10 = vpop.xlane.xlu0 %479 }
 0x10a   : > { %v508_v12 = vmul.f32 %v480_v10, %v5794_v20 }
 0x10c   : > { %v524_v14 = vadd.f32 1e-05, %v508_v12 }
 0x10e   : > { %5414 = vrsqrt.f32 %v524_v14  ;;  %vm627_vm3 = vweird.f32 %v524_v14 }
 0x111   : > { %v489_v17 = vpop.xlane.xlu1 %488  ;;  %v486_v18 = vpop.xlane.xlu0 %485 }
 0x112   : > { %v511_v19 = vmul.f32 %v489_v17, %v5794_v20  ;;  %v483_v21 = vpop.xlane.xlu2 %482  ;;  %v510_v22 = vmul.f32 %v486_v18, %v5794_v20 }
 0x113   : > { %v509_v25 = vmul.f32 %v483_v21, %v5794_v20 }
 0x114   : > { %v5415_v28 = vpop.eup %5414  ;;  %v5907_v29 = vadd.f32 1e-05, %v511_v19  ;;  %v5909_v30 = vadd.f32 1e-05, %v510_v22 }
 0x115   : > { %v622_v31 = vmul.f32 %v5415_v28, %v524_v14  ;;  %v5911_v32 = vadd.f32 1e-05, %v509_v25  ;;  %vm628_vm2 = vweird.f32 %v5415_v28 }
 0x116   : > { %5416 = vrsqrt.f32 %v5907_v29  ;;  %vm629_vm4 = vmor %vm627_vm3, %vm628_vm2  ;;  %vm647_vm5 = vweird.f32 %v5909_v30  ;;  %vm657_vm7 = vweird.f32 %v5907_v29 }
 0x117   : > { %v623_v35 = vmul.f32 %v5415_v28, %v622_v31  ;;  %5418 = vrsqrt.f32 %v5911_v32  ;;  %vm637_vm6 = vweird.f32 %v5911_v32 }
 0x118   : > { %5420 = vrsqrt.f32 %v5909_v30 }
 0x119   : > { %v624_v36 = vmul.f32 0.5, %v623_v35  ;;  %v498_v37 = vpop.xlane.xlu1 %497  ;;  %v495_v41 = vpop.xlane.xlu0 %494 }
 0x11a   : > { %v514_v42 = vmul.f32 %v498_v37, %v5794_v20  ;;  %v492_v43 = vpop.xlane.xlu2 %491  ;;  %v513_v45 = vmul.f32 %v495_v41, %v5794_v20 }
 0x11b   : > { %v625_v46 = vsub.f32 1.5, %v624_v36  ;;  %v512_v47 = vmul.f32 %v492_v43, %v5794_v20 }
 0x11c   : > { %v5925_v48 = vpop.eup %5416  ;;  %v5927_v49 = vadd.f32 1e-05, %v514_v42  ;;  %v5935_v55 = vadd.f32 1e-05, %v513_v45 }
 0x11d   : > { %v5929_v50 = vpop.eup %5418  ;;  %v626_v52 = vmul.f32 %v5415_v28, %v625_v46  ;;  %v652_v53 = vmul.f32 %v5925_v48, %v5907_v29  ;;  %v5933_v54 = vadd.f32 1e-05, %v512_v47  ;;  %vm658_vm8 = vweird.f32 %v5925_v48 }
 0x11e   : > { %v5937_v59 = vpop.eup %5420  ;;  %v632_v60 = vmul.f32 %v5929_v50, %v5911_v32  ;;  %5422 = vrsqrt.f32 %v5927_v49  ;;  %vm638_vm9 = vweird.f32 %v5929_v50  ;;  %vm687_vm10 = vweird.f32 %v5927_v49 }
 0x11f   : > { %v630_v61 = vsel %vm629_vm4, %v5415_v28, %v626_v52  ;;  %v653_v1 = vmul.f32 %v5925_v48, %v652_v53  ;;  %v642_v2 = vmul.f32 %v5937_v59, %v5909_v30  ;;  %5424 = vrsqrt.f32 %v5933_v54  ;;  %vm5998_vm12 = vmor %vm637_vm6, %vm638_vm9 }
 0x120   : > { %v633_v5 = vmul.f32 %v5929_v50, %v632_v60  ;;  %5426 = vrsqrt.f32 %v5935_v55  ;;  %v700_v10 = vmul.f32 %v630_v61, %v5798_v26  ;;  %vm648_vm11 = vweird.f32 %v5937_v59 }
 0x121   : > { %v654_v6 = vmul.f32 0.5, %v653_v1  ;;  %v643_v7 = vmul.f32 %v5937_v59, %v642_v2  ;;  %v356_v8 = vpop.xlane.xlu1 %355  ;;  %v353_v9 = vpop.xlane.xlu0 %352  ;;  %vm667_vm13 = vweird.f32 %v5933_v54  ;;  %vm677_vm14 = vweird.f32 %v5935_v55  ;;  %vm6026_vm2 = vmor %vm647_vm5, %vm648_vm11 }
 0x122   : > { %v634_v11 = vmul.f32 0.5, %v633_v5  ;;  %v405_v12 = vmul.f32 %v5794_v20, %v356_v8  ;;  %v404_v13 = vmul.f32 %v5794_v20, %v353_v9  ;;  %v350_v14 = vpop.xlane.xlu2 %349  ;;  %v720_v17 = vmul.f32 %v5948_v3, %v700_v10  ;;  %vm6060_vm5 = vmor %vm657_vm7, %vm658_vm8 }
 0x123   : > { %v644_v26 = vmul.f32 0.5, %v643_v7  ;;  %v403_v16 = vmul.f32 %v5794_v20, %v350_v14  ;;  %v655_v19 = vsub.f32 1.5, %v654_v6 }
 0x124   : > { %v5969_v18 = vpop.eup %5422  ;;  %v635_v21 = vsub.f32 1.5, %v634_v11  ;;  %v5973_v22 = vsub.f32 %v5839_v56, %v405_v12  ;;  %v5979_v25 = vsub.f32 %v5842_v57, %v404_v13  ;;  %v5988_v34 = vadd.f32 %v5962_v15, %v720_v17 }
 0x125   : > { %v645_v23 = vsub.f32 1.5, %v644_v26  ;;  %v682_v24 = vmul.f32 %v5969_v18, %v5927_v49  ;;  %v5981_v28 = vpop.eup %5424  ;;  %v5985_v33 = vsub.f32 %v5845_v58, %v403_v16  ;;  %v6009_v41 = vmul.f32 %v5925_v48, %v655_v19  ;;  %v6066_v26 = vld [vmem:[%s5778_s25 + $0x40] sm:$0xff] }
 0x126   : > { %v636_v31 = vmul.f32 %v5929_v50, %v635_v21  ;;  %v437_v56 = vmul.f32 %v5973_v22, %v5973_v22  ;;  %v5992_v35 = vpop.eup %5426  ;;  %v662_v37 = vmul.f32 %v5981_v28, %v5933_v54  ;;  %vm688_vm15 = vweird.f32 %v5969_v18  ;;  %5246 = vmatmul.msk.f32.vlgmr.msra.gmra.mxu3 %vm10216_vm0, %v5988_v34 }
 0x127   : > { %v646_v36 = vmul.f32 %v5937_v59, %v645_v23  ;;  %v683_v58 = vmul.f32 %v5969_v18, %v682_v24  ;;  %v672_v42 = vmul.f32 %v5992_v35, %v5935_v55  ;;  %vm668_vm1 = vweird.f32 %v5981_v28  ;;  %vm6044_vm3 = vmor %vm687_vm10, %vm688_vm15  ;;  %v6077_v23 = vld [vmem:[%s5778_s25 + $0x38] sm:$0xff] }
 0x128   : > { %v640_v32 = vsel %vm5998_vm12, %v5929_v50, %v636_v31  ;;  %v663_v45 = vmul.f32 %v5981_v28, %v662_v37  ;;  %v457_v46 = vsel %vm10216_vm0, %v437_v56, 0.0  ;;  %v436_v53 = vmul.f32 %v5979_v25, %v5979_v25  ;;  %vm6084_vm6 = vmor %vm667_vm13, %vm668_vm1 }
 0x129   : > { %v684_v43 = vmul.f32 0.5, %v683_v58  ;;  %v362_v47 = vpop.xlane.xlu0 %361  ;;  %v673_v52 = vmul.f32 %v5992_v35, %v672_v42  ;;  %458 = vadd.xlane.f32.xlu0 %v457_v46  ;;  %v435_v61 = vmul.f32 %v5985_v33, %v5985_v33  ;;  %v650_v1 = vsel %vm6026_vm2, %v5937_v59, %v646_v36  ;;  %v365_v6 = vpop.xlane.xlu1 %364 }
 0x12a   : > { %v407_v60 = vmul.f32 %v5794_v20, %v362_v47  ;;  %v664_v2 = vmul.f32 0.5, %v663_v45  ;;  %v701_v5 = vmul.f32 %v640_v32, %v5813_v39  ;;  %v359_v7 = vpop.xlane.xlu2 %358  ;;  %v454_v10 = vsel %vm10216_vm0, %v436_v53, 0.0 }
 0x12b   : > { %v685_v30 = vsub.f32 1.5, %v684_v43  ;;  %v674_v9 = vmul.f32 0.5, %v673_v52  ;;  %v451_v11 = vsel %vm10216_vm0, %v435_v61, 0.0  ;;  %vm678_vm4 = vweird.f32 %v5992_v35  ;;  %455 = vadd.xlane.f32.xlu1 %v454_v10 }
 0x12c   : > { %v6050_v59 = vsub.f32 %v5854_v62, %v407_v60  ;;  %v665_v12 = vsub.f32 1.5, %v664_v2  ;;  %452 = vadd.xlane.f32.xlu2 %v451_v11  ;;  %v721_v49 = vmul.f32 %v5948_v3, %v701_v5  ;;  %v408_v14 = vmul.f32 %v5794_v20, %v365_v6  ;;  %vm679_vm7 = vmor %vm677_vm14, %vm678_vm4 }
 0x12d   : > { %v686_v39 = vmul.f32 %v5969_v18, %v685_v30  ;;  %v675_v62 = vsub.f32 1.5, %v674_v9  ;;  %v406_v17 = vmul.f32 %v5794_v20, %v359_v7  ;;  %v702_v24 = vmul.f32 %v650_v1, %v5800_v27 }
 0x12e   : > { %v439_v16 = vmul.f32 %v6050_v59, %v6050_v59  ;;  %v666_v29 = vmul.f32 %v5981_v28, %v665_v12  ;;  %v741_v21 = vadd.f32 %v5962_v15, %v721_v49  ;;  %v660_v57 = vsel %vm6060_vm5, %v5925_v48, %v6009_v41 }
 0x12f   : > { %v690_v19 = vsel %vm6044_vm3, %v5969_v18, %v686_v39  ;;  %v676_v56 = vmul.f32 %v5992_v35, %v675_v62  ;;  %v372_v54 = vsel %vm10216_vm0, %v6066_v26, 0.0  ;;  %v6107_v48 = vsub.f32 %v5857_v63, %v408_v14 }
 0x130   : > { %v463_v18 = vsel %vm10216_vm0, %v439_v16, 0.0  ;;  %v670_v27 = vsel %vm6084_vm6, %v5981_v28, %v666_v29  ;;  %5247 = vmatmul.msk.f32.gmra.mxu3 %vm10216_vm0, %v741_v21  ;;  %v706_v36 = vmul.f32 %v690_v19, %v5831_v51  ;;  %v369_v28 = vsel %vm10216_vm0, %v6077_v23, 0.0 }
 0x131   : > { %v680_v58 = vsel %vm679_vm7, %v5992_v35, %v676_v56  ;;  %464 = vadd.xlane.f32.xlu0 %v463_v18  ;;  %v6112_v37 = vsub.f32 %v5860_v0, %v406_v17  ;;  %v722_v55 = vmul.f32 %v5948_v3, %v702_v24  ;;  %v368_v42 = vpop.xlane.xlu0 %367  ;;  %v704_v51 = vmul.f32 %v670_v27, %v5822_v44 }
 0x132   : > { %v726_v41 = vmul.f32 %v5948_v3, %v706_v36  ;;  %v705_v32 = vmul.f32 %v680_v58, %v5815_v40  ;;  %v703_v35 = vmul.f32 %v660_v57, %v5811_v38  ;;  %v440_v45 = vmul.f32 %v6107_v48, %v6107_v48 }
 0x133   : > { %373 = vadd.xlane.f32.xlu1 %v372_v54  ;;  %v724_v0 = vmul.f32 %v5948_v3, %v704_v51  ;;  %v409_v46 = vmul.f32 %v5794_v20, %v368_v42  ;;  %v438_v40 = vmul.f32 %v6112_v37, %v6112_v37  ;;  %v742_v44 = vadd.f32 %v5962_v15, %v722_v55 }
 0x134   : > { %370 = vadd.xlane.f32.xlu2 %v369_v28  ;;  %v746_v63 = vadd.f32 %v5962_v15, %v726_v41  ;;  %v725_v43 = vmul.f32 %v5948_v3, %v705_v32  ;;  %v723_v47 = vmul.f32 %v5948_v3, %v703_v35  ;;  %v466_v52 = vsel %vm10216_vm0, %v440_v45, 0.0 }
 0x135   : > { %v744_v50 = vadd.f32 %v5962_v15, %v724_v0  ;;  %v6134_v53 = vsub.f32 %v5869_v4, %v409_v46  ;;  %v460_v60 = vsel %vm10216_vm0, %v438_v40, 0.0 }
 0x136   : > { %1754 = vmatpush.msrb.mxu2 %v746_v63  ;;  %3469 = vmatpush.msrb.mxu1 %v746_v63  ;;  %v745_v38 = vadd.f32 %v5962_v15, %v725_v43  ;;  %v743_v61 = vadd.f32 %v5962_v15, %v723_v47 }
 0x137   : > { %v441_v1 = vmul.f32 %v6134_v53, %v6134_v53 }
 0x138   : > { %5248 = vmatmul.msk.f32.gmra.mxu3 %vm10216_vm0, %v742_v44  ;;  %1755 = vmatpush.msrb.mxu2 %v745_v38 }
 0x139   : > { %3470 = vmatpush.msrb.mxu1 %v745_v38  ;;  %v469_v4 = vsel %vm10216_vm0, %v441_v1, 0.0 }
 0x13a   : > { %1756 = vmatpush.msrb.mxu2 %v744_v50 }
 0x13b   : > { %3471 = vmatpush.msrb.mxu1 %v744_v50  ;;  %467 = vadd.xlane.f32.xlu1 %v466_v52 }
 0x13c   : > { %461 = vadd.xlane.f32.xlu2 %v460_v60  ;;  %1757 = vmatpush.msrb.mxu2 %v743_v61 }
 0x13d   : > { %3472 = vmatpush.msrb.mxu1 %v743_v61 }
 0x13e   : > { %1758 = vmatpush.msrb.mxu2 %v742_v44 }
 0x13f   : > { %3473 = vmatpush.msrb.mxu1 %v742_v44 }
 0x140   : > { %5249 = vmatmul.msk.f32.gmra.mxu3 %vm10216_vm0, %v743_v61  ;;  %1759 = vmatpush.msrb.mxu2 %v741_v21 }
 0x141   : > { %3474 = vmatpush.msrb.mxu1 %v741_v21 }
 0x142   : > { %1760 = vmatpush.msrb.mxu2 %v5988_v34 }
 0x143   : > { %3475 = vmatpush.msrb.mxu1 %v5988_v34 }
 0x144   : > { %470 = vadd.xlane.f32.xlu2 %v469_v4 }
 0x148   : > { %5250 = vmatmul.msk.f32.gmra.mxu3 %vm10216_vm0, %v744_v50 }
 0x150   : > { %5251 = vmatmul.msk.f32.gmra.mxu3 %vm10216_vm0, %v745_v38 }
 0x158   : > { %5252 = vmatmul.msk.f32.gmra.mxu3 %vm10216_vm0, %v746_v63 }
 0x19c   : > { %v459_v30 = vpop.xlane.xlu0 %458 }
 0x19d   : > { %v501_v2 = vmul.f32 %v459_v30, %v5794_v20 }
 0x19e   : > { %v456_v5 = vpop.xlane.xlu1 %455 }
 0x19f   : > { %v6148_v6 = vadd.f32 1e-05, %v501_v2  ;;  %v453_v7 = vpop.xlane.xlu2 %452  ;;  %v500_v8 = vmul.f32 %v456_v5, %v5794_v20 }
 0x1a0   : > { %v499_v9 = vmul.f32 %v453_v7, %v5794_v20 }
 0x1a1   : > { %5428 = vrsqrt.f32 %v6148_v6  ;;  %v6153_v34 = vadd.f32 1e-05, %v500_v8  ;;  %vm557_vm12 = vweird.f32 %v6148_v6 }
 0x1a2   : > { %v515_v10 = vadd.f32 1e-05, %v499_v9 }
 0x1a3   : > { %5430 = vrsqrt.f32 %v6153_v34  ;;  %vm547_vm8 = vweird.f32 %v6153_v34 }
 0x1a4   : > { %v465_v11 = vpop.xlane.xlu0 %464  ;;  %5432 = vrsqrt.f32 %v515_v10  ;;  %vm537_vm9 = vweird.f32 %v515_v10 }
 0x1a5   : > { %v503_v39 = vmul.f32 %v465_v11, %v5794_v20 }
 0x1a6   : > { %v374_v49 = vpop.xlane.xlu1 %373 }
 0x1a7   : > { %v6157_v12 = vpop.eup %5428  ;;  %v6159_v13 = vadd.f32 1e-05, %v503_v39  ;;  %v371_v62 = vpop.xlane.xlu2 %370  ;;  %v411_v14 = vmul.f32 %v5794_v20, %v374_v49 }
 0x1a8   : > { %v410_v16 = vmul.f32 %v5794_v20, %v371_v62  ;;  %v552_v19 = vmul.f32 %v6157_v12, %v6148_v6  ;;  %vm558_vm15 = vweird.f32 %v6157_v12 }
 0x1a9   : > { %v6163_v17 = vpop.eup %5430  ;;  %v6168_v29 = vsub.f32 %v6066_v26, %v411_v14  ;;  %5434 = vrsqrt.f32 %v6159_v13  ;;  %v6174_v24 = vpop.f32.mrf.mxu3  ;;  %vm6243_vm1 = vmor %vm557_vm12, %vm558_vm15  ;;  %vm577_vm2 = vweird.f32 %v6159_v13 }
 0x1aa   : > { %v6172_v21 = vsub.f32 %v6077_v23, %v410_v16  ;;  %v5433_v31 = vpop.eup %5432  ;;  %v542_v56 = vmul.f32 %v6163_v17, %v6153_v34  ;;  %v6179_v18 = vmul.f32 0.70710677, %v6174_v24  ;;  %v553_v36 = vmul.f32 %v6157_v12, %v552_v19 }
 0x1ab   : > { %v532_v57 = vmul.f32 %v5433_v31, %v515_v10  ;;  %v443_v27 = vmul.f32 %v6168_v29, %v6168_v29  ;;  %vm548_vm10 = vweird.f32 %v6163_v17  ;;  %vm538_vm11 = vweird.f32 %v5433_v31 }
 0x1ac   : > { %v543_v26 = vmul.f32 %v6163_v17, %v542_v56  ;;  %v1256_v54 = vmul.f32 %v6179_v18, %v6179_v18  ;;  %v442_v23 = vmul.f32 %v6172_v21, %v6172_v21  ;;  %v554_v40 = vmul.f32 0.5, %v553_v36  ;;  %vm539_vm13 = vmor %vm537_vm9, %vm538_vm11 }
 0x1ad   : > { %v533_v58 = vmul.f32 %v5433_v31, %v532_v57  ;;  %v475_v28 = vsel %vm10216_vm0, %v443_v27, 0.0  ;;  %vm6221_vm14 = vmor %vm547_vm8, %vm548_vm10 }
 0x1ae   : > { %v544_v55 = vmul.f32 0.5, %v543_v26  ;;  %v6190_v41 = vmin.f32 %v1256_v54, 16.0  ;;  %476 = vadd.xlane.f32.xlu1 %v475_v28  ;;  %v468_v32 = vpop.xlane.xlu1 %467  ;;  %v472_v42 = vsel %vm10216_vm0, %v442_v23, 0.0  ;;  %v555_v2 = vsub.f32 1.5, %v554_v40 }
 0x1af   : > { %v462_v51 = vpop.xlane.xlu2 %461  ;;  %v6193_v35 = vpop.eup %5434  ;;  %v534_v63 = vmul.f32 0.5, %v533_v58  ;;  %473 = vadd.xlane.f32.xlu0 %v472_v42  ;;  %v504_v45 = vmul.f32 %v468_v32, %v5794_v20 }
 0x1b0   : > { %v545_v43 = vsub.f32 1.5, %v544_v55  ;;  %v1258_v0 = vmul.f32 2.1237322e-06, %v6190_v41  ;;  %v502_v46 = vmul.f32 %v462_v51, %v5794_v20  ;;  %v572_v38 = vmul.f32 %v6193_v35, %v6159_v13 }
 0x1b1   : > { %v535_v44 = vsub.f32 1.5, %v534_v63  ;;  %v1269_v60 = vmul.f32 3.8918573e-05, %v6190_v41  ;;  %v6208_v4 = vadd.f32 1e-05, %v504_v45  ;;  %v556_v19 = vmul.f32 %v6157_v12, %v555_v2 }
 0x1b2   : > { %v1259_v47 = vadd.f32 0.00028619796, %v1258_v0  ;;  %v6202_v50 = vadd.f32 1e-05, %v502_v46  ;;  %v546_v61 = vmul.f32 %v6163_v17, %v545_v43  ;;  %v573_v9 = vmul.f32 %v6193_v35, %v572_v38 }
 0x1b3   : > { %v6204_v52 = vpop.f32.mrf.mxu3  ;;  %v536_v1 = vmul.f32 %v5433_v31, %v535_v44  ;;  %v1270_v62 = vadd.f32 0.001143296, %v1269_v60  ;;  %v560_v55 = vsel %vm6243_vm1, %v6157_v12, %v556_v19  ;;  %vm578_vm3 = vweird.f32 %v6193_v35 }
 0x1b4   : > { %v6211_v30 = vmul.f32 0.70710677, %v6204_v52  ;;  %v1260_v7 = vmul.f32 %v1259_v47, %v6190_v41  ;;  %5436 = vrsqrt.f32 %v6202_v50  ;;  %v550_v49 = vsel %vm6221_vm14, %v6163_v17, %v546_v61  ;;  %vm6303_vm7 = vmor %vm577_vm2, %vm578_vm3 }
 0x1b5   : > { %v540_v5 = vsel %vm539_vm13, %v5433_v31, %v536_v1  ;;  %5438 = vrsqrt.f32 %v6208_v4  ;;  %v692_v26 = vmul.f32 %v550_v49, %v5979_v25  ;;  %v574_v23 = vmul.f32 0.5, %v573_v9 }
 0x1b6   : > { %v1296_v10 = vmul.f32 %v6211_v30, %v6211_v30  ;;  %v691_v39 = vmul.f32 %v540_v5, %v5985_v33  ;;  %v1261_v31 = vadd.f32 0.0036580483, %v1260_v7  ;;  %v1271_v36 = vmul.f32 %v1270_v62, %v6190_v41 }
 0x1b7   : > { %v471_v11 = vpop.xlane.xlu2 %470  ;;  %v712_v51 = vmul.f32 %v5948_v3, %v692_v26  ;;  %v575_v63 = vsub.f32 1.5, %v574_v23  ;;  %v693_v40 = vmul.f32 %v560_v55, %v5973_v22  ;;  %vm567_vm4 = vweird.f32 %v6202_v50 }
 0x1b8   : > { %v505_v34 = vmul.f32 %v471_v11, %v5794_v20  ;;  %v6235_v14 = vmin.f32 %v1296_v10, 16.0  ;;  %v711_v16 = vmul.f32 %v5948_v3, %v691_v39  ;;  %v1262_v25 = vmul.f32 %v1261_v31, %v6190_v41 }
 0x1b9   : > { %v1272_v0 = vadd.f32 0.014752088, %v1271_v36  ;;  %v6283_v61 = vadd.f32 %v5962_v15, %v712_v51  ;;  %v576_v22 = vmul.f32 %v6193_v35, %v575_v63  ;;  %v713_v11 = vmul.f32 %v5948_v3, %v693_v40 }
 0x1ba   : > { %v6239_v56 = vadd.f32 1e-05, %v505_v34  ;;  %v1298_v17 = vmul.f32 2.1237322e-06, %v6235_v14  ;;  %v6249_v57 = vadd.f32 %v5962_v15, %v711_v16  ;;  %v5437_v54 = vpop.eup %5436  ;;  %v1263_v44 = vadd.f32 0.05243302, %v1262_v25 }
 0x1bb   : > { %v6251_v27 = vpop.f32.mrf.mxu3  ;;  %v562_v58 = vmul.f32 %v5437_v54, %v6202_v50  ;;  %v6259_v28 = vpop.eup %5438  ;;  %vm568_vm5 = vweird.f32 %v5437_v54  ;;  %v1273_v2 = vmul.f32 %v1272_v0, %v6190_v41  ;;  %v1309_v5 = vmul.f32 3.8918573e-05, %v6235_v14 }
 0x1bc   : > { %v1299_v6 = vadd.f32 0.00028619796, %v1298_v17  ;;  %5440 = vrsqrt.f32 %v6239_v56  ;;  %5237 = vmatmul.msk.f32.vlgmr.msra.gmra.mxu0 %vm10216_vm0, %v6249_v57  ;;  %v6266_v32 = vmul.f32 0.70710677, %v6251_v27  ;;  %v582_v12 = vmul.f32 %v6259_v28, %v6208_v4  ;;  %vm6292_vm6 = vmor %vm567_vm4, %vm568_vm5 }
 0x1bd   : > { %v563_v42 = vmul.f32 %v5437_v54, %v562_v58  ;;  %v1264_v49 = vmul.f32 %v1263_v44, %v6190_v41  ;;  %v1274_v19 = vadd.f32 0.112945676, %v1273_v2  ;;  %v1310_v31 = vadd.f32 0.001143296, %v1309_v5 }
 0x1be   : > { %v1336_v43 = vmul.f32 %v6266_v32, %v6266_v32  ;;  %v1300_v46 = vmul.f32 %v1299_v6, %v6235_v14  ;;  %v583_v50 = vmul.f32 %v6259_v28, %v582_v12  ;;  %v580_v26 = vsel %vm6303_vm7, %v6193_v35, %v576_v22 }
 0x1bf   : > { %v564_v45 = vmul.f32 0.5, %v563_v42  ;;  %v1275_v58 = vmul.f32 %v1274_v19, %v6190_v41  ;;  %v1265_v6 = vadd.f32 0.18741608, %v1264_v49  ;;  %v1311_v35 = vmul.f32 %v1310_v31, %v6235_v14 }
 0x1c0   : > { %v6278_v38 = vmin.f32 %v1336_v43, 16.0  ;;  %v1301_v10 = vadd.f32 0.0036580483, %v1300_v46  ;;  %v584_v23 = vmul.f32 0.5, %v583_v50  ;;  %vm587_vm8 = vweird.f32 %v6208_v4 }
 0x1c1   : > { %v565_v60 = vsub.f32 1.5, %v564_v45  ;;  %v1276_v43 = vadd.f32 0.4994258, %v1275_v58  ;;  %v1266_v44 = vmul.f32 %v1265_v6, %v6190_v41  ;;  %vm588_vm9 = vweird.f32 %v6259_v28 }
 0x1c2   : > { %v6280_v47 = vpop.eup %5440  ;;  %v1338_v7 = vmul.f32 2.1237322e-06, %v6278_v38  ;;  %v1302_v36 = vmul.f32 %v1301_v10, %v6235_v14  ;;  %v585_v45 = vsub.f32 1.5, %v584_v23  ;;  %v1349_v9 = vmul.f32 3.8918573e-05, %v6278_v38  ;;  %vm6361_vm10 = vmor %vm587_vm8, %vm588_vm9 }
 0x1c3   : > { %v6285_v1 = vpop.f32.mrf.mxu3  ;;  %v566_v8 = vmul.f32 %v5437_v54, %v565_v60  ;;  %v592_v34 = vmul.f32 %v6280_v47, %v6239_v56  ;;  %v1277_v40 = vmul.f32 %v1276_v43, %v6190_v41  ;;  %v695_v60 = vmul.f32 %v580_v26, %v6050_v59 }
 0x1c4   : > { %5238 = vmatmul.msk.f32.gmra.mxu0 %vm10216_vm0, %v6283_v61  ;;  %v1339_v62 = vadd.f32 0.00028619796, %v1338_v7  ;;  %v6311_v16 = vmul.f32 0.70710677, %v6285_v1  ;;  %v1303_v46 = vadd.f32 0.05243302, %v1302_v36  ;;  %v586_v41 = vmul.f32 %v6259_v28, %v585_v45 }
 0x1c5   : > { %v570_v33 = vsel %vm6292_vm6, %v5437_v54, %v566_v8  ;;  %v593_v55 = vmul.f32 %v6280_v47, %v592_v34  ;;  %v6327_v54 = vadd.f32 %v5962_v15, %v713_v11  ;;  %v6346_v22 = vadd.f32 1.0, %v1277_v40 }
 0x1c6   : > { %v1340_v13 = vmul.f32 %v1339_v62, %v6278_v38  ;;  %v1376_v17 = vmul.f32 %v6311_v16, %v6311_v16  ;;  %v694_v63 = vmul.f32 %v570_v33, %v6112_v37  ;;  %v1312_v7 = vadd.f32 0.014752088, %v1311_v35 }
 0x1c7   : > { %v594_v37 = vmul.f32 0.5, %v593_v55  ;;  %v1304_v10 = vmul.f32 %v1303_v46, %v6235_v14  ;;  %5442 = vrcp.f32 %v6346_v22  ;;  %v6355_v59 = vmul.f32 0.5, %v6174_v24 }
 0x1c8   : > { %v6324_v25 = vmin.f32 %v1376_v17, 16.0  ;;  %v1341_v42 = vadd.f32 0.0036580483, %v1340_v13  ;;  %v714_v5 = vmul.f32 %v5948_v3, %v694_v63  ;;  %v1267_v11 = vadd.f32 1.1283791, %v1266_v44 }
 0x1c9   : > { %v595_v49 = vsub.f32 1.5, %v594_v37  ;;  %v1313_v34 = vmul.f32 %v1312_v7, %v6235_v14  ;;  %v715_v24 = vmul.f32 %v5948_v3, %v695_v60  ;;  %v1350_v33 = vadd.f32 0.001143296, %v1349_v9 }
 0x1ca   : > { %v1378_v0 = vmul.f32 2.1237322e-06, %v6324_v25  ;;  %v1342_v2 = vmul.f32 %v1341_v42, %v6278_v38  ;;  %v6367_v19 = vadd.f32 %v5962_v15, %v714_v5  ;;  %vm597_vm11 = vweird.f32 %v6239_v56 }
 0x1cb   : > { %v6329_v51 = vpop.f32.mrf.mxu3  ;;  %vm598_vm12 = vweird.f32 %v6280_v47  ;;  %v590_v17 = vsel %vm6361_vm10, %v6259_v28, %v586_v41  ;;  %v1305_v26 = vadd.f32 0.18741608, %v1304_v10  ;;  %v1314_v23 = vadd.f32 0.112945676, %v1313_v34 }
 0x1cc   : > { %v6335_v12 = vmul.f32 0.70710677, %v6329_v51  ;;  %5239 = vmatmul.msk.f32.gmra.mxu0 %vm10216_vm0, %v6327_v54  ;;  %v1379_v50 = vadd.f32 0.00028619796, %v1378_v0  ;;  %v1343_v62 = vadd.f32 0.05243302, %v1342_v2  ;;  %v1351_v36 = vmul.f32 %v1350_v33, %v6278_v38  ;;  %vm6391_vm13 = vmor %vm597_vm11, %vm598_vm12 }
 0x1cd   : > { %v1268_v58 = vmul.f32 %v1267_v11, %v6179_v18  ;;  %v6385_v56 = vmul.f32 0.5, %v6204_v52  ;;  %v596_v6 = vmul.f32 %v6280_v47, %v595_v49  ;;  %v5443_v42 = vpop.eup %5442  ;;  %v6397_v43 = vadd.f32 %v5962_v15, %v715_v24 }
 0x1ce   : > { %v1416_v8 = vmul.f32 %v6335_v12, %v6335_v12  ;;  %v1380_v4 = vmul.f32 %v1379_v50, %v6324_v25  ;;  %v1344_v63 = vmul.f32 %v1343_v62, %v6278_v38  ;;  %v1315_v18 = vmul.f32 %v1314_v23, %v6235_v14 }
 0x1cf   : > { %v1352_v35 = vadd.f32 0.014752088, %v1351_v36  ;;  %v1280_v45 = vmul.f32 %v5443_v42, %v6346_v22  ;;  %v696_v46 = vmul.f32 %v590_v17, %v6107_v48  ;;  %v1306_v40 = vmul.f32 %v1305_v26, %v6235_v14 }
 0x1d0   : > { %v6375_v13 = vmin.f32 %v1416_v8, 16.0  ;;  %v1381_v52 = vadd.f32 0.0036580483, %v1380_v4  ;;  %v1316_v44 = vadd.f32 0.4994258, %v1315_v18  ;;  %v600_v2 = vsel %vm6391_vm13, %v6280_v47, %v596_v6 }
 0x1d1   : > { %v1353_v37 = vmul.f32 %v1352_v35, %v6278_v38  ;;  %v1389_v60 = vmul.f32 3.8918573e-05, %v6324_v25  ;;  %v1281_v7 = vsub.f32 1.0, %v1280_v45  ;;  %v1288_v50 = vand.u32 2147483647, %v6346_v22 }
 0x1d2   : > { %v1418_v0 = vmul.f32 2.1237322e-06, %v6375_v13  ;;  %v1345_v8 = vadd.f32 0.18741608, %v1344_v63  ;;  %v1290_v48 = vand.u32 2147483648, %v6346_v22  ;;  %v1317_v9 = vmul.f32 %v1316_v44, %v6235_v14 }
 0x1d3   : > { %v6369_v31 = vpop.f32.mrf.mxu3  ;;  %v1354_v41 = vadd.f32 0.112945676, %v1353_v37  ;;  %v1382_v10 = vmul.f32 %v1381_v52, %v6324_v25  ;;  %vm1285_vm14 = vweird.f32 %v5443_v42  ;;  %v1429_v47 = vmul.f32 3.8918573e-05, %v6375_v13 }
 0x1d4   : > { %5240 = vmatmul.msk.f32.gmra.mxu0 %vm10216_vm0, %v6367_v19  ;;  %v6389_v55 = vmul.f32 0.70710677, %v6369_v31  ;;  %v1419_v11 = vadd.f32 0.00028619796, %v1418_v0  ;;  %v1282_v49 = vmul.f32 %v5443_v42, %v1281_v7  ;;  %v6420_v34 = vadd.f32 1.0, %v1317_v9 }
 0x1d5   : > { %v1355_v62 = vmul.f32 %v1354_v41, %v6278_v38  ;;  %v1390_v24 = vadd.f32 0.001143296, %v1389_v60  ;;  %vm1284_vm15 = vweird.f32 %v6346_v22  ;;  %v716_v14 = vmul.f32 %v5948_v3, %v696_v46 }
 0x1d6   : > { %v1456_v5 = vmul.f32 %v6389_v55, %v6389_v55  ;;  %v697_v4 = vmul.f32 %v600_v2, %v6134_v53  ;;  %v1283_v26 = vadd.f32 %v5443_v42, %v1282_v49  ;;  %vm1289_vm1 = vcmp.eq.f32.partialorder %v1288_v50, 8.507059e+37  ;;  %vm1286_vm2 = vmor %vm1284_vm15, %vm1285_vm14 }
 0x1d7   : > { %5444 = vrcp.f32 %v6420_v34  ;;  %v1346_v23 = vmul.f32 %v1345_v8, %v6278_v38  ;;  %v1383_v36 = vadd.f32 0.05243302, %v1382_v10  ;;  %v1420_v6 = vmul.f32 %v1419_v11, %v6375_v13 }
 0x1d8   : > { %v6423_v33 = vmin.f32 %v1456_v5, 16.0  ;;  %v1291_v28 = vor.u32 1.1754944e-38, %v1290_v48  ;;  %v1287_v22 = vsel %vm1286_vm2, %v5443_v42, %v1283_v26  ;;  %v1356_v63 = vadd.f32 0.4994258, %v1355_v62 }
 0x1d9   : > { %v1391_v18 = vmul.f32 %v1390_v24, %v6324_v25  ;;  %v1430_v53 = vadd.f32 0.001143296, %v1429_v47  ;;  %v1307_v35 = vadd.f32 1.1283791, %v1306_v40  ;;  %v717_v45 = vmul.f32 %v5948_v3, %v697_v4 }
 0x1da   : > { %v1458_v52 = vmul.f32 2.1237322e-06, %v6423_v33  ;;  %v1292_v0 = vsel %vm1289_vm1, %v1291_v28, %v1287_v22  ;;  %v6441_v37 = vadd.f32 %v5962_v15, %v716_v14  ;;  %v1357_v60 = vmul.f32 %v1356_v63, %v6278_v38 }
 0x1db   : > { %v6415_v39 = vpop.f32.mrf.mxu3  ;;  %v1293_v44 = vmul.f32 %v1292_v0, %v1268_v58  ;;  %v1347_v42 = vadd.f32 1.1283791, %v1346_v23  ;;  %v1384_v2 = vmul.f32 %v1383_v36, %v6324_v25  ;;  %v1421_v5 = vadd.f32 0.0036580483, %v1420_v6 }
 0x1dc   : > { %5241 = vmatmul.msk.f32.gmra.mxu0 %vm10216_vm0, %v6397_v43  ;;  %v6429_v17 = vmul.f32 0.70710677, %v6415_v39  ;;  %vm1576_vm3 = vcmask 523264   ;;  %v6447_v3 = vadd.f32 1.0, %v1357_v60  ;;  %v1392_v50 = vadd.f32 0.014752088, %v1391_v18 }
 0x1dd   : > { %v5445_v40 = vpop.eup %5444  ;;  %v5262_v7 = vclamps-f32 %v1293_v44, 1.0  ;;  %v1431_v58 = vmul.f32 %v1430_v53, %v6375_v13  ;;  %v1308_v8 = vmul.f32 %v1307_v35, %v6211_v30  ;;  %v1459_v48 = vadd.f32 0.00028619796, %v1458_v52 }
 0x1de   : > { %v1496_v46 = vmul.f32 %v6429_v17, %v6429_v17  ;;  %v1320_v38 = vmul.f32 %v5445_v40, %v6420_v34  ;;  %v6453_v9 = vadd.f32 %v5962_v15, %v717_v45  ;;  %5446 = vrcp.f32 %v6447_v3 }
 0x1df   : > { %v1545_v10 = vadd.f32 1.0, %v5262_v7  ;;  %v1469_v11 = vmul.f32 3.8918573e-05, %v6423_v33  ;;  %v6460_v47 = vmul.f32 %v1347_v42, %v6266_v32  ;;  %v1422_v49 = vmul.f32 %v1421_v5, %v6375_v13 }
 0x1e0   : > { %v6455_v41 = vmin.f32 %v1496_v46, 16.0  ;;  %v1321_v62 = vsub.f32 1.0, %v1320_v38  ;;  %v1330_v30 = vand.u32 2147483648, %v6420_v34  ;;  %v6464_v24 = vadd.f32 0.18741608, %v1384_v2 }
 0x1e1   : > { %v1561_v15 = vmul.f32 %v1545_v10, %v6355_v59  ;;  %v1393_v14 = vmul.f32 %v1392_v50, %v6324_v25  ;;  %v1432_v4 = vadd.f32 0.014752088, %v1431_v58  ;;  %v1460_v26 = vmul.f32 %v1459_v48, %v6423_v33 }
 0x1e2   : > { %v1322_v23 = vmul.f32 %v5445_v40, %v1321_v62  ;;  %vm1325_vm4 = vweird.f32 %v5445_v40  ;;  %v1328_v36 = vand.u32 2147483647, %v6420_v34  ;;  %v1498_v32 = vmul.f32 2.1237322e-06, %v6455_v41 }
 0x1e3   : > { %5278 = vmatmul.msk.f32.vlgmr.msra.gmra.mxu2 %vm1576_vm3, %v1561_v15  ;;  %v1394_v6 = vadd.f32 0.112945676, %v1393_v14  ;;  %v1433_v28 = vmul.f32 %v1432_v4, %v6375_v13  ;;  %v1470_v22 = vadd.f32 0.001143296, %v1469_v11  ;;  %v1423_v63 = vadd.f32 0.05243302, %v1422_v49 }
 0x1e4   : > { %5242 = vmatmul.msk.f32.gmra.mxu0 %vm10216_vm0, %v6441_v37  ;;  %v1323_v18 = vadd.f32 %v5445_v40, %v1322_v23  ;;  %vm1324_vm5 = vweird.f32 %v6420_v34  ;;  %v1331_v59 = vor.u32 1.1754944e-38, %v1330_v30  ;;  %v5447_v53 = vpop.eup %5446  ;;  %v1509_v45 = vmul.f32 3.8918573e-05, %v6455_v41 }
 0x1e5   : > { %vm1326_vm6 = vmor %vm1324_vm5, %vm1325_vm4  ;;  %v1395_v35 = vmul.f32 %v1394_v6, %v6324_v25  ;;  %v1434_v52 = vadd.f32 0.112945676, %v1433_v28  ;;  %v1471_v0 = vmul.f32 %v1470_v22, %v6423_v33  ;;  %v1461_v46 = vadd.f32 0.0036580483, %v1460_v26 }
 0x1e6   : > { %v1327_v44 = vsel %vm1326_vm6, %v5445_v40, %v1323_v18  ;;  %vm1329_vm7 = vcmp.eq.f32.partialorder %v1328_v36, 8.507059e+37  ;;  %v1360_v60 = vmul.f32 %v5447_v53, %v6447_v3  ;;  %v1499_v42 = vadd.f32 0.00028619796, %v1498_v32 }
 0x1e7   : > { %v1332_v34 = vsel %vm1329_vm7, %v1331_v59, %v1327_v44  ;;  %v1396_v2 = vadd.f32 0.4994258, %v1395_v35  ;;  %v1435_v5 = vmul.f32 %v1434_v52, %v6375_v13  ;;  %v1368_v58 = vand.u32 2147483647, %v6447_v3 }
 0x1e8   : > { %v1333_v7 = vmul.f32 %v1332_v34, %v1308_v8  ;;  %v1361_v50 = vsub.f32 1.0, %v1360_v60  ;;  %v1472_v48 = vadd.f32 0.014752088, %v1471_v0  ;;  %v1370_v38 = vand.u32 2147483648, %v6447_v3 }
 0x1e9   : > { %v1397_v10 = vmul.f32 %v1396_v2, %v6324_v25  ;;  %v1436_v11 = vadd.f32 0.4994258, %v1435_v5  ;;  %v1510_v49 = vadd.f32 0.001143296, %v1509_v45  ;;  %vm1365_vm8 = vweird.f32 %v5447_v53 }
 0x1ea   : > { %v5263_v40 = vclamps-f32 %v1333_v7, 1.0  ;;  %v1362_v62 = vmul.f32 %v5447_v53, %v1361_v50  ;;  %v1473_v30 = vmul.f32 %v1472_v48, %v6423_v33  ;;  %v1424_v15 = vmul.f32 %v1423_v63, %v6375_v13 }
 0x1eb   : > { %v1462_v14 = vmul.f32 %v1461_v46, %v6423_v33  ;;  %v6487_v8 = vadd.f32 1.0, %v1397_v10  ;;  %v1437_v4 = vmul.f32 %v1436_v11, %v6375_v13  ;;  %vm1364_vm9 = vweird.f32 %v6447_v3 }
 0x1ec   : > { %5243 = vmatmul.msk.f32.gmra.mxu0 %vm10216_vm0, %v6453_v9  ;;  %v1546_v26 = vadd.f32 1.0, %v5263_v40  ;;  %v1363_v23 = vadd.f32 %v5447_v53, %v1362_v62  ;;  %v1474_v36 = vadd.f32 0.112945676, %v1473_v30  ;;  %v1500_v32 = vmul.f32 %v1499_v42, %v6455_v41  ;;  %vm1366_vm10 = vmor %vm1364_vm9, %vm1365_vm8 }
 0x1ed   : > { %v1371_v6 = vor.u32 1.1754944e-38, %v1370_v38  ;;  %5448 = vrcp.f32 %v6487_v8  ;;  %v1511_v28 = vmul.f32 %v1510_v49, %v6455_v41  ;;  %vm1369_vm11 = vcmp.eq.f32.partialorder %v1368_v58, 8.507059e+37 }
 0x1ee   : > { %v1562_v22 = vmul.f32 %v1546_v26, %v6385_v56  ;;  %v1367_v63 = vsel %vm1366_vm10, %v5447_v53, %v1363_v23  ;;  %v6495_v18 = vadd.f32 1.0, %v1437_v4  ;;  %v1425_v59 = vadd.f32 0.18741608, %v1424_v15 }
 0x1ef   : > { %v1372_v35 = vsel %vm1369_vm11, %v1371_v6, %v1367_v63  ;;  %v1475_v52 = vmul.f32 %v1474_v36, %v6423_v33  ;;  %v1463_v3 = vadd.f32 0.05243302, %v1462_v14  ;;  %v1501_v45 = vadd.f32 0.0036580483, %v1500_v32 }
 0x1f0   : > { %5279 = vmatmul.msk.f32.gmra.mxu2 %vm1576_vm3, %v1562_v22  ;;  %v1373_v0 = vmul.f32 %v1372_v35, %v6460_v47  ;;  %5450 = vrcp.f32 %v6495_v18  ;;  %v1512_v44 = vadd.f32 0.014752088, %v1511_v28  ;;  %v1386_v56 = vmul.f32 %v6464_v24, %v6324_v25 }
 0x1f1   : > { %v1476_v46 = vadd.f32 0.4994258, %v1475_v52  ;;  %v1426_v42 = vmul.f32 %v1425_v59, %v6375_v13  ;;  %v875_v5 = vmul.f32 0.5, %v6251_v27  ;;  %v1464_v50 = vmul.f32 %v1463_v3, %v6423_v33 }
 0x1f2   : > { %v5264_v53 = vclamps-f32 %v1373_v0, 1.0  ;;  %v1513_v2 = vmul.f32 %v1512_v44, %v6455_v41  ;;  %v1502_v58 = vmul.f32 %v1501_v45, %v6455_v41  ;;  %v1387_v38 = vadd.f32 1.1283791, %v1386_v56 }
 0x1f3   : > { %v5449_v60 = vpop.eup %5448  ;;  %v1477_v34 = vmul.f32 %v1476_v46, %v6423_v33  ;;  %v1427_v11 = vadd.f32 1.1283791, %v1426_v42  ;;  %v1410_v49 = vand.u32 2147483648, %v6487_v8  ;;  %v1408_v62 = vand.u32 2147483647, %v6487_v8 }
 0x1f4   : > { %v1547_v7 = vadd.f32 1.0, %v5264_v53  ;;  %v1400_v47 = vmul.f32 %v5449_v60, %v6487_v8  ;;  %v1514_v25 = vadd.f32 0.112945676, %v1513_v2  ;;  %vm1405_vm12 = vweird.f32 %v5449_v60 }
 0x1f5   : > { %v6510_v48 = vadd.f32 1.0, %v1477_v34  ;;  %v1465_v15 = vadd.f32 0.18741608, %v1464_v50  ;;  %v1503_v14 = vadd.f32 0.05243302, %v1502_v58  ;;  %vm1404_vm13 = vweird.f32 %v6487_v8 }
 0x1f6   : > { %v5451_v24 = vpop.eup %5450  ;;  %v1563_v10 = vmul.f32 %v1547_v7, %v875_v5  ;;  %v1401_v13 = vsub.f32 1.0, %v1400_v47  ;;  %v1515_v30 = vmul.f32 %v1514_v25, %v6455_v41  ;;  %v1450_v23 = vand.u32 2147483648, %v6495_v18  ;;  %vm1406_vm14 = vmor %vm1404_vm13, %vm1405_vm12 }
 0x1f7   : > { %v1440_v40 = vmul.f32 %v5451_v24, %v6495_v18  ;;  %5452 = vrcp.f32 %v6510_v48  ;;  %v1411_v32 = vor.u32 1.1754944e-38, %v1410_v49  ;;  %vm1445_vm15 = vweird.f32 %v5451_v24 }
 0x1f8   : > { %5280 = vmatmul.msk.f32.gmra.mxu2 %vm1576_vm3, %v1563_v10  ;;  %v1402_v27 = vmul.f32 %v5449_v60, %v1401_v13  ;;  %v1516_v36 = vadd.f32 0.4994258, %v1515_v30  ;;  %v1448_v28 = vand.u32 2147483647, %v6495_v18  ;;  %v1388_v22 = vmul.f32 %v1387_v38, %v6311_v16 }
 0x1f9   : > { %v1441_v4 = vsub.f32 1.0, %v1440_v40  ;;  %vm1409_vm1 = vcmp.eq.f32.partialorder %v1408_v62, 8.507059e+37  ;;  %v1466_v52 = vmul.f32 %v1465_v15, %v6423_v33  ;;  %vm1444_vm2 = vweird.f32 %v6495_v18 }
 0x1fa   : > { %v1403_v26 = vadd.f32 %v5449_v60, %v1402_v27  ;;  %v1517_v59 = vmul.f32 %v1516_v36, %v6455_v41  ;;  %vm1446_vm4 = vmor %vm1444_vm2, %vm1445_vm15  ;;  %v1451_v45 = vor.u32 1.1754944e-38, %v1450_v23  ;;  %v1428_v56 = vmul.f32 %v1427_v11, %v6335_v12 }
 0x1fb   : > { %v1442_v6 = vmul.f32 %v5451_v24, %v1441_v4  ;;  %v1504_v16 = vmul.f32 %v1503_v14, %v6455_v41  ;;  %vm1449_vm5 = vcmp.eq.f32.partialorder %v1448_v28, 8.507059e+37  ;;  %v876_v33 = vmul.f32 0.5, %v6285_v1 }
 0x1fc   : > { %v1407_v63 = vsel %vm1406_vm14, %v5449_v60, %v1403_v26  ;;  %v1518_v44 = vadd.f32 1.0, %v1517_v59  ;;  %v1467_v2 = vadd.f32 1.1283791, %v1466_v52  ;;  %v1490_v5 = vand.u32 2147483648, %v6510_v48 }
 0x1fd   : > { %v5453_v35 = vpop.eup %5452  ;;  %v1412_v3 = vsel %vm1409_vm1, %v1411_v32, %v1407_v63  ;;  %v1443_v8 = vadd.f32 %v5451_v24, %v1442_v6  ;;  %v1488_v50 = vand.u32 2147483647, %v6510_v48  ;;  %v1505_v12 = vadd.f32 0.18741608, %v1504_v16 }
 0x1fe   : > { %v1413_v0 = vmul.f32 %v1412_v3, %v1388_v22  ;;  %v1480_v46 = vmul.f32 %v5453_v35, %v6510_v48  ;;  %5454 = vrcp.f32 %v1518_v44  ;;  %vm1485_vm6 = vweird.f32 %v5453_v35 }
 0x1ff   : > { %v1447_v53 = vsel %vm1446_vm4, %v5451_v24, %v1443_v8  ;;  %vm1484_vm7 = vweird.f32 %v6510_v48  ;;  %v1491_v38 = vor.u32 1.1754944e-38, %v1490_v5  ;;  %v1468_v1 = vmul.f32 %v1467_v2, %v6389_v55 }
 0x200   : > { %v5265_v60 = vclamps-f32 %v1413_v0, 1.0  ;;  %v1452_v42 = vsel %vm1449_vm5, %v1451_v45, %v1447_v53  ;;  %v1481_v34 = vsub.f32 1.0, %v1480_v46  ;;  %vm1486_vm8 = vmor %vm1484_vm7, %vm1485_vm6  ;;  %vm1489_vm9 = vcmp.eq.f32.partialorder %v1488_v50, 8.507059e+37 }
 0x201   : > { %v1453_v18 = vmul.f32 %v1452_v42, %v1428_v56  ;;  %v1506_v49 = vmul.f32 %v1505_v12, %v6455_v41  ;;  %v877_v62 = vmul.f32 0.5, %v6329_v51  ;;  %v1530_v4 = vand.u32 2147483648, %v1518_v44 }
 0x202   : > { %v1548_v7 = vadd.f32 1.0, %v5265_v60  ;;  %v1482_v47 = vmul.f32 %v5453_v35, %v1481_v34  ;;  %v1528_v55 = vand.u32 2147483647, %v1518_v44  ;;  %vm1524_vm11 = vweird.f32 %v1518_v44 }
 0x203   : > { %v5266_v58 = vclamps-f32 %v1453_v18, 1.0  ;;  %v1507_v26 = vadd.f32 1.1283791, %v1506_v49  ;;  %v1531_v41 = vor.u32 1.1754944e-38, %v1530_v4  ;;  %v878_v51 = vmul.f32 0.5, %v6369_v31 }
 0x204   : > { %v1564_v25 = vmul.f32 %v1548_v7, %v876_v33  ;;  %v1483_v24 = vadd.f32 %v5453_v35, %v1482_v47  ;;  %v5455_v10 = vpop.eup %5454  ;;  %vm1529_vm13 = vcmp.eq.f32.partialorder %v1528_v55, 8.507059e+37  ;;  %v879_v3 = vmul.f32 0.5, %v6415_v39 }
 0x205   : > { %v1549_v13 = vadd.f32 1.0, %v5266_v58  ;;  %v1520_v27 = vmul.f32 %v5455_v10, %v1518_v44  ;;  %vm1525_vm10 = vweird.f32 %v5455_v10  ;;  %v1508_v6 = vmul.f32 %v1507_v26, %v6429_v17 }
 0x206   : > { %5281 = vmatmul.msk.f32.gmra.mxu2 %vm1576_vm3, %v1564_v25  ;;  %v1487_v11 = vsel %vm1486_vm8, %v5453_v35, %v1483_v24  ;;  %vm1526_vm12 = vmor %vm1524_vm11, %vm1525_vm10  ;;  %v5606_v24 = vld [vmem:[%s10108_s1] ss:$0 sm:$0xff] }
 0x207   : > { %v1492_v40 = vsel %vm1489_vm9, %v1491_v38, %v1487_v11  ;;  %v1521_v15 = vsub.f32 1.0, %v1520_v27  ;;  %v1565_v14 = vmul.f32 %v1549_v13, %v877_v62 }
 0x208   : > { %v1493_v30 = vmul.f32 %v1492_v40, %v1468_v1 }
 0x209   : > { %v1522_v23 = vmul.f32 %v5455_v10, %v1521_v15 }
 0x20a   : > { %v5267_v48 = vclamps-f32 %v1493_v30, 1.0 }
 0x20b   : > { %v1523_v36 = vadd.f32 %v5455_v10, %v1522_v23 }
 0x20c   : > { %v1550_v32 = vadd.f32 1.0, %v5267_v48 }
 0x20d   : > { %v1527_v28 = vsel %vm1526_vm12, %v5455_v10, %v1523_v36 }
 0x20e   : > { %5282 = vmatmul.msk.f32.gmra.mxu2 %vm1576_vm3, %v1565_v14  ;;  %v1532_v22 = vsel %vm1529_vm13, %v1531_v41, %v1527_v28  ;;  %v1566_v59 = vmul.f32 %v1550_v32, %v878_v51 }
 0x20f   : > { %v1533_v63 = vmul.f32 %v1532_v22, %v1508_v6  ;;  %v1722_v22 = vld [vmem:[%s10112_s5] sm:$0xff] }
 0x211   : > { %v5268_v35 = vclamps-f32 %v1533_v63, 1.0 }
 0x213   : > { %v1551_v52 = vadd.f32 1.0, %v5268_v35 }
 0x215   : > { %v1567_v8 = vmul.f32 %v1551_v52, %v879_v3 }
 0x216   : > { %5283 = vmatmul.msk.f32.gmra.mxu2 %vm1576_vm3, %v1566_v59 }
 0x21e   : > { %5284 = vmatmul.msk.f32.gmra.mxu2 %vm1576_vm3, %v1567_v8 }
 0x221   : > { %v477_v0 = vpop.xlane.xlu1 %476 }
 0x222   : > { %v507_v45 = vmul.f32 %v477_v0, %v5794_v20  ;;  %v474_v46 = vpop.xlane.xlu0 %473 }
 0x223   : > { %v506_v17 = vmul.f32 %v474_v46, %v5794_v20 }
 0x224   : > { %v523_v44 = vadd.f32 1e-05, %v507_v45 }
 0x225   : > { %v522_v31 = vadd.f32 1e-05, %v506_v17 }
 0x226   : > { %5456 = vrsqrt.f32 %v523_v44  ;;  %vm617_vm14 = vweird.f32 %v523_v44 }
 0x227   : > { %5458 = vrsqrt.f32 %v522_v31  ;;  %vm607_vm4 = vweird.f32 %v522_v31 }
 0x22c   : > { %v5457_v56 = vpop.eup %5456 }
 0x22d   : > { %v5459_v16 = vpop.eup %5458  ;;  %v612_v53 = vmul.f32 %v5457_v56, %v523_v44  ;;  %vm618_vm15 = vweird.f32 %v5457_v56 }
 0x22e   : > { %v602_v60 = vmul.f32 %v5459_v16, %v522_v31  ;;  %vm608_vm1 = vweird.f32 %v5459_v16  ;;  %vm619_vm2 = vmor %vm617_vm14, %vm618_vm15 }
 0x22f   : > { %v613_v42 = vmul.f32 %v5457_v56, %v612_v53  ;;  %vm609_vm5 = vmor %vm607_vm4, %vm608_vm1 }
 0x230   : > { %v603_v34 = vmul.f32 %v5459_v16, %v602_v60  ;;  %v1723_v60 = vld [vmem:[%s10112_s5 + $0x8] sm:$0xff] }
 0x231   : > { %v614_v39 = vmul.f32 0.5, %v613_v42 }
 0x232   : > { %v604_v33 = vmul.f32 0.5, %v603_v34 }
 0x233   : > { %v615_v2 = vsub.f32 1.5, %v614_v39 }
 0x234   : > { %v605_v18 = vsub.f32 1.5, %v604_v33 }
 0x235   : > { %v616_v20 = vmul.f32 %v5457_v56, %v615_v2 }
 0x236   : > { %v606_v5 = vmul.f32 %v5459_v16, %v605_v18 }
 0x237   : > { %v620_v7 = vsel %vm619_vm2, %v5457_v56, %v616_v20 }
 0x238   : > { %v610_v47 = vsel %vm609_vm5, %v5459_v16, %v606_v5  ;;  %v699_v50 = vmul.f32 %v620_v7, %v6168_v29  ;;  %v5607_v29 = vld [vmem:[%s10109_s2] ss:$0 sm:$0xff] }
 0x239   : > { %v6545_v12 = vpop.f32.mrf.mxu0  ;;  %v698_v58 = vmul.f32 %v610_v47, %v6172_v21 }
 0x23a   : > { %v6549_v25 = vmul.f32 0.70710677, %v6545_v12  ;;  %v719_v38 = vmul.f32 %v5606_v24, %v699_v50 }
 0x23b   : > { %v718_v10 = vmul.f32 %v5606_v24, %v698_v58 }
 0x23c   : > { %v896_v1 = vmul.f32 %v6549_v25, %v6549_v25  ;;  %v739_v13 = vadd.f32 %v5607_v29, %v719_v38 }
 0x23d   : > { %v738_v11 = vadd.f32 %v5607_v29, %v718_v10 }
 0x23e   : > { %v6559_v49 = vmin.f32 %v896_v1, 16.0  ;;  %1761 = vmatpush.msrb.mxu2 %v739_v13  ;;  %3476 = vmatpush.msrb.mxu1 %v739_v13 }
 0x23f   : > { %5244 = vmatmul.msk.f32.gmra.mxu0 %vm10216_vm0, %v738_v11 }
 0x240   : > { %v898_v21 = vmul.f32 2.1237322e-06, %v6559_v49  ;;  %1762 = vmatpush.msrb.mxu2 %v738_v11  ;;  %3477 = vmatpush.msrb.mxu1 %v738_v11  ;;  %v909_v40 = vmul.f32 3.8918573e-05, %v6559_v49 }
 0x241   : > { %v6564_v27 = vpop.f32.mrf.mxu0 }
 0x242   : > { %v899_v62 = vadd.f32 0.00028619796, %v898_v21  ;;  %v6567_v30 = vmul.f32 0.70710677, %v6564_v27  ;;  %1763 = vmatpush.msrb.mxu2 %v6453_v9  ;;  %3478 = vmatpush.msrb.mxu1 %v6453_v9  ;;  %v910_v15 = vadd.f32 0.001143296, %v909_v40 }
 0x244   : > { %v900_v14 = vmul.f32 %v899_v62, %v6559_v49  ;;  %v936_v48 = vmul.f32 %v6567_v30, %v6567_v30  ;;  %1764 = vmatpush.msrb.mxu2 %v6441_v37  ;;  %3479 = vmatpush.msrb.mxu1 %v6441_v37  ;;  %v911_v4 = vmul.f32 %v910_v15, %v6559_v49 }
 0x246   : > { %v901_v26 = vadd.f32 0.0036580483, %v900_v14  ;;  %v6577_v23 = vmin.f32 %v936_v48, 16.0  ;;  %1765 = vmatpush.msrb.mxu2 %v6397_v43  ;;  %3480 = vmatpush.msrb.mxu1 %v6397_v43  ;;  %v912_v9 = vadd.f32 0.014752088, %v911_v4  ;;  %v1724_v14 = vld [vmem:[%s10112_s5 + $0x10] sm:$0xff] }
 0x247   : > { %5245 = vmatmul.msk.f32.gmra.mxu0 %vm10216_vm0, %v739_v13 }
 0x248   : > { %v938_v55 = vmul.f32 2.1237322e-06, %v6577_v23  ;;  %1766 = vmatpush.msrb.mxu2 %v6367_v19  ;;  %3481 = vmatpush.msrb.mxu1 %v6367_v19  ;;  %v949_v37 = vmul.f32 3.8918573e-05, %v6577_v23  ;;  %v913_v32 = vmul.f32 %v912_v9, %v6559_v49  ;;  %v902_v41 = vmul.f32 %v901_v26, %v6559_v49 }
 0x249   : > { %v6586_v36 = vpop.f32.mrf.mxu0 }
 0x24a   : > { %v939_v6 = vadd.f32 0.00028619796, %v938_v55  ;;  %1767 = vmatpush.msrb.mxu2 %v6327_v54  ;;  %3482 = vmatpush.msrb.mxu1 %v6327_v54  ;;  %v6593_v43 = vmul.f32 0.70710677, %v6586_v36  ;;  %v914_v28 = vadd.f32 0.112945676, %v913_v32 }
 0x24b   : > { %v950_v51 = vadd.f32 0.001143296, %v949_v37  ;;  %v903_v35 = vadd.f32 0.05243302, %v902_v41 }
 0x24c   : > { %v940_v19 = vmul.f32 %v939_v6, %v6577_v23  ;;  %1768 = vmatpush.msrb.mxu2 %v6283_v61  ;;  %3483 = vmatpush.msrb.mxu1 %v6283_v61  ;;  %v976_v63 = vmul.f32 %v6593_v43, %v6593_v43  ;;  %v915_v54 = vmul.f32 %v914_v28, %v6559_v49 }
 0x24d   : > { %v951_v59 = vmul.f32 %v950_v51, %v6577_v23  ;;  %v904_v31 = vmul.f32 %v903_v35, %v6559_v49 }
 0x24e   : > { %v941_v52 = vadd.f32 0.0036580483, %v940_v19  ;;  %1769 = vmatpush.msrb.mxu2 %v6249_v57  ;;  %3484 = vmatpush.msrb.mxu1 %v6249_v57  ;;  %v6607_v3 = vmin.f32 %v976_v63, 16.0  ;;  %v916_v61 = vadd.f32 0.4994258, %v915_v54 }
 0x24f   : > { %1770 = vmatmul.f32.vlgmr.msrb.gmra.mxu2 %v1722_v22  ;;  %v952_v8 = vadd.f32 0.014752088, %v951_v59  ;;  %v905_v18 = vadd.f32 0.18741608, %v904_v31 }
 0x250   : > { %v978_v0 = vmul.f32 2.1237322e-06, %v6607_v3  ;;  %v917_v46 = vmul.f32 %v916_v61, %v6559_v49  ;;  %v989_v44 = vmul.f32 3.8918573e-05, %v6607_v3  ;;  %v942_v56 = vmul.f32 %v941_v52, %v6577_v23 }
 0x251   : > { %v6610_v45 = vpop.f32.mrf.mxu0  ;;  %v953_v17 = vmul.f32 %v952_v8, %v6577_v23  ;;  %v906_v11 = vmul.f32 %v905_v18, %v6559_v49 }
 0x252   : > { %v979_v57 = vadd.f32 0.00028619796, %v978_v0  ;;  %v6618_v16 = vmul.f32 0.70710677, %v6610_v45  ;;  %v918_v53 = vadd.f32 1.0, %v917_v46 }
 0x253   : > { %v954_v42 = vadd.f32 0.112945676, %v953_v17  ;;  %v990_v34 = vadd.f32 0.001143296, %v989_v44  ;;  %v943_v20 = vadd.f32 0.05243302, %v942_v56 }
 0x254   : > { %v980_v39 = vmul.f32 %v979_v57, %v6607_v3  ;;  %v1016_v33 = vmul.f32 %v6618_v16, %v6618_v16  ;;  %5460 = vrcp.f32 %v918_v53  ;;  %v907_v32 = vadd.f32 1.1283791, %v906_v11  ;;  %v1725_v44 = vld [vmem:[%s10112_s5 + $0x18] sm:$0xff] }
 0x255   : > { %v955_v2 = vmul.f32 %v954_v42, %v6577_v23  ;;  %v991_v7 = vmul.f32 %v990_v34, %v6607_v3  ;;  %v944_v21 = vmul.f32 %v943_v20, %v6577_v23  ;;  %v930_v6 = vand.u32 2147483648, %v918_v53 }
 0x256   : > { %v6627_v5 = vmin.f32 %v1016_v33, 16.0  ;;  %v981_v47 = vadd.f32 0.0036580483, %v980_v39  ;;  %v928_v19 = vand.u32 2147483647, %v918_v53  ;;  %vm924_vm7 = vweird.f32 %v918_v53 }
 0x257   : > { %1773 = vmatmul.f32.gmra.mxu2 %v1723_v60  ;;  %v956_v50 = vadd.f32 0.4994258, %v955_v2  ;;  %v992_v38 = vadd.f32 0.014752088, %v991_v7  ;;  %v945_v41 = vadd.f32 0.18741608, %v944_v21  ;;  %v908_v8 = vmul.f32 %v907_v32, %v6549_v25 }
 0x258   : > { %v1018_v58 = vmul.f32 2.1237322e-06, %v6627_v5  ;;  %v1029_v10 = vmul.f32 3.8918573e-05, %v6627_v5  ;;  %v982_v4 = vmul.f32 %v981_v47, %v6607_v3  ;;  %v931_v46 = vor.u32 1.1754944e-38, %v930_v6 }
 0x259   : > { %v6631_v24 = vpop.f32.mrf.mxu0  ;;  %v957_v29 = vmul.f32 %v956_v50, %v6577_v23  ;;  %v993_v40 = vmul.f32 %v992_v38, %v6607_v3  ;;  %v946_v0 = vmul.f32 %v945_v41, %v6577_v23  ;;  %vm929_vm9 = vcmp.eq.f32.partialorder %v928_v19, 8.507059e+37 }
 0x25a   : > { %v6635_v1 = vmul.f32 0.70710677, %v6631_v24  ;;  %v5461_v13 = vpop.eup %5460  ;;  %v1030_v62 = vadd.f32 0.001143296, %v1029_v10  ;;  %v1019_v15 = vadd.f32 0.00028619796, %v1018_v58 }
 0x25b   : > { %v920_v48 = vmul.f32 %v5461_v13, %v918_v53  ;;  %v6645_v26 = vadd.f32 1.0, %v957_v29  ;;  %v994_v9 = vadd.f32 0.112945676, %v993_v40  ;;  %vm925_vm6 = vweird.f32 %v5461_v13 }
 0x25c   : > { %v1056_v55 = vmul.f32 %v6635_v1, %v6635_v1  ;;  %v1031_v37 = vmul.f32 %v1030_v62, %v6627_v5  ;;  %v1020_v28 = vmul.f32 %v1019_v15, %v6627_v5  ;;  %v983_v22 = vadd.f32 0.05243302, %v982_v4  ;;  %vm926_vm8 = vmor %vm924_vm7, %vm925_vm6  ;;  %v1726_v4 = vld [vmem:[%s10112_s5 + $0x20] sm:$0xff] }
 0x25d   : > { %v921_v49 = vsub.f32 1.0, %v920_v48  ;;  %5462 = vrcp.f32 %v6645_v26  ;;  %v995_v54 = vmul.f32 %v994_v9, %v6607_v3  ;;  %v864_v33 = vmul.f32 0.5, %v6545_v12 }
 0x25e   : > { %v1032_v59 = vadd.f32 0.014752088, %v1031_v37  ;;  %v6655_v35 = vmin.f32 %v1056_v55, 16.0  ;;  %v1021_v17 = vadd.f32 0.0036580483, %v1020_v28  ;;  %v984_v60 = vmul.f32 %v983_v22, %v6607_v3 }
 0x25f   : > { %1776 = vmatmul.f32.gmra.mxu2 %v1724_v14  ;;  %v922_v51 = vmul.f32 %v5461_v13, %v921_v49  ;;  %v996_v56 = vadd.f32 0.4994258, %v995_v54  ;;  %v947_v20 = vadd.f32 1.1283791, %v946_v0  ;;  %v968_v29 = vand.u32 2147483647, %v6645_v26 }
 0x260   : > { %v1033_v25 = vmul.f32 %v1032_v59, %v6627_v5  ;;  %v1058_v23 = vmul.f32 2.1237322e-06, %v6655_v35  ;;  %v1022_v7 = vmul.f32 %v1021_v17, %v6627_v5  ;;  %v985_v58 = vadd.f32 0.18741608, %v984_v60 }
 0x261   : > { %v6652_v63 = vpop.f32.mrf.mxu0  ;;  %v923_v61 = vadd.f32 %v5461_v13, %v922_v51  ;;  %v997_v2 = vmul.f32 %v996_v56, %v6607_v3  ;;  %v970_v21 = vand.u32 2147483648, %v6645_v26  ;;  %vm964_vm11 = vweird.f32 %v6645_v26 }
 0x262   : > { %v6658_v52 = vmul.f32 0.70710677, %v6652_v63  ;;  %v1034_v18 = vadd.f32 0.112945676, %v1033_v25  ;;  %v1059_v11 = vadd.f32 0.00028619796, %v1058_v23  ;;  %v948_v37 = vmul.f32 %v947_v20, %v6567_v30 }
 0x263   : > { %v927_v31 = vsel %vm926_vm8, %v5461_v13, %v923_v61  ;;  %v5463_v57 = vpop.eup %5462  ;;  %v6679_v13 = vadd.f32 1.0, %v997_v2  ;;  %v1023_v14 = vadd.f32 0.05243302, %v1022_v7  ;;  %v1069_v49 = vmul.f32 3.8918573e-05, %v6655_v35 }
 0x264   : > { %v1096_v53 = vmul.f32 %v6658_v52, %v6658_v52  ;;  %v932_v42 = vsel %vm929_vm9, %v931_v46, %v927_v31  ;;  %v960_v39 = vmul.f32 %v5463_v57, %v6645_v26  ;;  %vm965_vm10 = vweird.f32 %v5463_v57 }
 0x265   : > { %v933_v34 = vmul.f32 %v932_v42, %v908_v8  ;;  %5464 = vrcp.f32 %v6679_v13  ;;  %v1035_v15 = vmul.f32 %v1034_v18, %v6627_v5  ;;  %v986_v32 = vmul.f32 %v985_v58, %v6607_v3  ;;  %vm966_vm12 = vmor %vm964_vm11, %vm965_vm10 }
 0x266   : > { %v961_v50 = vsub.f32 1.0, %v960_v39  ;;  %v6674_v38 = vmin.f32 %v1096_v53, 16.0  ;;  %v971_v6 = vor.u32 1.1754944e-38, %v970_v21  ;;  %v1060_v28 = vmul.f32 %v1059_v11, %v6655_v35  ;;  %v1727_v53 = vld [vmem:[%s10112_s5 + $0x28] sm:$0xff] }
 0x267   : > { %1779 = vmatmul.f32.gmra.mxu2 %v1725_v44  ;;  %v5253_v47 = vclamps-f32 %v933_v34, 1.0  ;;  %vm969_vm13 = vcmp.eq.f32.partialorder %v968_v29, 8.507059e+37  ;;  %v1036_v26 = vadd.f32 0.4994258, %v1035_v15  ;;  %v1024_v19 = vmul.f32 %v1023_v14, %v6627_v5 }
 0x268   : > { %v962_v62 = vmul.f32 %v5463_v57, %v961_v50  ;;  %v1098_v9 = vmul.f32 2.1237322e-06, %v6674_v38  ;;  %v1070_v61 = vadd.f32 0.001143296, %v1069_v49  ;;  %v865_v8 = vmul.f32 0.5, %v6564_v27 }
 0x269   : > { %v6676_v10 = vpop.f32.mrf.mxu0  ;;  %v1536_v12 = vadd.f32 1.0, %v5253_v47  ;;  %v1037_v59 = vmul.f32 %v1036_v26, %v6627_v5  ;;  %v987_v0 = vadd.f32 1.1283791, %v986_v32  ;;  %v1061_v44 = vadd.f32 0.0036580483, %v1060_v28 }
 0x26a   : > { %v6683_v40 = vmul.f32 0.70710677, %v6676_v10  ;;  %v963_v55 = vadd.f32 %v5463_v57, %v962_v62  ;;  %v1099_v54 = vadd.f32 0.00028619796, %v1098_v9  ;;  %v1025_v60 = vadd.f32 0.18741608, %v1024_v19 }
 0x26b   : > { %v1552_v48 = vmul.f32 %v1536_v12, %v864_v33  ;;  %v5465_v30 = vpop.eup %5464  ;;  %v6706_v56 = vadd.f32 1.0, %v1037_v59  ;;  %v1109_v25 = vmul.f32 3.8918573e-05, %v6674_v38  ;;  %v1010_v34 = vand.u32 2147483648, %v6679_v13 }
 0x26c   : > { %v1136_v41 = vmul.f32 %v6683_v40, %v6683_v40  ;;  %v967_v51 = vsel %vm966_vm12, %v5463_v57, %v963_v55  ;;  %v1000_v17 = vmul.f32 %v5465_v30, %v6679_v13  ;;  %v1071_v57 = vmul.f32 %v1070_v61, %v6655_v35 }
 0x26d   : > { %5269 = vmatmul.msk.f32.vlgmr.msra.gmra.mxu1 %vm1576_vm3, %v1552_v48  ;;  %v972_v22 = vsel %vm969_vm13, %v971_v6, %v967_v51  ;;  %v1100_v27 = vmul.f32 %v1099_v54, %v6674_v38  ;;  %5466 = vrcp.f32 %v6706_v56  ;;  %vm1005_vm14 = vweird.f32 %v5465_v30 }
 0x26e   : > { %v973_v3 = vmul.f32 %v972_v22, %v948_v37  ;;  %v6703_v46 = vmin.f32 %v1136_v41, 16.0  ;;  %v1001_v42 = vsub.f32 1.0, %v1000_v17  ;;  %v1008_v2 = vand.u32 2147483647, %v6679_v13  ;;  %v1728_v37 = vld [vmem:[%s10112_s5 + $0x30] sm:$0xff] }
 0x26f   : > { %1782 = vmatmul.f32.gmra.mxu2 %v1726_v4  ;;  %v988_v18 = vmul.f32 %v987_v0, %v6593_v43  ;;  %v1072_v7 = vadd.f32 0.014752088, %v1071_v57  ;;  %v1110_v47 = vadd.f32 0.001143296, %v1109_v25  ;;  %v1026_v50 = vmul.f32 %v1025_v60, %v6627_v5 }
 0x270   : > { %v5254_v31 = vclamps-f32 %v973_v3, 1.0  ;;  %v1138_v39 = vmul.f32 2.1237322e-06, %v6703_v46  ;;  %v1002_v33 = vmul.f32 %v5465_v30, %v1001_v42  ;;  %v1062_v58 = vmul.f32 %v1061_v44, %v6655_v35 }
 0x271   : > { %vm1004_vm15 = vweird.f32 %v6679_v13  ;;  %v1011_v11 = vor.u32 1.1754944e-38, %v1010_v34  ;;  %v1073_v12 = vmul.f32 %v1072_v7, %v6655_v35  ;;  %v1111_v21 = vmul.f32 %v1110_v47, %v6674_v38 }
 0x272   : > { %v1537_v23 = vadd.f32 1.0, %v5254_v31  ;;  %v1003_v29 = vadd.f32 %v5465_v30, %v1002_v33  ;;  %vm1006_vm1 = vmor %vm1004_vm15, %vm1005_vm14  ;;  %v1149_v43 = vmul.f32 3.8918573e-05, %v6703_v46  ;;  %v1101_v62 = vadd.f32 0.0036580483, %v1100_v27 }
 0x273   : > { %v1139_v15 = vadd.f32 0.00028619796, %v1138_v39  ;;  %vm1009_vm2 = vcmp.eq.f32.partialorder %v1008_v2, 8.507059e+37  ;;  %v5467_v5 = vpop.eup %5466  ;;  %v1074_v4 = vadd.f32 0.112945676, %v1073_v12  ;;  %v866_v13 = vmul.f32 0.5, %v6586_v36 }
 0x274   : > { %v1553_v20 = vmul.f32 %v1537_v23, %v865_v8  ;;  %v1007_v14 = vsel %vm1006_vm1, %v5465_v30, %v1003_v29  ;;  %v1112_v9 = vadd.f32 0.014752088, %v1111_v21  ;;  %v1063_v55 = vadd.f32 0.05243302, %v1062_v58 }
 0x275   : > { %v1012_v48 = vsel %vm1009_vm2, %v1011_v11, %v1007_v14  ;;  %v1040_v32 = vmul.f32 %v5467_v5, %v6706_v56  ;;  %v1027_v41 = vadd.f32 1.1283791, %v1026_v50  ;;  %v1075_v6 = vmul.f32 %v1074_v4, %v6655_v35 }
 0x276   : > { %5270 = vmatmul.msk.f32.gmra.mxu1 %vm1576_vm3, %v1553_v20  ;;  %v1013_v49 = vmul.f32 %v1012_v48, %v988_v18  ;;  %v1113_v28 = vmul.f32 %v1112_v9, %v6674_v38  ;;  %v1150_v51 = vadd.f32 0.001143296, %v1149_v43  ;;  %v1102_v26 = vmul.f32 %v1101_v62, %v6674_v38  ;;  %v1729_v18 = vld [vmem:[%s10112_s5 + $0x38] sm:$0xff] }
 0x277   : > { %1785 = vmatmul.f32.gmra.mxu2 %v1727_v53  ;;  %v1140_v19 = vmul.f32 %v1139_v15, %v6703_v46  ;;  %v1041_v36 = vsub.f32 1.0, %v1040_v32  ;;  %v1050_v30 = vand.u32 2147483648, %v6706_v56  ;;  %v1076_v54 = vadd.f32 0.4994258, %v1075_v6 }
 0x278   : > { %v5255_v22 = vclamps-f32 %v1013_v49, 1.0  ;;  %v1114_v3 = vadd.f32 0.112945676, %v1113_v28  ;;  %v1151_v59 = vmul.f32 %v1150_v51, %v6703_v46  ;;  %vm1045_vm4 = vweird.f32 %v5467_v5  ;;  %v6758_v49 = vpop.f32.mrf.mxu2 }
 0x279   : > { %v1042_v8 = vmul.f32 %v5467_v5, %v1041_v36  ;;  %v1048_v0 = vand.u32 2147483647, %v6706_v56  ;;  %v1064_v17 = vmul.f32 %v1063_v55, %v6655_v35  ;;  %v1077_v44 = vmul.f32 %v1076_v54, %v6655_v35  ;;  %10249 = vst [vmem:[#allocation5_spill] sm:$0xff] %v6758_v49 }
 0x27a   : > { %v1538_v61 = vadd.f32 1.0, %v5255_v22  ;;  %v1115_v31 = vmul.f32 %v1114_v3, %v6674_v38  ;;  %v1152_v57 = vadd.f32 0.014752088, %v1151_v59  ;;  %v1141_v60 = vadd.f32 0.0036580483, %v1140_v19 }
 0x27b   : > { %v1043_v42 = vadd.f32 %v5467_v5, %v1042_v8  ;;  %vm1044_vm5 = vweird.f32 %v6706_v56  ;;  %v1051_v25 = vor.u32 1.1754944e-38, %v1050_v30  ;;  %v1078_v27 = vadd.f32 1.0, %v1077_v44 }
 0x27c   : > { %v1554_v53 = vmul.f32 %v1538_v61, %v866_v13  ;;  %vm1046_vm6 = vmor %vm1044_vm5, %vm1045_vm4  ;;  %v1116_v23 = vadd.f32 0.4994258, %v1115_v31  ;;  %v1153_v34 = vmul.f32 %v1152_v57, %v6703_v46  ;;  %v1028_v39 = vmul.f32 %v1027_v41, %v6618_v16  ;;  %v1730_v13 = vld [vmem:[%s10112_s5 + $0x40] sm:$0xff] }
 0x27d   : > { %v1103_v33 = vadd.f32 0.05243302, %v1102_v26  ;;  %v1047_v2 = vsel %vm1046_vm6, %v5467_v5, %v1043_v42  ;;  %vm1049_vm7 = vcmp.eq.f32.partialorder %v1048_v0, 8.507059e+37  ;;  %5468 = vrcp.f32 %v1078_v27 }
 0x27e   : > { %5271 = vmatmul.msk.f32.gmra.mxu1 %vm1576_vm3, %v1554_v53  ;;  %v1052_v20 = vsel %vm1049_vm7, %v1051_v25, %v1047_v2  ;;  %v1117_v7 = vmul.f32 %v1116_v23, %v6674_v38  ;;  %v1065_v47 = vadd.f32 0.18741608, %v1064_v17  ;;  %v1142_v50 = vmul.f32 %v1141_v60, %v6703_v46 }
 0x27f   : > { %1788 = vmatmul.f32.gmra.mxu2 %v1728_v37  ;;  %v1053_v56 = vmul.f32 %v1052_v20, %v1028_v39  ;;  %v1154_v58 = vadd.f32 0.112945676, %v1153_v34  ;;  %v1104_v16 = vmul.f32 %v1103_v33, %v6674_v38  ;;  %v867_v21 = vmul.f32 0.5, %v6610_v45 }
 0x280   : > { %v1118_v11 = vadd.f32 1.0, %v1117_v7  ;;  %v1066_v15 = vmul.f32 %v1065_v47, %v6655_v35  ;;  %v1143_v14 = vadd.f32 0.05243302, %v1142_v50  ;;  %v1090_v35 = vand.u32 2147483648, %v1078_v27  ;;  %v6768_v53 = vpop.f32.mrf.mxu2 }
 0x281   : > { %v5256_v29 = vclamps-f32 %v1053_v56, 1.0  ;;  %v1155_v12 = vmul.f32 %v1154_v58, %v6703_v46  ;;  %v1105_v48 = vadd.f32 0.18741608, %v1104_v16  ;;  %v1088_v26 = vand.u32 2147483647, %v1078_v27  ;;  %10250 = vst [vmem:[#allocation6_spill] sm:$0xff] %v6768_v53 }
 0x282   : > { %5470 = vrcp.f32 %v1118_v11  ;;  %v1067_v37 = vadd.f32 1.1283791, %v1066_v15  ;;  %v1144_v32 = vmul.f32 %v1143_v14, %v6703_v46  ;;  %vm1084_vm9 = vweird.f32 %v1078_v27  ;;  %v1732_v58 = vld [vmem:[%s10112_s5 + $0x50] sm:$0xff] }
 0x283   : > { %v1539_v43 = vadd.f32 1.0, %v5256_v29  ;;  %v5469_v62 = vpop.eup %5468  ;;  %v1156_v5 = vadd.f32 0.4994258, %v1155_v12  ;;  %v1106_v28 = vmul.f32 %v1105_v48, %v6674_v38  ;;  %v1091_v54 = vor.u32 1.1754944e-38, %v1090_v35  ;;  %v1731_v38 = vld [vmem:[%s10112_s5 + $0x48] sm:$0xff]  ;;  %v1733_v48 = vld [vmem:[%s10112_s5 + $0x58] sm:$0xff] }
 0x284   : > { %v1080_v9 = vmul.f32 %v5469_v62, %v1078_v27  ;;  %vm1085_vm8 = vweird.f32 %v5469_v62  ;;  %v1068_v36 = vmul.f32 %v1067_v37, %v6635_v1  ;;  %v1145_v30 = vadd.f32 0.18741608, %v1144_v32 }
 0x285   : > { %v1555_v4 = vmul.f32 %v1539_v43, %v867_v21  ;;  %v1157_v55 = vmul.f32 %v1156_v5, %v6703_v46  ;;  %vm1086_vm10 = vmor %vm1084_vm9, %vm1085_vm8  ;;  %v1107_v59 = vadd.f32 1.1283791, %v1106_v28  ;;  %vm1089_vm11 = vcmp.eq.f32.partialorder %v1088_v26, 8.507059e+37 }
 0x286   : > { %v1081_v45 = vsub.f32 1.0, %v1080_v9  ;;  %v1130_v8 = vand.u32 2147483648, %v1118_v11  ;;  %v1128_v44 = vand.u32 2147483647, %v1118_v11  ;;  %v1146_v1 = vmul.f32 %v1145_v30, %v6703_v46 }
 0x287   : > { %1791 = vmatmul.f32.gmra.mxu2 %v1729_v18  ;;  %5272 = vmatmul.msk.f32.gmra.mxu1 %vm1576_vm3, %v1555_v4  ;;  %v1158_v41 = vadd.f32 1.0, %v1157_v55  ;;  %vm1124_vm13 = vweird.f32 %v1118_v11  ;;  %v1108_v23 = vmul.f32 %v1107_v59, %v6658_v52  ;;  %v868_v39 = vmul.f32 0.5, %v6631_v24  ;;  %v1735_v55 = vld [vmem:[%s10112_s5 + $0x68] sm:$0xff] }
 0x288   : > { %v5471_v6 = vpop.eup %5470  ;;  %v1082_v51 = vmul.f32 %v5469_v62, %v1081_v45  ;;  %v1131_v25 = vor.u32 1.1754944e-38, %v1130_v8  ;;  %vm1129_vm15 = vcmp.eq.f32.partialorder %v1128_v44, 8.507059e+37  ;;  %v1147_v20 = vadd.f32 1.1283791, %v1146_v1 }
 0x289   : > { %v1120_v19 = vmul.f32 %v5471_v6, %v1118_v11  ;;  %5472 = vrcp.f32 %v1158_v41  ;;  %vm1125_vm12 = vweird.f32 %v5471_v6  ;;  %v1170_v56 = vand.u32 2147483648, %v1158_v41 }
 0x28a   : > { %v1083_v22 = vadd.f32 %v5469_v62, %v1082_v51  ;;  %vm1126_vm14 = vmor %vm1124_vm13, %vm1125_vm12  ;;  %v1168_v50 = vand.u32 2147483647, %v1158_v41  ;;  %vm1164_vm2 = vweird.f32 %v1158_v41  ;;  %v869_v11 = vmul.f32 0.5, %v6652_v63 }
 0x28b   : > { %v1121_v3 = vsub.f32 1.0, %v1120_v19  ;;  %v1171_v29 = vor.u32 1.1754944e-38, %v1170_v56  ;;  %v1148_v12 = vmul.f32 %v1147_v20, %v6683_v40  ;;  %v870_v63 = vmul.f32 0.5, %v6676_v10  ;;  %v1736_v10 = vld [vmem:[%s10112_s5 + $0x70] sm:$0xff]  ;;  %v1737_v19 = vld [vmem:[%s10112_s5 + $0x78] sm:$0xff]  ;;  %v1739_v56 = vld [vmem:[%s10112_s5 + $0x88] sm:$0xff] }
 0x28c   : > { %v1087_v61 = vsel %vm1086_vm10, %v5469_v62, %v1083_v22  ;;  %vm1169_vm5 = vcmp.eq.f32.partialorder %v1168_v50, 8.507059e+37  ;;  %v6778_v62 = vpop.f32.mrf.mxu2 }
 0x28d   : > { %v1092_v0 = vsel %vm1089_vm11, %v1091_v54, %v1087_v61  ;;  %v1122_v17 = vmul.f32 %v5471_v6, %v1121_v3  ;;  %10251 = vst [vmem:[#allocation7_spill] sm:$0xff] %v6778_v62 }
 0x28e   : > { %v1093_v31 = vmul.f32 %v1092_v0, %v1068_v36 }
 0x28f   : > { %1794 = vmatmul.f32.gmra.mxu2 %v1730_v13  ;;  %v5473_v57 = vpop.eup %5472  ;;  %v1123_v60 = vadd.f32 %v5471_v6, %v1122_v17  ;;  %v1734_v13 = vld [vmem:[%s10112_s5 + $0x60] sm:$0xff] }
 0x290   : > { %v5257_v42 = vclamps-f32 %v1093_v31, 1.0  ;;  %v1160_v27 = vmul.f32 %v5473_v57, %v1158_v41  ;;  %vm1165_vm1 = vweird.f32 %v5473_v57  ;;  %v1738_v31 = vld [vmem:[%s10112_s5 + $0x80] sm:$0xff] }
 0x291   : > { %v1127_v34 = vsel %vm1126_vm14, %v5471_v6, %v1123_v60  ;;  %vm1166_vm4 = vmor %vm1164_vm2, %vm1165_vm1 }
 0x292   : > { %v1540_v33 = vadd.f32 1.0, %v5257_v42  ;;  %v1132_v2 = vsel %vm1129_vm15, %v1131_v25, %v1127_v34  ;;  %v1161_v18 = vsub.f32 1.0, %v1160_v27 }
 0x293   : > { %v1133_v46 = vmul.f32 %v1132_v2, %v1108_v23 }
 0x294   : > { %v1556_v7 = vmul.f32 %v1540_v33, %v868_v39  ;;  %v1162_v47 = vmul.f32 %v5473_v57, %v1161_v18  ;;  %v6785_v40 = vpop.f32.mrf.mxu2 }
 0x295   : > { %v5258_v16 = vclamps-f32 %v1133_v46, 1.0  ;;  %10252 = vst [vmem:[#allocation8_spill] sm:$0xff] %v6785_v40 }
 0x296   : > { %5273 = vmatmul.msk.f32.gmra.mxu1 %vm1576_vm3, %v1556_v7  ;;  %v1163_v52 = vadd.f32 %v5473_v57, %v1162_v47 }
 0x297   : > { %1797 = vmatmul.f32.gmra.mxu2 %v1731_v38  ;;  %v1541_v24 = vadd.f32 1.0, %v5258_v16 }
 0x298   : > { %v1167_v21 = vsel %vm1166_vm4, %v5473_v57, %v1163_v52 }
 0x299   : > { %v1172_v43 = vsel %vm1169_vm5, %v1171_v29, %v1167_v21  ;;  %v1557_v15 = vmul.f32 %v1541_v24, %v869_v11 }
 0x29a   : > { %v1173_v14 = vmul.f32 %v1172_v43, %v1148_v12  ;;  %v1740_v43 = vld [vmem:[%s10112_s5 + $0x90] sm:$0xff] }
 0x29c   : > { %v5259_v5 = vclamps-f32 %v1173_v14, 1.0  ;;  %v6794_v45 = vpop.f32.mrf.mxu2 }
 0x29d   : > { %10253 = vst [vmem:[#allocation9_spill] sm:$0xff] %v6794_v45 }
 0x29e   : > { %5274 = vmatmul.msk.f32.gmra.mxu1 %vm1576_vm3, %v1557_v15  ;;  %v1542_v4 = vadd.f32 1.0, %v5259_v5 }
 0x29f   : > { %1800 = vmatmul.f32.gmra.mxu2 %v1732_v58 }
 0x2a0   : > { %v1558_v9 = vmul.f32 %v1542_v4, %v870_v63 }
 0x2a4   : > { %v6806_v41 = vpop.f32.mrf.mxu2 }
 0x2a5   : > { %10254 = vst [vmem:[#allocation10_spill] sm:$0xff] %v6806_v41 }
 0x2a6   : > { %5275 = vmatmul.msk.f32.gmra.mxu1 %vm1576_vm3, %v1558_v9 }
 0x2a7   : > { %1803 = vmatmul.f32.gmra.mxu2 %v1733_v48 }
 0x2ac   : > { %v6818_v8 = vpop.f32.mrf.mxu2 }
 0x2ad   : > { %10255 = vst [vmem:[#allocation11_spill] sm:$0xff] %v6818_v8 }
 0x2af   : > { %1806 = vmatmul.f32.gmra.mxu2 %v1734_v13 }
 0x2b7   : > { %1809 = vmatmul.f32.gmra.mxu2 %v1735_v55 }
 0x2bc   : > { %v6796_v37 = vpop.f32.mrf.mxu0 }
 0x2bd   : > { %v6802_v32 = vmul.f32 0.70710677, %v6796_v37 }
 0x2bf   : > { %v1176_v35 = vmul.f32 %v6802_v32, %v6802_v32  ;;  %1812 = vmatmul.f32.gmra.mxu2 %v1736_v10 }
 0x2c1   : > { %v1177_v6 = vmin.f32 %v1176_v35, 16.0 }
 0x2c3   : > { %v1178_v28 = vmul.f32 2.1237322e-06, %v1177_v6  ;;  %v1189_v51 = vmul.f32 3.8918573e-05, %v1177_v6 }
 0x2c4   : > { %v6808_v26 = vpop.f32.mrf.mxu0 }
 0x2c5   : > { %v1179_v22 = vadd.f32 0.00028619796, %v1178_v28  ;;  %v6814_v36 = vmul.f32 0.70710677, %v6808_v26  ;;  %v1190_v30 = vadd.f32 0.001143296, %v1189_v51 }
 0x2c6   : > { %v1741_v51 = vld [vmem:[%s10112_s5 + $0x98] sm:$0xff] }
 0x2c7   : > { %v1180_v54 = vmul.f32 %v1179_v22, %v1177_v6  ;;  %v1216_v3 = vmul.f32 %v6814_v36, %v6814_v36  ;;  %1815 = vmatmul.f32.gmra.mxu2 %v1737_v19  ;;  %v1191_v59 = vmul.f32 %v1190_v30, %v1177_v6 }
 0x2c9   : > { %v1217_v61 = vmin.f32 %v1216_v3, 16.0  ;;  %v1181_v38 = vadd.f32 0.0036580483, %v1180_v54  ;;  %v1192_v0 = vadd.f32 0.014752088, %v1191_v59 }
 0x2cb   : > { %v1218_v17 = vmul.f32 2.1237322e-06, %v1217_v61  ;;  %v1229_v44 = vmul.f32 3.8918573e-05, %v1217_v61  ;;  %v1193_v57 = vmul.f32 %v1192_v0, %v1177_v6  ;;  %v1182_v42 = vmul.f32 %v1181_v38, %v1177_v6 }
 0x2cd   : > { %v1219_v1 = vadd.f32 0.00028619796, %v1218_v17  ;;  %v1230_v60 = vadd.f32 0.001143296, %v1229_v44  ;;  %v1194_v25 = vadd.f32 0.112945676, %v1193_v57 }
 0x2ce   : > { %v1183_v33 = vadd.f32 0.05243302, %v1182_v42 }
 0x2cf   : > { %v1220_v27 = vmul.f32 %v1219_v1, %v1217_v61  ;;  %1818 = vmatmul.f32.gmra.mxu2 %v1738_v31  ;;  %v1231_v23 = vmul.f32 %v1230_v60, %v1217_v61  ;;  %v1195_v34 = vmul.f32 %v1194_v25, %v1177_v6  ;;  %v1742_v60 = vld [vmem:[%s10112_s5 + $0xa0] sm:$0xff] }
 0x2d0   : > { %v1184_v50 = vmul.f32 %v1183_v33, %v1177_v6 }
 0x2d1   : > { %v1232_v39 = vadd.f32 0.014752088, %v1231_v23  ;;  %v1196_v18 = vadd.f32 0.4994258, %v1195_v34  ;;  %v1221_v20 = vadd.f32 0.0036580483, %v1220_v27 }
 0x2d2   : > { %v6823_v2 = vpop.f32.mrf.mxu2  ;;  %v1185_v29 = vadd.f32 0.18741608, %v1184_v50 }
 0x2d3   : > { %v1233_v46 = vmul.f32 %v1232_v39, %v1217_v61  ;;  %v1197_v7 = vmul.f32 %v1196_v18, %v1177_v6  ;;  %v1222_v16 = vmul.f32 %v1221_v20, %v1217_v61 }
 0x2d4   : > { %v1186_v5 = vmul.f32 %v1185_v29, %v1177_v6 }
 0x2d5   : > { %v1234_v47 = vadd.f32 0.112945676, %v1233_v46  ;;  %v1198_v58 = vadd.f32 1.0, %v1197_v7  ;;  %v1223_v12 = vadd.f32 0.05243302, %v1222_v16  ;;  %v872_v7 = vmul.f32 0.5, %v6808_v26 }
 0x2d6   : > { %v1187_v9 = vadd.f32 1.1283791, %v1186_v5  ;;  %v3437_v16 = vld [vmem:[%s10114_s7] sm:$0xff]  ;;  %v1745_v26 = vld [vmem:[%s10112_s5 + $0xb8] sm:$0xff] }
 0x2d7   : > { %1821 = vmatmul.f32.gmra.mxu2 %v1739_v56  ;;  %v1235_v52 = vmul.f32 %v1234_v47, %v1217_v61  ;;  %5474 = vrcp.f32 %v1198_v58  ;;  %v1224_v48 = vmul.f32 %v1223_v12, %v1217_v61  ;;  %v1210_v55 = vand.u32 2147483648, %v1198_v58  ;;  %v1746_v12 = vld [vmem:[%s10112_s5 + $0xc0] sm:$0xff] }
 0x2d8   : > { %v1208_v28 = vand.u32 2147483647, %v1198_v58  ;;  %vm1204_vm7 = vweird.f32 %v1198_v58  ;;  %v1188_v30 = vmul.f32 %v1187_v9, %v6802_v32  ;;  %v1749_v9 = vld [vmem:[%s10112_s5 + $0xd8] sm:$0xff] }
 0x2d9   : > { %v1236_v24 = vadd.f32 0.4994258, %v1235_v52  ;;  %v1225_v10 = vadd.f32 0.18741608, %v1224_v48  ;;  %v1211_v22 = vor.u32 1.1754944e-38, %v1210_v55  ;;  %v1748_v48 = vld [vmem:[%s10112_s5 + $0xd0] sm:$0xff] }
 0x2da   : > { %v6828_v11 = vpop.f32.mrf.mxu2  ;;  %vm1209_vm9 = vcmp.eq.f32.partialorder %v1208_v28, 8.507059e+37  ;;  %v3442_v55 = vld [vmem:[%s10114_s7 + $0x28] sm:$0xff]  ;;  %v3443_v28 = vld [vmem:[%s10114_s7 + $0x30] sm:$0xff] }
 0x2db   : > { %v1237_v21 = vmul.f32 %v1236_v24, %v1217_v61  ;;  %v1226_v54 = vmul.f32 %v1225_v10, %v1217_v61  ;;  %v871_v61 = vmul.f32 0.5, %v6796_v37  ;;  %v1743_v37 = vld [vmem:[%s10112_s5 + $0xa8] sm:$0xff] }
 0x2dc   : > { %v3438_v24 = vld [vmem:[%s10114_s7 + $0x8] sm:$0xff] }
 0x2dd   : > { %v1238_v15 = vadd.f32 1.0, %v1237_v21  ;;  %v5475_v14 = vpop.eup %5474  ;;  %v1227_v31 = vadd.f32 1.1283791, %v1226_v54  ;;  %v3439_v21 = vld [vmem:[%s10114_s7 + $0x10] sm:$0xff] }
 0x2de   : > { %v1200_v4 = vmul.f32 %v5475_v14, %v1198_v58  ;;  %vm1205_vm6 = vweird.f32 %v5475_v14  ;;  %v1744_v58 = vld [vmem:[%s10112_s5 + $0xb0] sm:$0xff] }
 0x2df   : > { %1824 = vmatmul.f32.gmra.mxu2 %v1740_v43  ;;  %5476 = vrcp.f32 %v1238_v15  ;;  %vm1206_vm8 = vmor %vm1204_vm7, %vm1205_vm6  ;;  %v1250_v57 = vand.u32 2147483648, %v1238_v15  ;;  %v1248_v32 = vand.u32 2147483647, %v1238_v15  ;;  %vm1244_vm11 = vweird.f32 %v1238_v15 }
 0x2e0   : > { %v1201_v63 = vsub.f32 1.0, %v1200_v4  ;;  %v1228_v34 = vmul.f32 %v1227_v31, %v6814_v36  ;;  %v3441_v4 = vld [vmem:[%s10114_s7 + $0x20] sm:$0xff] }
 0x2e1   : > { %v1251_v23 = vor.u32 1.1754944e-38, %v1250_v57  ;;  %vm1249_vm13 = vcmp.eq.f32.partialorder %v1248_v32, 8.507059e+37 }
 0x2e2   : > { %v6833_v13 = vpop.f32.mrf.mxu2  ;;  %v1202_v35 = vmul.f32 %v5475_v14, %v1201_v63 }
 0x2e4   : > { %v1203_v19 = vadd.f32 %v5475_v14, %v1202_v35  ;;  %v1750_v35 = vld [vmem:[%s10112_s5 + $0xe0] sm:$0xff] }
 0x2e5   : > { %v5477_v6 = vpop.eup %5476 }
 0x2e6   : > { %v1207_v3 = vsel %vm1206_vm8, %v5475_v14, %v1203_v19  ;;  %v1240_v38 = vmul.f32 %v5477_v6, %v1238_v15  ;;  %vm1245_vm10 = vweird.f32 %v5477_v6  ;;  %v1747_v15 = vld [vmem:[%s10112_s5 + $0xc8] sm:$0xff]  ;;  %v3440_v14 = vld [vmem:[%s10114_s7 + $0x18] sm:$0xff] }
 0x2e7   : > { %1827 = vmatmul.f32.gmra.mxu2 %v1741_v51  ;;  %v1212_v59 = vsel %vm1209_vm9, %v1211_v22, %v1207_v3  ;;  %vm1246_vm12 = vmor %vm1244_vm11, %vm1245_vm10 }
 0x2e8   : > { %v1213_v0 = vmul.f32 %v1212_v59, %v1188_v30  ;;  %v1241_v44 = vsub.f32 1.0, %v1240_v38  ;;  %v1751_v30 = vld [vmem:[%s10112_s5 + $0xe8] sm:$0xff]  ;;  %v3444_v59 = vld [vmem:[%s10114_s7 + $0x38] sm:$0xff] }
 0x2ea   : > { %v6839_v17 = vpop.f32.mrf.mxu2  ;;  %v5260_v1 = vclamps-f32 %v1213_v0, 1.0  ;;  %v1242_v42 = vmul.f32 %v5477_v6, %v1241_v44 }
 0x2eb   : > { %10256 = vst [vmem:[#allocation12_spill] sm:$0xff] %v6839_v17 }
 0x2ec   : > { %v1543_v25 = vadd.f32 1.0, %v5260_v1  ;;  %v1243_v27 = vadd.f32 %v5477_v6, %v1242_v42 }
 0x2ee   : > { %v1559_v39 = vmul.f32 %v1543_v25, %v871_v61  ;;  %v1247_v33 = vsel %vm1246_vm12, %v5477_v6, %v1243_v27 }
 0x2ef   : > { %1830 = vmatmul.f32.gmra.mxu2 %v1742_v60  ;;  %v1252_v18 = vsel %vm1249_vm13, %v1251_v23, %v1247_v33  ;;  %v1752_v60 = vld [vmem:[%s10112_s5 + $0xf0] sm:$0xff]  ;;  %v3445_v23 = vld [vmem:[%s10114_s7 + $0x40] sm:$0xff] }
 0x2f0   : > { %5276 = vmatmul.msk.f32.gmra.mxu1 %vm1576_vm3, %v1559_v39  ;;  %v1253_v46 = vmul.f32 %v1252_v18, %v1228_v34 }
 0x2f2   : > { %v6847_v20 = vpop.f32.mrf.mxu2  ;;  %v5261_v56 = vclamps-f32 %v1253_v46, 1.0 }
 0x2f4   : > { %v1544_v47 = vadd.f32 1.0, %v5261_v56 }
 0x2f6   : > { %v1560_v50 = vmul.f32 %v1544_v47, %v872_v7 }
 0x2f7   : > { %1833 = vmatmul.f32.gmra.mxu2 %v1743_v37 }
 0x2f8   : > { %5277 = vmatmul.msk.f32.gmra.mxu1 %vm1576_vm3, %v1560_v50  ;;  %v1753_v50 = vld [vmem:[%s10112_s5 + $0xf8] sm:$0xff] }
 0x2fa   : > { %v6854_v36 = vpop.f32.mrf.mxu2 }
 0x2ff   : > { %1836 = vmatmul.f32.gmra.mxu2 %v1744_v58 }
 0x300   : > { %3485 = vmatmul.f32.vlgmr.msrb.gmra.mxu1 %v3437_v16 }
 0x302   : > { %v6862_v52 = vpop.f32.mrf.mxu2 }
 0x307   : > { %1839 = vmatmul.f32.gmra.mxu2 %v1745_v26 }
 0x308   : > { %3488 = vmatmul.f32.gmra.mxu1 %v3438_v24 }
 0x30a   : > { %v6870_v29 = vpop.f32.mrf.mxu2 }
 0x30f   : > { %1842 = vmatmul.f32.gmra.mxu2 %v1746_v12 }
 0x310   : > { %3491 = vmatmul.f32.gmra.mxu1 %v3439_v21 }
 0x312   : > { %v6878_v43 = vpop.f32.mrf.mxu2 }
 0x317   : > { %1845 = vmatmul.f32.gmra.mxu2 %v1747_v15 }
 0x318   : > { %3494 = vmatmul.f32.gmra.mxu1 %v3440_v14  ;;  %v3446_v14 = vld [vmem:[%s10114_s7 + $0x48] sm:$0xff] }
 0x31a   : > { %v6886_v5 = vpop.f32.mrf.mxu2 }
 0x31f   : > { %1848 = vmatmul.f32.gmra.mxu2 %v1748_v48 }
 0x320   : > { %3497 = vmatmul.f32.gmra.mxu1 %v3441_v4 }
 0x322   : > { %v6894_v63 = vpop.f32.mrf.mxu2 }
 0x323   : > { %v6924_v54 = vmul.f32 0.70710677, %v6894_v63 }
 0x325   : > { %v2331_v44 = vmul.f32 %v6924_v54, %v6924_v54 }
 0x327   : > { %1851 = vmatmul.f32.gmra.mxu2 %v1749_v9  ;;  %v6949_v25 = vmin.f32 %v2331_v44, 16.0 }
 0x328   : > { %3500 = vmatmul.f32.gmra.mxu1 %v3442_v55 }
 0x329   : > { %v2344_v56 = vmul.f32 3.8918573e-05, %v6949_v25 }
 0x32a   : > { %v6902_v10 = vpop.f32.mrf.mxu2 }
 0x32b   : > { %v6911_v51 = vmul.f32 0.70710677, %v6902_v10  ;;  %v2345_v12 = vadd.f32 0.001143296, %v2344_v56  ;;  %v2333_v56 = vmul.f32 2.1237322e-06, %v6949_v25 }
 0x32d   : > { %v2371_v6 = vmul.f32 %v6911_v51, %v6911_v51 }
 0x32f   : > { %1854 = vmatmul.f32.gmra.mxu2 %v1750_v35  ;;  %v6931_v38 = vmin.f32 %v2371_v6, 16.0 }
 0x330   : > { %3503 = vmatmul.f32.gmra.mxu1 %v3443_v28 }
 0x331   : > { %v2384_v42 = vmul.f32 3.8918573e-05, %v6931_v38  ;;  %v2373_v9 = vmul.f32 2.1237322e-06, %v6931_v38 }
 0x332   : > { %v6913_v19 = vpop.f32.mrf.mxu2 }
 0x333   : > { %v6918_v22 = vmul.f32 0.70710677, %v6913_v19  ;;  %v2385_v39 = vadd.f32 0.001143296, %v2384_v42 }
 0x335   : > { %v2411_v3 = vmul.f32 %v6918_v22, %v6918_v22  ;;  %v2386_v58 = vmul.f32 %v2385_v39, %v6931_v38 }
 0x337   : > { %1857 = vmatmul.f32.gmra.mxu2 %v1751_v30  ;;  %v6933_v0 = vmin.f32 %v2411_v3, 16.0  ;;  %v2387_v35 = vadd.f32 0.014752088, %v2386_v58  ;;  %v3447_v58 = vld [vmem:[%s10114_s7 + $0x50] sm:$0xff] }
 0x338   : > { %3506 = vmatmul.f32.gmra.mxu1 %v3444_v59  ;;  %v2346_v59 = vmul.f32 %v2345_v12, %v6949_v25 }
 0x339   : > { %v2424_v57 = vmul.f32 3.8918573e-05, %v6933_v0  ;;  %v2413_v37 = vmul.f32 2.1237322e-06, %v6933_v0 }
 0x33a   : > { %v6937_v31 = vpop.f32.mrf.mxu2 }
 0x33b   : > { %v6941_v1 = vmul.f32 0.70710677, %v6937_v31  ;;  %v2425_v61 = vadd.f32 0.001143296, %v2424_v57  ;;  %v2414_v21 = vadd.f32 0.00028619796, %v2413_v37 }
 0x33d   : > { %v2451_v32 = vmul.f32 %v6941_v1, %v6941_v1  ;;  %v2426_v34 = vmul.f32 %v2425_v61, %v6933_v0  ;;  %v2415_v44 = vmul.f32 %v2414_v21, %v6933_v0 }
 0x33f   : > { %v6951_v27 = vmin.f32 %v2451_v32, 16.0  ;;  %1860 = vmatmul.f32.gmra.mxu2 %v1752_v60  ;;  %v2427_v18 = vadd.f32 0.014752088, %v2426_v34  ;;  %v2374_v34 = vadd.f32 0.00028619796, %v2373_v9 }
 0x340   : > { %3509 = vmatmul.f32.gmra.mxu1 %v3445_v23  ;;  %v2388_v23 = vmul.f32 %v2387_v35, %v6931_v38  ;;  %v2334_v35 = vadd.f32 0.00028619796, %v2333_v56 }
 0x341   : > { %v2464_v33 = vmul.f32 3.8918573e-05, %v6951_v27  ;;  %v2428_v47 = vmul.f32 %v2427_v18, %v6933_v0  ;;  %v2453_v55 = vmul.f32 2.1237322e-06, %v6951_v27 }
 0x342   : > { %v6958_v46 = vpop.f32.mrf.mxu2  ;;  %v2335_v56 = vmul.f32 %v2334_v35, %v6949_v25 }
 0x343   : > { %v6963_v7 = vmul.f32 0.70710677, %v6958_v46  ;;  %v2465_v26 = vadd.f32 0.001143296, %v2464_v33  ;;  %v2429_v24 = vadd.f32 0.112945676, %v2428_v47 }
 0x344   : > { %v2454_v32 = vadd.f32 0.00028619796, %v2453_v55  ;;  %v2347_v47 = vadd.f32 0.014752088, %v2346_v59 }
 0x345   : > { %v2491_v16 = vmul.f32 %v6963_v7, %v6963_v7  ;;  %v2466_v48 = vmul.f32 %v2465_v26, %v6951_v27  ;;  %v2430_v4 = vmul.f32 %v2429_v24, %v6933_v0 }
 0x346   : > { %v2455_v12 = vmul.f32 %v2454_v32, %v6951_v27 }
 0x347   : > { %v6972_v15 = vmin.f32 %v2491_v16, 16.0  ;;  %1863 = vmatmul.f32.gmra.mxu2 %v1753_v50  ;;  %v2467_v30 = vadd.f32 0.014752088, %v2466_v48  ;;  %v2431_v42 = vadd.f32 0.4994258, %v2430_v4  ;;  %v2375_v48 = vmul.f32 %v2374_v34, %v6931_v38 }
 0x348   : > { %3512 = vmatmul.f32.gmra.mxu1 %v3446_v14  ;;  %v2416_v50 = vadd.f32 0.0036580483, %v2415_v44  ;;  %v2389_v14 = vadd.f32 0.112945676, %v2388_v23 }
 0x349   : > { %v2493_v28 = vmul.f32 2.1237322e-06, %v6972_v15  ;;  %v2504_v6 = vmul.f32 3.8918573e-05, %v6972_v15  ;;  %v2468_v60 = vmul.f32 %v2467_v30, %v6951_v27  ;;  %v2432_v24 = vmul.f32 %v2431_v42, %v6933_v0 }
 0x34a   : > { %v6983_v3 = vpop.f32.mrf.mxu2  ;;  %v2348_v30 = vmul.f32 %v2347_v47, %v6949_v25  ;;  %v2417_v59 = vmul.f32 %v2416_v50, %v6933_v0  ;;  %v2390_v23 = vmul.f32 %v2389_v14, %v6931_v38  ;;  %v2376_v34 = vadd.f32 0.0036580483, %v2375_v48 }
 0x34b   : > { %v2494_v57 = vadd.f32 0.00028619796, %v2493_v28  ;;  %v6989_v61 = vmul.f32 0.70710677, %v6983_v3  ;;  %v2505_v33 = vadd.f32 0.001143296, %v2504_v6 }
 0x34c   : > { %v2469_v18 = vadd.f32 0.112945676, %v2468_v60  ;;  %v2456_v60 = vadd.f32 0.0036580483, %v2455_v12  ;;  %v2349_v50 = vadd.f32 0.112945676, %v2348_v30 }
 0x34d   : > { %v2495_v39 = vmul.f32 %v2494_v57, %v6972_v15  ;;  %v2531_v37 = vmul.f32 %v6989_v61, %v6989_v61  ;;  %v2506_v16 = vmul.f32 %v2505_v33, %v6972_v15  ;;  %v7011_v57 = vadd.f32 1.0, %v2432_v24 }
 0x34e   : > { %v2470_v26 = vmul.f32 %v2469_v18, %v6951_v27  ;;  %v2457_v12 = vmul.f32 %v2456_v60, %v6951_v27  ;;  %v2391_v48 = vadd.f32 0.4994258, %v2390_v23  ;;  %v2350_v30 = vmul.f32 %v2349_v50, %v6949_v25 }
 0x34f   : > { %v7003_v21 = vmin.f32 %v2531_v37, 16.0  ;;  %v2496_v4 = vadd.f32 0.0036580483, %v2495_v39  ;;  %v2507_v9 = vadd.f32 0.014752088, %v2506_v16  ;;  %v3448_v16 = vld [vmem:[%s10114_s7 + $0x58] sm:$0xff]  ;;  %5478 = vrcp.f32 %v7011_v57 }
 0x350   : > { %v2471_v55 = vadd.f32 0.4994258, %v2470_v26  ;;  %3515 = vmatmul.f32.gmra.mxu1 %v3447_v58  ;;  %v2418_v58 = vadd.f32 0.05243302, %v2417_v59  ;;  %v2458_v60 = vadd.f32 0.05243302, %v2457_v12  ;;  %vm2439_vm3 = vweird.f32 %v7011_v57 }
 0x351   : > { %v2533_v28 = vmul.f32 2.1237322e-06, %v7003_v21  ;;  %v2544_v6 = vmul.f32 3.8918573e-05, %v7003_v21  ;;  %v2508_v44 = vmul.f32 %v2507_v9, %v6972_v15  ;;  %v2497_v39 = vmul.f32 %v2496_v4, %v6972_v15 }
 0x352   : > { %v2472_v32 = vmul.f32 %v2471_v55, %v6951_v27  ;;  %v2377_v4 = vmul.f32 %v2376_v34, %v6931_v38  ;;  %v2419_v59 = vmul.f32 %v2418_v58, %v6933_v0  ;;  %v7038_v34 = vmul.f32 0.70710677, %v6886_v5 }
 0x353   : > { %v2534_v42 = vadd.f32 0.00028619796, %v2533_v28  ;;  %v2545_v33 = vadd.f32 0.001143296, %v2544_v6  ;;  %v2509_v18 = vadd.f32 0.112945676, %v2508_v44 }
 0x354   : > { %v7018_v47 = vadd.f32 1.0, %v2472_v32  ;;  %v2498_v9 = vadd.f32 0.05243302, %v2497_v39  ;;  %v2336_v28 = vadd.f32 0.0036580483, %v2335_v56  ;;  %v2392_v32 = vmul.f32 %v2391_v48, %v6931_v38 }
 0x355   : > { %v2535_v37 = vmul.f32 %v2534_v42, %v7003_v21  ;;  %v2546_v26 = vmul.f32 %v2545_v33, %v7003_v21  ;;  %v2510_v24 = vmul.f32 %v2509_v18, %v6972_v15  ;;  %v7035_v23 = vpop.eup %5478  ;;  %v2378_v39 = vadd.f32 0.05243302, %v2377_v4 }
 0x356   : > { %5480 = vrcp.f32 %v7018_v47  ;;  %v2499_v33 = vmul.f32 %v2498_v9, %v6972_v15  ;;  %v7054_v4 = vadd.f32 1.0, %v2392_v32  ;;  %v2291_v9 = vmul.f32 %v7038_v34, %v7038_v34 }
 0x357   : > { %v2536_v14 = vadd.f32 0.0036580483, %v2535_v37  ;;  %v2547_v55 = vadd.f32 0.014752088, %v2546_v26  ;;  %v2511_v35 = vadd.f32 0.4994258, %v2510_v24  ;;  %v2337_v37 = vmul.f32 %v2336_v28, %v6949_v25 }
 0x358   : > { %3518 = vmatmul.f32.gmra.mxu1 %v3448_v16  ;;  %v2351_v16 = vadd.f32 0.4994258, %v2350_v30  ;;  %v2420_v26 = vadd.f32 0.18741608, %v2419_v59  ;;  %v3449_v24 = vld [vmem:[%s10114_s7 + $0x60] sm:$0xff]  ;;  %v2435_v28 = vmul.f32 %v7035_v23, %v7011_v57  ;;  %v2379_v30 = vmul.f32 %v2378_v39, %v6931_v38 }
 0x359   : > { %v2537_v6 = vmul.f32 %v2536_v14, %v7003_v21  ;;  %v2548_v44 = vmul.f32 %v2547_v55, %v7003_v21  ;;  %v2512_v42 = vmul.f32 %v2511_v35, %v6972_v15  ;;  %v2459_v14 = vmul.f32 %v2458_v60, %v6951_v27 }
 0x35a   : > { %v2500_v55 = vadd.f32 0.18741608, %v2499_v33  ;;  %v2421_v60 = vmul.f32 %v2420_v26, %v6933_v0  ;;  %v7066_v32 = vmul.f32 0.70710677, %v6839_v17  ;;  %v7077_v0 = vadd.f32 0.18741608, %v2379_v30 }
 0x35b   : > { %v2549_v18 = vadd.f32 0.112945676, %v2548_v44  ;;  %v2538_v50 = vadd.f32 0.05243302, %v2537_v6  ;;  %v7044_v58 = vadd.f32 1.0, %v2512_v42  ;;  %v2352_v44 = vmul.f32 %v2351_v16, %v6949_v25 }
 0x35c   : > { %v7041_v56 = vpop.eup %5480  ;;  %v2338_v6 = vadd.f32 0.05243302, %v2337_v37  ;;  %v2460_v33 = vadd.f32 0.18741608, %v2459_v14  ;;  %v2501_v39 = vmul.f32 %v2500_v55, %v6972_v15  ;;  %v2422_v14 = vadd.f32 1.1283791, %v2421_v60 }
 0x35d   : > { %v2550_v12 = vmul.f32 %v2549_v18, %v7003_v21  ;;  %5482 = vrcp.f32 %v7044_v58  ;;  %v2475_v48 = vmul.f32 %v7041_v56, %v7018_v47  ;;  %v2539_v59 = vmul.f32 %v2538_v50, %v7003_v21 }
 0x35e   : > { %5484 = vrcp.f32 %v7054_v4  ;;  %v2436_v50 = vsub.f32 1.0, %v2435_v28  ;;  %v7075_v16 = vmul.f32 %v2338_v6, %v6949_v25  ;;  %v2443_v15 = vand.u32 2147483647, %v7011_v57 }
 0x35f   : > { %v2551_v35 = vadd.f32 0.4994258, %v2550_v12  ;;  %v2476_v18 = vsub.f32 1.0, %v2475_v48  ;;  %v7069_v12 = vmin.f32 %v2291_v9, 16.0  ;;  %v2540_v26 = vadd.f32 0.18741608, %v2539_v59 }
 0x360   : > { %3521 = vmatmul.f32.gmra.mxu1 %v3449_v24  ;;  %v3450_v48 = vld [vmem:[%s10114_s7 + $0x68] sm:$0xff]  ;;  %v2461_v9 = vmul.f32 %v2460_v33, %v6951_v27  ;;  %vm2479_vm14 = vweird.f32 %v7018_v47  ;;  %v2502_v6 = vadd.f32 1.1283791, %v2501_v39  ;;  %v2483_v30 = vand.u32 2147483647, %v7018_v47 }
 0x361   : > { %v2552_v42 = vmul.f32 %v2551_v35, %v7003_v21  ;;  %v7079_v35 = vadd.f32 1.0, %v2352_v44  ;;  %v2477_v28 = vmul.f32 %v7041_v56, %v2476_v18  ;;  %v2485_v59 = vand.u32 2147483648, %v7018_v47 }
 0x362   : > { %v2437_v44 = vmul.f32 %v7035_v23, %v2436_v50  ;;  %v2525_v27 = vand.u32 2147483648, %v7044_v58  ;;  %vm2480_vm15 = vweird.f32 %v7041_v56  ;;  %vm2519_vm1 = vweird.f32 %v7044_v58 }
 0x363   : > { %v7072_v37 = vadd.f32 1.0, %v2552_v42  ;;  %v5483_v24 = vpop.eup %5482  ;;  %v2541_v42 = vmul.f32 %v2540_v26, %v7003_v21  ;;  %v2523_v33 = vand.u32 2147483647, %v7044_v58  ;;  %v2445_v18 = vand.u32 2147483648, %v7011_v57  ;;  %vm7107_vm5 = vmor %vm2479_vm14, %vm2480_vm15 }
 0x364   : > { %v2515_v55 = vmul.f32 %v5483_v24, %v7044_v58  ;;  %v7094_v60 = vpop.eup %5484  ;;  %vm2520_vm2 = vweird.f32 %v5483_v24  ;;  %v2462_v39 = vadd.f32 1.1283791, %v2461_v9  ;;  %v2478_v50 = vadd.f32 %v7041_v56, %v2477_v28 }
 0x365   : > { %5486 = vrcp.f32 %v7072_v37  ;;  %vm2440_vm4 = vweird.f32 %v7035_v23  ;;  %v2503_v26 = vmul.f32 %v2502_v6, %v6963_v7  ;;  %vm7111_vm6 = vcmp.eq.f32.partialorder %v2483_v30, 8.507059e+37  ;;  %vm7121_vm7 = vmor %vm2519_vm1, %vm2520_vm2  ;;  %v3451_v30 = vld [vmem:[%s10114_s7 + $0x70] sm:$0xff] }
 0x366   : > { %v2516_v8 = vsub.f32 1.0, %v2515_v55  ;;  %v2486_v45 = vor.u32 1.1754944e-38, %v2485_v59  ;;  %v2542_v9 = vadd.f32 1.1283791, %v2541_v42  ;;  %v2526_v47 = vor.u32 1.1754944e-38, %v2525_v27  ;;  %vm7135_vm10 = vmor %vm2439_vm3, %vm2440_vm4 }
 0x367   : > { %v2438_v6 = vadd.f32 %v7035_v23, %v2437_v44  ;;  %vm2559_vm8 = vweird.f32 %v7072_v37  ;;  %v2565_v59 = vand.u32 2147483648, %v7072_v37  ;;  %vm2524_vm9 = vcmp.eq.f32.partialorder %v2523_v33, 8.507059e+37 }
 0x368   : > { %3524 = vmatmul.f32.gmra.mxu1 %v3450_v48  ;;  %v2517_v41 = vmul.f32 %v5483_v24, %v2516_v8  ;;  %v2395_v8 = vmul.f32 %v7094_v60, %v7054_v4  ;;  %v2563_v44 = vand.u32 2147483647, %v7072_v37  ;;  %v2482_v40 = vsel %vm7107_vm5, %v7041_v56, %v2478_v50  ;;  %v7172_v48 = vpop.f32.mrf.mxu1 }
 0x369   : > { %v2463_v62 = vmul.f32 %v2462_v39, %v6941_v1  ;;  %vm7146_vm12 = vcmp.eq.f32.partialorder %v2443_v15, 8.507059e+37  ;;  %v2446_v57 = vor.u32 1.1754944e-38, %v2445_v18  ;;  %v2442_v49 = vsel %vm7135_vm10, %v7035_v23, %v2438_v6  ;;  %10269 = vst [vmem:[#allocation13_spill] sm:$0xff] %v7172_v48 }
 0x36a   : > { %v2518_v42 = vadd.f32 %v5483_v24, %v2517_v41  ;;  %v2396_v17 = vsub.f32 1.0, %v2395_v8  ;;  %v2423_v56 = vmul.f32 %v2422_v14, %v6918_v22  ;;  %v2487_v15 = vsel %vm7111_vm6, %v2486_v45, %v2482_v40 }
 0x36b   : > { %v5487_v21 = vpop.eup %5486  ;;  %5488 = vrcp.f32 %v7079_v35  ;;  %v2543_v18 = vmul.f32 %v2542_v9, %v6989_v61  ;;  %vm2564_vm3 = vcmp.eq.f32.partialorder %v2563_v44, 8.507059e+37  ;;  %v7165_v50 = vmul.f32 0.70710677, %v6862_v52 }
 0x36c   : > { %v2555_v28 = vmul.f32 %v5487_v21, %v7072_v37  ;;  %vm2560_vm11 = vweird.f32 %v5487_v21  ;;  %v2522_v41 = vsel %vm7121_vm7, %v5483_v24, %v2518_v42  ;;  %v2566_v24 = vor.u32 1.1754944e-38, %v2565_v59 }
 0x36d   : > { %vm7156_vm13 = vmor %vm2559_vm8, %vm2560_vm11  ;;  %v2381_v22 = vmul.f32 %v7077_v0, %v6931_v38  ;;  %v2447_v37 = vsel %vm7146_vm12, %v2446_v57, %v2442_v49  ;;  %v2304_v14 = vmul.f32 3.8918573e-05, %v7069_v12  ;;  %v7175_v40 = vmul.f32 0.70710677, %v6878_v43  ;;  %v3452_v49 = vld [vmem:[%s10114_s7 + $0x78] sm:$0xff] }
 0x36e   : > { %v2556_v27 = vsub.f32 1.0, %v2555_v28  ;;  %v2527_v28 = vsel %vm2524_vm9, %v2526_v47, %v2522_v41  ;;  %v2488_v45 = vmul.f32 %v2487_v15, %v2463_v62  ;;  %v2397_v61 = vmul.f32 %v7094_v60, %v2396_v17 }
 0x36f   : > { %v2528_v23 = vmul.f32 %v2527_v28, %v2503_v26  ;;  %v2293_v26 = vmul.f32 2.1237322e-06, %v7069_v12  ;;  %v2340_v38 = vadd.f32 0.18741608, %v7075_v16  ;;  %v2448_v9 = vmul.f32 %v2447_v37, %v2423_v56 }
 0x370   : > { %3527 = vmatmul.f32.gmra.mxu1 %v3451_v30  ;;  %v2557_v53 = vmul.f32 %v5487_v21, %v2556_v27  ;;  %vm2399_vm14 = vweird.f32 %v7054_v4  ;;  %v7189_v62 = vmul.f32 0.70710677, %v6870_v29  ;;  %v2382_v17 = vadd.f32 1.1283791, %v2381_v22  ;;  %v7218_v22 = vpop.f32.mrf.mxu1 }
 0x371   : > { %v5299_v8 = vclamps-f32 %v2528_v23, 1.0  ;;  %v7186_v7 = vpop.eup %5488  ;;  %vm2400_vm15 = vweird.f32 %v7094_v60  ;;  %v5298_v47 = vclamps-f32 %v2488_v45, 1.0  ;;  %v2398_v6 = vadd.f32 %v7094_v60, %v2397_v61  ;;  %10272 = vst [vmem:[#allocation14_spill] sm:$0xff] %v7218_v22 }
 0x372   : > { %v2558_v39 = vadd.f32 %v5487_v21, %v2557_v53  ;;  %v2403_v30 = vand.u32 2147483647, %v7054_v4  ;;  %v2251_v59 = vmul.f32 %v7175_v40, %v7175_v40  ;;  %v2294_v42 = vadd.f32 0.00028619796, %v2293_v26  ;;  %vm7200_vm1 = vmor %vm2399_vm14, %vm2400_vm15 }
 0x373   : > { %v2341_v58 = vmul.f32 %v2340_v38, %v6949_v25  ;;  %v1881_v27 = vmul.f32 0.5, %v6958_v46  ;;  %v1882_v41 = vmul.f32 0.5, %v6983_v3  ;;  %v3225_v57 = vadd.f32 1.0, %v5299_v8 }
 0x374   : > { %v2562_v53 = vsel %vm7156_vm13, %v5487_v21, %v2558_v39  ;;  %v2305_v21 = vadd.f32 0.001143296, %v2304_v14  ;;  %v5297_v28 = vclamps-f32 %v2448_v9, 1.0  ;;  %v2383_v56 = vmul.f32 %v2382_v17, %v6911_v51  ;;  %v3453_v51 = vld [vmem:[%s10114_s7 + $0x80] sm:$0xff] }
 0x375   : > { %v2567_v0 = vsel %vm2564_vm3, %v2566_v24, %v2562_v53  ;;  %v2405_v1 = vand.u32 2147483648, %v7054_v4  ;;  %v2355_v25 = vmul.f32 %v7186_v7, %v7079_v35  ;;  %v3224_v15 = vadd.f32 1.0, %v5298_v47 }
 0x376   : > { %v2568_v55 = vmul.f32 %v2567_v0, %v2543_v18  ;;  %v2306_v46 = vmul.f32 %v2305_v21, %v7069_v12  ;;  %v2402_v18 = vsel %vm7200_vm1, %v7094_v60, %v2398_v6  ;;  %vm2404_vm2 = vcmp.eq.f32.partialorder %v2403_v30, 8.507059e+37 }
 0x377   : > { %v2295_v3 = vmul.f32 %v2294_v42, %v7069_v12  ;;  %v1880_v39 = vmul.f32 0.5, %v6937_v31  ;;  %v2406_v4 = vor.u32 1.1754944e-38, %v2405_v1  ;;  %v2356_v23 = vsub.f32 1.0, %v2355_v25 }
 0x378   : > { %3530 = vmatmul.f32.gmra.mxu1 %v3452_v49  ;;  %v5300_v16 = vclamps-f32 %v2568_v55, 1.0  ;;  %v3257_v37 = vmul.f32 %v3225_v57, %v1881_v27  ;;  %v3223_v14 = vadd.f32 1.0, %v5297_v28  ;;  %vm2359_vm4 = vweird.f32 %v7079_v35 }
 0x379   : > { %vm2360_vm5 = vweird.f32 %v7186_v7  ;;  %v2342_v60 = vadd.f32 1.1283791, %v2341_v58  ;;  %v1879_v53 = vmul.f32 0.5, %v6913_v19  ;;  %v2407_v45 = vsel %vm2404_vm2, %v2406_v4, %v2402_v18 }
 0x37a   : > { %v3226_v33 = vadd.f32 1.0, %v5300_v16  ;;  %v2357_v31 = vmul.f32 %v7186_v7, %v2356_v23  ;;  %v3256_v61 = vmul.f32 %v3224_v15, %v1880_v39  ;;  %v2408_v26 = vmul.f32 %v2407_v45, %v2383_v56  ;;  %vm7235_vm6 = vmor %vm2359_vm4, %vm2360_vm5 }
 0x37b   : > { %v2363_v38 = vand.u32 2147483647, %v7079_v35  ;;  %v2307_v49 = vadd.f32 0.014752088, %v2306_v46  ;;  %v7226_v0 = vmul.f32 0.70710677, %v6847_v20  ;;  %v2171_v8 = vmul.f32 %v7165_v50, %v7165_v50  ;;  %v7266_v46 = vpop.f32.mrf.mxu1 }
 0x37c   : > { %v3258_v24 = vmul.f32 %v3226_v33, %v1882_v41  ;;  %v7229_v55 = vmul.f32 0.70710677, %v6854_v36  ;;  %v2365_v9 = vand.u32 2147483648, %v7079_v35  ;;  %v2296_v17 = vadd.f32 0.0036580483, %v2295_v3  ;;  %v3454_v41 = vld [vmem:[%s10114_s7 + $0x88] sm:$0xff] }
 0x37d   : > { %v3255_v21 = vmul.f32 %v3223_v14, %v1879_v53  ;;  %v5296_v16 = vclamps-f32 %v2408_v26, 1.0  ;;  %v2358_v47 = vadd.f32 %v7186_v7, %v2357_v31  ;;  %v2211_v6 = vmul.f32 %v7189_v62, %v7189_v62  ;;  %10275 = vst [vmem:[#allocation15_spill] sm:$0xff] %v7266_v46 }
 0x37e   : > { %3275 = vmatpush.msrb.mxu3 %v3258_v24  ;;  %v7243_v30 = vmin.f32 %v2251_v59, 16.0  ;;  %v2343_v42 = vmul.f32 %v2342_v60, %v6924_v54  ;;  %v1878_v58 = vmul.f32 0.5, %v6902_v10  ;;  %vm2364_vm7 = vcmp.eq.f32.partialorder %v2363_v38, 8.507059e+37 }
 0x37f   : > { %v3222_v27 = vadd.f32 1.0, %v5296_v16  ;;  %v2362_v35 = vsel %vm7235_vm6, %v7186_v7, %v2358_v47  ;;  %v2308_v44 = vmul.f32 %v2307_v49, %v7069_v12  ;;  %v2366_v33 = vor.u32 1.1754944e-38, %v2365_v9 }
 0x380   : > { %3533 = vmatmul.f32.gmra.mxu1 %v3453_v51  ;;  %3276 = vmatpush.msrb.mxu3 %v3257_v37  ;;  %v2131_v59 = vmul.f32 %v7229_v55, %v7229_v55  ;;  %v2253_v54 = vmul.f32 2.1237322e-06, %v7243_v30  ;;  %v2297_v10 = vmul.f32 %v2296_v17, %v7069_v12  ;;  %v2051_v28 = vmul.f32 %v7066_v32, %v7066_v32 }
 0x381   : > { %v3254_v57 = vmul.f32 %v3222_v27, %v1878_v58  ;;  %v7260_v7 = vmin.f32 %v2171_v8, 16.0  ;;  %v7262_v56 = vmin.f32 %v2211_v6, 16.0  ;;  %v2367_v1 = vsel %vm2364_vm7, %v2366_v33, %v2362_v35 }
 0x382   : > { %3277 = vmatpush.msrb.mxu3 %v3256_v61  ;;  %v2091_v25 = vmul.f32 %v7226_v0, %v7226_v0  ;;  %v2368_v24 = vmul.f32 %v2367_v1, %v2343_v42  ;;  %v2309_v15 = vadd.f32 0.112945676, %v2308_v44  ;;  %v7270_v39 = vmin.f32 %v2131_v59, 16.0 }
 0x383   : > { %v2173_v18 = vmul.f32 2.1237322e-06, %v7260_v7  ;;  %v2213_v3 = vmul.f32 2.1237322e-06, %v7262_v56  ;;  %v2254_v51 = vadd.f32 0.00028619796, %v2253_v54 }
 0x384   : > { %3278 = vmatpush.msrb.mxu3 %v3255_v21  ;;  %v2298_v4 = vadd.f32 0.05243302, %v2297_v10  ;;  %v5295_v23 = vclamps-f32 %v2368_v24, 1.0  ;;  %v7273_v37 = vmul.f32 0.70710677, %v6823_v2  ;;  %v7278_v60 = vmin.f32 %v2051_v28, 16.0 }
 0x385   : > { %v7276_v14 = vmul.f32 0.70710677, %v6833_v13  ;;  %v2310_v53 = vmul.f32 %v2309_v15, %v7069_v12  ;;  %v7281_v45 = vmin.f32 %v2091_v25, 16.0  ;;  %v2133_v31 = vmul.f32 2.1237322e-06, %v7270_v39  ;;  %v7307_v15 = vpop.f32.mrf.mxu1 }
 0x386   : > { %3279 = vmatpush.msrb.mxu3 %v3254_v57  ;;  %v1877_v61 = vmul.f32 0.5, %v6894_v63  ;;  %v3221_v26 = vadd.f32 1.0, %v5295_v23  ;;  %v2174_v38 = vadd.f32 0.00028619796, %v2173_v18  ;;  %v2214_v49 = vadd.f32 0.00028619796, %v2213_v3 }
 0x387   : > { %v2311_v8 = vadd.f32 0.4994258, %v2310_v53  ;;  %v2255_v19 = vmul.f32 %v2254_v51, %v7243_v30  ;;  %v2299_v9 = vmul.f32 %v2298_v4, %v7069_v12  ;;  %v2264_v21 = vmul.f32 3.8918573e-05, %v7243_v30  ;;  %10276 = vst [vmem:[#allocation16_spill] sm:$0xff] %v7307_v15 }
 0x388   : > { %3536 = vmatmul.f32.gmra.mxu1 %v3454_v41  ;;  %v3253_v17 = vmul.f32 %v3221_v26, %v1877_v61  ;;  %v1931_v16 = vmul.f32 %v7273_v37, %v7273_v37  ;;  %v7291_v47 = vmul.f32 0.70710677, %v6828_v11  ;;  %v2011_v63 = vmul.f32 %v7276_v14, %v7276_v14 }
 0x389   : > { %v2312_v6 = vmul.f32 %v2311_v8, %v7069_v12  ;;  %v2053_v42 = vmul.f32 2.1237322e-06, %v7278_v60  ;;  %v2093_v58 = vmul.f32 2.1237322e-06, %v7281_v45  ;;  %v2265_v27 = vadd.f32 0.001143296, %v2264_v21 }
 0x38a   : > { %3280 = vmatpush.msrb.mxu3 %v3253_v17  ;;  %v2134_v35 = vadd.f32 0.00028619796, %v2133_v31  ;;  %v2175_v44 = vmul.f32 %v2174_v38, %v7260_v7  ;;  %v2215_v41 = vmul.f32 %v2214_v49, %v7262_v56  ;;  %v2256_v59 = vadd.f32 0.0036580483, %v2255_v19 }
 0x38b   : > { %v2313_v33 = vadd.f32 1.0, %v2312_v6  ;;  %v2300_v54 = vadd.f32 0.18741608, %v2299_v9  ;;  %v2266_v10 = vmul.f32 %v2265_v27, %v7243_v30  ;;  %v7301_v57 = vmin.f32 %v1931_v16, 16.0 }
 0x38c   : > { %v1971_v28 = vmul.f32 %v7291_v47, %v7291_v47  ;;  %v7305_v1 = vmin.f32 %v2011_v63, 16.0  ;;  %v2054_v25 = vadd.f32 0.00028619796, %v2053_v42  ;;  %v2094_v24 = vadd.f32 0.00028619796, %v2093_v58 }
 0x38d   : > { %5490 = vrcp.f32 %v2313_v33  ;;  %v2224_v18 = vmul.f32 3.8918573e-05, %v7262_v56  ;;  %v2135_v3 = vmul.f32 %v2134_v35, %v7270_v39  ;;  %v2176_v51 = vadd.f32 0.0036580483, %v2175_v44 }
 0x38e   : > { %v2216_v4 = vadd.f32 0.0036580483, %v2215_v41  ;;  %v2267_v23 = vadd.f32 0.014752088, %v2266_v10  ;;  %v2257_v53 = vmul.f32 %v2256_v59, %v7243_v30  ;;  %v2301_v31 = vmul.f32 %v2300_v54, %v7069_v12 }
 0x38f   : > { %v1933_v61 = vmul.f32 2.1237322e-06, %v7301_v57  ;;  %v7314_v26 = vmin.f32 %v1971_v28, 16.0  ;;  %v2013_v38 = vmul.f32 2.1237322e-06, %v7305_v1  ;;  %v2055_v8 = vmul.f32 %v2054_v25, %v7278_v60 }
 0x390   : > { %v2268_v49 = vmul.f32 %v2267_v23, %v7243_v30  ;;  %v2095_v19 = vmul.f32 %v2094_v24, %v7281_v45  ;;  %v2225_v9 = vadd.f32 0.001143296, %v2224_v18  ;;  %v2184_v17 = vmul.f32 3.8918573e-05, %v7260_v7 }
 0x391   : > { %v2136_v16 = vadd.f32 0.0036580483, %v2135_v3  ;;  %v2177_v63 = vmul.f32 %v2176_v51, %v7260_v7  ;;  %v2217_v12 = vmul.f32 %v2216_v4, %v7262_v56  ;;  %v2258_v42 = vadd.f32 0.05243302, %v2257_v53  ;;  %v7328_v51 = vpop.f32.mrf.mxu1 }
 0x392   : > { %v2269_v6 = vadd.f32 0.112945676, %v2268_v49  ;;  %v2302_v58 = vadd.f32 1.1283791, %v2301_v31  ;;  %vm2319_vm8 = vweird.f32 %v2313_v33  ;;  %v2325_v35 = vand.u32 2147483648, %v2313_v33  ;;  %10277 = vst [vmem:[#allocation17_spill] sm:$0xff] %v7328_v51 }
 0x393   : > { %v5491_v21 = vpop.eup %5490  ;;  %v2226_v41 = vmul.f32 %v2225_v9, %v7262_v56  ;;  %v2185_v59 = vadd.f32 0.001143296, %v2184_v17  ;;  %v2323_v10 = vand.u32 2147483647, %v2313_v33  ;;  %v2144_v28 = vmul.f32 3.8918573e-05, %v7270_v39 }
 0x394   : > { %v2315_v27 = vmul.f32 %v5491_v21, %v2313_v33  ;;  %v2270_v44 = vmul.f32 %v2269_v6, %v7243_v30  ;;  %vm2320_vm9 = vweird.f32 %v5491_v21  ;;  %v2137_v25 = vmul.f32 %v2136_v16, %v7270_v39 }
 0x395   : > { %v2178_v24 = vadd.f32 0.05243302, %v2177_v63  ;;  %v2186_v3 = vmul.f32 %v2185_v59, %v7260_v7  ;;  %v2218_v4 = vadd.f32 0.05243302, %v2217_v12  ;;  %v2259_v23 = vmul.f32 %v2258_v42, %v7243_v30  ;;  %vm7332_vm10 = vmor %vm2319_vm8, %vm2320_vm9 }
 0x396   : > { %v2316_v54 = vsub.f32 1.0, %v2315_v27  ;;  %v2271_v18 = vadd.f32 0.4994258, %v2270_v44  ;;  %v2227_v31 = vadd.f32 0.014752088, %v2226_v41  ;;  %v2326_v9 = vor.u32 1.1754944e-38, %v2325_v35 }
 0x397   : > { %v2187_v16 = vadd.f32 0.014752088, %v2186_v3  ;;  %v2145_v63 = vadd.f32 0.001143296, %v2144_v28  ;;  %v2303_v6 = vmul.f32 %v2302_v58, %v7038_v34  ;;  %vm2324_vm11 = vcmp.eq.f32.partialorder %v2323_v10, 8.507059e+37 }
 0x398   : > { %v2317_v53 = vmul.f32 %v5491_v21, %v2316_v54  ;;  %v2272_v17 = vmul.f32 %v2271_v18, %v7243_v30  ;;  %v2228_v12 = vmul.f32 %v2227_v31, %v7262_v56  ;;  %v2096_v44 = vadd.f32 0.0036580483, %v2095_v19 }
 0x399   : > { %v2188_v33 = vmul.f32 %v2187_v16, %v7260_v7  ;;  %v2146_v41 = vmul.f32 %v2145_v63, %v7270_v39  ;;  %v2138_v59 = vadd.f32 0.05243302, %v2137_v25  ;;  %v2260_v54 = vadd.f32 0.18741608, %v2259_v23 }
 0x39a   : > { %v2318_v27 = vadd.f32 %v5491_v21, %v2317_v53  ;;  %v7339_v42 = vadd.f32 1.0, %v2272_v17  ;;  %v2229_v18 = vadd.f32 0.112945676, %v2228_v12  ;;  %v7345_v28 = vadd.f32 0.00028619796, %v1933_v61 }
 0x39b   : > { %v1973_v34 = vmul.f32 2.1237322e-06, %v7314_v26  ;;  %v2014_v19 = vadd.f32 0.00028619796, %v2013_v38  ;;  %v2179_v10 = vmul.f32 %v2178_v24, %v7260_v7  ;;  %v2219_v3 = vmul.f32 %v2218_v4, %v7262_v56  ;;  %v3455_v38 = vld [vmem:[%s10114_s7 + $0x90] sm:$0xff] }
 0x39c   : > { %v2322_v35 = vsel %vm7332_vm10, %v5491_v21, %v2318_v27  ;;  %5492 = vrcp.f32 %v7339_v42  ;;  %v2056_v31 = vadd.f32 0.0036580483, %v2055_v8  ;;  %v2230_v25 = vmul.f32 %v2229_v18, %v7262_v56  ;;  %3539 = vmatmul.f32.gmra.mxu1 %v3455_v38  ;;  %v7361_v27 = vpop.f32.mrf.mxu1 }
 0x39d   : > { %v2327_v58 = vsel %vm2324_vm11, %v2326_v9, %v2322_v35  ;;  %v2189_v23 = vadd.f32 0.112945676, %v2188_v33  ;;  %v2147_v49 = vadd.f32 0.014752088, %v2146_v41  ;;  %v2097_v21 = vmul.f32 %v2096_v44, %v7281_v45  ;;  %10280 = vst [vmem:[#allocation18_spill] sm:$0xff] %v7361_v27 }
 0x39e   : > { %v2328_v53 = vmul.f32 %v2327_v58, %v2303_v6  ;;  %v2139_v61 = vmul.f32 %v2138_v59, %v7270_v39  ;;  %v2261_v17 = vmul.f32 %v2260_v54, %v7243_v30  ;;  %v2231_v24 = vadd.f32 0.4994258, %v2230_v25 }
 0x39f   : > { %v2190_v4 = vmul.f32 %v2189_v23, %v7260_v7  ;;  %v2148_v8 = vmul.f32 %v2147_v49, %v7270_v39  ;;  %v2104_v16 = vmul.f32 3.8918573e-05, %v7281_v45  ;;  %v2180_v63 = vadd.f32 0.18741608, %v2179_v10 }
 0x3a0   : > { %v5294_v9 = vclamps-f32 %v2328_v53, 1.0  ;;  %v2220_v6 = vadd.f32 0.18741608, %v2219_v3  ;;  %v1876_v12 = vmul.f32 0.5, %v6886_v5  ;;  %v2232_v33 = vmul.f32 %v2231_v24, %v7262_v56 }
 0x3a1   : > { %v2191_v41 = vadd.f32 0.4994258, %v2190_v4  ;;  %v2149_v59 = vadd.f32 0.112945676, %v2148_v8  ;;  %v2105_v54 = vadd.f32 0.001143296, %v2104_v16  ;;  %vm2279_vm12 = vweird.f32 %v7339_v42 }
 0x3a2   : > { %v3220_v30 = vadd.f32 1.0, %v5294_v9  ;;  %v5493_v44 = vpop.eup %5492  ;;  %v2262_v35 = vadd.f32 1.1283791, %v2261_v17  ;;  %v2283_v10 = vand.u32 2147483647, %v7339_v42  ;;  %v2285_v3 = vand.u32 2147483648, %v7339_v42 }
 0x3a3   : > { %v2275_v58 = vmul.f32 %v5493_v44, %v7339_v42  ;;  %v2233_v53 = vadd.f32 1.0, %v2232_v33  ;;  %v2192_v5 = vmul.f32 %v2191_v41, %v7260_v7  ;;  %vm2280_vm13 = vweird.f32 %v5493_v44 }
 0x3a4   : > { %v3252_v18 = vmul.f32 %v3220_v30, %v1876_v12  ;;  %v2150_v23 = vmul.f32 %v2149_v59, %v7270_v39  ;;  %v2106_v49 = vmul.f32 %v2105_v54, %v7281_v45  ;;  %v2015_v17 = vmul.f32 %v2014_v19, %v7305_v1  ;;  %vm7380_vm3 = vmor %vm2279_vm12, %vm2280_vm13 }
 0x3a5   : > { %v2276_v25 = vsub.f32 1.0, %v2275_v58  ;;  %v2057_v9 = vmul.f32 %v2056_v31, %v7278_v60  ;;  %v2098_v38 = vadd.f32 0.05243302, %v2097_v21  ;;  %5494 = vrcp.f32 %v2233_v53 }
 0x3a6   : > { %3281 = vmatpush.msrb.mxu3 %v3252_v18  ;;  %v2140_v24 = vadd.f32 0.18741608, %v2139_v61  ;;  %v2181_v4 = vmul.f32 %v2180_v63, %v7260_v7  ;;  %v7375_v16 = vadd.f32 1.0, %v2192_v5  ;;  %v2221_v12 = vmul.f32 %v2220_v6, %v7262_v56  ;;  %v7394_v6 = vpop.f32.mrf.mxu1 }
 0x3a7   : > { %v2277_v8 = vmul.f32 %v5493_v44, %v2276_v25  ;;  %v2286_v33 = vor.u32 1.1754944e-38, %v2285_v3  ;;  %v2151_v19 = vadd.f32 0.4994258, %v2150_v23  ;;  %v2107_v41 = vadd.f32 0.014752088, %v2106_v49  ;;  %10283 = vst [vmem:[#allocation19_spill] sm:$0xff] %v7394_v6 }
 0x3a8   : > { %v2263_v31 = vmul.f32 %v2262_v35, %v7175_v40  ;;  %vm2284_vm14 = vcmp.eq.f32.partialorder %v2283_v10, 8.507059e+37  ;;  %5496 = vrcp.f32 %v7375_v16  ;;  %v7386_v7 = vadd.f32 0.00028619796, %v1973_v34 }
 0x3a9   : > { %v2278_v21 = vadd.f32 %v5493_v44, %v2277_v8  ;;  %v7388_v61 = vadd.f32 0.0036580483, %v2015_v17  ;;  %v7390_v56 = vadd.f32 0.05243302, %v2057_v9  ;;  %v2152_v42 = vmul.f32 %v2151_v19, %v7270_v39 }
 0x3aa   : > { %v2099_v63 = vmul.f32 %v2098_v38, %v7281_v45  ;;  %v2108_v40 = vmul.f32 %v2107_v41, %v7281_v45  ;;  %v2064_v54 = vmul.f32 3.8918573e-05, %v7278_v60  ;;  %v2141_v34 = vmul.f32 %v2140_v24, %v7270_v39 }
 0x3ab   : > { %v2282_v59 = vsel %vm7380_vm3, %v5493_v44, %v2278_v21  ;;  %v5495_v35 = vpop.eup %5494  ;;  %v2222_v18 = vadd.f32 1.1283791, %v2221_v12  ;;  %v2243_v10 = vand.u32 2147483647, %v2233_v53  ;;  %v2182_v3 = vadd.f32 1.1283791, %v2181_v4  ;;  %v7411_v4 = vpop.f32.mrf.mxu2 }
 0x3ac   : > { %v2287_v58 = vsel %vm2284_vm14, %v2286_v33, %v2282_v59  ;;  %v1875_v5 = vmul.f32 0.5, %v6878_v43  ;;  %v2235_v23 = vmul.f32 %v5495_v35, %v2233_v53  ;;  %vm2239_vm15 = vweird.f32 %v2233_v53  ;;  %10286 = vst [vmem:[#allocation20_spill] sm:$0xff] %v7411_v4 }
 0x3ad   : > { %v2288_v25 = vmul.f32 %v2287_v58, %v2263_v31  ;;  %vm2240_vm1 = vweird.f32 %v5495_v35  ;;  %v2245_v49 = vand.u32 2147483648, %v2233_v53  ;;  %v7402_v17 = vadd.f32 1.0, %v2152_v42 }
 0x3ae   : > { %v5497_v44 = vpop.eup %5496  ;;  %v2236_v38 = vsub.f32 1.0, %v2235_v23  ;;  %v2109_v8 = vadd.f32 0.112945676, %v2108_v40  ;;  %v2065_v30 = vadd.f32 0.001143296, %v2064_v54  ;;  %v2223_v39 = vmul.f32 %v2222_v18, %v7189_v62  ;;  %vm7417_vm4 = vmor %vm2239_vm15, %vm2240_vm1  ;;  %v7422_v42 = vpop.f32.mrf.mxu1 }
 0x3af   : > { %v5293_v9 = vclamps-f32 %v2288_v25, 1.0  ;;  %vm7405_vm2 = vcmp.eq.f32.partialorder %v2243_v10, 8.507059e+37  ;;  %v2195_v43 = vmul.f32 %v5497_v44, %v7375_v16  ;;  %5498 = vrcp.f32 %v7402_v17  ;;  %10289 = vst [vmem:[#allocation21_spill] sm:$0xff] %v7422_v42 }
 0x3b0   : > { %v2237_v33 = vmul.f32 %v5495_v35, %v2236_v38  ;;  %v2203_v19 = vand.u32 2147483647, %v7375_v16  ;;  %v2205_v41 = vand.u32 2147483648, %v7375_v16  ;;  %v2246_v31 = vor.u32 1.1754944e-38, %v2245_v49 }
 0x3b1   : > { %v3219_v12 = vadd.f32 1.0, %v5293_v9  ;;  %v2196_v21 = vsub.f32 1.0, %v2195_v43  ;;  %vm2199_vm5 = vweird.f32 %v7375_v16  ;;  %vm2200_vm6 = vweird.f32 %v5497_v44 }
 0x3b2   : > { %v2238_v40 = vadd.f32 %v5495_v35, %v2237_v33  ;;  %v2110_v54 = vmul.f32 %v2109_v8, %v7281_v45  ;;  %v2066_v18 = vmul.f32 %v2065_v30, %v7278_v60  ;;  %v2100_v58 = vadd.f32 0.18741608, %v2099_v63  ;;  %vm7429_vm7 = vmor %vm2199_vm5, %vm2200_vm6 }
 0x3b3   : > { %v3251_v59 = vmul.f32 %v3219_v12, %v1875_v5  ;;  %v2142_v10 = vadd.f32 1.1283791, %v2141_v34  ;;  %v2183_v53 = vmul.f32 %v2182_v3, %v7165_v50  ;;  %v2197_v25 = vmul.f32 %v5497_v44, %v2196_v21 }
 0x3b4   : > { %v2242_v23 = vsel %vm7417_vm4, %v5495_v35, %v2238_v40  ;;  %vm7433_vm8 = vcmp.eq.f32.partialorder %v2203_v19, 8.507059e+37  ;;  %v2206_v49 = vor.u32 1.1754944e-38, %v2205_v41  ;;  %v2111_v9 = vadd.f32 0.4994258, %v2110_v54 }
 0x3b5   : > { %3282 = vmatpush.msrb.mxu3 %v3251_v59  ;;  %v5499_v38 = vpop.eup %5498  ;;  %v2247_v63 = vsel %vm7405_vm2, %v2246_v31, %v2242_v23  ;;  %v2198_v50 = vadd.f32 %v5497_v44, %v2197_v25  ;;  %vm2159_vm9 = vweird.f32 %v7402_v17  ;;  %v2067_v34 = vadd.f32 0.014752088, %v2066_v18 }
 0x3b6   : > { %v2248_v3 = vmul.f32 %v2247_v63, %v2223_v39  ;;  %v2155_v35 = vmul.f32 %v5499_v38, %v7402_v17  ;;  %v2163_v8 = vand.u32 2147483647, %v7402_v17  ;;  %v2112_v30 = vmul.f32 %v2111_v9, %v7281_v45 }
 0x3b7   : > { %v2202_v43 = vsel %vm7429_vm7, %v5497_v44, %v2198_v50  ;;  %vm2160_vm10 = vweird.f32 %v5499_v38  ;;  %v2165_v12 = vand.u32 2147483648, %v7402_v17  ;;  %v2068_v24 = vmul.f32 %v2067_v34, %v7278_v60  ;;  %v7454_v44 = vpop.f32.mrf.mxu2  ;;  %v3456_v17 = vld [vmem:[%s10114_s7 + $0x98] sm:$0xff] }
 0x3b8   : > { %v5292_v33 = vclamps-f32 %v2248_v3, 1.0  ;;  %v2207_v19 = vsel %vm7433_vm8, %v2206_v49, %v2202_v43  ;;  %v2156_v41 = vsub.f32 1.0, %v2155_v35  ;;  %v7449_v39 = vadd.f32 1.0, %v2112_v30  ;;  %10294 = vst [vmem:[#allocation22_spill] sm:$0xff] %v7454_v44  ;;  %vm7463_vm11 = vmor %vm2159_vm9, %vm2160_vm10  ;;  %3542 = vmatmul.f32.gmra.mxu1 %v3456_v17 }
 0x3b9   : > { %v2059_v62 = vmul.f32 %v7390_v56, %v7278_v60  ;;  %v1874_v31 = vmul.f32 0.5, %v6870_v29  ;;  %v2208_v21 = vmul.f32 %v2207_v19, %v2183_v53  ;;  %v2069_v59 = vadd.f32 0.112945676, %v2068_v24  ;;  %v7467_v53 = vpop.f32.mrf.mxu1 }
 0x3ba   : > { %v3218_v40 = vadd.f32 1.0, %v5292_v33  ;;  %v2157_v54 = vmul.f32 %v5499_v38, %v2156_v41  ;;  %5500 = vrcp.f32 %v7449_v39  ;;  %v2024_v18 = vmul.f32 3.8918573e-05, %v7305_v1  ;;  %10297 = vst [vmem:[#allocation23_spill] sm:$0xff] %v7467_v53 }
 0x3bb   : > { %v2101_v25 = vmul.f32 %v2100_v58, %v7281_v45  ;;  %v2143_v23 = vmul.f32 %v2142_v10, %v7229_v55  ;;  %v5291_v16 = vclamps-f32 %v2208_v21, 1.0  ;;  %v2166_v56 = vor.u32 1.1754944e-38, %v2165_v12 }
 0x3bc   : > { %v3250_v5 = vmul.f32 %v3218_v40, %v1874_v31  ;;  %v2158_v49 = vadd.f32 %v5499_v38, %v2157_v54  ;;  %vm2164_vm12 = vcmp.eq.f32.partialorder %v2163_v8, 8.507059e+37  ;;  %v2070_v9 = vmul.f32 %v2069_v59, %v7278_v60 }
 0x3bd   : > { %v1935_v45 = vmul.f32 %v7345_v28, %v7301_v57  ;;  %v1873_v55 = vmul.f32 0.5, %v6862_v52  ;;  %v3217_v58 = vadd.f32 1.0, %v5291_v16  ;;  %v1975_v10 = vmul.f32 %v7386_v7, %v7314_v26 }
 0x3be   : > { %3283 = vmatpush.msrb.mxu3 %v3250_v5  ;;  %v2162_v63 = vsel %vm7463_vm11, %v5499_v38, %v2158_v49  ;;  %v2071_v50 = vadd.f32 0.4994258, %v2070_v9  ;;  %v2025_v34 = vadd.f32 0.001143296, %v2024_v18  ;;  %v2017_v28 = vmul.f32 %v7388_v61, %v7305_v1 }
 0x3bf   : > { %v2060_v3 = vadd.f32 0.18741608, %v2059_v62  ;;  %v3249_v52 = vmul.f32 %v3217_v58, %v1873_v55  ;;  %v2167_v35 = vsel %vm2164_vm12, %v2166_v56, %v2162_v63  ;;  %v2102_v30 = vadd.f32 1.1283791, %v2101_v25  ;;  %v7492_v54 = vpop.f32.mrf.mxu2 }
 0x3c0   : > { %v5501_v8 = vpop.eup %5500  ;;  %v2168_v43 = vmul.f32 %v2167_v35, %v2143_v23  ;;  %v2072_v12 = vmul.f32 %v2071_v50, %v7278_v60  ;;  %v2026_v7 = vmul.f32 %v2025_v34, %v7305_v1  ;;  %vm2119_vm13 = vweird.f32 %v7449_v39  ;;  %10298 = vst [vmem:[#allocation24_spill] sm:$0xff] %v7492_v54 }
 0x3c1   : > { %3284 = vmatpush.msrb.mxu3 %v3249_v52  ;;  %v2115_v24 = vmul.f32 %v5501_v8, %v7449_v39  ;;  %v2123_v38 = vand.u32 2147483647, %v7449_v39  ;;  %v1984_v33 = vmul.f32 3.8918573e-05, %v7314_v26  ;;  %v2125_v19 = vand.u32 2147483648, %v7449_v39  ;;  %v7498_v5 = vpop.f32.mrf.mxu1 }
 0x3c2   : > { %v5290_v61 = vclamps-f32 %v2168_v43, 1.0  ;;  %v7489_v41 = vadd.f32 1.0, %v2072_v12  ;;  %v2027_v62 = vadd.f32 0.014752088, %v2026_v7  ;;  %vm2120_vm3 = vweird.f32 %v5501_v8  ;;  %10299 = vst [vmem:[#allocation25_spill] sm:$0xff] %v7498_v5 }
 0x3c3   : > { %v2116_v31 = vsub.f32 1.0, %v2115_v24  ;;  %v1985_v21 = vadd.f32 0.001143296, %v1984_v33  ;;  %v1944_v59 = vmul.f32 3.8918573e-05, %v7301_v57  ;;  %v1872_v18 = vmul.f32 0.5, %v6854_v36  ;;  %vm7502_vm14 = vmor %vm2119_vm13, %vm2120_vm3 }
 0x3c4   : > { %v1976_v40 = vadd.f32 0.0036580483, %v1975_v10  ;;  %v3216_v25 = vadd.f32 1.0, %v5290_v61  ;;  %5502 = vrcp.f32 %v7489_v41  ;;  %v2018_v23 = vadd.f32 0.05243302, %v2017_v28 }
 0x3c5   : > { %v2061_v16 = vmul.f32 %v2060_v3, %v7278_v60  ;;  %v2117_v29 = vmul.f32 %v5501_v8, %v2116_v31  ;;  %v2028_v56 = vmul.f32 %v2027_v62, %v7305_v1  ;;  %v2126_v55 = vor.u32 1.1754944e-38, %v2125_v19 }
 0x3c6   : > { %v3248_v49 = vmul.f32 %v3216_v25, %v1872_v18  ;;  %v1986_v36 = vmul.f32 %v1985_v21, %v7314_v26  ;;  %v1945_v58 = vadd.f32 0.001143296, %v1944_v59  ;;  %v2103_v17 = vmul.f32 %v2102_v30, %v7226_v0 }
 0x3c7   : > { %v2118_v10 = vadd.f32 %v5501_v8, %v2117_v29  ;;  %vm2124_vm15 = vcmp.eq.f32.partialorder %v2123_v38, 8.507059e+37  ;;  %v2029_v60 = vadd.f32 0.112945676, %v2028_v56  ;;  %v1936_v63 = vadd.f32 0.0036580483, %v1935_v45 }
 0x3c8   : > { %3285 = vmatpush.msrb.mxu3 %v3248_v49  ;;  %v1987_v50 = vadd.f32 0.014752088, %v1986_v36  ;;  %v1946_v34 = vmul.f32 %v1945_v58, %v7301_v57  ;;  %v1977_v39 = vmul.f32 %v1976_v40, %v7314_v26  ;;  %v2019_v28 = vmul.f32 %v2018_v23, %v7305_v1  ;;  %v7522_v40 = vpop.f32.mrf.mxu2 }
 0x3c9   : > { %v2122_v3 = vsel %vm7502_vm14, %v5501_v8, %v2118_v10  ;;  %v2030_v52 = vmul.f32 %v2029_v60, %v7305_v1  ;;  %v2062_v43 = vadd.f32 1.1283791, %v2061_v16  ;;  %vm2079_vm1 = vweird.f32 %v7489_v41  ;;  %10302 = vst [vmem:[#allocation26_spill] sm:$0xff] %v7522_v40 }
 0x3ca   : > { %v5503_v35 = vpop.eup %5502  ;;  %v2127_v0 = vsel %vm2124_vm15, %v2126_v55, %v2122_v3  ;;  %v1988_v30 = vmul.f32 %v1987_v50, %v7314_v26  ;;  %v1947_v12 = vadd.f32 0.014752088, %v1946_v34  ;;  %v2083_v38 = vand.u32 2147483647, %v7489_v41  ;;  %v7527_v55 = vpop.f32.mrf.mxu1 }
 0x3cb   : > { %v2128_v45 = vmul.f32 %v2127_v0, %v2103_v17  ;;  %v2075_v7 = vmul.f32 %v5503_v35, %v7489_v41  ;;  %v2031_v24 = vadd.f32 0.4994258, %v2030_v52  ;;  %vm2080_vm2 = vweird.f32 %v5503_v35  ;;  %10303 = vst [vmem:[#allocation27_spill] sm:$0xff] %v7527_v55  ;;  %v3457_v52 = vld [vmem:[%s10114_s7 + $0xa0] sm:$0xff] }
 0x3cc   : > { %v2085_v33 = vand.u32 2147483648, %v7489_v41  ;;  %v1989_v8 = vadd.f32 0.112945676, %v1988_v30  ;;  %v1948_v31 = vmul.f32 %v1947_v12, %v7301_v57  ;;  %v1937_v21 = vmul.f32 %v1936_v63, %v7301_v57  ;;  %vm2081_vm4 = vmor %vm2079_vm1, %vm2080_vm2  ;;  %3545 = vmatmul.f32.gmra.mxu1 %v3457_v52 }
 0x3cd   : > { %v5289_v61 = vclamps-f32 %v2128_v45, 1.0  ;;  %v2076_v19 = vsub.f32 1.0, %v2075_v7  ;;  %v2032_v62 = vmul.f32 %v2031_v24, %v7305_v1  ;;  %v1978_v59 = vadd.f32 0.05243302, %v1977_v39 }
 0x3ce   : > { %v1871_v18 = vmul.f32 0.5, %v6847_v20  ;;  %v1990_v25 = vmul.f32 %v1989_v8, %v7314_v26  ;;  %v1949_v56 = vadd.f32 0.112945676, %v1948_v31  ;;  %v2020_v49 = vadd.f32 0.18741608, %v2019_v28 }
 0x3cf   : > { %v3215_v23 = vadd.f32 1.0, %v5289_v61  ;;  %v2077_v16 = vmul.f32 %v5503_v35, %v2076_v19  ;;  %v2033_v29 = vadd.f32 1.0, %v2032_v62  ;;  %v2063_v9 = vmul.f32 %v2062_v43, %v7066_v32 }
 0x3d0   : > { %v2086_v36 = vor.u32 1.1754944e-38, %v2085_v33  ;;  %v1991_v58 = vadd.f32 0.4994258, %v1990_v25  ;;  %vm2084_vm5 = vcmp.eq.f32.partialorder %v2083_v38, 8.507059e+37  ;;  %v1938_v60 = vadd.f32 0.05243302, %v1937_v21  ;;  %v7540_v45 = vpop.f32.mrf.mxu2 }
 0x3d1   : > { %v3247_v17 = vmul.f32 %v3215_v23, %v1871_v18  ;;  %v2078_v10 = vadd.f32 %v5503_v35, %v2077_v16  ;;  %5504 = vrcp.f32 %v2033_v29  ;;  %v1979_v63 = vmul.f32 %v1978_v59, %v7314_v26  ;;  %10304 = vst [vmem:[#allocation28_spill] sm:$0xff] %v7540_v45  ;;  %v3458_v23 = vld [vmem:[%s10114_s7 + $0xa8] sm:$0xff] }
 0x3d2   : > { %v1992_v20 = vmul.f32 %v1991_v58, %v7314_v26  ;;  %v1950_v32 = vmul.f32 %v1949_v56, %v7301_v57  ;;  %v2021_v34 = vmul.f32 %v2020_v49, %v7305_v1  ;;  %v1939_v0 = vmul.f32 %v1938_v60, %v7301_v57  ;;  %v10305_v1 = vld [vmem:[#allocation12_spill] sm:$0xff]  ;;  %v7544_v61 = vpop.f32.mrf.mxu1 }
 0x3d3   : > { %3286 = vmatpush.msrb.mxu3 %v3247_v17  ;;  %v2082_v50 = vsel %vm2081_vm4, %v5503_v35, %v2078_v10  ;;  %v1980_v30 = vadd.f32 0.18741608, %v1979_v63  ;;  %v1870_v24 = vmul.f32 0.5, %v10305_v1  ;;  %v2045_v33 = vand.u32 2147483648, %v2033_v29  ;;  %10306 = vst [vmem:[#allocation12_spill] sm:$0xff] %v7544_v61 }
 0x3d4   : > { %v2087_v39 = vsel %vm2084_vm5, %v2086_v36, %v2082_v50  ;;  %v1993_v28 = vadd.f32 1.0, %v1992_v20  ;;  %v1951_v3 = vadd.f32 0.4994258, %v1950_v32  ;;  %v2022_v35 = vadd.f32 1.1283791, %v2021_v34  ;;  %3548 = vmatmul.f32.gmra.mxu1 %v3458_v23 }
 0x3d5   : > { %v2088_v41 = vmul.f32 %v2087_v39, %v2063_v9  ;;  %vm2039_vm6 = vweird.f32 %v2033_v29  ;;  %v2043_v62 = vand.u32 2147483647, %v2033_v29  ;;  %v1940_v31 = vadd.f32 0.18741608, %v1939_v0 }
 0x3d6   : > { %5506 = vrcp.f32 %v1993_v28  ;;  %v1952_v8 = vmul.f32 %v1951_v3, %v7301_v57  ;;  %v1981_v21 = vmul.f32 %v1980_v30, %v7314_v26  ;;  %v2046_v49 = vor.u32 1.1754944e-38, %v2045_v33  ;;  %v3459_v30 = vld [vmem:[%s10114_s7 + $0xb0] sm:$0xff] }
 0x3d7   : > { %v5505_v43 = vpop.eup %5504  ;;  %v5288_v12 = vclamps-f32 %v2088_v41, 1.0  ;;  %vm2044_vm9 = vcmp.eq.f32.partialorder %v2043_v62, 8.507059e+37  ;;  %v1941_v36 = vmul.f32 %v1940_v31, %v7301_v57  ;;  %vm1999_vm10 = vweird.f32 %v1993_v28  ;;  %v3462_v57 = vld [vmem:[%s10114_s7 + $0xc8] sm:$0xff] }
 0x3d8   : > { %v2035_v7 = vmul.f32 %v5505_v43, %v2033_v29  ;;  %vm2040_vm7 = vweird.f32 %v5505_v43  ;;  %v1953_v18 = vadd.f32 1.0, %v1952_v8  ;;  %v2023_v29 = vmul.f32 %v2022_v35, %v7276_v14  ;;  %v7558_v50 = vpop.f32.mrf.mxu2 }
 0x3d9   : > { %v3214_v38 = vadd.f32 1.0, %v5288_v12  ;;  %vm7550_vm8 = vmor %vm2039_vm6, %vm2040_vm7  ;;  %v1982_v58 = vadd.f32 1.1283791, %v1981_v21  ;;  %v2005_v17 = vand.u32 2147483648, %v1993_v28  ;;  %v2003_v60 = vand.u32 2147483647, %v1993_v28 }
 0x3da   : > { %v2036_v19 = vsub.f32 1.0, %v2035_v7  ;;  %5508 = vrcp.f32 %v1953_v18  ;;  %10309 = vst [vmem:[#allocation29_spill] sm:$0xff] %v7558_v50  ;;  %v1942_v39 = vadd.f32 1.1283791, %v1941_v36  ;;  %v7565_v52 = vpop.f32.mrf.mxu1  ;;  %v1869_v12 = vmul.f32 0.5, %v6833_v13 }
 0x3db   : > { %v3246_v59 = vmul.f32 %v3214_v38, %v1870_v24  ;;  %v1983_v41 = vmul.f32 %v1982_v58, %v7291_v47  ;;  %v2006_v3 = vor.u32 1.1754944e-38, %v2005_v17  ;;  %10312 = vst [vmem:[#allocation30_spill] sm:$0xff] %v7565_v52  ;;  %vm2004_vm13 = vcmp.eq.f32.partialorder %v2003_v60, 8.507059e+37 }
 0x3dc   : > { %v2037_v25 = vmul.f32 %v5505_v43, %v2036_v19  ;;  %v5507_v16 = vpop.eup %5506  ;;  %vm1959_vm3 = vweird.f32 %v1953_v18  ;;  %v1963_v35 = vand.u32 2147483647, %v1953_v18  ;;  %v1965_v47 = vand.u32 2147483648, %v1953_v18  ;;  %3551 = vmatmul.f32.gmra.mxu1 %v3459_v30 }
 0x3dd   : > { %3287 = vmatpush.msrb.mxu3 %v3246_v59  ;;  %v1995_v26 = vmul.f32 %v5507_v16, %v1993_v28  ;;  %vm2000_vm11 = vweird.f32 %v5507_v16  ;;  %v1943_v31 = vmul.f32 %v1942_v39, %v7273_v37  ;;  %v7699_v42 = vmul.f32 0.70710677, %v7454_v44 }
 0x3de   : > { %v2038_v9 = vadd.f32 %v5505_v43, %v2037_v25  ;;  %vm7561_vm12 = vmor %vm1999_vm10, %vm2000_vm11  ;;  %v1966_v62 = vor.u32 1.1754944e-38, %v1965_v47  ;;  %vm1964_vm1 = vcmp.eq.f32.partialorder %v1963_v35, 8.507059e+37  ;;  %v7707_v51 = vmul.f32 0.70710677, %v7522_v40 }
 0x3df   : > { %v1996_v20 = vsub.f32 1.0, %v1995_v26  ;;  %v1867_v26 = vmul.f32 0.5, %v6823_v2  ;;  %10332 = vst [vmem:[#allocation50_spill] sm:$0xff] %v7699_v42 }
 0x3e0   : > { %v2042_v10 = vsel %vm7550_vm8, %v5505_v43, %v2038_v9  ;;  %v5509_v34 = vpop.eup %5508  ;;  %v7574_v59 = vpop.f32.mrf.mxu2  ;;  %v3460_v9 = vld [vmem:[%s10114_s7 + $0xb8] sm:$0xff]  ;;  %10334 = vst [vmem:[#allocation52_spill] sm:$0xff] %v7707_v51 }
 0x3e1   : > { %v2047_v63 = vsel %vm2044_vm9, %v2046_v49, %v2042_v10  ;;  %v1997_v14 = vmul.f32 %v5507_v16, %v1996_v20  ;;  %v1955_v28 = vmul.f32 %v5509_v34, %v1953_v18  ;;  %vm1960_vm14 = vweird.f32 %v5509_v34  ;;  %10313 = vst [vmem:[#allocation31_spill] sm:$0xff] %v7574_v59 }
 0x3e2   : > { %v2048_v32 = vmul.f32 %v2047_v63, %v2023_v29  ;;  %vm1961_vm15 = vmor %vm1959_vm3, %vm1960_vm14  ;;  %v1868_v18 = vmul.f32 0.5, %v6828_v11  ;;  %v7577_v29 = vpop.f32.mrf.mxu1  ;;  %v3461_v63 = vld [vmem:[%s10114_s7 + $0xc0] sm:$0xff]  ;;  %v7715_v46 = vmul.f32 0.70710677, %v7574_v59 }
 0x3e3   : > { %v1998_v0 = vadd.f32 %v5507_v16, %v1997_v14  ;;  %v1956_v24 = vsub.f32 1.0, %v1955_v28  ;;  %10314 = vst [vmem:[#allocation32_spill] sm:$0xff] %v7577_v29 }
 0x3e4   : > { %v5287_v43 = vclamps-f32 %v2048_v32, 1.0  ;;  %3554 = vmatmul.f32.gmra.mxu1 %v3460_v9  ;;  %10336 = vst [vmem:[#allocation54_spill] sm:$0xff] %v7715_v46 }
 0x3e5   : > { %v2002_v1 = vsel %vm7561_vm12, %v5507_v16, %v1998_v0  ;;  %v1957_v19 = vmul.f32 %v5509_v34, %v1956_v24 }
 0x3e6   : > { %v3213_v7 = vadd.f32 1.0, %v5287_v43  ;;  %v2007_v38 = vsel %vm2004_vm13, %v2006_v3, %v2002_v1  ;;  %v7630_v1 = vmul.f32 0.70710677, %v7411_v4  ;;  %v2811_v4 = vmul.f32 %v7715_v46, %v7715_v46 }
 0x3e7   : > { %v2008_v8 = vmul.f32 %v2007_v38, %v1983_v41  ;;  %v1958_v21 = vadd.f32 %v5509_v34, %v1957_v19 }
 0x3e8   : > { %v3245_v33 = vmul.f32 %v3213_v7, %v1869_v12  ;;  %v7583_v17 = vpop.f32.mrf.mxu2  ;;  %10324 = vst [vmem:[#allocation42_spill] sm:$0xff] %v7630_v1  ;;  %v2571_v19 = vmul.f32 %v7630_v1, %v7630_v1 }
 0x3e9   : > { %v5286_v13 = vclamps-f32 %v2008_v8, 1.0  ;;  %v1962_v23 = vsel %vm1961_vm15, %v5509_v34, %v1958_v21  ;;  %10315 = vst [vmem:[#allocation33_spill] sm:$0xff] %v7583_v17 }
 0x3ea   : > { %3288 = vmatpush.msrb.mxu3 %v3245_v33  ;;  %v1967_v16 = vsel %vm1964_vm1, %v1966_v62, %v1962_v23  ;;  %v7585_v11 = vpop.f32.mrf.mxu1  ;;  %v7653_v23 = vmul.f32 0.70710677, %v7540_v45  ;;  %v7662_v9 = vmin.f32 %v2571_v19, 16.0 }
 0x3eb   : > { %v3212_v25 = vadd.f32 1.0, %v5286_v13  ;;  %v1968_v49 = vmul.f32 %v1967_v16, %v1943_v31  ;;  %10316 = vst [vmem:[#allocation34_spill] sm:$0xff] %v7585_v11  ;;  %v7656_v16 = vmul.f32 0.70710677, %v7558_v50 }
 0x3ec   : > { %3557 = vmatmul.f32.gmra.mxu1 %v3461_v63  ;;  %10327 = vst [vmem:[#allocation45_spill] sm:$0xff] %v7653_v23 }
 0x3ed   : > { %v3244_v56 = vmul.f32 %v3212_v25, %v1868_v18  ;;  %v5285_v37 = vclamps-f32 %v1968_v49, 1.0  ;;  %10328 = vst [vmem:[#allocation46_spill] sm:$0xff] %v7656_v16 }
 0x3ee   : > { %10329 = vst [vmem:[#allocation47_spill] sm:$0xff] %v7662_v9 }
 0x3ef   : > { %3289 = vmatpush.msrb.mxu3 %v3244_v56  ;;  %v3211_v36 = vadd.f32 1.0, %v5285_v37 }
 0x3f0   : > { %v7587_v10 = vpop.f32.mrf.mxu2 }
 0x3f1   : > { %v3243_v58 = vmul.f32 %v3211_v36, %v1867_v26  ;;  %10317 = vst [vmem:[#allocation35_spill] sm:$0xff] %v7587_v10 }
 0x3f2   : > { %v7589_v20 = vpop.f32.mrf.mxu1 }
 0x3f3   : > { %3290 = vmatpush.msrb.mxu3 %v3243_v58  ;;  %10318 = vst [vmem:[#allocation36_spill] sm:$0xff] %v7589_v20  ;;  %v3463_v58 = vld [vmem:[%s10114_s7 + $0xd0] sm:$0xff] }
 0x3f4   : > { %3560 = vmatmul.f32.gmra.mxu1 %v3462_v57 }
 0x3f8   : > { %v7591_v60 = vpop.f32.mrf.mxu2 }
 0x3f9   : > { %10319 = vst [vmem:[#allocation37_spill] sm:$0xff] %v7591_v60 }
 0x3fa   : > { %v7596_v32 = vpop.f32.mrf.mxu1 }
 0x3fb   : > { %10320 = vst [vmem:[#allocation38_spill] sm:$0xff] %v7596_v32 }
 0x3fc   : > { %3563 = vmatmul.f32.gmra.mxu1 %v3463_v58 }
 0x400   : > { %v7598_v2 = vpop.f32.mrf.mxu2 }
 0x401   : > { %10321 = vst [vmem:[#allocation39_spill] sm:$0xff] %v7598_v2  ;;  %v7643_v62 = vmul.f32 0.70710677, %v7598_v2 }
 0x402   : > { %v7600_v14 = vpop.f32.mrf.mxu1 }
 0x403   : > { %v7603_v34 = vmul.f32 0.70710677, %v7600_v14  ;;  %10325 = vst [vmem:[#allocation43_spill] sm:$0xff] %v7643_v62  ;;  %v2971_v37 = vmul.f32 %v7643_v62, %v7643_v62 }
 0x405   : > { %v3966_v41 = vmul.f32 %v7603_v34, %v7603_v34 }
 0x407   : > { %v7614_v43 = vmin.f32 %v3966_v41, 16.0 }
 0x408   : > { %v7605_v39 = vpop.f32.mrf.mxu2 }
 0x409   : > { %10322 = vst [vmem:[#allocation40_spill] sm:$0xff] %v7605_v39  ;;  %v3979_v28 = vmul.f32 3.8918573e-05, %v7614_v43  ;;  %v7625_v35 = vmul.f32 0.70710677, %v7605_v39 }
 0x40a   : > { %v7612_v3 = vpop.f32.mrf.mxu1 }
 0x40b   : > { %v7617_v0 = vmul.f32 0.70710677, %v7612_v3  ;;  %v3980_v47 = vadd.f32 0.001143296, %v3979_v28  ;;  %v3011_v33 = vmul.f32 %v7625_v35, %v7625_v35 }
 0x40d   : > { %v4006_v12 = vmul.f32 %v7617_v0, %v7617_v0  ;;  %v3981_v8 = vmul.f32 %v3980_v47, %v7614_v43  ;;  %v7648_v21 = vmin.f32 %v3011_v33, 16.0  ;;  %v2731_v47 = vmul.f32 %v7653_v23, %v7653_v23 }
 0x40e   : > { %v2771_v33 = vmul.f32 %v7656_v16, %v7656_v16 }
 0x40f   : > { %v7632_v24 = vmin.f32 %v4006_v12, 16.0  ;;  %v3982_v25 = vadd.f32 0.014752088, %v3981_v8  ;;  %v3013_v56 = vmul.f32 2.1237322e-06, %v7648_v21  ;;  %v7722_v61 = vmin.f32 %v2731_v47, 16.0 }
 0x410   : > { %v7620_v30 = vpop.f32.mrf.mxu2  ;;  %v7681_v12 = vmul.f32 2.1237322e-06, %v7662_v9 }
 0x411   : > { %10323 = vst [vmem:[#allocation41_spill] sm:$0xff] %v7620_v30  ;;  %v4019_v31 = vmul.f32 3.8918573e-05, %v7632_v24  ;;  %v7660_v49 = vmul.f32 0.70710677, %v7620_v30  ;;  %v3983_v57 = vmul.f32 %v3982_v25, %v7614_v43  ;;  %v7694_v25 = vmin.f32 %v2971_v37, 16.0 }
 0x412   : > { %v7627_v7 = vpop.f32.mrf.mxu1  ;;  %10330 = vst [vmem:[#allocation48_spill] sm:$0xff] %v7681_v12  ;;  %v3014_v8 = vadd.f32 0.00028619796, %v3013_v56  ;;  %v7702_v56 = vmul.f32 0.70710677, %v7492_v54 }
 0x413   : > { %v7635_v38 = vmul.f32 0.70710677, %v7627_v7  ;;  %v4020_v26 = vadd.f32 0.001143296, %v4019_v31  ;;  %v3051_v19 = vmul.f32 %v7660_v49, %v7660_v49  ;;  %v3984_v27 = vadd.f32 0.112945676, %v3983_v57 }
 0x414   : > { %10333 = vst [vmem:[#allocation51_spill] sm:$0xff] %v7702_v56  ;;  %v2973_v37 = vmul.f32 2.1237322e-06, %v7694_v25  ;;  %v3015_v22 = vmul.f32 %v3014_v8, %v7648_v21  ;;  %v2651_v1 = vmul.f32 %v7702_v56, %v7702_v56  ;;  %v3968_v54 = vmul.f32 2.1237322e-06, %v7614_v43 }
 0x415   : > { %v4046_v13 = vmul.f32 %v7635_v38, %v7635_v38  ;;  %v4021_v58 = vmul.f32 %v4020_v26, %v7632_v24  ;;  %v7712_v26 = vmin.f32 %v2771_v33, 16.0  ;;  %v7718_v48 = vmin.f32 %v3051_v19, 16.0  ;;  %10338 = vst [vmem:[#allocation56_spill] sm:$0xff] %v7722_v61 }
 0x416   : > { %v3985_v20 = vmul.f32 %v3984_v27, %v7614_v43  ;;  %v2974_v8 = vadd.f32 0.00028619796, %v2973_v37  ;;  %v7756_v23 = vmul.f32 2.1237322e-06, %v7722_v61  ;;  %v7759_v56 = vmin.f32 %v2811_v4, 16.0 }
 0x417   : > { %v7666_v36 = vmin.f32 %v4046_v13, 16.0  ;;  %v7692_v13 = vmul.f32 0.70710677, %v7591_v60  ;;  %10335 = vst [vmem:[#allocation53_spill] sm:$0xff] %v7712_v26  ;;  %v4022_v5 = vadd.f32 0.014752088, %v4021_v58 }
 0x418   : > { %v7650_v18 = vpop.f32.mrf.mxu2  ;;  %v3053_v33 = vmul.f32 2.1237322e-06, %v7718_v48  ;;  %v7738_v58 = vmul.f32 0.70710677, %v7583_v17  ;;  %v3986_v40 = vadd.f32 0.4994258, %v3985_v20  ;;  %v2975_v45 = vmul.f32 %v2974_v8, %v7694_v25 }
 0x419   : > { %10326 = vst [vmem:[#allocation44_spill] sm:$0xff] %v7650_v18  ;;  %v7674_v41 = vmul.f32 0.70710677, %v7650_v18  ;;  %v4059_v53 = vmul.f32 3.8918573e-05, %v7666_v36  ;;  %v2931_v57 = vmul.f32 %v7692_v13, %v7692_v13  ;;  %v4023_v27 = vmul.f32 %v4022_v5, %v7632_v24 }
 0x41a   : > { %v7671_v63 = vpop.f32.mrf.mxu1  ;;  %10331 = vst [vmem:[#allocation49_spill] sm:$0xff] %v7692_v13  ;;  %v3054_v44 = vadd.f32 0.00028619796, %v3053_v33  ;;  %v2851_v20 = vmul.f32 %v7738_v58, %v7738_v58  ;;  %v3987_v59 = vmul.f32 %v3986_v40, %v7614_v43 }
 0x41b   : > { %v7678_v28 = vmul.f32 0.70710677, %v7671_v63  ;;  %v3091_v6 = vmul.f32 %v7674_v41, %v7674_v41  ;;  %v4060_v52 = vadd.f32 0.001143296, %v4059_v53  ;;  %10339 = vst [vmem:[#allocation57_spill] sm:$0xff] %v7738_v58  ;;  %v7744_v11 = vmin.f32 %v2931_v57, 16.0 }
 0x41c   : > { %v3016_v53 = vadd.f32 0.0036580483, %v3015_v22  ;;  %10341 = vst [vmem:[#allocation59_spill] sm:$0xff] %v7756_v23  ;;  %v4024_v33 = vadd.f32 0.112945676, %v4023_v27  ;;  %v3055_v16 = vmul.f32 %v3054_v44, %v7718_v48  ;;  %v3464_v44 = vld [vmem:[%s10114_s7 + $0xd8] sm:$0xff] }
 0x41d   : > { %v4086_v31 = vmul.f32 %v7678_v28, %v7678_v28  ;;  %v7728_v32 = vmin.f32 %v3091_v6, 16.0  ;;  %v7742_v6 = vmul.f32 0.70710677, %v7587_v10  ;;  %v4061_v37 = vmul.f32 %v4060_v52, %v7666_v36  ;;  %10342 = vst [vmem:[#allocation60_spill] sm:$0xff] %v7759_v56  ;;  %3566 = vmatmul.f32.gmra.mxu1 %v3464_v44 }
 0x41e   : > { %v2933_v22 = vmul.f32 2.1237322e-06, %v7744_v11  ;;  %v3017_v52 = vmul.f32 %v3016_v53, %v7648_v21  ;;  %v2813_v53 = vmul.f32 2.1237322e-06, %v7759_v56  ;;  %v7779_v40 = vmin.f32 %v2851_v20, 16.0 }
 0x41f   : > { %v7710_v15 = vmin.f32 %v4086_v31, 16.0  ;;  %v2773_v31 = vmul.f32 2.1237322e-06, %v7712_v26  ;;  %v3093_v29 = vmul.f32 2.1237322e-06, %v7728_v32  ;;  %10340 = vst [vmem:[#allocation58_spill] sm:$0xff] %v7742_v6  ;;  %v2891_v8 = vmul.f32 %v7742_v6, %v7742_v6 }
 0x420   : > { %v7720_v55 = vpop.f32.mrf.mxu2  ;;  %v4062_v12 = vadd.f32 0.014752088, %v4061_v37  ;;  %v2934_v17 = vadd.f32 0.00028619796, %v2933_v22  ;;  %v3018_v27 = vadd.f32 0.05243302, %v3017_v52 }
 0x421   : > { %10337 = vst [vmem:[#allocation55_spill] sm:$0xff] %v7720_v55  ;;  %v7732_v19 = vmul.f32 0.70710677, %v7720_v55  ;;  %v4099_v47 = vmul.f32 3.8918573e-05, %v7710_v15  ;;  %v7785_v52 = vadd.f32 1.0, %v3987_v59 }
 0x422   : > { %v2774_v5 = vadd.f32 0.00028619796, %v2773_v31  ;;  %v3094_v50 = vadd.f32 0.00028619796, %v3093_v29  ;;  %v2976_v31 = vadd.f32 0.0036580483, %v2975_v45  ;;  %v2935_v20 = vmul.f32 %v2934_v17, %v7744_v11 }
 0x423   : > { %v3131_v9 = vmul.f32 %v7732_v19, %v7732_v19  ;;  %v4100_v57 = vadd.f32 0.001143296, %v4099_v47  ;;  %v3969_v47 = vadd.f32 0.00028619796, %v3968_v54  ;;  %v7770_v29 = vmin.f32 %v2651_v1, 16.0  ;;  %v7777_v54 = vpop.f32.mrf.mxu1  ;;  %10344 = vst [vmem:[#allocation62_spill] sm:$0xff] %v7779_v40 }
 0x424   : > { %v3095_v37 = vmul.f32 %v3094_v50, %v7728_v32  ;;  %v4063_v1 = vmul.f32 %v4062_v12, %v7666_v36  ;;  %v3056_v22 = vadd.f32 0.0036580483, %v3055_v16  ;;  %v7788_v50 = vmul.f32 0.70710677, %v7777_v54 }
 0x425   : > { %v7767_v46 = vmin.f32 %v3131_v9, 16.0  ;;  %v4101_v4 = vmul.f32 %v4100_v57, %v7710_v15  ;;  %10343 = vst [vmem:[#allocation61_spill] sm:$0xff] %v7770_v29  ;;  %v4025_v9 = vmul.f32 %v4024_v33, %v7632_v24  ;;  %v3970_v57 = vmul.f32 %v3969_v47, %v7614_v43 }
 0x426   : > { %v7790_v10 = vmin.f32 %v2891_v8, 16.0  ;;  %v2977_v58 = vmul.f32 %v2976_v31, %v7694_v25  ;;  %v3019_v33 = vmul.f32 %v3018_v27, %v7648_v21  ;;  %v3096_v60 = vadd.f32 0.0036580483, %v3095_v37 }
 0x427   : > { %v3133_v45 = vmul.f32 2.1237322e-06, %v7767_v46  ;;  %v4102_v6 = vadd.f32 0.014752088, %v4101_v4  ;;  %v4008_v12 = vmul.f32 2.1237322e-06, %v7632_v24  ;;  %v4126_v16 = vmul.f32 %v7788_v50, %v7788_v50 }
 0x428   : > { %10345 = vst [vmem:[#allocation63_spill] sm:$0xff] %v7790_v10  ;;  %v7799_v59 = vmul.f32 %v2774_v5, %v7712_v26  ;;  %v4026_v44 = vadd.f32 0.4994258, %v4025_v9  ;;  %v4064_v8 = vadd.f32 0.112945676, %v4063_v1  ;;  %v3057_v29 = vmul.f32 %v3056_v22, %v7718_v48  ;;  %v7806_v51 = vpop.f32.mrf.mxu2 }
 0x429   : > { %v3134_v47 = vadd.f32 0.00028619796, %v3133_v45  ;;  %v3971_v17 = vadd.f32 0.0036580483, %v3970_v57  ;;  %5510 = vrcp.f32 %v7785_v52  ;;  %v7803_v31 = vmin.f32 %v4126_v16, 16.0  ;;  %10347 = vst [vmem:[#allocation65_spill] sm:$0xff] %v7806_v51 }
 0x42a   : > { %10346 = vst [vmem:[#allocation64_spill] sm:$0xff] %v7799_v59  ;;  %v2893_v4 = vmul.f32 2.1237322e-06, %v7790_v10  ;;  %v2936_v27 = vadd.f32 0.0036580483, %v2935_v20  ;;  %v4103_v61 = vmul.f32 %v4102_v6, %v7710_v15  ;;  %v3097_v45 = vmul.f32 %v3096_v60, %v7728_v32 }
 0x42b   : > { %v2978_v37 = vadd.f32 0.05243302, %v2977_v58  ;;  %v3020_v5 = vadd.f32 0.18741608, %v3019_v33  ;;  %v4009_v9 = vadd.f32 0.00028619796, %v4008_v12  ;;  %v3135_v57 = vmul.f32 %v3134_v47, %v7767_v46 }
 0x42c   : > { %v4139_v1 = vmul.f32 3.8918573e-05, %v7803_v31  ;;  %v7811_v22 = vadd.f32 0.00028619796, %v2813_v53  ;;  %v4027_v16 = vmul.f32 %v4026_v44, %v7632_v24  ;;  %v4065_v13 = vmul.f32 %v4064_v8, %v7666_v36 }
 0x42d   : > { %v7817_v58 = vmul.f32 2.1237322e-06, %v7779_v40  ;;  %v3058_v20 = vadd.f32 0.05243302, %v3057_v29  ;;  %v3972_v6 = vmul.f32 %v3971_v17, %v7614_v43  ;;  %v7821_v33 = vmul.f32 0.70710677, %v7806_v51 }
 0x42e   : > { %10348 = vst [vmem:[#allocation66_spill] sm:$0xff] %v7811_v22  ;;  %v2894_v60 = vadd.f32 0.00028619796, %v2893_v4  ;;  %v2937_v12 = vmul.f32 %v2936_v27, %v7744_v11  ;;  %v4104_v53 = vadd.f32 0.112945676, %v4103_v61  ;;  %v2979_v47 = vmul.f32 %v2978_v37, %v7694_v25 }
 0x42f   : > { %v4140_v23 = vadd.f32 0.001143296, %v4139_v1  ;;  %v7824_v42 = vpop.eup %5510  ;;  %v3021_v44 = vmul.f32 %v3020_v5, %v7648_v21  ;;  %v3098_v8 = vadd.f32 0.05243302, %v3097_v45  ;;  %v4010_v26 = vmul.f32 %v4009_v9, %v7632_v24 }
 0x430   : > { %v3136_v29 = vadd.f32 0.0036580483, %v3135_v57  ;;  %v7829_v2 = vadd.f32 1.0, %v4027_v16  ;;  %v4066_v17 = vadd.f32 0.4994258, %v4065_v13  ;;  %v3059_v4 = vmul.f32 %v3058_v20, %v7718_v48 }
 0x431   : > { %v4141_v59 = vmul.f32 %v4140_v23, %v7803_v31  ;;  %v3973_v27 = vadd.f32 0.05243302, %v3972_v6  ;;  %v3171_v61 = vmul.f32 %v7821_v33, %v7821_v33  ;;  %v4048_v1 = vmul.f32 2.1237322e-06, %v7666_v36 }
 0x432   : > { %v7837_v37 = vmul.f32 %v2894_v60, %v7790_v10  ;;  %v2938_v5 = vadd.f32 0.05243302, %v2937_v12  ;;  %v3990_v45 = vmul.f32 %v7824_v42, %v7785_v52  ;;  %v4105_v9 = vmul.f32 %v4104_v53, %v7710_v15 }
 0x433   : > { %v2980_v13 = vadd.f32 0.18741608, %v2979_v47  ;;  %v3022_v57 = vadd.f32 1.1283791, %v3021_v44  ;;  %v3099_v23 = vmul.f32 %v3098_v8, %v7728_v32  ;;  %v4011_v16 = vadd.f32 0.0036580483, %v4010_v26 }
 0x434   : > { %v3137_v20 = vmul.f32 %v3136_v29, %v7767_v46  ;;  %5512 = vrcp.f32 %v7829_v2  ;;  %v4067_v6 = vmul.f32 %v4066_v17, %v7666_v36  ;;  %v4142_v39 = vadd.f32 0.014752088, %v4141_v59 }
 0x435   : > { %v3060_v60 = vadd.f32 0.18741608, %v3059_v4  ;;  %v3974_v12 = vmul.f32 %v3973_v27, %v7614_v43  ;;  %v7847_v30 = vmin.f32 %v3171_v61, 16.0  ;;  %v4049_v22 = vadd.f32 0.00028619796, %v4048_v1  ;;  %v3465_v4 = vld [vmem:[%s10114_s7 + $0xe0] sm:$0xff]  ;;  %v7861_v27 = vpop.f32.mrf.mxu1 }
 0x436   : > { %v7850_v53 = vmul.f32 %v2938_v5, %v7744_v11  ;;  %v3991_v47 = vsub.f32 1.0, %v3990_v45  ;;  %v4088_v44 = vmul.f32 2.1237322e-06, %v7710_v15  ;;  %v4106_v26 = vadd.f32 0.4994258, %v4105_v9  ;;  %3569 = vmatmul.f32.gmra.mxu1 %v3465_v4 }
 0x437   : > { %v7854_v8 = vmul.f32 %v2980_v13, %v7694_v25  ;;  %v3100_v29 = vadd.f32 0.18741608, %v3099_v23  ;;  %v4012_v17 = vmul.f32 %v4011_v16, %v7632_v24  ;;  %v3173_v59 = vmul.f32 2.1237322e-06, %v7847_v30 }
 0x438   : > { %10349 = vst [vmem:[#allocation67_spill] sm:$0xff] %v7850_v53  ;;  %v3138_v61 = vadd.f32 0.05243302, %v3137_v20  ;;  %v7863_v1 = vadd.f32 1.0, %v4067_v6  ;;  %v4143_v5 = vmul.f32 %v4142_v39, %v7803_v31  ;;  %v7867_v45 = vmul.f32 0.70710677, %v7861_v27 }
 0x439   : > { %v7870_v9 = vmul.f32 %v3022_v57, %v7625_v35  ;;  %v7873_v13 = vmul.f32 0.5, %v7600_v14  ;;  %v3975_v23 = vadd.f32 0.18741608, %v3974_v12  ;;  %v4050_v16 = vmul.f32 %v4049_v22, %v7666_v36 }
 0x43a   : > { %v7876_v56 = vpop.eup %5512  ;;  %v3992_v20 = vmul.f32 %v7824_v42, %v3991_v47  ;;  %v4089_v6 = vadd.f32 0.00028619796, %v4088_v44  ;;  %v4107_v39 = vmul.f32 %v4106_v26, %v7710_v15  ;;  %v4166_v4 = vmul.f32 %v7867_v45, %v7867_v45 }
 0x43b   : > { %10350 = vst [vmem:[#allocation68_spill] sm:$0xff] %v7870_v9  ;;  %v3061_v40 = vmul.f32 %v3060_v60, %v7718_v48  ;;  %v3101_v35 = vmul.f32 %v3100_v29, %v7728_v32  ;;  %v4013_v57 = vadd.f32 0.05243302, %v4012_v17  ;;  %v3174_v14 = vadd.f32 0.00028619796, %v3173_v59 }
 0x43c   : > { %v3139_v12 = vmul.f32 %v3138_v61, %v7767_v46  ;;  %5514 = vrcp.f32 %v7863_v1  ;;  %v4144_v22 = vadd.f32 0.112945676, %v4143_v5  ;;  %v7886_v18 = vmin.f32 %v4166_v4, 16.0 }
 0x43d   : > { %v3976_v47 = vmul.f32 %v3975_v23, %v7614_v43  ;;  %vm3995_vm2 = vweird.f32 %v7824_v42  ;;  %v4030_v44 = vmul.f32 %v7876_v56, %v7829_v2  ;;  %v4051_v26 = vadd.f32 0.0036580483, %v4050_v16 }
 0x43e   : > { %v3993_v60 = vadd.f32 %v7824_v42, %v3992_v20  ;;  %v4090_v29 = vmul.f32 %v4089_v6, %v7710_v15  ;;  %v7894_v17 = vadd.f32 1.0, %v4107_v39  ;;  %v4179_v59 = vmul.f32 3.8918573e-05, %v7886_v18 }
 0x43f   : > { %v3102_v61 = vadd.f32 1.1283791, %v3101_v35  ;;  %v4000_v5 = vand.u32 2147483648, %v7785_v52  ;;  %v4014_v4 = vmul.f32 %v4013_v57, %v7632_v24  ;;  %v3175_v43 = vmul.f32 %v3174_v14, %v7847_v30 }
 0x440   : > { %vm3994_vm4 = vweird.f32 %v7785_v52  ;;  %v3998_v23 = vand.u32 2147483647, %v7785_v52  ;;  %v3140_v16 = vadd.f32 0.18741608, %v3139_v12  ;;  %v4145_v20 = vmul.f32 %v4144_v22, %v7803_v31 }
 0x441   : > { %v3977_v10 = vadd.f32 1.1283791, %v3976_v47  ;;  %vm7905_vm5 = vmor %vm3994_vm4, %vm3995_vm2  ;;  %v4031_v39 = vsub.f32 1.0, %v4030_v44  ;;  %v4052_v35 = vmul.f32 %v4051_v26, %v7666_v36  ;;  %v4180_v57 = vadd.f32 0.001143296, %v4179_v59 }
 0x442   : > { %v7910_v51 = vpop.eup %5514  ;;  %v3997_v52 = vsel %vm7905_vm5, %v7824_v42, %v3993_v60  ;;  %v4091_v14 = vadd.f32 0.0036580483, %v4090_v29  ;;  %5516 = vrcp.f32 %v7894_v17  ;;  %v4128_v12 = vmul.f32 2.1237322e-06, %v7803_v31 }
 0x443   : > { %v4001_v22 = vor.u32 1.1754944e-38, %v4000_v5  ;;  %v4015_v47 = vadd.f32 0.18741608, %v4014_v4  ;;  %v3176_v55 = vadd.f32 0.0036580483, %v3175_v43  ;;  %v4181_v62 = vmul.f32 %v4180_v57, %v7886_v18 }
 0x444   : > { %v7918_v44 = vadd.f32 1.1283791, %v3061_v40  ;;  %vm3999_vm6 = vcmp.eq.f32.partialorder %v3998_v23, 8.507059e+37  ;;  %v3141_v26 = vmul.f32 %v3140_v16, %v7767_v46  ;;  %v4146_v59 = vadd.f32 0.4994258, %v4145_v20 }
 0x445   : > { %v4002_v9 = vsel %vm3999_vm6, %v4001_v22, %v3997_v52  ;;  %v4032_v6 = vmul.f32 %v7876_v56, %v4031_v39  ;;  %v4053_v42 = vadd.f32 0.05243302, %v4052_v35  ;;  %v4070_v60 = vmul.f32 %v7910_v51, %v7863_v1  ;;  %v7947_v52 = vpop.f32.mrf.mxu1 }
 0x446   : > { %v3978_v29 = vmul.f32 %v3977_v10, %v7603_v34  ;;  %v4092_v5 = vmul.f32 %v4091_v14, %v7710_v15  ;;  %v4129_v4 = vadd.f32 0.00028619796, %v4128_v12  ;;  %v4182_v43 = vadd.f32 0.014752088, %v4181_v62 }
 0x447   : > { %v7927_v40 = vmul.f32 %v3102_v61, %v7674_v41  ;;  %v7930_v23 = vmul.f32 0.5, %v7612_v3  ;;  %v4016_v16 = vmul.f32 %v4015_v47, %v7632_v24  ;;  %v3177_v20 = vmul.f32 %v3176_v55, %v7847_v30 }
 0x448   : > { %v7934_v39 = vpop.eup %5516  ;;  %v4003_v35 = vmul.f32 %v4002_v9, %v3978_v29  ;;  %v3142_v57 = vadd.f32 1.1283791, %v3141_v26  ;;  %v4147_v10 = vmul.f32 %v4146_v59, %v7803_v31  ;;  %v4168_v34 = vmul.f32 2.1237322e-06, %v7886_v18  ;;  %v3466_v9 = vld [vmem:[%s10114_s7 + $0xe8] sm:$0xff] }
 0x449   : > { %v4033_v62 = vadd.f32 %v7876_v56, %v4032_v6  ;;  %vm4035_vm7 = vweird.f32 %v7876_v56  ;;  %v4054_v41 = vmul.f32 %v4053_v42, %v7666_v36  ;;  %v4071_v3 = vsub.f32 1.0, %v4070_v60  ;;  %3572 = vmatmul.f32.gmra.mxu1 %v3466_v9 }
 0x44a   : > { %vm4034_vm8 = vweird.f32 %v7829_v2  ;;  %v4093_v24 = vadd.f32 0.05243302, %v4092_v5  ;;  %v4130_v55 = vmul.f32 %v4129_v4, %v7803_v31  ;;  %v4183_v61 = vmul.f32 %v4182_v43, %v7886_v18 }
 0x44b   : > { %v4038_v14 = vand.u32 2147483647, %v7829_v2  ;;  %v4040_v12 = vand.u32 2147483648, %v7829_v2  ;;  %v3178_v22 = vadd.f32 0.05243302, %v3177_v20  ;;  %v4110_v47 = vmul.f32 %v7934_v39, %v7894_v17  ;;  %vm7953_vm9 = vmor %vm4034_vm8, %vm4035_vm7 }
 0x44c   : > { %v7958_v59 = vmul.f32 0.5, %v7627_v7  ;;  %v7960_v6 = vadd.f32 1.0, %v4147_v10  ;;  %v4169_v42 = vadd.f32 0.00028619796, %v4168_v34  ;;  %v7963_v60 = vmul.f32 0.70710677, %v7947_v52 }
 0x44d   : > { %v4017_v29 = vadd.f32 1.1283791, %v4016_v16  ;;  %v4037_v2 = vsel %vm7953_vm9, %v7876_v56, %v4033_v62  ;;  %v4055_v5 = vadd.f32 0.18741608, %v4054_v41  ;;  %v4072_v4 = vmul.f32 %v7910_v51, %v4071_v3 }
 0x44e   : > { %v4094_v43 = vmul.f32 %v4093_v24, %v7710_v15  ;;  %v4131_v20 = vadd.f32 0.0036580483, %v4130_v55  ;;  %v4184_v9 = vadd.f32 0.112945676, %v4183_v61  ;;  %v4206_v7 = vmul.f32 %v7963_v60, %v7963_v60 }
 0x44f   : > { %v5325_v10 = vclamps-f32 %v4003_v35, 1.0  ;;  %vm4039_vm10 = vcmp.eq.f32.partialorder %v4038_v14, 8.507059e+37  ;;  %v4041_v34 = vor.u32 1.1754944e-38, %v4040_v12  ;;  %v4111_v53 = vsub.f32 1.0, %v4110_v47 }
 0x450   : > { %v3179_v16 = vmul.f32 %v3178_v22, %v7847_v30  ;;  %5518 = vrcp.f32 %v7960_v6  ;;  %v4170_v56 = vmul.f32 %v4169_v42, %v7886_v18  ;;  %v7975_v62 = vmin.f32 %v4206_v7, 16.0 }
 0x451   : > { %v4042_v41 = vsel %vm4039_vm10, %v4041_v34, %v4037_v2  ;;  %v4056_v3 = vmul.f32 %v4055_v5, %v7666_v36  ;;  %v4073_v24 = vadd.f32 %v7910_v51, %v4072_v4  ;;  %vm4075_vm11 = vweird.f32 %v7910_v51 }
 0x452   : > { %v4095_v55 = vadd.f32 0.18741608, %v4094_v43  ;;  %v4132_v35 = vmul.f32 %v4131_v20, %v7803_v31  ;;  %v4185_v61 = vmul.f32 %v4184_v9, %v7886_v18  ;;  %v4219_v14 = vmul.f32 3.8918573e-05, %v7975_v62 }
 0x453   : > { %v7983_v12 = vadd.f32 1.0, %v5325_v10  ;;  %v7986_v22 = vmul.f32 %v3142_v57, %v7732_v19  ;;  %v4018_v47 = vmul.f32 %v4017_v29, %v7617_v0  ;;  %v4112_v36 = vmul.f32 %v7934_v39, %v4111_v53 }
 0x454   : > { %vm4074_vm12 = vweird.f32 %v7863_v1  ;;  %v4078_v26 = vand.u32 2147483647, %v7863_v1  ;;  %v4080_v42 = vand.u32 2147483648, %v7863_v1  ;;  %v4171_v2 = vadd.f32 0.0036580483, %v4170_v56 }
 0x455   : > { %v4043_v5 = vmul.f32 %v4042_v41, %v4018_v47  ;;  %v3180_v4 = vadd.f32 0.18741608, %v3179_v16  ;;  %v4057_v43 = vadd.f32 1.1283791, %v4056_v3  ;;  %vm7995_vm13 = vmor %vm4074_vm12, %vm4075_vm11  ;;  %v4220_v19 = vadd.f32 0.001143296, %v4219_v14 }
 0x456   : > { %v7999_v0 = vpop.eup %5518  ;;  %v4077_v53 = vsel %vm7995_vm13, %v7910_v51, %v4073_v24  ;;  %v4096_v57 = vmul.f32 %v4095_v55, %v7710_v15  ;;  %v4133_v1 = vadd.f32 0.05243302, %v4132_v35  ;;  %v4186_v29 = vadd.f32 0.4994258, %v4185_v61 }
 0x457   : > { %v4113_v9 = vadd.f32 %v7934_v39, %v4112_v36  ;;  %vm4115_vm3 = vweird.f32 %v7934_v39  ;;  %v4208_v7 = vmul.f32 2.1237322e-06, %v7975_v62  ;;  %v4221_v10 = vmul.f32 %v4220_v19, %v7975_v62 }
 0x458   : > { %vm4079_vm14 = vcmp.eq.f32.partialorder %v4078_v26, 8.507059e+37  ;;  %v4081_v34 = vor.u32 1.1754944e-38, %v4080_v42  ;;  %v4120_v16 = vand.u32 2147483648, %v7894_v17  ;;  %v4172_v56 = vmul.f32 %v4171_v2, %v7886_v18 }
 0x459   : > { %vm4114_vm15 = vweird.f32 %v7894_v17  ;;  %v4118_v15 = vand.u32 2147483647, %v7894_v17  ;;  %v4150_v51 = vmul.f32 %v7999_v0, %v7960_v6  ;;  %v4222_v41 = vadd.f32 0.014752088, %v4221_v10 }
 0x45a   : > { %v3181_v3 = vmul.f32 %v3180_v4, %v7847_v30  ;;  %v4082_v24 = vsel %vm4079_vm14, %v4081_v34, %v4077_v53  ;;  %vm8016_vm1 = vmor %vm4114_vm15, %vm4115_vm3  ;;  %v4134_v35 = vmul.f32 %v4133_v1, %v7803_v31  ;;  %v4187_v61 = vmul.f32 %v4186_v29, %v7886_v18 }
 0x45b   : > { %v4097_v14 = vadd.f32 1.1283791, %v4096_v57  ;;  %v4117_v17 = vsel %vm8016_vm1, %v7934_v39, %v4113_v9  ;;  %v4209_v47 = vadd.f32 0.00028619796, %v4208_v7  ;;  %v4223_v36 = vmul.f32 %v4222_v41, %v7975_v62  ;;  %v3467_v39 = vld [vmem:[%s10114_s7 + $0xf0] sm:$0xff]  ;;  %v8033_v9 = vpop.f32.mrf.mxu1 }
 0x45c   : > { %v4058_v26 = vmul.f32 %v4057_v43, %v7635_v38  ;;  %v4121_v42 = vor.u32 1.1754944e-38, %v4120_v16  ;;  %v4173_v2 = vadd.f32 0.05243302, %v4172_v56  ;;  %v3024_v4 = vmul.f32 3.8918573e-05, %v7648_v21  ;;  %3575 = vmatmul.f32.gmra.mxu1 %v3467_v39 }
 0x45d   : > { %v5326_v20 = vclamps-f32 %v4043_v5, 1.0  ;;  %vm4119_vm2 = vcmp.eq.f32.partialorder %v4118_v15, 8.507059e+37  ;;  %v4151_v19 = vsub.f32 1.0, %v4150_v51  ;;  %v4224_v53 = vadd.f32 0.112945676, %v4223_v36 }
 0x45e   : > { %v4083_v1 = vmul.f32 %v4082_v24, %v4058_v26  ;;  %v4122_v29 = vsel %vm4119_vm2, %v4121_v42, %v4117_v17  ;;  %v4135_v57 = vadd.f32 0.18741608, %v4134_v35  ;;  %v8028_v10 = vadd.f32 1.0, %v4187_v61 }
 0x45f   : > { %v4210_v38 = vmul.f32 %v4209_v47, %v7975_v62  ;;  %v4225_v43 = vmul.f32 %v4224_v53, %v7975_v62  ;;  %v8038_v5 = vmul.f32 0.70710677, %v8033_v9  ;;  %v3025_v7 = vadd.f32 0.001143296, %v3024_v4 }
 0x460   : > { %v8040_v34 = vadd.f32 1.1283791, %v3181_v3  ;;  %v8043_v16 = vmul.f32 0.5, %v7671_v63  ;;  %v4098_v56 = vmul.f32 %v4097_v14, %v7678_v28  ;;  %v4174_v15 = vmul.f32 %v4173_v2, %v7886_v18 }
 0x461   : > { %v8047_v51 = vadd.f32 1.0, %v5326_v20  ;;  %v4152_v41 = vmul.f32 %v7999_v0, %v4151_v19  ;;  %v4226_v24 = vadd.f32 0.4994258, %v4225_v43  ;;  %v4246_v55 = vmul.f32 %v8038_v5, %v8038_v5 }
 0x462   : > { %v5327_v35 = vclamps-f32 %v4083_v1, 1.0  ;;  %v4123_v61 = vmul.f32 %v4122_v29, %v4098_v56  ;;  %v4136_v3 = vmul.f32 %v4135_v57, %v7803_v31  ;;  %5520 = vrcp.f32 %v8028_v10 }
 0x463   : > { %v4211_v63 = vadd.f32 0.0036580483, %v4210_v38  ;;  %v4227_v17 = vmul.f32 %v4226_v24, %v7975_v62  ;;  %v8055_v28 = vmin.f32 %v4246_v55, 16.0  ;;  %v3026_v14 = vmul.f32 %v3025_v7, %v7648_v21 }
 0x464   : > { %vm4155_vm4 = vweird.f32 %v7999_v0  ;;  %v4158_v47 = vand.u32 2147483647, %v7960_v6  ;;  %v4175_v36 = vadd.f32 0.18741608, %v4174_v15  ;;  %v3064_v26 = vmul.f32 3.8918573e-05, %v7718_v48 }
 0x465   : > { %v4153_v42 = vadd.f32 %v7999_v0, %v4152_v41  ;;  %v8062_v2 = vadd.f32 1.0, %v4227_v17  ;;  %v4248_v31 = vmul.f32 2.1237322e-06, %v8055_v28  ;;  %v4259_v4 = vmul.f32 3.8918573e-05, %v8055_v28 }
 0x466   : > { %v4936_v20 = vadd.f32 1.0, %v5327_v35  ;;  %vm4154_vm5 = vweird.f32 %v7960_v6  ;;  %v3065_v19 = vadd.f32 0.001143296, %v3064_v26  ;;  %v2984_v53 = vmul.f32 3.8918573e-05, %v7694_v25 }
 0x467   : > { %v4160_v1 = vand.u32 2147483648, %v7960_v6  ;;  %v4212_v29 = vmul.f32 %v4211_v63, %v7975_v62  ;;  %5522 = vrcp.f32 %v8062_v2  ;;  %v3027_v57 = vadd.f32 0.014752088, %v3026_v14  ;;  %vm8075_vm6 = vmor %vm4154_vm5, %vm4155_vm4 }
 0x468   : > { %v8071_v39 = vpop.eup %5520  ;;  %v4137_v38 = vadd.f32 1.1283791, %v4136_v3  ;;  %v4249_v7 = vadd.f32 0.00028619796, %v4248_v31  ;;  %v4260_v56 = vadd.f32 0.001143296, %v4259_v4  ;;  %v3066_v15 = vmul.f32 %v3065_v19, %v7718_v48 }
 0x469   : > { %v5328_v41 = vclamps-f32 %v4123_v61, 1.0  ;;  %v4157_v6 = vsel %vm8075_vm6, %v7999_v0, %v4153_v42  ;;  %vm8083_vm7 = vcmp.eq.f32.partialorder %v4158_v47, 8.507059e+37  ;;  %v4176_v55 = vmul.f32 %v4175_v36, %v7886_v18 }
 0x46a   : > { %v4250_v35 = vmul.f32 %v4249_v7, %v8055_v28  ;;  %v4261_v3 = vmul.f32 %v4260_v56, %v8055_v28  ;;  %v3067_v63 = vadd.f32 0.014752088, %v3066_v15  ;;  %v2985_v17 = vadd.f32 0.001143296, %v2984_v53 }
 0x46b   : > { %v4161_v14 = vor.u32 1.1754944e-38, %v4160_v1  ;;  %v4190_v61 = vmul.f32 %v8071_v39, %v8028_v10  ;;  %v4213_v26 = vadd.f32 0.05243302, %v4212_v29  ;;  %v3028_v31 = vmul.f32 %v3027_v57, %v7648_v21 }
 0x46c   : > { %v4251_v0 = vadd.f32 0.0036580483, %v4250_v35  ;;  %v4262_v47 = vadd.f32 0.014752088, %v4261_v3  ;;  %v3104_v42 = vmul.f32 3.8918573e-05, %v7728_v32  ;;  %v3068_v4 = vmul.f32 %v3067_v63, %v7718_v48 }
 0x46d   : > { %v8095_v18 = vpop.eup %5522  ;;  %v8098_v36 = vmul.f32 %v4936_v20, %v7958_v59  ;;  %v8101_v19 = vmul.f32 0.5, %v7777_v54  ;;  %v4138_v53 = vmul.f32 %v4137_v38, %v7788_v50  ;;  %v4162_v1 = vsel %vm8083_vm7, %v4161_v14, %v4157_v6 }
 0x46e   : > { %v4177_v29 = vadd.f32 1.1283791, %v4176_v55  ;;  %v4230_v57 = vmul.f32 %v8095_v18, %v8062_v2  ;;  %v4263_v43 = vmul.f32 %v4262_v47, %v8055_v28  ;;  %v2986_v7 = vmul.f32 %v2985_v17, %v7694_v25  ;;  %v3468_v55 = vld [vmem:[%s10114_s7 + $0xf8] sm:$0xff] }
 0x46f   : > { %v4214_v56 = vmul.f32 %v4213_v26, %v7975_v62  ;;  %v3105_v59 = vadd.f32 0.001143296, %v3104_v42  ;;  %v3069_v20 = vadd.f32 0.112945676, %v3068_v4  ;;  %v3029_v15 = vadd.f32 0.112945676, %v3028_v31  ;;  %3578 = vmatmul.f32.gmra.mxu1 %v3468_v55 }
 0x470   : > { %v8111_v54 = vadd.f32 1.0, %v5328_v41  ;;  %v4191_v35 = vsub.f32 1.0, %v4190_v61  ;;  %v4252_v50 = vmul.f32 %v4251_v0, %v8055_v28  ;;  %v4264_v38 = vadd.f32 0.112945676, %v4263_v43 }
 0x471   : > { %v8114_v6 = vmul.f32 %v4162_v1, %v4138_v53  ;;  %v4231_v24 = vsub.f32 1.0, %v4230_v57  ;;  %v3106_v3 = vmul.f32 %v3105_v59, %v7728_v32  ;;  %v3070_v63 = vmul.f32 %v3069_v20, %v7718_v48 }
 0x472   : > { %v8122_v17 = vmul.f32 %v4177_v29, %v7867_v45  ;;  %v4198_v41 = vand.u32 2147483647, %v8028_v10  ;;  %v4265_v14 = vmul.f32 %v4264_v38, %v8055_v28  ;;  %v2987_v61 = vadd.f32 0.014752088, %v2986_v7 }
 0x473   : > { %v4215_v26 = vadd.f32 0.18741608, %v4214_v56  ;;  %v3107_v31 = vadd.f32 0.014752088, %v3106_v3  ;;  %v3071_v0 = vadd.f32 0.4994258, %v3070_v63  ;;  %v3030_v47 = vmul.f32 %v3029_v15, %v7648_v21 }
 0x474   : > { %v4192_v42 = vmul.f32 %v8071_v39, %v4191_v35  ;;  %v4253_v4 = vadd.f32 0.05243302, %v4252_v50  ;;  %v4266_v53 = vadd.f32 0.4994258, %v4265_v14  ;;  %v3144_v1 = vmul.f32 3.8918573e-05, %v7767_v46 }
 0x475   : > { %vm4194_vm8 = vweird.f32 %v8028_v10  ;;  %v4232_v45 = vmul.f32 %v8095_v18, %v4231_v24  ;;  %v3108_v29 = vmul.f32 %v3107_v31, %v7728_v32  ;;  %v3072_v57 = vmul.f32 %v3071_v0, %v7718_v48 }
 0x476   : > { %v4200_v43 = vand.u32 2147483648, %v8028_v10  ;;  %v4267_v7 = vmul.f32 %v4266_v53, %v8055_v28  ;;  %v3145_v56 = vadd.f32 0.001143296, %v3144_v1  ;;  %v2988_v59 = vmul.f32 %v2987_v61, %v7694_v25 }
 0x477   : > { %vm4195_vm9 = vweird.f32 %v8071_v39  ;;  %vm8137_vm10 = vcmp.eq.f32.partialorder %v4198_v41, 8.507059e+37  ;;  %v3109_v15 = vadd.f32 0.112945676, %v3108_v29  ;;  %v3031_v35 = vadd.f32 0.4994258, %v3030_v47 }
 0x478   : > { %v4193_v50 = vadd.f32 %v8071_v39, %v4192_v42  ;;  %v4216_v38 = vmul.f32 %v4215_v26, %v7975_v62  ;;  %v4254_v48 = vmul.f32 %v4253_v4, %v8055_v28  ;;  %v8144_v24 = vadd.f32 1.0, %v4267_v7  ;;  %vm8158_vm12 = vmor %vm4194_vm8, %vm4195_vm9 }
 0x479   : > { %v4233_v55 = vadd.f32 %v8095_v18, %v4232_v45  ;;  %vm4235_vm11 = vweird.f32 %v8095_v18  ;;  %v3146_v3 = vmul.f32 %v3145_v56, %v7767_v46  ;;  %v8149_v63 = vadd.f32 1.0, %v3072_v57 }
 0x47a   : > { %v4240_v41 = vand.u32 2147483648, %v8062_v2  ;;  %5524 = vrcp.f32 %v8144_v24  ;;  %v3110_v14 = vmul.f32 %v3109_v15, %v7728_v32  ;;  %v2989_v61 = vadd.f32 0.112945676, %v2988_v59 }
 0x47b   : > { %v4201_v26 = vor.u32 1.1754944e-38, %v4200_v43  ;;  %vm4234_vm13 = vweird.f32 %v8062_v2  ;;  %v4238_v31 = vand.u32 2147483647, %v8062_v2  ;;  %v3032_v0 = vmul.f32 %v3031_v35, %v7648_v21 }
 0x47c   : > { %v4197_v47 = vsel %vm8158_vm12, %v8071_v39, %v4193_v50  ;;  %vm8168_vm3 = vmor %vm4234_vm13, %vm4235_vm11  ;;  %v4255_v10 = vadd.f32 0.18741608, %v4254_v48  ;;  %v3184_v4 = vmul.f32 3.8918573e-05, %v7847_v30  ;;  %v2944_v53 = vmul.f32 3.8918573e-05, %v7744_v11 }
 0x47d   : > { %v4217_v1 = vadd.f32 1.1283791, %v4216_v38  ;;  %v4237_v2 = vsel %vm8168_vm3, %v8095_v18, %v4233_v55  ;;  %v3147_v45 = vadd.f32 0.014752088, %v3146_v3  ;;  %5526 = vrcp.f32 %v8149_v63 }
 0x47e   : > { %v4241_v21 = vor.u32 1.1754944e-38, %v4240_v41  ;;  %v3185_v29 = vadd.f32 0.001143296, %v3184_v4  ;;  %v3111_v39 = vadd.f32 0.4994258, %v3110_v14  ;;  %v2990_v57 = vmul.f32 %v2989_v61, %v7694_v25 }
 0x47f   : > { %v4202_v43 = vsel %vm8137_vm10, %v4201_v26, %v4197_v47  ;;  %vm4239_vm14 = vcmp.eq.f32.partialorder %v4238_v31, 8.507059e+37  ;;  %v3148_v7 = vmul.f32 %v3147_v45, %v7767_v46  ;;  %v8182_v56 = vadd.f32 1.0, %v3032_v0 }
 0x480   : > { %v5525_v59 = vpop.eup %5524  ;;  %v4242_v15 = vsel %vm4239_vm14, %v4241_v21, %v4237_v2  ;;  %v4256_v18 = vmul.f32 %v4255_v10, %v8055_v28  ;;  %v3186_v35 = vmul.f32 %v3185_v29, %v7847_v30  ;;  %v3112_v50 = vmul.f32 %v3111_v39, %v7728_v32 }
 0x481   : > { %v4218_v38 = vmul.f32 %v4217_v1, %v7963_v60  ;;  %v4270_v48 = vmul.f32 %v5525_v59, %v8144_v24  ;;  %v3149_v55 = vadd.f32 0.112945676, %v3148_v7  ;;  %v2945_v20 = vadd.f32 0.001143296, %v2944_v53 }
 0x482   : > { %v4203_v3 = vmul.f32 %v4202_v43, %v8122_v17  ;;  %v3187_v41 = vadd.f32 0.014752088, %v3186_v35  ;;  %v8190_v14 = vadd.f32 1.0, %v3112_v50  ;;  %v2991_v61 = vadd.f32 0.4994258, %v2990_v57 }
 0x483   : > { %v8192_v62 = vpop.eup %5526  ;;  %v4243_v26 = vmul.f32 %v4242_v15, %v4218_v38  ;;  %v4271_v28 = vsub.f32 1.0, %v4270_v48  ;;  %v3150_v31 = vmul.f32 %v3149_v55, %v7767_v46  ;;  %5528 = vrcp.f32 %v8182_v56 }
 0x484   : > { %v4257_v32 = vadd.f32 1.1283791, %v4256_v18  ;;  %v4280_v60 = vand.u32 2147483648, %v8144_v24  ;;  %v3188_v0 = vmul.f32 %v3187_v41, %v7847_v30  ;;  %5530 = vrcp.f32 %v8190_v14 }
 0x485   : > { %v4272_v17 = vmul.f32 %v5525_v59, %v4271_v28  ;;  %vm4275_vm15 = vweird.f32 %v5525_v59  ;;  %v4278_v47 = vand.u32 2147483647, %v8144_v24  ;;  %v3151_v42 = vadd.f32 0.4994258, %v3150_v31 }
 0x486   : > { %v5329_v10 = vclamps-f32 %v8114_v6, 1.0  ;;  %v3189_v4 = vadd.f32 0.112945676, %v3188_v0  ;;  %v3075_v53 = vmul.f32 %v8192_v62, %v8149_v63  ;;  %v2946_v1 = vmul.f32 %v2945_v20, %v7744_v11 }
 0x487   : > { %v5330_v2 = vclamps-f32 %v4203_v3, 1.0  ;;  %v4273_v45 = vadd.f32 %v5525_v59, %v4272_v17  ;;  %vm4274_vm1 = vweird.f32 %v8144_v24  ;;  %v3152_v21 = vmul.f32 %v3151_v42, %v7767_v46 }
 0x488   : > { %v5331_v29 = vclamps-f32 %v4243_v26, 1.0  ;;  %vm4276_vm2 = vmor %vm4274_vm1, %vm4275_vm15  ;;  %v4281_v39 = vor.u32 1.1754944e-38, %v4280_v60  ;;  %v3190_v57 = vmul.f32 %v3189_v4, %v7847_v30  ;;  %v2992_v43 = vmul.f32 %v2991_v61, %v7694_v25 }
 0x489   : > { %v8208_v6 = vpop.eup %5528  ;;  %v4258_v7 = vmul.f32 %v4257_v32, %v8038_v5  ;;  %v4277_v15 = vsel %vm4276_vm2, %v5525_v59, %v4273_v45  ;;  %vm4279_vm4 = vcmp.eq.f32.partialorder %v4278_v47, 8.507059e+37  ;;  %v8211_v18 = vadd.f32 1.0, %v3152_v21 }
 0x48a   : > { %v8213_v35 = vpop.eup %5530  ;;  %v4938_v24 = vadd.f32 1.0, %v5329_v10  ;;  %v4282_v50 = vsel %vm4279_vm4, %v4281_v39, %v4277_v15  ;;  %v3191_v46 = vadd.f32 0.4994258, %v3190_v57  ;;  %v3076_v38 = vsub.f32 1.0, %v3075_v53 }
 0x48b   : > { %v4939_v48 = vadd.f32 1.0, %v5330_v2  ;;  %v4283_v55 = vmul.f32 %v4282_v50, %v4258_v7  ;;  %5532 = vrcp.f32 %v8211_v18  ;;  %v2947_v20 = vadd.f32 0.014752088, %v2946_v1 }
 0x48c   : > { %v4940_v25 = vadd.f32 1.0, %v5331_v29  ;;  %v3192_v3 = vmul.f32 %v3191_v46, %v7847_v30  ;;  %v3035_v5 = vmul.f32 %v8208_v6, %v8182_v56  ;;  %v8219_v59 = vadd.f32 1.0, %v2992_v43 }
 0x48d   : > { %v8223_v41 = vmul.f32 %v8111_v54, %v8043_v16  ;;  %v3595_v61 = vmul.f32 0.5, %v7861_v27  ;;  %v5332_v26 = vclamps-f32 %v4283_v55, 1.0  ;;  %v3115_v28 = vmul.f32 %v8213_v35, %v8190_v14 }
 0x48e   : > { %v4970_v31 = vmul.f32 %v4938_v24, %v8101_v19  ;;  %v3596_v32 = vmul.f32 0.5, %v7947_v52  ;;  %v3597_v30 = vmul.f32 0.5, %v8033_v9  ;;  %v3077_v60 = vmul.f32 %v8192_v62, %v3076_v38 }
 0x48f   : > { %v4971_v0 = vmul.f32 %v4939_v48, %v3595_v61  ;;  %v4941_v17 = vadd.f32 1.0, %v5332_v26  ;;  %v8232_v47 = vadd.f32 1.0, %v3192_v3  ;;  %v2948_v16 = vmul.f32 %v2947_v20, %v7744_v11 }
 0x490   : > { %v4972_v54 = vmul.f32 %v4940_v25, %v3596_v32  ;;  %v3116_v27 = vsub.f32 1.0, %v3115_v28  ;;  %v3036_v42 = vsub.f32 1.0, %v3035_v5  ;;  %5534 = vrcp.f32 %v8219_v59 }
 0x491   : > { %v5533_v10 = vpop.eup %5532  ;;  %v4973_v4 = vmul.f32 %v4941_v17, %v3597_v30  ;;  %5536 = vrcp.f32 %v8232_v47  ;;  %vm3079_vm5 = vweird.f32 %v8149_v63  ;;  %vm3080_vm6 = vweird.f32 %v8192_v62 }
 0x492   : > { %v3155_v52 = vmul.f32 %v5533_v10, %v8211_v18  ;;  %v3117_v9 = vmul.f32 %v8213_v35, %v3116_v27  ;;  %v8242_v19 = vadd.f32 %v8192_v62, %v3077_v60  ;;  %v3085_v53 = vand.u32 2147483648, %v8149_v63  ;;  %vm8253_vm11 = vmor %vm3079_vm5, %vm3080_vm6 }
 0x493   : > { %v3163_v1 = vand.u32 2147483647, %v8211_v18  ;;  %v3165_v2 = vand.u32 2147483648, %v8211_v18  ;;  %vm3119_vm7 = vweird.f32 %v8190_v14  ;;  %vm3120_vm8 = vweird.f32 %v8213_v35  ;;  %4990 = vmatpush.msra.mxu3 %v4973_v4 }
 0x494   : > { %v3156_v45 = vsub.f32 1.0, %v3155_v52  ;;  %vm3159_vm9 = vweird.f32 %v8211_v18  ;;  %vm3160_vm10 = vweird.f32 %v5533_v10  ;;  %v3125_v21 = vand.u32 2147483648, %v8190_v14  ;;  %vm8264_vm12 = vmor %vm3119_vm7, %vm3120_vm8 }
 0x495   : > { %v3118_v39 = vadd.f32 %v8213_v35, %v3117_v9  ;;  %v3123_v57 = vand.u32 2147483647, %v8190_v14  ;;  %v3045_v43 = vand.u32 2147483648, %v8182_v56  ;;  %v2949_v7 = vadd.f32 0.112945676, %v2948_v16  ;;  %4991 = vmatpush.msra.mxu3 %v4972_v54  ;;  %vm8274_vm3 = vmor %vm3159_vm9, %vm3160_vm10 }
 0x496   : > { %v8260_v15 = vpop.eup %5534  ;;  %v3157_v24 = vmul.f32 %v5533_v10, %v3156_v45  ;;  %v3083_v46 = vand.u32 2147483647, %v8149_v63  ;;  %v3037_v38 = vmul.f32 %v8208_v6, %v3036_v42  ;;  %vm3039_vm13 = vweird.f32 %v8182_v56 }
 0x497   : > { %v5537_v48 = vpop.eup %5536  ;;  %vm8278_vm14 = vcmp.eq.f32.partialorder %v3163_v1, 8.507059e+37  ;;  %v3166_v20 = vor.u32 1.1754944e-38, %v3165_v2  ;;  %v3082_v63 = vsel %vm8253_vm11, %v8192_v62, %v8242_v19  ;;  %v3086_v25 = vor.u32 1.1754944e-38, %v3085_v53  ;;  %4992 = vmatpush.msra.mxu3 %v4971_v0  ;;  %v10384_v2 = vld [vmem:[#allocation68_spill] sm:$0xff] }
 0x498   : > { %v3195_v3 = vmul.f32 %v5537_v48, %v8232_v47  ;;  %vm3199_vm15 = vweird.f32 %v8232_v47  ;;  %v3158_v18 = vadd.f32 %v5533_v10, %v3157_v24  ;;  %v3126_v5 = vor.u32 1.1754944e-38, %v3125_v21 }
 0x499   : > { %v3205_v61 = vand.u32 2147483648, %v8232_v47  ;;  %v3122_v26 = vsel %vm8264_vm12, %v8213_v35, %v3118_v39  ;;  %vm3124_vm1 = vcmp.eq.f32.partialorder %v3123_v57, 8.507059e+37  ;;  %vm3040_vm2 = vweird.f32 %v8208_v6  ;;  %4993 = vmatpush.msra.mxu3 %v4970_v31  ;;  %v10385_v57 = vld [vmem:[#allocation43_spill] sm:$0xff] }
 0x49a   : > { %v3196_v28 = vsub.f32 1.0, %v3195_v3  ;;  %vm3200_vm4 = vweird.f32 %v5537_v48  ;;  %v3203_v62 = vand.u32 2147483647, %v8232_v47  ;;  %v3162_v32 = vsel %vm8274_vm3, %v5533_v10, %v3158_v18  ;;  %vm8313_vm6 = vmor %vm3039_vm13, %vm3040_vm2 }
 0x49b   : > { %v3167_v30 = vsel %vm8278_vm14, %v3166_v20, %v3162_v32  ;;  %vm8298_vm5 = vcmp.eq.f32.partialorder %v3083_v46, 8.507059e+37  ;;  %v3038_v35 = vadd.f32 %v8208_v6, %v3037_v38  ;;  %v3043_v0 = vand.u32 2147483647, %v8182_v56  ;;  %4994 = vmatpush.msra.mxu3 %v8223_v41  ;;  %vm8324_vm7 = vmor %vm3199_vm15, %vm3200_vm4  ;;  %v10391_v32 = vld [vmem:[#allocation44_spill] sm:$0xff] }
 0x49c   : > { %v3063_v31 = vmul.f32 %v7918_v44, %v7660_v49  ;;  %v4966_v17 = vmul.f32 %v7983_v12, %v7873_v13  ;;  %v3197_v16 = vmul.f32 %v5537_v48, %v3196_v28  ;;  %v3127_v54 = vsel %vm3124_vm1, %v3126_v5, %v3122_v26  ;;  %v10390_v28 = vld [vmem:[#allocation63_spill] sm:$0xff] }
 0x49d   : > { %v4967_v42 = vmul.f32 %v8047_v51, %v7930_v23  ;;  %v3183_v41 = vmul.f32 %v8040_v34, %v7821_v33  ;;  %v3206_v13 = vor.u32 1.1754944e-38, %v3205_v61  ;;  %v3168_v44 = vmul.f32 %v3167_v30, %v7986_v22  ;;  %4995 = vmatpush.msra.mxu3 %v8098_v36 }
 0x49e   : > { %v3198_v12 = vadd.f32 %v5537_v48, %v3197_v16  ;;  %vm3204_vm8 = vcmp.eq.f32.partialorder %v3203_v62, 8.507059e+37  ;;  %v3087_v23 = vsel %vm8298_vm5, %v3086_v25, %v3082_v63  ;;  %v2950_v51 = vmul.f32 %v2949_v7, %v7744_v11  ;;  %v10386_v7 = vld [vmem:[#allocation55_spill] sm:$0xff] }
 0x49f   : > { %v3128_v33 = vmul.f32 %v3127_v54, %v7927_v40  ;;  %v3042_v34 = vsel %vm8313_vm6, %v8208_v6, %v3038_v35  ;;  %vm3044_vm9 = vcmp.eq.f32.partialorder %v3043_v0, 8.507059e+37  ;;  %v3046_v56 = vor.u32 1.1754944e-38, %v3045_v43  ;;  %4996 = vmatpush.msra.mxu3 %v4967_v42  ;;  %v10393_v54 = vld [vmem:[#allocation60_spill] sm:$0xff]  ;;  %v10394_v42 = vld [vmem:[#allocation66_spill] sm:$0xff] }
 0x4a0   : > { %v2854_v22 = vadd.f32 0.00028619796, %v7817_v58  ;;  %v2896_v36 = vadd.f32 0.0036580483, %v7837_v37  ;;  %v3202_v47 = vsel %vm8324_vm7, %v5537_v48, %v3198_v12  ;;  %v2995_v10 = vmul.f32 %v8260_v15, %v8219_v59  ;;  %v10383_v58 = vld [vmem:[#allocation67_spill] sm:$0xff]  ;;  %v10389_v48 = vld [vmem:[#allocation65_spill] sm:$0xff] }
 0x4a1   : > { %v2982_v4 = vadd.f32 1.1283791, %v7854_v8  ;;  %v3207_v40 = vsel %vm3204_vm8, %v3206_v13, %v3202_v47  ;;  %v5315_v52 = vclamps-f32 %v3168_v44, 1.0  ;;  %v3088_v9 = vmul.f32 %v3087_v23, %v3063_v31  ;;  %4997 = vmatpush.msra.mxu3 %v4966_v17  ;;  %v10392_v17 = vld [vmem:[#allocation62_spill] sm:$0xff]  ;;  %v10395_v13 = vld [vmem:[#allocation41_spill] sm:$0xff] }
 0x4a2   : > { %v3208_v6 = vmul.f32 %v3207_v40, %v3183_v41  ;;  %v3047_v19 = vsel %vm3044_vm9, %v3046_v56, %v3042_v34  ;;  %v2996_v53 = vsub.f32 1.0, %v2995_v10  ;;  %vm2999_vm10 = vweird.f32 %v8219_v59  ;;  %v10396_v10 = vld [vmem:[#allocation40_spill] sm:$0xff] }
 0x4a3   : > { %v2940_v1 = vadd.f32 0.18741608, %v10383_v58  ;;  %v5314_v37 = vclamps-f32 %v3128_v33, 1.0  ;;  %v3048_v45 = vmul.f32 %v3047_v19, %v10384_v2  ;;  %v2951_v21 = vadd.f32 0.4994258, %v2950_v51  ;;  %v10398_v19 = vld [vmem:[#allocation39_spill] sm:$0xff] }
 0x4a4   : > { %v5316_v29 = vclamps-f32 %v3208_v6, 1.0  ;;  %v2997_v39 = vmul.f32 %v8260_v15, %v2996_v53  ;;  %vm3000_vm11 = vweird.f32 %v8260_v15  ;;  %v3003_v8 = vand.u32 2147483647, %v8219_v59 }
 0x4a5   : > { %v2983_v43 = vmul.f32 %v2982_v4, %v10385_v57  ;;  %v1897_v24 = vmul.f32 0.5, %v10386_v7  ;;  %v3241_v50 = vadd.f32 1.0, %v5315_v52  ;;  %v5313_v46 = vclamps-f32 %v3088_v9, 1.0  ;;  %vm8352_vm12 = vmor %vm2999_vm10, %vm3000_vm11  ;;  %v10397_v9 = vld [vmem:[#allocation64_spill] sm:$0xff] }
 0x4a6   : > { %v1898_v55 = vmul.f32 0.5, %v10389_v48  ;;  %v3242_v14 = vadd.f32 1.0, %v5316_v29  ;;  %v2998_v20 = vadd.f32 %v8260_v15, %v2997_v39  ;;  %v3005_v63 = vand.u32 2147483648, %v8219_v59  ;;  %v10400_v29 = vld [vmem:[#allocation50_spill] sm:$0xff] }
 0x4a7   : > { %v3240_v25 = vadd.f32 1.0, %v5314_v37  ;;  %v5312_v3 = vclamps-f32 %v3048_v45, 1.0  ;;  %vm3004_vm13 = vcmp.eq.f32.partialorder %v3003_v8, 8.507059e+37  ;;  %v2952_v18 = vmul.f32 %v2951_v21, %v7744_v11 }
 0x4a8   : > { %v3274_v5 = vmul.f32 %v3242_v14, %v1898_v55  ;;  %v3002_v61 = vsel %vm8352_vm12, %v8260_v15, %v2998_v20  ;;  %v3006_v26 = vor.u32 1.1754944e-38, %v3005_v63  ;;  %v2904_v62 = vmul.f32 3.8918573e-05, %v10390_v28 }
 0x4a9   : > { %v1896_v30 = vmul.f32 0.5, %v10391_v32  ;;  %v3273_v60 = vmul.f32 %v3241_v50, %v1897_v24  ;;  %v3239_v35 = vadd.f32 1.0, %v5313_v46  ;;  %v8365_v0 = vadd.f32 1.0, %v2952_v18 }
 0x4aa   : > { %3340 = vmatpush.msrb.mxu0 %v3274_v5  ;;  %v3007_v59 = vsel %vm3004_vm13, %v3006_v26, %v3002_v61  ;;  %v2905_v31 = vadd.f32 0.001143296, %v2904_v62  ;;  %v2864_v16 = vmul.f32 3.8918573e-05, %v10392_v17  ;;  %v2824_v27 = vmul.f32 3.8918573e-05, %v10393_v54 }
 0x4ab   : > { %v2815_v41 = vmul.f32 %v10394_v42, %v10393_v54  ;;  %v2855_v15 = vmul.f32 %v2854_v22, %v10392_v17  ;;  %v3008_v49 = vmul.f32 %v3007_v59, %v2983_v43  ;;  %5538 = vrcp.f32 %v8365_v0 }
 0x4ac   : > { %v1895_v44 = vmul.f32 0.5, %v10395_v13  ;;  %3341 = vmatpush.msrb.mxu0 %v3273_v60  ;;  %v3272_v12 = vmul.f32 %v3240_v25, %v1896_v30  ;;  %v3238_v23 = vadd.f32 1.0, %v5312_v3  ;;  %v2906_v51 = vmul.f32 %v2905_v31, %v10390_v28  ;;  %v10401_v25 = vld [vmem:[#allocation59_spill] sm:$0xff] }
 0x4ad   : > { %v2897_v33 = vmul.f32 %v2896_v36, %v10390_v28  ;;  %v2941_v34 = vmul.f32 %v2940_v1, %v7744_v11  ;;  %v5311_v56 = vclamps-f32 %v3008_v49, 1.0  ;;  %v2865_v47 = vadd.f32 0.001143296, %v2864_v16  ;;  %v10399_v1 = vld [vmem:[#allocation53_spill] sm:$0xff]  ;;  %v10405_v49 = vld [vmem:[#allocation56_spill] sm:$0xff] }
 0x4ae   : > { %v1894_v4 = vmul.f32 0.5, %v10396_v10  ;;  %3342 = vmatpush.msrb.mxu0 %v3272_v12  ;;  %v3271_v22 = vmul.f32 %v3239_v35, %v1895_v44  ;;  %v2907_v40 = vadd.f32 0.014752088, %v2906_v51  ;;  %v2825_v52 = vadd.f32 0.001143296, %v2824_v27  ;;  %v10404_v27 = vld [vmem:[#allocation49_spill] sm:$0xff] }
 0x4af   : > { %v2776_v6 = vadd.f32 0.0036580483, %v10397_v9  ;;  %v1893_v53 = vmul.f32 0.5, %v10398_v19  ;;  %v3237_v58 = vadd.f32 1.0, %v5311_v56  ;;  %v2866_v37 = vmul.f32 %v2865_v47, %v10392_v17  ;;  %v10406_v19 = vld [vmem:[#allocation52_spill] sm:$0xff] }
 0x4b0   : > { %3343 = vmatpush.msrb.mxu0 %v3271_v22  ;;  %v3270_v2 = vmul.f32 %v3238_v23, %v1894_v4  ;;  %v2908_v36 = vmul.f32 %v2907_v40, %v10390_v28  ;;  %v2826_v11 = vmul.f32 %v2825_v52, %v10393_v54  ;;  %v2784_v45 = vmul.f32 3.8918573e-05, %v10399_v1 }
 0x4b1   : > { %v5539_v21 = vpop.eup %5538  ;;  %v2611_v39 = vmul.f32 %v10400_v29, %v10400_v29  ;;  %v2816_v8 = vadd.f32 0.0036580483, %v2815_v41  ;;  %v2856_v57 = vadd.f32 0.0036580483, %v2855_v15  ;;  %v2898_v43 = vadd.f32 0.05243302, %v2897_v33 }
 0x4b2   : > { %v2942_v7 = vadd.f32 1.1283791, %v2941_v34  ;;  %3344 = vmatpush.msrb.mxu0 %v3270_v2  ;;  %v3269_v24 = vmul.f32 %v3237_v58, %v1893_v53  ;;  %v2955_v50 = vmul.f32 %v5539_v21, %v8365_v0  ;;  %v2963_v46 = vand.u32 2147483647, %v8365_v0 }
 0x4b3   : > { %vm2959_vm3 = vweird.f32 %v8365_v0  ;;  %v2965_v38 = vand.u32 2147483648, %v8365_v0  ;;  %v2909_v48 = vadd.f32 0.112945676, %v2908_v36  ;;  %v2867_v55 = vadd.f32 0.014752088, %v2866_v37  ;;  %v10407_v37 = vld [vmem:[#allocation61_spill] sm:$0xff] }
 0x4b4   : > { %3345 = vmatpush.msrb.mxu0 %v3269_v24  ;;  %v2956_v14 = vsub.f32 1.0, %v2955_v50  ;;  %vm2960_vm14 = vweird.f32 %v5539_v21  ;;  %v2827_v20 = vadd.f32 0.014752088, %v2826_v11  ;;  %v2785_v63 = vadd.f32 0.001143296, %v2784_v45  ;;  %v10408_v24 = vld [vmem:[#allocation37_spill] sm:$0xff] }
 0x4b5   : > { %v2734_v3 = vadd.f32 0.00028619796, %v10401_v25  ;;  %v2777_v18 = vmul.f32 %v2776_v6, %v10399_v1  ;;  %v2910_v5 = vmul.f32 %v2909_v48, %v10390_v28  ;;  %v2868_v61 = vmul.f32 %v2867_v55, %v10392_v17  ;;  %vm8401_vm15 = vmor %vm2959_vm3, %vm2960_vm14 }
 0x4b6   : > { %v2817_v26 = vmul.f32 %v2816_v8, %v10393_v54  ;;  %v2957_v62 = vmul.f32 %v5539_v21, %v2956_v14  ;;  %v2828_v32 = vmul.f32 %v2827_v20, %v10393_v54  ;;  %v2786_v30 = vmul.f32 %v2785_v63, %v10399_v1 }
 0x4b7   : > { %v2857_v60 = vmul.f32 %v2856_v57, %v10392_v17  ;;  %v2899_v35 = vmul.f32 %v2898_v43, %v10390_v28  ;;  %v2966_v31 = vor.u32 1.1754944e-38, %v2965_v38  ;;  %v2911_v16 = vadd.f32 0.4994258, %v2910_v5 }
 0x4b8   : > { %v2943_v42 = vmul.f32 %v2942_v7, %v10404_v27  ;;  %v2958_v41 = vadd.f32 %v5539_v21, %v2957_v62  ;;  %vm2964_vm1 = vcmp.eq.f32.partialorder %v2963_v46, 8.507059e+37  ;;  %v2869_v15 = vadd.f32 0.112945676, %v2868_v61 }
 0x4b9   : > { %v2735_v13 = vmul.f32 %v2734_v3, %v10405_v49  ;;  %v2912_v44 = vmul.f32 %v2911_v16, %v10390_v28  ;;  %v2829_v12 = vadd.f32 0.112945676, %v2828_v32  ;;  %v2744_v23 = vmul.f32 3.8918573e-05, %v10405_v49 }
 0x4ba   : > { %v2818_v51 = vadd.f32 0.05243302, %v2817_v26  ;;  %v2962_v0 = vsel %vm8401_vm15, %v5539_v21, %v2958_v41  ;;  %v2870_v33 = vmul.f32 %v2869_v15, %v10392_v17  ;;  %v2787_v34 = vadd.f32 0.014752088, %v2786_v30 }
 0x4bb   : > { %v2858_v56 = vadd.f32 0.05243302, %v2857_v60  ;;  %v2967_v47 = vsel %vm2964_vm1, %v2966_v31, %v2962_v0  ;;  %v8412_v10 = vadd.f32 1.0, %v2912_v44  ;;  %v2830_v4 = vmul.f32 %v2829_v12, %v10393_v54 }
 0x4bc   : > { %v2778_v22 = vadd.f32 0.05243302, %v2777_v18  ;;  %v2900_v40 = vadd.f32 0.18741608, %v2899_v35  ;;  %v2968_v52 = vmul.f32 %v2967_v47, %v2943_v42  ;;  %v2871_v9 = vadd.f32 0.4994258, %v2870_v33 }
 0x4bd   : > { %v8415_v6 = vmin.f32 %v2611_v39, 16.0  ;;  %v2691_v53 = vmul.f32 %v10406_v19, %v10406_v19  ;;  %5540 = vrcp.f32 %v8412_v10  ;;  %v2745_v58 = vadd.f32 0.001143296, %v2744_v23 }
 0x4be   : > { %v2653_v2 = vmul.f32 2.1237322e-06, %v10407_v37  ;;  %v2736_v36 = vadd.f32 0.0036580483, %v2735_v13  ;;  %v5310_v11 = vclamps-f32 %v2968_v52, 1.0  ;;  %v2788_v45 = vmul.f32 %v2787_v34, %v10399_v1 }
 0x4bf   : > { %v2819_v21 = vmul.f32 %v2818_v51, %v10393_v54  ;;  %v2859_v8 = vmul.f32 %v2858_v56, %v10392_v17  ;;  %v2872_v57 = vmul.f32 %v2871_v9, %v10392_v17  ;;  %v2831_v39 = vadd.f32 0.4994258, %v2830_v4  ;;  %v10411_v56 = vld [vmem:[#allocation58_spill] sm:$0xff] }
 0x4c0   : > { %v2779_v43 = vmul.f32 %v2778_v22, %v10399_v1  ;;  %v2901_v7 = vmul.f32 %v2900_v40, %v10390_v28  ;;  %v1892_v50 = vmul.f32 0.5, %v10408_v24  ;;  %v3236_v46 = vadd.f32 1.0, %v5310_v11 }
 0x4c1   : > { %v8428_v38 = vmin.f32 %v2691_v53, 16.0  ;;  %v8430_v48 = vadd.f32 1.0, %v2872_v57  ;;  %v2832_v55 = vmul.f32 %v2831_v39, %v10393_v54  ;;  %v2746_v14 = vmul.f32 %v2745_v58, %v10405_v49 }
 0x4c2   : > { %v8435_v20 = vmul.f32 2.1237322e-06, %v8415_v6  ;;  %v2654_v63 = vadd.f32 0.00028619796, %v2653_v2  ;;  %v3268_v25 = vmul.f32 %v3236_v46, %v1892_v50  ;;  %v2789_v3 = vadd.f32 0.112945676, %v2788_v45 }
 0x4c3   : > { %v5541_v18 = vpop.eup %5540  ;;  %v2693_v28 = vmul.f32 2.1237322e-06, %v8428_v38  ;;  %v2820_v5 = vadd.f32 0.18741608, %v2819_v21  ;;  %v2860_v61 = vadd.f32 0.18741608, %v2859_v8  ;;  %5542 = vrcp.f32 %v8430_v48 }
 0x4c4   : > { %v2737_v26 = vmul.f32 %v2736_v36, %v10405_v49  ;;  %v2780_v62 = vadd.f32 0.18741608, %v2779_v43  ;;  %v2902_v32 = vadd.f32 1.1283791, %v2901_v7  ;;  %3346 = vmatpush.msrb.mxu0 %v3268_v25  ;;  %v2915_v30 = vmul.f32 %v5541_v18, %v8412_v10 }
 0x4c5   : > { %vm2919_vm2 = vweird.f32 %v8412_v10  ;;  %v2925_v60 = vand.u32 2147483648, %v8412_v10  ;;  %v8443_v35 = vadd.f32 1.0, %v2832_v55  ;;  %v2747_v59 = vadd.f32 0.014752088, %v2746_v14  ;;  %v10414_v55 = vld [vmem:[#allocation57_spill] sm:$0xff] }
 0x4c6   : > { %v2916_v31 = vsub.f32 1.0, %v2915_v30  ;;  %vm2920_vm4 = vweird.f32 %v5541_v18  ;;  %v2923_v16 = vand.u32 2147483647, %v8412_v10  ;;  %v2790_v27 = vmul.f32 %v2789_v3, %v10399_v1 }
 0x4c7   : > { %v8448_v42 = vmul.f32 %v2654_v63, %v10407_v37  ;;  %v2821_v41 = vmul.f32 %v2820_v5, %v10393_v54  ;;  %v2861_v15 = vmul.f32 %v2860_v61, %v10392_v17  ;;  %5544 = vrcp.f32 %v8443_v35  ;;  %vm8456_vm5 = vmor %vm2919_vm2, %vm2920_vm4  ;;  %v10415_v63 = vld [vmem:[#allocation35_spill] sm:$0xff] }
 0x4c8   : > { %v2694_v13 = vadd.f32 0.00028619796, %v2693_v28  ;;  %v2738_v44 = vadd.f32 0.05243302, %v2737_v26  ;;  %v2781_v12 = vmul.f32 %v2780_v62, %v10399_v1  ;;  %v2917_v23 = vmul.f32 %v5541_v18, %v2916_v31 }
 0x4c9   : > { %v5543_v51 = vpop.eup %5542  ;;  %v2926_v33 = vor.u32 1.1754944e-38, %v2925_v60  ;;  %v2885_v34 = vand.u32 2147483648, %v8430_v48  ;;  %v2791_v54 = vadd.f32 0.4994258, %v2790_v27  ;;  %v2748_v17 = vmul.f32 %v2747_v59, %v10405_v49 }
 0x4ca   : > { %v2903_v47 = vmul.f32 %v2902_v32, %v10411_v56  ;;  %v2918_v4 = vadd.f32 %v5541_v18, %v2917_v23  ;;  %vm2924_vm6 = vcmp.eq.f32.partialorder %v2923_v16, 8.507059e+37  ;;  %v2875_v22 = vmul.f32 %v5543_v51, %v8430_v48  ;;  %v10416_v32 = vld [vmem:[#allocation54_spill] sm:$0xff] }
 0x4cb   : > { %v2822_v40 = vadd.f32 1.1283791, %v2821_v41  ;;  %v2862_v52 = vadd.f32 1.1283791, %v2861_v15  ;;  %v2792_v10 = vmul.f32 %v2791_v54, %v10399_v1  ;;  %v2749_v9 = vadd.f32 0.112945676, %v2748_v17 }
 0x4cc   : > { %v2922_v53 = vsel %vm8456_vm5, %v5541_v18, %v2918_v4  ;;  %v2876_v58 = vsub.f32 1.0, %v2875_v22  ;;  %vm2879_vm7 = vweird.f32 %v8430_v48  ;;  %vm2880_vm8 = vweird.f32 %v5543_v51  ;;  %v10419_v4 = vld [vmem:[#allocation33_spill] sm:$0xff] }
 0x4cd   : > { %v5545_v2 = vpop.eup %5544  ;;  %v2927_v36 = vsel %vm2924_vm6, %v2926_v33, %v2922_v53  ;;  %v2883_v11 = vand.u32 2147483647, %v8430_v48  ;;  %v2886_v45 = vor.u32 1.1754944e-38, %v2885_v34  ;;  %v8469_v21 = vadd.f32 1.0, %v2792_v10  ;;  %vm8473_vm9 = vmor %vm2879_vm7, %vm2880_vm8 }
 0x4ce   : > { %v2928_v8 = vmul.f32 %v2927_v36, %v2903_v47  ;;  %v2877_v57 = vmul.f32 %v5543_v51, %v2876_v58  ;;  %v2835_v39 = vmul.f32 %v5545_v2, %v8443_v35  ;;  %v2750_v1 = vmul.f32 %v2749_v9, %v10405_v49  ;;  %v10420_v36 = vld [vmem:[#allocation31_spill] sm:$0xff] }
 0x4cf   : > { %vm2839_vm10 = vweird.f32 %v8443_v35  ;;  %v2843_v7 = vand.u32 2147483647, %v8443_v35  ;;  %v2845_v24 = vand.u32 2147483648, %v8443_v35  ;;  %5546 = vrcp.f32 %v8469_v21 }
 0x4d0   : > { %v5309_v50 = vclamps-f32 %v2928_v8, 1.0  ;;  %v2878_v46 = vadd.f32 %v5543_v51, %v2877_v57  ;;  %v2836_v48 = vsub.f32 1.0, %v2835_v39  ;;  %vm2840_vm11 = vweird.f32 %v5545_v2  ;;  %v10423_v39 = vld [vmem:[#allocation46_spill] sm:$0xff] }
 0x4d1   : > { %v2863_v14 = vmul.f32 %v2862_v52, %v10414_v55  ;;  %v1891_v25 = vmul.f32 0.5, %v10415_v63  ;;  %vm2884_vm12 = vcmp.eq.f32.partialorder %v2883_v11, 8.507059e+37  ;;  %v2704_v3 = vmul.f32 3.8918573e-05, %v8428_v38  ;;  %vm8491_vm13 = vmor %vm2839_vm10, %vm2840_vm11 }
 0x4d2   : > { %v3235_v18 = vadd.f32 1.0, %v5309_v50  ;;  %v2882_v28 = vsel %vm8473_vm9, %v5543_v51, %v2878_v46  ;;  %v2837_v5 = vmul.f32 %v5545_v2, %v2836_v48  ;;  %v2751_v61 = vadd.f32 0.4994258, %v2750_v1 }
 0x4d3   : > { %v2695_v26 = vmul.f32 %v2694_v13, %v8428_v38  ;;  %v2739_v62 = vmul.f32 %v2738_v44, %v10405_v49  ;;  %v2823_v30 = vmul.f32 %v2822_v40, %v10416_v32  ;;  %v2846_v59 = vor.u32 1.1754944e-38, %v2845_v24  ;;  %v10425_v32 = vld [vmem:[#allocation29_spill] sm:$0xff] }
 0x4d4   : > { %v3267_v31 = vmul.f32 %v3235_v18, %v1891_v25  ;;  %v2887_v16 = vsel %vm2884_vm12, %v2886_v45, %v2882_v28  ;;  %v2838_v27 = vadd.f32 %v5545_v2, %v2837_v5  ;;  %vm2844_vm3 = vcmp.eq.f32.partialorder %v2843_v7, 8.507059e+37  ;;  %v10424_v18 = vld [vmem:[#allocation48_spill] sm:$0xff] }
 0x4d5   : > { %v5547_v41 = vpop.eup %5546  ;;  %v2782_v15 = vadd.f32 1.1283791, %v2781_v12  ;;  %v2888_v23 = vmul.f32 %v2887_v16, %v2863_v14  ;;  %v2705_v51 = vadd.f32 0.001143296, %v2704_v3  ;;  %v2664_v13 = vmul.f32 3.8918573e-05, %v10407_v37 }
 0x4d6   : > { %3347 = vmatpush.msrb.mxu0 %v3267_v31  ;;  %v2842_v44 = vsel %vm8491_vm13, %v5545_v2, %v2838_v27  ;;  %v2795_v35 = vmul.f32 %v5547_v41, %v8469_v21  ;;  %vm2799_vm14 = vweird.f32 %v8469_v21  ;;  %v2752_v0 = vmul.f32 %v2751_v61, %v10405_v49 }
 0x4d7   : > { %v5308_v33 = vclamps-f32 %v2888_v23, 1.0  ;;  %v2847_v34 = vsel %vm2844_vm3, %v2846_v59, %v2842_v44  ;;  %v2803_v54 = vand.u32 2147483647, %v8469_v21  ;;  %v2805_v12 = vand.u32 2147483648, %v8469_v21 }
 0x4d8   : > { %v2848_v17 = vmul.f32 %v2847_v34, %v2823_v30  ;;  %v2796_v56 = vsub.f32 1.0, %v2795_v35  ;;  %vm2800_vm15 = vweird.f32 %v5547_v41  ;;  %v8503_v47 = vadd.f32 1.0, %v2752_v0 }
 0x4d9   : > { %v1890_v22 = vmul.f32 0.5, %v10419_v4  ;;  %v3234_v40 = vadd.f32 1.0, %v5308_v33  ;;  %v2706_v52 = vmul.f32 %v2705_v51, %v8428_v38  ;;  %v2665_v10 = vadd.f32 0.001143296, %v2664_v13  ;;  %vm8510_vm1 = vmor %vm2799_vm14, %vm2800_vm15 }
 0x4da   : > { %v2696_v9 = vadd.f32 0.0036580483, %v2695_v26  ;;  %v2740_v53 = vadd.f32 0.18741608, %v2739_v62  ;;  %v5307_v58 = vclamps-f32 %v2848_v17, 1.0  ;;  %v2797_v2 = vmul.f32 %v5547_v41, %v2796_v56  ;;  %v10426_v56 = vld [vmem:[#allocation45_spill] sm:$0xff] }
 0x4db   : > { %v1889_v11 = vmul.f32 0.5, %v10420_v36  ;;  %v3266_v45 = vmul.f32 %v3234_v40, %v1890_v22  ;;  %v2806_v57 = vor.u32 1.1754944e-38, %v2805_v12  ;;  %5548 = vrcp.f32 %v8503_v47 }
 0x4dc   : > { %v2783_v1 = vmul.f32 %v2782_v15, %v10423_v39  ;;  %v3233_v43 = vadd.f32 1.0, %v5307_v58  ;;  %v2798_v7 = vadd.f32 %v5547_v41, %v2797_v2  ;;  %vm2804_vm2 = vcmp.eq.f32.partialorder %v2803_v54, 8.507059e+37  ;;  %v10429_v58 = vld [vmem:[#allocation47_spill] sm:$0xff] }
 0x4dd   : > { %v2656_v24 = vadd.f32 0.0036580483, %v8448_v42  ;;  %3348 = vmatpush.msrb.mxu0 %v3266_v45  ;;  %v2707_v50 = vadd.f32 0.014752088, %v2706_v52  ;;  %v2666_v46 = vmul.f32 %v2665_v10, %v10407_v37  ;;  %v2624_v21 = vmul.f32 3.8918573e-05, %v8415_v6 }
 0x4de   : > { %v2697_v48 = vmul.f32 %v2696_v9, %v8428_v38  ;;  %v2741_v55 = vmul.f32 %v2740_v53, %v10405_v49  ;;  %v3265_v14 = vmul.f32 %v3233_v43, %v1889_v11  ;;  %v2802_v63 = vsel %vm8510_vm1, %v5547_v41, %v2798_v7 }
 0x4df   : > { %v2807_v25 = vsel %vm2804_vm2, %v2806_v57, %v2802_v63  ;;  %v2708_v3 = vmul.f32 %v2707_v50, %v8428_v38  ;;  %v2574_v28 = vadd.f32 0.00028619796, %v10424_v18  ;;  %v2614_v42 = vadd.f32 0.00028619796, %v8435_v20  ;;  %v10430_v18 = vld [vmem:[#allocation28_spill] sm:$0xff] }
 0x4e0   : > { %3349 = vmatpush.msrb.mxu0 %v3265_v14  ;;  %v2808_v5 = vmul.f32 %v2807_v25, %v2783_v1  ;;  %v2667_v61 = vadd.f32 0.014752088, %v2666_v46  ;;  %v2657_v62 = vmul.f32 %v2656_v24, %v10407_v37  ;;  %v1888_v30 = vmul.f32 0.5, %v10425_v32 }
 0x4e1   : > { %v5549_v26 = vpop.eup %5548  ;;  %v2709_v49 = vadd.f32 0.112945676, %v2708_v3  ;;  %v2625_v60 = vadd.f32 0.001143296, %v2624_v21  ;;  %v2698_v59 = vadd.f32 0.05243302, %v2697_v48  ;;  %vm2759_vm4 = vweird.f32 %v8503_v47 }
 0x4e2   : > { %v2742_v31 = vadd.f32 1.1283791, %v2741_v55  ;;  %v5306_v16 = vclamps-f32 %v2808_v5, 1.0  ;;  %v2755_v27 = vmul.f32 %v5549_v26, %v8503_v47  ;;  %v2763_v41 = vand.u32 2147483647, %v8503_v47 }
 0x4e3   : > { %v2765_v20 = vand.u32 2147483648, %v8503_v47  ;;  %v2710_v15 = vmul.f32 %v2709_v49, %v8428_v38  ;;  %vm2760_vm5 = vweird.f32 %v5549_v26  ;;  %v2668_v13 = vmul.f32 %v2667_v61, %v10407_v37 }
 0x4e4   : > { %v3232_v23 = vadd.f32 1.0, %v5306_v16  ;;  %v2756_v51 = vsub.f32 1.0, %v2755_v27  ;;  %v2615_v44 = vmul.f32 %v2614_v42, %v8415_v6  ;;  %v2658_v35 = vadd.f32 0.05243302, %v2657_v62  ;;  %vm8540_vm6 = vmor %vm2759_vm4, %vm2760_vm5 }
 0x4e5   : > { %v2711_v0 = vadd.f32 0.4994258, %v2710_v15  ;;  %v2626_v33 = vmul.f32 %v2625_v60, %v8415_v6  ;;  %v2699_v34 = vmul.f32 %v2698_v59, %v8428_v38  ;;  %v2669_v17 = vadd.f32 0.112945676, %v2668_v13 }
 0x4e6   : > { %v3264_v54 = vmul.f32 %v3232_v23, %v1888_v30  ;;  %v2757_v12 = vmul.f32 %v5549_v26, %v2756_v51  ;;  %v2743_v4 = vmul.f32 %v2742_v31, %v10426_v56  ;;  %v2766_v40 = vor.u32 1.1754944e-38, %v2765_v20 }
 0x4e7   : > { %v2712_v52 = vmul.f32 %v2711_v0, %v8428_v38  ;;  %v2627_v10 = vadd.f32 0.014752088, %v2626_v33  ;;  %vm2764_vm7 = vcmp.eq.f32.partialorder %v2763_v41, 8.507059e+37  ;;  %v2670_v53 = vmul.f32 %v2669_v17, %v10407_v37 }
 0x4e8   : > { %3350 = vmatpush.msrb.mxu0 %v3264_v54  ;;  %v2758_v9 = vadd.f32 %v5549_v26, %v2757_v12  ;;  %v2584_v2 = vmul.f32 3.8918573e-05, %v10429_v58  ;;  %v2575_v36 = vmul.f32 %v2574_v28, %v10429_v58  ;;  %v2616_v45 = vadd.f32 0.0036580483, %v2615_v44 }
 0x4e9   : > { %v2713_v11 = vadd.f32 1.0, %v2712_v52  ;;  %v2628_v47 = vmul.f32 %v2627_v10, %v8415_v6  ;;  %v2671_v57 = vadd.f32 0.4994258, %v2670_v53  ;;  %v2659_v1 = vmul.f32 %v2658_v35, %v10407_v37 }
 0x4ea   : > { %v2762_v8 = vsel %vm8540_vm6, %v5549_v26, %v2758_v9  ;;  %v2585_v39 = vadd.f32 0.001143296, %v2584_v2  ;;  %v2700_v43 = vadd.f32 0.18741608, %v2699_v34  ;;  %v2576_v21 = vadd.f32 0.0036580483, %v2575_v36 }
 0x4eb   : > { %v2767_v7 = vsel %vm2764_vm7, %v2766_v40, %v2762_v8  ;;  %5550 = vrcp.f32 %v2713_v11  ;;  %v2672_v50 = vmul.f32 %v2671_v57, %v10407_v37  ;;  %v2629_v46 = vadd.f32 0.112945676, %v2628_v47 }
 0x4ec   : > { %v2768_v24 = vmul.f32 %v2767_v7, %v2743_v4  ;;  %v2617_v48 = vmul.f32 %v2616_v45, %v8415_v6  ;;  %v2586_v14 = vmul.f32 %v2585_v39, %v10429_v58  ;;  %v2660_v63 = vadd.f32 0.18741608, %v2659_v1  ;;  %v10434_v1 = vld [vmem:[#allocation26_spill] sm:$0xff] }
 0x4ed   : > { %v2701_v25 = vmul.f32 %v2700_v43, %v8428_v38  ;;  %v2673_v3 = vadd.f32 1.0, %v2672_v50  ;;  %v1887_v28 = vmul.f32 0.5, %v10430_v18  ;;  %v2630_v61 = vmul.f32 %v2629_v46, %v8415_v6 }
 0x4ee   : > { %v5305_v55 = vclamps-f32 %v2768_v24, 1.0  ;;  %v2587_v26 = vadd.f32 0.014752088, %v2586_v14  ;;  %v2577_v62 = vmul.f32 %v2576_v21, %v10429_v58  ;;  %v2618_v32 = vadd.f32 0.05243302, %v2617_v48 }
 0x4ef   : > { %5552 = vrcp.f32 %v2673_v3  ;;  %v2661_v60 = vmul.f32 %v2660_v63, %v10407_v37  ;;  %v2702_v59 = vadd.f32 1.1283791, %v2701_v25  ;;  %v2725_v31 = vand.u32 2147483648, %v2713_v11 }
 0x4f0   : > { %v3231_v42 = vadd.f32 1.0, %v5305_v55  ;;  %vm2719_vm8 = vweird.f32 %v2713_v11  ;;  %v2723_v16 = vand.u32 2147483647, %v2713_v11  ;;  %v2631_v27 = vadd.f32 0.4994258, %v2630_v61 }
 0x4f1   : > { %v5551_v5 = vpop.eup %5550  ;;  %v2588_v41 = vmul.f32 %v2587_v26, %v10429_v58  ;;  %v2578_v20 = vadd.f32 0.05243302, %v2577_v62  ;;  %v2619_v15 = vmul.f32 %v2618_v32, %v8415_v6  ;;  %v2662_v13 = vadd.f32 1.1283791, %v2661_v60 }
 0x4f2   : > { %v3263_v30 = vmul.f32 %v3231_v42, %v1887_v28  ;;  %v2715_v49 = vmul.f32 %v5551_v5, %v2713_v11  ;;  %vm2720_vm9 = vweird.f32 %v5551_v5  ;;  %v2726_v37 = vor.u32 1.1754944e-38, %v2725_v31  ;;  %v10433_v11 = vld [vmem:[#allocation51_spill] sm:$0xff]  ;;  %v10435_v42 = vld [vmem:[#allocation24_spill] sm:$0xff] }
 0x4f3   : > { %vm8562_vm10 = vmor %vm2719_vm8, %vm2720_vm9  ;;  %v2632_v35 = vmul.f32 %v2631_v27, %v8415_v6  ;;  %v2589_v0 = vadd.f32 0.112945676, %v2588_v41  ;;  %v2703_v33 = vmul.f32 %v2702_v59, %v10406_v19  ;;  %vm2724_vm11 = vcmp.eq.f32.partialorder %v2723_v16, 8.507059e+37 }
 0x4f4   : > { %3351 = vmatpush.msrb.mxu0 %v3263_v30  ;;  %v2716_v38 = vsub.f32 1.0, %v2715_v49  ;;  %vm2679_vm12 = vweird.f32 %v2673_v3  ;;  %v2685_v12 = vand.u32 2147483648, %v2673_v3  ;;  %v2683_v40 = vand.u32 2147483647, %v2673_v3 }
 0x4f5   : > { %v5553_v51 = vpop.eup %5552  ;;  %v2633_v17 = vadd.f32 1.0, %v2632_v35  ;;  %v2590_v56 = vmul.f32 %v2589_v0, %v10429_v58  ;;  %v2620_v52 = vadd.f32 0.18741608, %v2619_v15  ;;  %v2579_v19 = vmul.f32 %v2578_v20, %v10429_v58 }
 0x4f6   : > { %v2717_v23 = vmul.f32 %v5551_v5, %v2716_v38  ;;  %v2675_v54 = vmul.f32 %v5553_v51, %v2673_v3  ;;  %vm2680_vm13 = vweird.f32 %v5553_v51  ;;  %v2686_v2 = vor.u32 1.1754944e-38, %v2685_v12 }
 0x4f7   : > { %5554 = vrcp.f32 %v2633_v17  ;;  %vm2681_vm3 = vmor %vm2679_vm12, %vm2680_vm13  ;;  %v2591_v36 = vadd.f32 0.4994258, %v2590_v56  ;;  %v2663_v47 = vmul.f32 %v2662_v13, %v10433_v11  ;;  %vm2684_vm14 = vcmp.eq.f32.partialorder %v2683_v40, 8.507059e+37  ;;  %v10436_v13 = vld [vmem:[#allocation22_spill] sm:$0xff] }
 0x4f8   : > { %v2718_v34 = vadd.f32 %v5551_v5, %v2717_v23  ;;  %v2676_v22 = vsub.f32 1.0, %v2675_v54  ;;  %v2621_v57 = vmul.f32 %v2620_v52, %v8415_v6  ;;  %v1886_v43 = vmul.f32 0.5, %v10434_v1  ;;  %v10439_v52 = vld [vmem:[#allocation32_spill] sm:$0xff] }
 0x4f9   : > { %v2592_v39 = vmul.f32 %v2591_v36, %v10429_v58  ;;  %v2580_v48 = vadd.f32 0.18741608, %v2579_v19  ;;  %vm2639_vm15 = vweird.f32 %v2633_v17  ;;  %v2645_v3 = vand.u32 2147483648, %v2633_v17  ;;  %v10441_v36 = vld [vmem:[#allocation36_spill] sm:$0xff] }
 0x4fa   : > { %v2722_v4 = vsel %vm8562_vm10, %v5551_v5, %v2718_v34  ;;  %v2677_v53 = vmul.f32 %v5553_v51, %v2676_v22  ;;  %v2622_v25 = vadd.f32 1.1283791, %v2621_v57  ;;  %v2643_v28 = vand.u32 2147483647, %v2633_v17  ;;  %v1690_v34 = vld [vmem:[%s10113_s6] sm:$0xff] }
 0x4fb   : > { %v2727_v10 = vsel %vm2724_vm11, %v2726_v37, %v2722_v4  ;;  %v2593_v21 = vadd.f32 1.0, %v2592_v39  ;;  %v1885_v5 = vmul.f32 0.5, %v10435_v42  ;;  %v2581_v62 = vmul.f32 %v2580_v48, %v10429_v58  ;;  %v10437_v37 = vld [vmem:[#allocation42_spill] sm:$0xff]  ;;  %3291 = vmatmul.f32.vlgmr.msrb.gmra.mxu3 %v1690_v34  ;;  %v1692_v48 = vld [vmem:[%s10113_s6 + $0x10] sm:$0xff]  ;;  %v10444_v42 = vld [vmem:[#allocation25_spill] sm:$0xff] }
 0x4fc   : > { %v2728_v9 = vmul.f32 %v2727_v10, %v2703_v33  ;;  %v2678_v8 = vadd.f32 %v5553_v51, %v2677_v53  ;;  %v2646_v32 = vor.u32 1.1754944e-38, %v2645_v3  ;;  %v2623_v30 = vmul.f32 %v2622_v25, %v10400_v29  ;;  %v10438_v4 = vld [vmem:[#allocation34_spill] sm:$0xff] }
 0x4fd   : > { %v5555_v50 = vpop.eup %5554  ;;  %5556 = vrcp.f32 %v2593_v21  ;;  %vm2644_vm4 = vcmp.eq.f32.partialorder %v2643_v28, 8.507059e+37  ;;  %v2582_v16 = vadd.f32 1.1283791, %v2581_v62  ;;  %vm2599_vm5 = vweird.f32 %v2593_v21  ;;  %v10442_v39 = vld [vmem:[#allocation38_spill] sm:$0xff] }
 0x4fe   : > { %v5304_v45 = vclamps-f32 %v2728_v9, 1.0  ;;  %v2682_v24 = vsel %vm2681_vm3, %v5553_v51, %v2678_v8  ;;  %v2635_v63 = vmul.f32 %v5555_v50, %v2633_v17  ;;  %vm2640_vm1 = vweird.f32 %v5555_v50  ;;  %v10440_v9 = vld [vmem:[#allocation20_spill] sm:$0xff] }
 0x4ff   : > { %v2687_v46 = vsel %vm2684_vm14, %v2686_v2, %v2682_v24  ;;  %vm2641_vm2 = vmor %vm2639_vm15, %vm2640_vm1  ;;  %v2605_v41 = vand.u32 2147483648, %v2593_v21  ;;  %v2603_v23 = vand.u32 2147483647, %v2593_v21  ;;  %v1884_v44 = vmul.f32 0.5, %v10436_v13 }
 0x500   : > { %v3230_v7 = vadd.f32 1.0, %v5304_v45  ;;  %v2688_v14 = vmul.f32 %v2687_v46, %v2663_v47  ;;  %v2636_v6 = vsub.f32 1.0, %v2635_v63  ;;  %v2583_v35 = vmul.f32 %v2582_v16, %v10437_v37 }
 0x501   : > { %v2606_v29 = vor.u32 1.1754944e-38, %v2605_v41  ;;  %vm2604_vm8 = vcmp.eq.f32.partialorder %v2603_v23, 8.507059e+37  ;;  %v8585_v22 = vmul.f32 0.70710677, %v10438_v4  ;;  %v8588_v10 = vmul.f32 0.70710677, %v10439_v52 }
 0x502   : > { %v3262_v55 = vmul.f32 %v3230_v7, %v1886_v43  ;;  %v5303_v18 = vclamps-f32 %v2688_v14, 1.0  ;;  %v2637_v26 = vmul.f32 %v5555_v50, %v2636_v6  ;;  %v1883_v53 = vmul.f32 0.5, %v10440_v9 }
 0x503   : > { %v5557_v59 = vpop.eup %5556  ;;  %v3846_v2 = vmul.f32 %v8585_v22, %v8585_v22  ;;  %v8594_v11 = vmul.f32 0.70710677, %v10441_v36  ;;  %v3806_v45 = vmul.f32 %v8588_v10, %v8588_v10  ;;  %v8603_v1 = vmul.f32 0.70710677, %v10442_v39  ;;  %3294 = vmatmul.f32.gmra.mxu3 %v1692_v48 }
 0x504   : > { %3352 = vmatpush.msrb.mxu0 %v3262_v55  ;;  %v3229_v61 = vadd.f32 1.0, %v5303_v18  ;;  %v2638_v60 = vadd.f32 %v5555_v50, %v2637_v26  ;;  %v2595_v38 = vmul.f32 %v5557_v59, %v2593_v21  ;;  %vm2600_vm6 = vweird.f32 %v5557_v59 }
 0x505   : > { %vm2601_vm7 = vmor %vm2599_vm5, %vm2600_vm6  ;;  %v8598_v8 = vmin.f32 %v3846_v2, 16.0  ;;  %v3886_v57 = vmul.f32 %v8594_v11, %v8594_v11  ;;  %v8605_v43 = vmin.f32 %v3806_v45, 16.0  ;;  %v3926_v21 = vmul.f32 %v8603_v1, %v8603_v1 }
 0x506   : > { %v3261_v49 = vmul.f32 %v3229_v61, %v1885_v5  ;;  %v2642_v31 = vsel %vm2641_vm2, %v5555_v50, %v2638_v60  ;;  %v2596_v15 = vsub.f32 1.0, %v2595_v38  ;;  %v10443_v50 = vld [vmem:[#allocation30_spill] sm:$0xff]  ;;  %v8626_v5 = vmul.f32 0.70710677, %v10444_v42 }
 0x507   : > { %v2647_v27 = vsel %vm2644_vm4, %v2646_v32, %v2642_v31  ;;  %v8607_v7 = vmin.f32 %v3886_v57, 16.0  ;;  %v3859_v24 = vmul.f32 3.8918573e-05, %v8598_v8  ;;  %v8611_v46 = vmul.f32 0.70710677, %v10443_v50 }
 0x508   : > { %3353 = vmatpush.msrb.mxu0 %v3261_v49  ;;  %v2648_v20 = vmul.f32 %v2647_v27, %v2623_v30  ;;  %v2597_v51 = vmul.f32 %v5557_v59, %v2596_v15  ;;  %v3819_v14 = vmul.f32 3.8918573e-05, %v8605_v43  ;;  %v8621_v3 = vmin.f32 %v3926_v21, 16.0 }
 0x509   : > { %v3860_v55 = vadd.f32 0.001143296, %v3859_v24  ;;  %v3888_v63 = vmul.f32 2.1237322e-06, %v8607_v7  ;;  %v3766_v18 = vmul.f32 %v8611_v46, %v8611_v46  ;;  %v3899_v26 = vmul.f32 3.8918573e-05, %v8607_v7 }
 0x50a   : > { %v5302_v58 = vclamps-f32 %v2648_v20, 1.0  ;;  %v2598_v33 = vadd.f32 %v5557_v59, %v2597_v51  ;;  %v3820_v28 = vadd.f32 0.001143296, %v3819_v14  ;;  %v3928_v62 = vmul.f32 2.1237322e-06, %v8621_v3 }
 0x50b   : > { %v3861_v25 = vmul.f32 %v3860_v55, %v8598_v8  ;;  %v3889_v61 = vadd.f32 0.00028619796, %v3888_v63  ;;  %v8631_v30 = vmin.f32 %v3766_v18, 16.0  ;;  %v3900_v49 = vadd.f32 0.001143296, %v3899_v26  ;;  %v1694_v18 = vld [vmem:[%s10113_s6 + $0x20] sm:$0xff] }
 0x50c   : > { %v3228_v0 = vadd.f32 1.0, %v5302_v58  ;;  %v2602_v12 = vsel %vm2601_vm7, %v5557_v59, %v2598_v33  ;;  %v3821_v60 = vmul.f32 %v3820_v28, %v8605_v43  ;;  %v3646_v59 = vmul.f32 %v8626_v5, %v8626_v5  ;;  %3297 = vmatmul.f32.gmra.mxu3 %v1694_v18 }
 0x50d   : > { %v2607_v17 = vsel %vm2604_vm8, %v2606_v29, %v2602_v12  ;;  %v3862_v6 = vadd.f32 0.014752088, %v3861_v25  ;;  %v3848_v31 = vmul.f32 2.1237322e-06, %v8598_v8  ;;  %v3890_v38 = vmul.f32 %v3889_v61, %v8607_v7  ;;  %v8663_v25 = vpop.f32.mrf.mxu1 }
 0x50e   : > { %v3260_v54 = vmul.f32 %v3228_v0, %v1884_v44  ;;  %v2608_v56 = vmul.f32 %v2607_v17, %v2583_v35  ;;  %v3901_v16 = vmul.f32 %v3900_v49, %v8607_v7  ;;  %v3929_v27 = vadd.f32 0.00028619796, %v3928_v62  ;;  %v10445_v0 = vld [vmem:[#allocation12_spill] sm:$0xff]  ;;  %10447 = vst [vmem:[#allocation67_spill] sm:$0xff] %v8663_v25 }
 0x50f   : > { %v3863_v32 = vmul.f32 %v3862_v6, %v8598_v8  ;;  %v3822_v15 = vadd.f32 0.014752088, %v3821_v60  ;;  %v3779_v23 = vmul.f32 3.8918573e-05, %v8631_v30  ;;  %v8640_v58 = vmin.f32 %v3646_v59, 16.0 }
 0x510   : > { %3354 = vmatpush.msrb.mxu0 %v3260_v54  ;;  %v5301_v40 = vclamps-f32 %v2608_v56, 1.0  ;;  %v3902_v20 = vadd.f32 0.014752088, %v3901_v16  ;;  %v3808_v51 = vmul.f32 2.1237322e-06, %v8605_v43  ;;  %v3930_v54 = vmul.f32 %v3929_v27, %v8621_v3 }
 0x511   : > { %v3864_v41 = vadd.f32 0.112945676, %v3863_v32  ;;  %v3849_v44 = vadd.f32 0.00028619796, %v3848_v31  ;;  %v3891_v29 = vadd.f32 0.0036580483, %v3890_v38  ;;  %v3823_v56 = vmul.f32 %v3822_v15, %v8605_v43 }
 0x512   : > { %v3227_v19 = vadd.f32 1.0, %v5301_v40  ;;  %v3939_v37 = vmul.f32 3.8918573e-05, %v8621_v3  ;;  %v3903_v35 = vmul.f32 %v3902_v20, %v8607_v7  ;;  %v8647_v33 = vmul.f32 0.70710677, %v10445_v0 }
 0x513   : > { %v3865_v13 = vmul.f32 %v3864_v41, %v8598_v8  ;;  %v3768_v34 = vmul.f32 2.1237322e-06, %v8631_v30  ;;  %v3780_v40 = vadd.f32 0.001143296, %v3779_v23  ;;  %v3648_v9 = vmul.f32 2.1237322e-06, %v8640_v58 }
 0x514   : > { %v3259_v47 = vmul.f32 %v3227_v19, %v1883_v53  ;;  %v3940_v17 = vadd.f32 0.001143296, %v3939_v37  ;;  %v10446_v53 = vld [vmem:[#allocation27_spill] sm:$0xff]  ;;  %v3904_v2 = vadd.f32 0.112945676, %v3903_v35  ;;  %v3850_v57 = vmul.f32 %v3849_v44, %v8598_v8 }
 0x515   : > { %v3866_v12 = vadd.f32 0.4994258, %v3865_v13  ;;  %v8654_v19 = vmul.f32 0.70710677, %v10446_v53  ;;  %v3809_v45 = vadd.f32 0.00028619796, %v3808_v51  ;;  %v3892_v24 = vmul.f32 %v3891_v29, %v8607_v7 }
 0x516   : > { %3355 = vmatpush.msrb.mxu0 %v3259_v47  ;;  %v3941_v21 = vmul.f32 %v3940_v17, %v8621_v3  ;;  %v3726_v48 = vmul.f32 %v8647_v33, %v8647_v33  ;;  %v3769_v55 = vadd.f32 0.00028619796, %v3768_v34  ;;  %v3931_v14 = vadd.f32 0.0036580483, %v3930_v54 }
 0x517   : > { %v3867_v47 = vmul.f32 %v3866_v12, %v8598_v8  ;;  %v3905_v63 = vmul.f32 %v3904_v2, %v8607_v7  ;;  %v3824_v61 = vadd.f32 0.112945676, %v3823_v56  ;;  %v3781_v26 = vmul.f32 %v3780_v40, %v8631_v30 }
 0x518   : > { %v3942_v6 = vadd.f32 0.014752088, %v3941_v21  ;;  %v3649_v62 = vadd.f32 0.00028619796, %v3648_v9  ;;  %v3686_v32 = vmul.f32 %v8654_v19, %v8654_v19  ;;  %v3810_v60 = vmul.f32 %v3809_v45, %v8605_v43 }
 0x519   : > { %v8668_v28 = vadd.f32 1.0, %v3867_v47  ;;  %v3906_v49 = vadd.f32 0.4994258, %v3905_v63  ;;  %v3851_v59 = vadd.f32 0.0036580483, %v3850_v57  ;;  %v8675_v16 = vmin.f32 %v3726_v48, 16.0 }
 0x51a   : > { %v3893_v31 = vadd.f32 0.05243302, %v3892_v24  ;;  %v3943_v38 = vmul.f32 %v3942_v6, %v8621_v3  ;;  %v3770_v27 = vmul.f32 %v3769_v55, %v8631_v30  ;;  %v3932_v41 = vmul.f32 %v3931_v14, %v8621_v3  ;;  %v8697_v55 = vpop.f32.mrf.mxu1 }
 0x51b   : > { %v3907_v20 = vmul.f32 %v3906_v49, %v8607_v7  ;;  %5558 = vrcp.f32 %v8668_v28  ;;  %v3825_v23 = vmul.f32 %v3824_v61, %v8605_v43  ;;  %v3782_v51 = vadd.f32 0.014752088, %v3781_v26  ;;  %10448 = vst [vmem:[#allocation68_spill] sm:$0xff] %v8697_v55 }
 0x51c   : > { %v3944_v15 = vadd.f32 0.112945676, %v3943_v38  ;;  %v3650_v13 = vmul.f32 %v3649_v62, %v8640_v58  ;;  %v8683_v44 = vmin.f32 %v3686_v32, 16.0  ;;  %v3811_v37 = vadd.f32 0.0036580483, %v3810_v60 }
 0x51d   : > { %v8685_v29 = vadd.f32 1.0, %v3907_v20  ;;  %v3852_v35 = vmul.f32 %v3851_v59, %v8598_v8  ;;  %v3894_v34 = vmul.f32 %v3893_v31, %v8607_v7  ;;  %v3728_v12 = vmul.f32 2.1237322e-06, %v8675_v16 }
 0x51e   : > { %v3945_v54 = vmul.f32 %v3944_v15, %v8621_v3  ;;  %v3933_v17 = vadd.f32 0.05243302, %v3932_v41  ;;  %v3771_v56 = vadd.f32 0.0036580483, %v3770_v27  ;;  %v3826_v9 = vadd.f32 0.4994258, %v3825_v23 }
 0x51f   : > { %5560 = vrcp.f32 %v8685_v29  ;;  %v3783_v2 = vmul.f32 %v3782_v51, %v8631_v30  ;;  %v3651_v47 = vadd.f32 0.0036580483, %v3650_v13  ;;  %v3688_v45 = vmul.f32 2.1237322e-06, %v8683_v44 }
 0x520   : > { %v3946_v40 = vadd.f32 0.4994258, %v3945_v54  ;;  %v3812_v24 = vmul.f32 %v3811_v37, %v8605_v43  ;;  %v3853_v21 = vadd.f32 0.05243302, %v3852_v35  ;;  %v3895_v48 = vadd.f32 0.18741608, %v3894_v34 }
 0x521   : > { %v8694_v57 = vpop.eup %5558  ;;  %v3729_v63 = vadd.f32 0.00028619796, %v3728_v12  ;;  %v3934_v18 = vmul.f32 %v3933_v17, %v8621_v3  ;;  %v3772_v6 = vmul.f32 %v3771_v56, %v8631_v30  ;;  %v3827_v26 = vmul.f32 %v3826_v9, %v8605_v43  ;;  %v1696_v9 = vld [vmem:[%s10113_s6 + $0x30] sm:$0xff] }
 0x522   : > { %v3947_v14 = vmul.f32 %v3946_v40, %v8621_v3  ;;  %v3784_v62 = vadd.f32 0.112945676, %v3783_v2  ;;  %v3652_v49 = vmul.f32 %v3651_v47, %v8640_v58  ;;  %v3689_v60 = vadd.f32 0.00028619796, %v3688_v45  ;;  %3300 = vmatmul.f32.gmra.mxu3 %v1696_v9 }
 0x523   : > { %v3870_v59 = vmul.f32 %v8694_v57, %v8668_v28  ;;  %v3813_v31 = vadd.f32 0.05243302, %v3812_v24  ;;  %v3854_v38 = vmul.f32 %v3853_v21, %v8598_v8  ;;  %v3896_v27 = vmul.f32 %v3895_v48, %v8607_v7  ;;  %v8731_v48 = vpop.f32.mrf.mxu1 }
 0x524   : > { %v8702_v61 = vadd.f32 1.0, %v3947_v14  ;;  %v3935_v41 = vadd.f32 0.18741608, %v3934_v18  ;;  %v3730_v15 = vmul.f32 %v3729_v63, %v8675_v16  ;;  %v3773_v23 = vadd.f32 0.05243302, %v3772_v6  ;;  %10449 = vst [vmem:[#allocation43_spill] sm:$0xff] %v8731_v48 }
 0x525   : > { %v5561_v32 = vpop.eup %5560  ;;  %v8713_v51 = vadd.f32 1.0, %v3827_v26  ;;  %v3785_v13 = vmul.f32 %v3784_v62, %v8631_v30  ;;  %v8716_v37 = vadd.f32 0.05243302, %v3652_v49  ;;  %v8719_v35 = vmul.f32 %v3689_v60, %v8683_v44 }
 0x526   : > { %5562 = vrcp.f32 %v8702_v61  ;;  %v3910_v20 = vmul.f32 %v5561_v32, %v8685_v29  ;;  %v3871_v54 = vsub.f32 1.0, %v3870_v59  ;;  %v3814_v7 = vmul.f32 %v3813_v31, %v8605_v43 }
 0x527   : > { %v3855_v12 = vadd.f32 0.18741608, %v3854_v38  ;;  %v3897_v17 = vadd.f32 1.1283791, %v3896_v27  ;;  %v3920_v56 = vand.u32 2147483648, %v8685_v29  ;;  %v3936_v40 = vmul.f32 %v3935_v41, %v8621_v3 }
 0x528   : > { %v3911_v34 = vsub.f32 1.0, %v3910_v20  ;;  %vm3915_vm9 = vweird.f32 %v5561_v32  ;;  %v3918_v47 = vand.u32 2147483647, %v8685_v29  ;;  %v8728_v24 = vadd.f32 0.0036580483, %v3730_v15 }
 0x529   : > { %v3774_v21 = vmul.f32 %v3773_v23, %v8631_v30  ;;  %5564 = vrcp.f32 %v8713_v51  ;;  %v3786_v14 = vadd.f32 0.4994258, %v3785_v13  ;;  %vm3914_vm10 = vweird.f32 %v8685_v29 }
 0x52a   : > { %v3912_v2 = vmul.f32 %v5561_v32, %v3911_v34  ;;  %v3872_v18 = vmul.f32 %v8694_v57, %v3871_v54  ;;  %v3815_v6 = vadd.f32 0.18741608, %v3814_v7  ;;  %v3856_v26 = vmul.f32 %v3855_v12, %v8598_v8  ;;  %vm3916_vm11 = vmor %vm3914_vm10, %vm3915_vm9 }
 0x52b   : > { %v3898_v62 = vmul.f32 %v3897_v17, %v8594_v11  ;;  %v3921_v49 = vor.u32 1.1754944e-38, %v3920_v56  ;;  %v3937_v60 = vadd.f32 1.1283791, %v3936_v40  ;;  %vm3919_vm12 = vcmp.eq.f32.partialorder %v3918_v47, 8.507059e+37  ;;  %v8768_v47 = vpop.f32.mrf.mxu1 }
 0x52c   : > { %v5563_v45 = vpop.eup %5562  ;;  %v3913_v63 = vadd.f32 %v5561_v32, %v3912_v2  ;;  %v3960_v38 = vand.u32 2147483648, %v8702_v61  ;;  %vm3875_vm13 = vweird.f32 %v8694_v57  ;;  %v3787_v29 = vmul.f32 %v3786_v14, %v8631_v30  ;;  %10453 = vst [vmem:[#allocation65_spill] sm:$0xff] %v8768_v47 }
 0x52d   : > { %v3950_v3 = vmul.f32 %v5563_v45, %v8702_v61  ;;  %vm3955_vm3 = vweird.f32 %v5563_v45  ;;  %v3958_v8 = vand.u32 2147483647, %v8702_v61  ;;  %v3873_v11 = vadd.f32 %v8694_v57, %v3872_v18 }
 0x52e   : > { %v3917_v31 = vsel %vm3916_vm11, %v5561_v32, %v3913_v63  ;;  %v3857_v15 = vadd.f32 1.1283791, %v3856_v26  ;;  %vm3874_vm14 = vweird.f32 %v8668_v28  ;;  %v3880_v32 = vand.u32 2147483648, %v8668_v28 }
 0x52f   : > { %v3951_v59 = vsub.f32 1.0, %v3950_v3  ;;  %v3922_v27 = vsel %vm3919_vm12, %v3921_v49, %v3917_v31  ;;  %v8745_v20 = vpop.eup %5564  ;;  %v3739_v23 = vmul.f32 3.8918573e-05, %v8675_v16  ;;  %vm3954_vm15 = vweird.f32 %v8702_v61  ;;  %vm8751_vm1 = vmor %vm3874_vm14, %vm3875_vm13 }
 0x530   : > { %v3923_v34 = vmul.f32 %v3922_v27, %v3898_v62  ;;  %v3878_v7 = vand.u32 2147483647, %v8668_v28  ;;  %v3938_v12 = vmul.f32 %v3937_v60, %v8603_v1  ;;  %v8758_v17 = vmul.f32 0.70710677, %v8663_v25  ;;  %vm3956_vm2 = vmor %vm3954_vm15, %vm3955_vm3 }
 0x531   : > { %v3952_v41 = vmul.f32 %v5563_v45, %v3951_v59  ;;  %v3961_v56 = vor.u32 1.1754944e-38, %v3960_v38  ;;  %v8761_v40 = vadd.f32 1.0, %v3787_v29  ;;  %vm3959_vm4 = vcmp.eq.f32.partialorder %v3958_v8, 8.507059e+37 }
 0x532   : > { %10452 = vst [vmem:[#allocation55_spill] sm:$0xff] %v8758_v17  ;;  %v3877_v61 = vsel %vm8751_vm1, %v8694_v57, %v3873_v11  ;;  %v3830_v2 = vmul.f32 %v8745_v20, %v8713_v51  ;;  %v3775_v28 = vadd.f32 0.18741608, %v3774_v21  ;;  %v3881_v14 = vor.u32 1.1754944e-38, %v3880_v32 }
 0x533   : > { %v3953_v13 = vadd.f32 %v5563_v45, %v3952_v41  ;;  %v3740_v3 = vadd.f32 0.001143296, %v3739_v23  ;;  %v3858_v63 = vmul.f32 %v3857_v15, %v8585_v22  ;;  %v5323_v26 = vclamps-f32 %v3923_v34, 1.0 }
 0x534   : > { %vm3879_vm5 = vcmp.eq.f32.partialorder %v3878_v7, 8.507059e+37  ;;  %v3816_v62 = vmul.f32 %v3815_v6, %v8605_v43  ;;  %v4286_v57 = vmul.f32 %v8758_v17, %v8758_v17  ;;  %v3831_v59 = vsub.f32 1.0, %v3830_v2 }
 0x535   : > { %v3957_v9 = vsel %vm3956_vm2, %v5563_v45, %v3953_v13  ;;  %v8772_v45 = vadd.f32 0.0036580483, %v8719_v35  ;;  %v3882_v49 = vsel %vm3879_vm5, %v3881_v14, %v3877_v61  ;;  %5566 = vrcp.f32 %v8761_v40  ;;  %v8801_v61 = vpop.f32.mrf.mxu1 }
 0x536   : > { %v3962_v1 = vsel %vm3959_vm4, %v3961_v56, %v3957_v9  ;;  %v3883_v60 = vmul.f32 %v3882_v49, %v3858_v63  ;;  %v3732_v22 = vmul.f32 %v8728_v24, %v8675_v16  ;;  %v3776_v31 = vmul.f32 %v3775_v28, %v8631_v30  ;;  %10455 = vst [vmem:[#allocation44_spill] sm:$0xff] %v8801_v61 }
 0x537   : > { %v3963_v18 = vmul.f32 %v3962_v1, %v3938_v12  ;;  %v3589_v38 = vmul.f32 0.5, %v10442_v39  ;;  %v3741_v35 = vmul.f32 %v3740_v3, %v8675_v16  ;;  %v4932_v43 = vadd.f32 1.0, %v5323_v26 }
 0x538   : > { %v5322_v6 = vclamps-f32 %v3883_v60, 1.0  ;;  %v3840_v29 = vand.u32 2147483648, %v8713_v51  ;;  %v3817_v41 = vadd.f32 1.1283791, %v3816_v62  ;;  %v3832_v8 = vmul.f32 %v8745_v20, %v3831_v59 }
 0x539   : > { %v5324_v21 = vclamps-f32 %v3963_v18, 1.0  ;;  %vm3835_vm6 = vweird.f32 %v8745_v20  ;;  %v3838_v11 = vand.u32 2147483647, %v8713_v51  ;;  %v3588_v24 = vmul.f32 0.5, %v10441_v36  ;;  %v1698_v36 = vld [vmem:[%s10113_s6 + $0x40] sm:$0xff] }
 0x53a   : > { %v8788_v15 = vmin.f32 %v4286_v57, 16.0  ;;  %v4931_v39 = vadd.f32 1.0, %v5322_v6  ;;  %v8791_v32 = vmul.f32 0.70710677, %v8697_v55  ;;  %v3833_v23 = vadd.f32 %v8745_v20, %v3832_v8  ;;  %3303 = vmatmul.f32.gmra.mxu3 %v1698_v36 }
 0x53b   : > { %v4933_v27 = vadd.f32 1.0, %v5324_v21  ;;  %vm3834_vm7 = vweird.f32 %v8713_v51  ;;  %v3742_v13 = vadd.f32 0.014752088, %v3741_v35  ;;  %v5567_v34 = vpop.eup %5566  ;;  %v3587_v54 = vmul.f32 0.5, %v10438_v4 }
 0x53c   : > { %10454 = vst [vmem:[#allocation63_spill] sm:$0xff] %v8791_v32  ;;  %v4964_v7 = vmul.f32 %v4932_v43, %v3588_v24  ;;  %vm3836_vm8 = vmor %vm3834_vm7, %vm3835_vm6  ;;  %v3841_v12 = vor.u32 1.1754944e-38, %v3840_v29  ;;  %v3699_v56 = vmul.f32 3.8918573e-05, %v8683_v44  ;;  %v3818_v9 = vmul.f32 %v3817_v41, %v8588_v10 }
 0x53d   : > { %v4965_v30 = vmul.f32 %v4933_v27, %v3589_v38  ;;  %v3837_v51 = vsel %vm3836_vm8, %v8745_v20, %v3833_v23  ;;  %vm3839_vm9 = vcmp.eq.f32.partialorder %v3838_v11, 8.507059e+37  ;;  %v3790_v2 = vmul.f32 %v5567_v34, %v8761_v40 }
 0x53e   : > { %v3733_v4 = vadd.f32 0.05243302, %v3732_v22  ;;  %v4963_v28 = vmul.f32 %v4931_v39, %v3587_v54  ;;  %v3842_v1 = vsel %vm3839_vm9, %v3841_v12, %v3837_v51  ;;  %v3743_v14 = vmul.f32 %v3742_v13, %v8675_v16 }
 0x53f   : > { %4998 = vmatpush.msra.mxu3 %v4965_v30  ;;  %v4299_v3 = vmul.f32 3.8918573e-05, %v8788_v15  ;;  %v4326_v63 = vmul.f32 %v8791_v32, %v8791_v32  ;;  %v3843_v10 = vmul.f32 %v3842_v1, %v3818_v9  ;;  %v3791_v18 = vsub.f32 1.0, %v3790_v2 }
 0x540   : > { %v3777_v26 = vadd.f32 1.1283791, %v3776_v31  ;;  %v3744_v20 = vadd.f32 0.112945676, %v3743_v14  ;;  %v3700_v62 = vadd.f32 0.001143296, %v3699_v56  ;;  %vm3795_vm10 = vweird.f32 %v5567_v34 }
 0x541   : > { %4999 = vmatpush.msra.mxu3 %v4964_v7  ;;  %v5321_v57 = vclamps-f32 %v3843_v10, 1.0  ;;  %v3798_v49 = vand.u32 2147483647, %v8761_v40  ;;  %v3800_v21 = vand.u32 2147483648, %v8761_v40  ;;  %v3659_v60 = vmul.f32 3.8918573e-05, %v8640_v58  ;;  %v8826_v7 = vpop.f32.mrf.mxu1 }
 0x542   : > { %v3792_v59 = vmul.f32 %v5567_v34, %v3791_v18  ;;  %v3745_v22 = vmul.f32 %v3744_v20, %v8675_v16  ;;  %v3701_v38 = vmul.f32 %v3700_v62, %v8683_v44  ;;  %v3586_v35 = vmul.f32 0.5, %v10439_v52  ;;  %10457 = vst [vmem:[#allocation60_spill] sm:$0xff] %v8826_v7 }
 0x543   : > { %5000 = vmatpush.msra.mxu3 %v4963_v28  ;;  %v4300_v27 = vadd.f32 0.001143296, %v4299_v3  ;;  %v8815_v31 = vmin.f32 %v4326_v63, 16.0  ;;  %v4930_v43 = vadd.f32 1.0, %v5321_v57  ;;  %v8818_v6 = vmul.f32 0.70710677, %v8731_v48 }
 0x544   : > { %v3793_v29 = vadd.f32 %v5567_v34, %v3792_v59  ;;  %vm3794_vm11 = vweird.f32 %v8761_v40  ;;  %v3746_v41 = vadd.f32 0.4994258, %v3745_v22  ;;  %v3692_v8 = vmul.f32 %v8772_v45, %v8683_v44 }
 0x545   : > { %10456 = vst [vmem:[#allocation62_spill] sm:$0xff] %v8818_v6  ;;  %vm3796_vm12 = vmor %vm3794_vm11, %vm3795_vm10  ;;  %v3801_v11 = vor.u32 1.1754944e-38, %v3800_v21  ;;  %v3702_v24 = vadd.f32 0.014752088, %v3701_v38  ;;  %v3660_v30 = vadd.f32 0.001143296, %v3659_v60  ;;  %v3778_v52 = vmul.f32 %v3777_v26, %v8611_v46 }
 0x546   : > { %v4962_v39 = vmul.f32 %v4930_v43, %v3586_v35  ;;  %v3797_v23 = vsel %vm3796_vm12, %v5567_v34, %v3793_v29  ;;  %vm3799_vm13 = vcmp.eq.f32.partialorder %v3798_v49, 8.507059e+37  ;;  %v3734_v13 = vmul.f32 %v3733_v4, %v8675_v16 }
 0x547   : > { %v4301_v54 = vmul.f32 %v4300_v27, %v8788_v15  ;;  %v3802_v40 = vsel %vm3799_vm13, %v3801_v11, %v3797_v23  ;;  %v3747_v12 = vmul.f32 %v3746_v41, %v8675_v16  ;;  %v4339_v45 = vmul.f32 3.8918573e-05, %v8815_v31 }
 0x548   : > { %v4366_v36 = vmul.f32 %v8818_v6, %v8818_v6  ;;  %5001 = vmatpush.msra.mxu3 %v4962_v39  ;;  %v3803_v56 = vmul.f32 %v3802_v40, %v3778_v52  ;;  %v3703_v34 = vmul.f32 %v3702_v24, %v8683_v44  ;;  %v3661_v9 = vmul.f32 %v3660_v30, %v8640_v58 }
 0x549   : > { %v8832_v46 = vadd.f32 1.0, %v3747_v12  ;;  %v3654_v51 = vmul.f32 %v8716_v37, %v8640_v58  ;;  %v3693_v2 = vadd.f32 0.05243302, %v3692_v8  ;;  %v3735_v28 = vadd.f32 0.18741608, %v3734_v13  ;;  %v8852_v35 = vpop.f32.mrf.mxu1 }
 0x54a   : > { %v5320_v4 = vclamps-f32 %v3803_v56, 1.0  ;;  %v4302_v1 = vadd.f32 0.014752088, %v4301_v54  ;;  %v3585_v14 = vmul.f32 0.5, %v10443_v50  ;;  %v4340_v3 = vadd.f32 0.001143296, %v4339_v45 }
 0x54b   : > { %5568 = vrcp.f32 %v8832_v46  ;;  %v8840_v63 = vmin.f32 %v4366_v36, 16.0  ;;  %v3704_v18 = vadd.f32 0.112945676, %v3703_v34  ;;  %v3662_v26 = vadd.f32 0.014752088, %v3661_v9  ;;  %10459 = vst [vmem:[#allocation41_spill] sm:$0xff] %v8852_v35 }
 0x54c   : > { %v4929_v10 = vadd.f32 1.0, %v5320_v4  ;;  %v3655_v20 = vadd.f32 0.18741608, %v3654_v51  ;;  %v3694_v62 = vmul.f32 %v3693_v2, %v8683_v44  ;;  %v3736_v37 = vmul.f32 %v3735_v28, %v8675_v16 }
 0x54d   : > { %v4303_v49 = vmul.f32 %v4302_v1, %v8788_v15  ;;  %v3705_v21 = vmul.f32 %v3704_v18, %v8683_v44  ;;  %v3663_v60 = vmul.f32 %v3662_v26, %v8640_v58  ;;  %v4341_v50 = vmul.f32 %v4340_v3, %v8815_v31 }
 0x54e   : > { %v4961_v57 = vmul.f32 %v4929_v10, %v3585_v14  ;;  %v4379_v59 = vmul.f32 3.8918573e-05, %v8840_v63  ;;  %v8850_v38 = vmul.f32 0.70710677, %v8768_v47  ;;  %v3656_v16 = vmul.f32 %v3655_v20, %v8640_v58 }
 0x54f   : > { %v3706_v27 = vadd.f32 0.4994258, %v3705_v21  ;;  %v3664_v43 = vadd.f32 0.112945676, %v3663_v60  ;;  %v3695_v29 = vadd.f32 0.18741608, %v3694_v62  ;;  %vm3754_vm14 = vweird.f32 %v8832_v46 }
 0x550   : > { %5002 = vmatpush.msra.mxu3 %v4961_v57  ;;  %10458 = vst [vmem:[#allocation66_spill] sm:$0xff] %v8850_v38  ;;  %v4288_v41 = vmul.f32 2.1237322e-06, %v8788_v15  ;;  %v3737_v11 = vadd.f32 1.1283791, %v3736_v37  ;;  %v4406_v54 = vmul.f32 %v8850_v38, %v8850_v38  ;;  %v3760_v40 = vand.u32 2147483648, %v8832_v46 }
 0x551   : > { %v5569_v22 = vpop.eup %5568  ;;  %v4304_v24 = vadd.f32 0.112945676, %v4303_v49  ;;  %v3707_v30 = vmul.f32 %v3706_v27, %v8683_v44  ;;  %v3665_v52 = vmul.f32 %v3664_v43, %v8640_v58  ;;  %v4342_v39 = vadd.f32 0.014752088, %v4341_v50  ;;  %v8885_v37 = vpop.f32.mrf.mxu1 }
 0x552   : > { %v3750_v8 = vmul.f32 %v5569_v22, %v8832_v46  ;;  %v4380_v23 = vadd.f32 0.001143296, %v4379_v59  ;;  %v4289_v36 = vadd.f32 0.00028619796, %v4288_v41  ;;  %vm3755_vm3 = vweird.f32 %v5569_v22  ;;  %10461 = vst [vmem:[#allocation64_spill] sm:$0xff] %v8885_v37 }
 0x553   : > { %v8862_v12 = vadd.f32 1.0, %v3707_v30  ;;  %v3666_v45 = vadd.f32 0.4994258, %v3665_v52  ;;  %v3758_v34 = vand.u32 2147483647, %v8832_v46  ;;  %v4305_v51 = vmul.f32 %v4304_v24, %v8788_v15  ;;  %vm3756_vm15 = vmor %vm3754_vm14, %vm3755_vm3  ;;  %v1700_v46 = vld [vmem:[%s10113_s6 + $0x50] sm:$0xff] }
 0x554   : > { %v3751_v13 = vsub.f32 1.0, %v3750_v8  ;;  %v3657_v9 = vadd.f32 1.1283791, %v3656_v16  ;;  %v3696_v2 = vmul.f32 %v3695_v29, %v8683_v44  ;;  %v4343_v4 = vmul.f32 %v4342_v39, %v8815_v31  ;;  %v1691_v44 = vld [vmem:[%s10113_s6 + $0x8] sm:$0xff]  ;;  %3306 = vmatmul.f32.gmra.mxu3 %v1700_v46 }
 0x555   : > { %5570 = vrcp.f32 %v8862_v12  ;;  %v4381_v1 = vmul.f32 %v4380_v23, %v8840_v63  ;;  %v8871_v14 = vmin.f32 %v4406_v54, 16.0  ;;  %v3761_v3 = vor.u32 1.1754944e-38, %v3760_v40  ;;  %3356 = vmatmul.f32.vlgmr.msrb.gmra.mxu0 %v1691_v44 }
 0x556   : > { %v3752_v56 = vmul.f32 %v5569_v22, %v3751_v13  ;;  %v3667_v10 = vmul.f32 %v3666_v45, %v8640_v58  ;;  %v3738_v18 = vmul.f32 %v3737_v11, %v8647_v33  ;;  %v4290_v26 = vmul.f32 %v4289_v36, %v8788_v15 }
 0x557   : > { %vm3759_vm1 = vcmp.eq.f32.partialorder %v3758_v34, 8.507059e+37  ;;  %v4306_v62 = vadd.f32 0.4994258, %v4305_v51  ;;  %v8883_v57 = vmul.f32 0.70710677, %v8801_v61  ;;  %v8890_v49 = vmul.f32 0.5, %v10446_v53 }
 0x558   : > { %v3753_v28 = vadd.f32 %v5569_v22, %v3752_v56  ;;  %v8887_v33 = vadd.f32 1.0, %v3667_v10  ;;  %v3697_v21 = vadd.f32 1.1283791, %v3696_v2  ;;  %v4344_v59 = vadd.f32 0.112945676, %v4343_v4 }
 0x559   : > { %10460 = vst [vmem:[#allocation40_spill] sm:$0xff] %v8883_v57  ;;  %v4419_v27 = vmul.f32 3.8918573e-05, %v8871_v14  ;;  %v8895_v43 = vmul.f32 %v3657_v9, %v8626_v5  ;;  %v3584_v16 = vmul.f32 0.5, %v10445_v0  ;;  %v4291_v8 = vadd.f32 0.0036580483, %v4290_v26 }
 0x55a   : > { %v3757_v20 = vsel %vm3756_vm15, %v5569_v22, %v3753_v28  ;;  %v4382_v22 = vadd.f32 0.014752088, %v4381_v1  ;;  %5572 = vrcp.f32 %v8887_v33  ;;  %v4307_v53 = vmul.f32 %v4306_v62, %v8788_v15 }
 0x55b   : > { %v3762_v58 = vsel %vm3759_vm1, %v3761_v3, %v3757_v20  ;;  %v5571_v50 = vpop.eup %5570  ;;  %v4446_v11 = vmul.f32 %v8883_v57, %v8883_v57  ;;  %v8903_v24 = vmul.f32 0.70710677, %v8826_v7  ;;  %v3698_v30 = vmul.f32 %v3697_v21, %v8654_v19 }
 0x55c   : > { %v3763_v60 = vmul.f32 %v3762_v58, %v3738_v18  ;;  %v3710_v41 = vmul.f32 %v5571_v50, %v8862_v12  ;;  %v4328_v52 = vmul.f32 2.1237322e-06, %v8815_v31  ;;  %v4345_v0 = vmul.f32 %v4344_v59, %v8815_v31  ;;  %v8922_v18 = vpop.f32.mrf.mxu1 }
 0x55d   : > { %10462 = vst [vmem:[#allocation39_spill] sm:$0xff] %v8903_v24  ;;  %v4383_v23 = vmul.f32 %v4382_v22, %v8840_v63  ;;  %v4420_v13 = vadd.f32 0.001143296, %v4419_v27  ;;  %v3720_v54 = vand.u32 2147483648, %v8862_v12  ;;  %vm3715_vm2 = vweird.f32 %v5571_v50 }
 0x55e   : > { %v5319_v29 = vclamps-f32 %v3763_v60, 1.0  ;;  %v3711_v39 = vsub.f32 1.0, %v3710_v41  ;;  %v3718_v36 = vand.u32 2147483647, %v8862_v12  ;;  %v4292_v34 = vmul.f32 %v4291_v8, %v8788_v15  ;;  %10464 = vst [vmem:[#allocation50_spill] sm:$0xff] %v8922_v18 }
 0x55f   : > { %v8912_v19 = vadd.f32 1.0, %v4307_v53  ;;  %v8914_v9 = vmin.f32 %v4446_v11, 16.0  ;;  %v4486_v51 = vmul.f32 %v8903_v24, %v8903_v24  ;;  %v4329_v2 = vadd.f32 0.00028619796, %v4328_v52 }
 0x560   : > { %v4928_v5 = vadd.f32 1.0, %v5319_v29  ;;  %v3712_v45 = vmul.f32 %v5571_v50, %v3711_v39  ;;  %v5573_v56 = vpop.eup %5572  ;;  %vm3714_vm4 = vweird.f32 %v8862_v12  ;;  %v4346_v1 = vadd.f32 0.4994258, %v4345_v0 }
 0x561   : > { %10463 = vst [vmem:[#allocation53_spill] sm:$0xff] %v8912_v19  ;;  %v3670_v28 = vmul.f32 %v5573_v56, %v8887_v33  ;;  %v4368_v3 = vmul.f32 2.1237322e-06, %v8840_v63  ;;  %v4421_v10 = vmul.f32 %v4420_v13, %v8871_v14  ;;  %vm3716_vm5 = vmor %vm3714_vm4, %vm3715_vm2  ;;  %v3721_v26 = vor.u32 1.1754944e-38, %v3720_v54 }
 0x562   : > { %v4960_v40 = vmul.f32 %v4928_v5, %v3584_v16  ;;  %v3713_v4 = vadd.f32 %v5571_v50, %v3712_v45  ;;  %v4384_v20 = vadd.f32 0.112945676, %v4383_v23  ;;  %vm3719_vm6 = vcmp.eq.f32.partialorder %v3718_v36, 8.507059e+37 }
 0x563   : > { %v3671_v46 = vsub.f32 1.0, %v3670_v28  ;;  %v4459_v62 = vmul.f32 3.8918573e-05, %v8914_v9  ;;  %v8926_v58 = vmin.f32 %v4486_v51, 16.0  ;;  %v3680_v21 = vand.u32 2147483648, %v8887_v33 }
 0x564   : > { %5003 = vmatpush.msra.mxu3 %v4960_v40  ;;  %v3717_v44 = vsel %vm3716_vm5, %v5571_v50, %v3713_v4  ;;  %vm3675_vm7 = vweird.f32 %v5573_v56  ;;  %v3678_v22 = vand.u32 2147483647, %v8887_v33  ;;  %v4330_v27 = vmul.f32 %v4329_v2, %v8815_v31 }
 0x565   : > { %v3722_v12 = vsel %vm3719_vm6, %v3721_v26, %v3717_v44  ;;  %v3672_v59 = vmul.f32 %v5573_v56, %v3671_v46  ;;  %v4347_v16 = vmul.f32 %v4346_v1, %v8815_v31  ;;  %v4422_v29 = vadd.f32 0.014752088, %v4421_v10  ;;  %v8948_v1 = vpop.f32.mrf.mxu1 }
 0x566   : > { %v3723_v60 = vmul.f32 %v3722_v12, %v3698_v30  ;;  %v8933_v50 = vmul.f32 0.70710677, %v8852_v35  ;;  %v4369_v41 = vadd.f32 0.00028619796, %v4368_v3  ;;  %vm3674_vm8 = vweird.f32 %v8887_v33  ;;  %10467 = vst [vmem:[#allocation56_spill] sm:$0xff] %v8948_v1 }
 0x567   : > { %v3673_v53 = vadd.f32 %v5573_v56, %v3672_v59  ;;  %v4385_v11 = vmul.f32 %v4384_v20, %v8840_v63  ;;  %v4460_v30 = vadd.f32 0.001143296, %v4459_v62  ;;  %v4499_v52 = vmul.f32 3.8918573e-05, %v8926_v58  ;;  %vm3676_vm9 = vmor %vm3674_vm8, %vm3675_vm7 }
 0x568   : > { %10465 = vst [vmem:[#allocation59_spill] sm:$0xff] %v8933_v50  ;;  %v5318_v8 = vclamps-f32 %v3723_v60, 1.0  ;;  %v3681_v5 = vor.u32 1.1754944e-38, %v3680_v21  ;;  %5574 = vrcp.f32 %v8912_v19  ;;  %vm3679_vm10 = vcmp.eq.f32.partialorder %v3678_v22, 8.507059e+37 }
 0x569   : > { %v3677_v0 = vsel %vm3676_vm9, %v5573_v56, %v3673_v53  ;;  %v8939_v23 = vadd.f32 1.0, %v4347_v16  ;;  %v4423_v13 = vmul.f32 %v4422_v29, %v8871_v14  ;;  %v4526_v54 = vmul.f32 %v8933_v50, %v8933_v50 }
 0x56a   : > { %v4927_v39 = vadd.f32 1.0, %v5318_v8  ;;  %v3682_v33 = vsel %vm3679_vm10, %v3681_v5, %v3677_v0  ;;  %v4293_v40 = vadd.f32 0.05243302, %v4292_v34  ;;  %v4331_v45 = vadd.f32 0.0036580483, %v4330_v27  ;;  %v1693_v34 = vld [vmem:[%s10113_s6 + $0x18] sm:$0xff] }
 0x56b   : > { %10466 = vst [vmem:[#allocation49_spill] sm:$0xff] %v8939_v23  ;;  %v3683_v51 = vmul.f32 %v3682_v33, %v8895_v43  ;;  %v4370_v2 = vmul.f32 %v4369_v41, %v8840_v63  ;;  %v4386_v4 = vadd.f32 0.4994258, %v4385_v11  ;;  %v4461_v56 = vmul.f32 %v4460_v30, %v8914_v9  ;;  %3359 = vmatmul.f32.gmra.mxu0 %v1693_v34 }
 0x56c   : > { %v4959_v36 = vmul.f32 %v4927_v39, %v8890_v49  ;;  %v4500_v28 = vadd.f32 0.001143296, %v4499_v52  ;;  %v4408_v3 = vmul.f32 2.1237322e-06, %v8871_v14  ;;  %v1702_v49 = vld [vmem:[%s10113_s6 + $0x60] sm:$0xff]  ;;  %5576 = vrcp.f32 %v8939_v23 }
 0x56d   : > { %v5317_v10 = vclamps-f32 %v3683_v51, 1.0  ;;  %v4424_v43 = vadd.f32 0.112945676, %v4423_v13  ;;  %v8958_v26 = vmin.f32 %v4526_v54, 16.0  ;;  %3309 = vmatmul.f32.gmra.mxu3 %v1702_v49  ;;  %v3582_v44 = vmul.f32 0.5, %v10444_v42 }
 0x56e   : > { %5004 = vmatpush.msra.mxu3 %v4959_v36  ;;  %v8960_v20 = vpop.eup %5574  ;;  %v4294_v46 = vmul.f32 %v4293_v40, %v8788_v15  ;;  %v4332_v62 = vmul.f32 %v4331_v45, %v8815_v31  ;;  %v4371_v21 = vadd.f32 0.0036580483, %v4370_v2  ;;  %v4387_v60 = vmul.f32 %v4386_v4, %v8840_v63  ;;  %v8983_v36 = vpop.f32.mrf.mxu1 }
 0x56f   : > { %10468 = vst [vmem:[#allocation52_spill] sm:$0xff] %v8960_v20  ;;  %v4926_v12 = vadd.f32 1.0, %v5317_v10  ;;  %v4462_v59 = vadd.f32 0.014752088, %v4461_v56  ;;  %v4501_v22 = vmul.f32 %v4500_v28, %v8926_v58  ;;  %v4409_v27 = vadd.f32 0.00028619796, %v4408_v3 }
 0x570   : > { %v4310_v29 = vmul.f32 %v8960_v20, %v8912_v19  ;;  %v4425_v41 = vmul.f32 %v4424_v43, %v8871_v14  ;;  %v4539_v42 = vmul.f32 3.8918573e-05, %v8958_v26  ;;  %v8972_v8 = vmul.f32 0.70710677, %v8885_v37  ;;  %10472 = vst [vmem:[#allocation57_spill] sm:$0xff] %v8983_v36 }
 0x571   : > { %v4958_v16 = vmul.f32 %v4926_v12, %v3582_v44  ;;  %v4295_v53 = vadd.f32 0.18741608, %v4294_v46  ;;  %v4333_v11 = vadd.f32 0.05243302, %v4332_v62  ;;  %v4372_v52 = vmul.f32 %v4371_v21, %v8840_v63 }
 0x572   : > { %10469 = vst [vmem:[#allocation61_spill] sm:$0xff] %v8972_v8  ;;  %v8974_v30 = vpop.eup %5576  ;;  %v8977_v5 = vadd.f32 1.0, %v4387_v60  ;;  %v4463_v39 = vmul.f32 %v4462_v59, %v8914_v9  ;;  %v4502_v0 = vadd.f32 0.014752088, %v4501_v22  ;;  %v4410_v13 = vmul.f32 %v4409_v27, %v8871_v14 }
 0x573   : > { %5005 = vmatpush.msra.mxu3 %v4958_v16  ;;  %10470 = vst [vmem:[#allocation37_spill] sm:$0xff] %v8974_v30  ;;  %v4311_v54 = vsub.f32 1.0, %v4310_v29  ;;  %v4426_v33 = vadd.f32 0.4994258, %v4425_v41  ;;  %v4540_v40 = vadd.f32 0.001143296, %v4539_v42  ;;  %v4566_v45 = vmul.f32 %v8972_v8, %v8972_v8 }
 0x574   : > { %10471 = vst [vmem:[#allocation58_spill] sm:$0xff] %v8977_v5  ;;  %v4296_v51 = vmul.f32 %v4295_v53, %v8788_v15  ;;  %v4334_v2 = vmul.f32 %v4333_v11, %v8815_v31  ;;  %v4350_v4 = vmul.f32 %v8974_v30, %v8939_v23  ;;  %v4373_v56 = vadd.f32 0.05243302, %v4372_v52 }
 0x575   : > { %5578 = vrcp.f32 %v8977_v5  ;;  %v4464_v28 = vadd.f32 0.112945676, %v4463_v39  ;;  %v4503_v3 = vmul.f32 %v4502_v0, %v8926_v58  ;;  %v4411_v10 = vadd.f32 0.0036580483, %v4410_v13 }
 0x576   : > { %v4448_v34 = vmul.f32 2.1237322e-06, %v8914_v9  ;;  %v4312_v49 = vmul.f32 %v8960_v20, %v4311_v54  ;;  %v4427_v43 = vmul.f32 %v4426_v33, %v8871_v14  ;;  %v4541_v15 = vmul.f32 %v4540_v40, %v8958_v26 }
 0x577   : > { %v8995_v44 = vmin.f32 %v4566_v45, 16.0  ;;  %v8997_v46 = vadd.f32 1.1283791, %v4296_v51  ;;  %v4335_v62 = vadd.f32 0.18741608, %v4334_v2  ;;  %v4351_v12 = vsub.f32 1.0, %v4350_v4  ;;  %v9022_v51 = vpop.f32.mrf.mxu1 }
 0x578   : > { %v4374_v21 = vmul.f32 %v4373_v56, %v8840_v63  ;;  %v4465_v60 = vmul.f32 %v4464_v28, %v8914_v9  ;;  %v4504_v59 = vadd.f32 0.112945676, %v4503_v3  ;;  %v9002_v22 = vmul.f32 0.70710677, %v8922_v18  ;;  %10477 = vst [vmem:[#allocation46_spill] sm:$0xff] %v9022_v51  ;;  %v1695_v2 = vld [vmem:[%s10113_s6 + $0x28] sm:$0xff] }
 0x579   : > { %10473 = vst [vmem:[#allocation35_spill] sm:$0xff] %v8997_v46  ;;  %vm4314_vm11 = vweird.f32 %v8912_v19  ;;  %vm4315_vm12 = vweird.f32 %v8960_v20  ;;  %v4412_v27 = vmul.f32 %v4411_v10, %v8871_v14  ;;  %v4449_v16 = vadd.f32 0.00028619796, %v4448_v34  ;;  %3362 = vmatmul.f32.gmra.mxu0 %v1695_v2  ;;  %v1706_v46 = vld [vmem:[%s10113_s6 + $0x80] sm:$0xff] }
 0x57a   : > { %10474 = vst [vmem:[#allocation54_spill] sm:$0xff] %v9002_v22  ;;  %v9010_v41 = vadd.f32 %v8960_v20, %v4312_v49  ;;  %v9012_v42 = vadd.f32 1.0, %v4427_v43  ;;  %v4542_v53 = vadd.f32 0.014752088, %v4541_v15  ;;  %v4579_v11 = vmul.f32 3.8918573e-05, %v8995_v44  ;;  %vm9034_vm13 = vmor %vm4314_vm11, %vm4315_vm12 }
 0x57b   : > { %v9007_v29 = vpop.eup %5578  ;;  %v4336_v39 = vmul.f32 %v4335_v62, %v8815_v31  ;;  %v4352_v0 = vmul.f32 %v8974_v30, %v4351_v12  ;;  %v4488_v13 = vmul.f32 2.1237322e-06, %v8926_v58  ;;  %v4375_v54 = vadd.f32 0.18741608, %v4374_v21  ;;  %v1704_v31 = vld [vmem:[%s10113_s6 + $0x70] sm:$0xff] }
 0x57c   : > { %10475 = vst [vmem:[#allocation33_spill] sm:$0xff] %v9007_v29  ;;  %v4466_v33 = vadd.f32 0.4994258, %v4465_v60  ;;  %v4505_v40 = vmul.f32 %v4504_v59, %v8926_v58  ;;  %v4606_v45 = vmul.f32 %v9002_v22, %v9002_v22  ;;  %v10478_v4 = vmov 0  ;;  %3312 = vmatmul.f32.gmra.mxu3 %v1704_v31 }
 0x57d   : > { %10476 = vst [vmem:[#allocation31_spill] sm:$0xff] %v9010_v41  ;;  %v10479_v4 = vsel %vm9034_vm13, 4294967295, %v10478_v4  ;;  %v4390_v28 = vmul.f32 %v9007_v29, %v8977_v5  ;;  %v4413_v3 = vadd.f32 0.05243302, %v4412_v27  ;;  %v4450_v10 = vmul.f32 %v4449_v16, %v8914_v9 }
 0x57e   : > { %10480 = vst [vmem:[#allocation48_spill] sm:$0xff] %v10479_v4  ;;  %5580 = vrcp.f32 %v9012_v42  ;;  %v4543_v49 = vmul.f32 %v4542_v53, %v8958_v26  ;;  %v4580_v43 = vadd.f32 0.001143296, %v4579_v11  ;;  %v9048_v15 = vadd.f32 1.1283791, %v4336_v39 }
 0x57f   : > { %v9051_v62 = vadd.f32 %v8974_v30, %v4352_v0  ;;  %vm4355_vm3 = vweird.f32 %v8974_v30  ;;  %v4489_v12 = vadd.f32 0.00028619796, %v4488_v13  ;;  %v4376_v21 = vmul.f32 %v4375_v54, %v8840_v63 }
 0x580   : > { %10481 = vst [vmem:[#allocation29_spill] sm:$0xff] %v9048_v15  ;;  %v4467_v60 = vmul.f32 %v4466_v33, %v8914_v9  ;;  %v4506_v59 = vadd.f32 0.4994258, %v4505_v40  ;;  %v9056_v27 = vmin.f32 %v4606_v45, 16.0  ;;  %vm4354_vm14 = vweird.f32 %v8939_v23  ;;  %v9093_v40 = vpop.f32.mrf.mxu1 }
 0x581   : > { %10482 = vst [vmem:[#allocation45_spill] sm:$0xff] %v9051_v62  ;;  %v4391_v16 = vsub.f32 1.0, %v4390_v28  ;;  %v4414_v53 = vmul.f32 %v4413_v3, %v8871_v14  ;;  %v4451_v11 = vadd.f32 0.0036580483, %v4450_v10  ;;  %vm9060_vm15 = vmor %vm4354_vm14, %vm4355_vm3  ;;  %v10483_v39 = vmov 0 }
 0x582   : > { %v10484_v39 = vsel %vm9060_vm15, 4294967295, %v10483_v39  ;;  %v4544_v13 = vadd.f32 0.112945676, %v4543_v49  ;;  %v4581_v63 = vmul.f32 %v4580_v43, %v8995_v44  ;;  %v9067_v54 = vmul.f32 0.70710677, %v8948_v1  ;;  %10488 = vst [vmem:[#allocation26_spill] sm:$0xff] %v9093_v40 }
 0x583   : > { %10485 = vst [vmem:[#allocation47_spill] sm:$0xff] %v10484_v39  ;;  %v4490_v45 = vmul.f32 %v4489_v12, %v8926_v58  ;;  %v4528_v2 = vmul.f32 2.1237322e-06, %v8958_v26  ;;  %v9078_v28 = vadd.f32 1.1283791, %v4376_v21  ;;  %v9080_v3 = vadd.f32 1.0, %v4467_v60 }
 0x584   : > { %v9076_v31 = vpop.eup %5580  ;;  %v4507_v10 = vmul.f32 %v4506_v59, %v8926_v58  ;;  %v4619_v49 = vmul.f32 3.8918573e-05, %v9056_v27  ;;  %v4392_v43 = vmul.f32 %v9007_v29, %v4391_v16  ;;  %v4415_v34 = vadd.f32 0.18741608, %v4414_v53  ;;  %3315 = vmatmul.f32.gmra.mxu3 %v1706_v46 }
 0x585   : > { %10486 = vst [vmem:[#allocation28_spill] sm:$0xff] %v9076_v31  ;;  %v4452_v33 = vmul.f32 %v4451_v11, %v8914_v9  ;;  %v9087_v56 = vmul.f32 0.70710677, %v8983_v36  ;;  %vm4394_vm1 = vweird.f32 %v8977_v5  ;;  %v4545_v12 = vmul.f32 %v4544_v13, %v8958_v26 }
 0x586   : > { %10487 = vst [vmem:[#allocation51_spill] sm:$0xff] %v9078_v28  ;;  %v4582_v21 = vadd.f32 0.014752088, %v4581_v63  ;;  %v4646_v60 = vmul.f32 %v9067_v54, %v9067_v54  ;;  %vm4395_vm2 = vweird.f32 %v9007_v29  ;;  %v4430_v59 = vmul.f32 %v9076_v31, %v9012_v42 }
 0x587   : > { %v4491_v16 = vadd.f32 0.0036580483, %v4490_v45  ;;  %v4529_v53 = vadd.f32 0.00028619796, %v4528_v2  ;;  %5582 = vrcp.f32 %v9080_v3  ;;  %v9099_v11 = vadd.f32 1.0, %v4507_v10  ;;  %vm9119_vm4 = vmor %vm4394_vm1, %vm4395_vm2 }
 0x588   : > { %v4568_v52 = vmul.f32 2.1237322e-06, %v8995_v44  ;;  %v4620_v13 = vadd.f32 0.001143296, %v4619_v49  ;;  %v9103_v63 = vadd.f32 %v9007_v29, %v4392_v43  ;;  %v4416_v0 = vmul.f32 %v4415_v34, %v8871_v14  ;;  %v9156_v17 = vpop.f32.mrf.mxu1 }
 0x589   : > { %v4453_v25 = vadd.f32 0.05243302, %v4452_v33  ;;  %v4686_v55 = vmul.f32 %v9087_v56, %v9087_v56  ;;  %v4546_v45 = vadd.f32 0.4994258, %v4545_v12  ;;  %v4583_v2 = vmul.f32 %v4582_v21, %v8995_v44  ;;  %10495 = vst [vmem:[#allocation32_spill] sm:$0xff] %v9156_v17 }
 0x58a   : > { %10489 = vst [vmem:[#allocation24_spill] sm:$0xff] %v9103_v63  ;;  %v9110_v47 = vmin.f32 %v4646_v60, 16.0  ;;  %v4431_v61 = vsub.f32 1.0, %v4430_v59  ;;  %v4492_v49 = vmul.f32 %v4491_v16, %v8926_v58  ;;  %v4530_v43 = vmul.f32 %v4529_v53, %v8958_v26 }
 0x58b   : > { %v10490_v14 = vmov 0  ;;  %5584 = vrcp.f32 %v9099_v11  ;;  %v4569_v34 = vadd.f32 0.00028619796, %v4568_v52  ;;  %v4621_v33 = vmul.f32 %v4620_v13, %v9056_v27 }
 0x58c   : > { %v10491_v14 = vsel %vm9119_vm4, 4294967295, %v10490_v14  ;;  %v9126_v12 = vmul.f32 0.70710677, %v9022_v51  ;;  %v9132_v60 = vadd.f32 1.1283791, %v4416_v0  ;;  %v4454_v59 = vmul.f32 %v4453_v25, %v8914_v9 }
 0x58d   : > { %10492 = vst [vmem:[#allocation22_spill] sm:$0xff] %v10491_v14  ;;  %v9135_v16 = vmin.f32 %v4686_v55, 16.0  ;;  %v9137_v53 = vpop.eup %5582  ;;  %v4547_v52 = vmul.f32 %v4546_v45, %v8958_v26  ;;  %v4584_v10 = vadd.f32 0.112945676, %v4583_v2  ;;  %v4659_v13 = vmul.f32 3.8918573e-05, %v9110_v47 }
 0x58e   : > { %10493 = vst [vmem:[#allocation42_spill] sm:$0xff] %v9132_v60  ;;  %v9142_v48 = vmul.f32 0.70710677, %v9093_v40  ;;  %vm4434_vm5 = vweird.f32 %v9012_v42  ;;  %v4493_v0 = vadd.f32 0.05243302, %v4492_v49  ;;  %v4432_v25 = vmul.f32 %v9076_v31, %v4431_v61  ;;  %v1697_v2 = vld [vmem:[%s10113_s6 + $0x38] sm:$0xff] }
 0x58f   : > { %10494 = vst [vmem:[#allocation34_spill] sm:$0xff] %v9137_v53  ;;  %v4531_v7 = vadd.f32 0.0036580483, %v4530_v43  ;;  %v4570_v55 = vmul.f32 %v4569_v34, %v8995_v44  ;;  %v4622_v35 = vadd.f32 0.014752088, %v4621_v33  ;;  %v4726_v45 = vmul.f32 %v9126_v12, %v9126_v12  ;;  %3365 = vmatmul.f32.gmra.mxu0 %v1697_v2 }
 0x590   : > { %v4455_v49 = vadd.f32 0.18741608, %v4454_v59  ;;  %v4470_v61 = vmul.f32 %v9137_v53, %v9080_v3  ;;  %v4699_v43 = vmul.f32 3.8918573e-05, %v9135_v16  ;;  %v9162_v34 = vmul.f32 0.70710677, %v9156_v17 }
 0x591   : > { %v9164_v33 = vpop.eup %5584  ;;  %v9166_v21 = vadd.f32 1.0, %v4547_v52  ;;  %v4585_v37 = vmul.f32 %v4584_v10, %v8995_v44  ;;  %v4660_v15 = vadd.f32 0.001143296, %v4659_v13  ;;  %v4766_v59 = vmul.f32 %v9142_v48, %v9142_v48 }
 0x592   : > { %10496 = vst [vmem:[#allocation20_spill] sm:$0xff] %v9164_v33  ;;  %vm4435_vm6 = vweird.f32 %v9076_v31  ;;  %v4494_v32 = vmul.f32 %v4493_v0, %v8926_v58  ;;  %v4532_v2 = vmul.f32 %v4531_v7, %v8958_v26  ;;  %v4806_v46 = vmul.f32 %v9162_v34, %v9162_v34 }
 0x593   : > { %v9177_v41 = vadd.f32 %v9076_v31, %v4432_v25  ;;  %v4571_v52 = vadd.f32 0.0036580483, %v4570_v55  ;;  %v4623_v20 = vmul.f32 %v4622_v35, %v9056_v27  ;;  %v9180_v10 = vmin.f32 %v4726_v45, 16.0  ;;  %vm9196_vm7 = vmor %vm4434_vm5, %vm4435_vm6 }
 0x594   : > { %v4456_v13 = vmul.f32 %v4455_v49, %v8914_v9  ;;  %v4471_v4 = vsub.f32 1.0, %v4470_v61  ;;  %v4510_v18 = vmul.f32 %v9164_v33, %v9099_v11  ;;  %v4700_v0 = vadd.f32 0.001143296, %v4699_v43 }
 0x595   : > { %10497 = vst [vmem:[#allocation36_spill] sm:$0xff] %v9177_v41  ;;  %5586 = vrcp.f32 %v9166_v21  ;;  %v4586_v7 = vadd.f32 0.4994258, %v4585_v37  ;;  %v4661_v28 = vmul.f32 %v4660_v15, %v9110_v47  ;;  %v9187_v6 = vmin.f32 %v4766_v59, 16.0 }
 0x596   : > { %v4495_v55 = vadd.f32 0.18741608, %v4494_v32  ;;  %v4533_v35 = vadd.f32 0.05243302, %v4532_v2  ;;  %v9190_v45 = vmin.f32 %v4806_v46, 16.0  ;;  %v10498_v9 = vmov 0 }
 0x597   : > { %v10499_v9 = vsel %vm9196_vm7, 4294967295, %v10498_v9  ;;  %v4572_v37 = vmul.f32 %v4571_v52, %v8995_v44  ;;  %v4608_v15 = vmul.f32 2.1237322e-06, %v9056_v27  ;;  %v4624_v49 = vadd.f32 0.112945676, %v4623_v20 }
 0x598   : > { %10500 = vst [vmem:[#allocation38_spill] sm:$0xff] %v10499_v9  ;;  %v4739_v61 = vmul.f32 3.8918573e-05, %v9180_v10  ;;  %v9207_v43 = vadd.f32 1.1283791, %v4456_v13  ;;  %v4472_v59 = vmul.f32 %v9137_v53, %v4471_v4  ;;  %v4701_v2 = vmul.f32 %v4700_v0, %v9135_v16 }
 0x599   : > { %v4511_v46 = vsub.f32 1.0, %v4510_v18  ;;  %v4587_v25 = vmul.f32 %v4586_v7, %v8995_v44  ;;  %v4662_v52 = vadd.f32 0.014752088, %v4661_v28  ;;  %v4779_v62 = vmul.f32 3.8918573e-05, %v9187_v6 }
 0x59a   : > { %10501 = vst [vmem:[#allocation30_spill] sm:$0xff] %v9207_v43  ;;  %vm4474_vm8 = vweird.f32 %v9080_v3  ;;  %v4496_v30 = vmul.f32 %v4495_v55, %v8926_v58  ;;  %v4534_v32 = vmul.f32 %v4533_v35, %v8958_v26  ;;  %v4819_v13 = vmul.f32 3.8918573e-05, %v9190_v45 }
 0x59b   : > { %v9218_v39 = vpop.eup %5586  ;;  %v4573_v4 = vadd.f32 0.05243302, %v4572_v37  ;;  %v4609_v0 = vadd.f32 0.00028619796, %v4608_v15  ;;  %v4625_v18 = vmul.f32 %v4624_v49, %v9056_v27  ;;  %v4740_v7 = vadd.f32 0.001143296, %v4739_v61 }
 0x59c   : > { %10502 = vst [vmem:[#allocation25_spill] sm:$0xff] %v9218_v39  ;;  %v9222_v28 = vadd.f32 %v9137_v53, %v4472_v59  ;;  %vm4475_vm9 = vweird.f32 %v9137_v53  ;;  %v4702_v1 = vadd.f32 0.014752088, %v4701_v2  ;;  %v4512_v58 = vmul.f32 %v9164_v33, %v4511_v46 }
 0x59d   : > { %v9227_v55 = vadd.f32 1.0, %v4587_v25  ;;  %v4663_v35 = vmul.f32 %v4662_v52, %v9110_v47  ;;  %v4780_v60 = vadd.f32 0.001143296, %v4779_v62  ;;  %v9230_v37 = vadd.f32 1.1283791, %v4496_v30  ;;  %vm9261_vm12 = vmor %vm4474_vm8, %vm4475_vm9 }
 0x59e   : > { %10503 = vst [vmem:[#allocation12_spill] sm:$0xff] %v9222_v28  ;;  %v4535_v15 = vadd.f32 0.18741608, %v4534_v32  ;;  %v4550_v49 = vmul.f32 %v9218_v39, %v9166_v21  ;;  %v4820_v61 = vadd.f32 0.001143296, %v4819_v13  ;;  %v4574_v59 = vmul.f32 %v4573_v4, %v8995_v44 }
 0x59f   : > { %10504 = vst [vmem:[#allocation27_spill] sm:$0xff] %v9230_v37  ;;  %v4610_v38 = vmul.f32 %v4609_v0, %v9056_v27  ;;  %v4626_v20 = vadd.f32 0.4994258, %v4625_v18  ;;  %v4741_v2 = vmul.f32 %v4740_v7, %v9180_v10  ;;  %vm4514_vm10 = vweird.f32 %v9099_v11  ;;  %v1699_v18 = vld [vmem:[%s10113_s6 + $0x48] sm:$0xff]  ;;  %v9255_v7 = vpop.f32.mrf.mxu1 }
 0x5a0   : > { %vm4515_vm11 = vweird.f32 %v9164_v33  ;;  %v4648_v62 = vmul.f32 2.1237322e-06, %v9110_v47  ;;  %v4703_v30 = vmul.f32 %v4702_v1, %v9135_v16  ;;  %v9242_v25 = vadd.f32 %v9164_v33, %v4512_v58  ;;  %v1708_v1 = vld [vmem:[%s10113_s6 + $0x90] sm:$0xff]  ;;  %10506 = vst [vmem:[#allocation70_spill] sm:$0xff] %v9255_v7  ;;  %3368 = vmatmul.f32.gmra.mxu0 %v1699_v18 }
 0x5a1   : > { %5588 = vrcp.f32 %v9227_v55  ;;  %v4664_v32 = vadd.f32 0.112945676, %v4663_v35  ;;  %v4781_v46 = vmul.f32 %v4780_v60, %v9187_v6  ;;  %v4536_v13 = vmul.f32 %v4535_v15, %v8958_v26  ;;  %3318 = vmatmul.f32.gmra.mxu3 %v1708_v1  ;;  %vm9274_vm3 = vmor %vm4514_vm10, %vm4515_vm11 }
 0x5a2   : > { %10505 = vst [vmem:[#allocation69_spill] sm:$0xff] %v9242_v25  ;;  %v4551_v4 = vsub.f32 1.0, %v4550_v49  ;;  %v4821_v0 = vmul.f32 %v4820_v61, %v9190_v45  ;;  %v10507_v60 = vmov 0  ;;  %v4575_v26 = vadd.f32 0.18741608, %v4574_v59 }
 0x5a3   : > { %v10508_v60 = vsel %vm9261_vm12, 4294967295, %v10507_v60  ;;  %v4611_v58 = vadd.f32 0.0036580483, %v4610_v38  ;;  %v4627_v35 = vmul.f32 %v4626_v20, %v9056_v27  ;;  %v4742_v15 = vadd.f32 0.014752088, %v4741_v2 }
 0x5a4   : > { %10509 = vst [vmem:[#allocation71_spill] sm:$0xff] %v10508_v60  ;;  %v10510_v61 = vmov 0  ;;  %v4649_v59 = vadd.f32 0.00028619796, %v4648_v62  ;;  %v4704_v38 = vadd.f32 0.112945676, %v4703_v30  ;;  %v4665_v1 = vmul.f32 %v4664_v32, %v9110_v47 }
 0x5a5   : > { %v10511_v61 = vsel %vm9274_vm3, 4294967295, %v10510_v61  ;;  %v9279_v20 = vmul.f32 0.70710677, %v9255_v7  ;;  %v4782_v49 = vadd.f32 0.014752088, %v4781_v46  ;;  %v4552_v63 = vmul.f32 %v9218_v39, %v4551_v4 }
 0x5a6   : > { %10512 = vst [vmem:[#allocation72_spill] sm:$0xff] %v10511_v61  ;;  %v9287_v52 = vadd.f32 1.1283791, %v4536_v13  ;;  %v4822_v29 = vadd.f32 0.014752088, %v4821_v0  ;;  %v4612_v36 = vmul.f32 %v4611_v58, %v9056_v27  ;;  %v9296_v2 = vadd.f32 1.0, %v4627_v35 }
 0x5a7   : > { %v4846_v62 = vmul.f32 %v9279_v20, %v9279_v20  ;;  %v9292_v30 = vpop.eup %5588  ;;  %v4743_v18 = vmul.f32 %v4742_v15, %v9180_v10  ;;  %v4576_v32 = vmul.f32 %v4575_v26, %v8995_v44  ;;  %v4650_v46 = vmul.f32 %v4649_v59, %v9110_v47 }
 0x5a8   : > { %10513 = vst [vmem:[#allocation73_spill] sm:$0xff] %v9287_v52  ;;  %v4705_v13 = vmul.f32 %v4704_v38, %v9135_v16  ;;  %vm4555_vm14 = vweird.f32 %v9218_v39  ;;  %v4666_v0 = vadd.f32 0.4994258, %v4665_v1  ;;  %v4688_v43 = vmul.f32 2.1237322e-06, %v9135_v16 }
 0x5a9   : > { %10514 = vst [vmem:[#allocation74_spill] sm:$0xff] %v9292_v30  ;;  %v9302_v4 = vmin.f32 %v4846_v62, 16.0  ;;  %v4783_v14 = vmul.f32 %v4782_v49, %v9187_v6  ;;  %v9308_v58 = vadd.f32 %v9218_v39, %v4552_v63  ;;  %v4590_v35 = vmul.f32 %v9292_v30, %v9227_v55 }
 0x5aa   : > { %v4823_v44 = vmul.f32 %v4822_v29, %v9190_v45  ;;  %v4613_v59 = vadd.f32 0.05243302, %v4612_v36  ;;  %5590 = vrcp.f32 %v9296_v2  ;;  %v4744_v38 = vadd.f32 0.112945676, %v4743_v18 }
 0x5ab   : > { %10515 = vst [vmem:[#allocation75_spill] sm:$0xff] %v9308_v58  ;;  %v4859_v26 = vmul.f32 3.8918573e-05, %v9302_v4  ;;  %vm4554_vm1 = vweird.f32 %v9166_v21  ;;  %v9317_v1 = vadd.f32 1.1283791, %v4576_v32  ;;  %v10517_v62 = vmov 0 }
 0x5ac   : > { %v4651_v49 = vadd.f32 0.0036580483, %v4650_v46  ;;  %v4706_v63 = vadd.f32 0.4994258, %v4705_v13  ;;  %vm9321_vm2 = vmor %vm4554_vm1, %vm4555_vm14  ;;  %v4667_v29 = vmul.f32 %v4666_v0, %v9110_v47  ;;  %v4689_v57 = vadd.f32 0.00028619796, %v4688_v43 }
 0x5ad   : > { %10516 = vst [vmem:[#allocation76_spill] sm:$0xff] %v9317_v1  ;;  %v10518_v62 = vsel %vm9321_vm2, 4294967295, %v10517_v62  ;;  %v4784_v15 = vadd.f32 0.112945676, %v4783_v14  ;;  %v4860_v36 = vadd.f32 0.001143296, %v4859_v26  ;;  %v4614_v41 = vmul.f32 %v4613_v59, %v9056_v27 }
 0x5ae   : > { %10519 = vst [vmem:[#allocation77_spill] sm:$0xff] %v10518_v62  ;;  %v4591_v32 = vsub.f32 1.0, %v4590_v35  ;;  %v4728_v46 = vmul.f32 2.1237322e-06, %v9180_v10  ;;  %v4824_v13 = vadd.f32 0.112945676, %v4823_v44  ;;  %v4745_v31 = vmul.f32 %v4744_v38, %v9180_v10 }
 0x5af   : > { %v4768_v9 = vmul.f32 2.1237322e-06, %v9187_v6  ;;  %v4861_v0 = vmul.f32 %v4860_v36, %v9302_v4  ;;  %v4652_v26 = vmul.f32 %v4651_v49, %v9110_v47  ;;  %v4707_v18 = vmul.f32 %v4706_v63, %v9135_v16 }
 0x5b0   : > { %v9339_v35 = vpop.eup %5590  ;;  %v9341_v51 = vadd.f32 1.0, %v4667_v29  ;;  %v4690_v44 = vmul.f32 %v4689_v57, %v9135_v16  ;;  %v4785_v59 = vmul.f32 %v4784_v15, %v9187_v6  ;;  %v4592_v37 = vmul.f32 %v9292_v30, %v4591_v32 }
 0x5b1   : > { %v4862_v38 = vadd.f32 0.014752088, %v4861_v0  ;;  %vm4594_vm5 = vweird.f32 %v9227_v55  ;;  %vm4595_vm6 = vweird.f32 %v9292_v30  ;;  %v4729_v36 = vadd.f32 0.00028619796, %v4728_v46 }
 0x5b2   : > { %v4825_v49 = vmul.f32 %v4824_v13, %v9190_v45  ;;  %v4615_v43 = vadd.f32 0.18741608, %v4614_v41  ;;  %v4746_v63 = vadd.f32 0.4994258, %v4745_v31  ;;  %v4769_v14 = vadd.f32 0.00028619796, %v4768_v9  ;;  %vm9389_vm8 = vmor %vm4594_vm5, %vm4595_vm6 }
 0x5b3   : > { %v4863_v29 = vmul.f32 %v4862_v38, %v9302_v4  ;;  %v4630_v57 = vmul.f32 %v9339_v35, %v9296_v2  ;;  %v4653_v24 = vadd.f32 0.05243302, %v4652_v26  ;;  %v9352_v15 = vadd.f32 1.0, %v4707_v18  ;;  %v1701_v18 = vld [vmem:[%s10113_s6 + $0x58] sm:$0xff]  ;;  %v1710_v26 = vld [vmem:[%s10113_s6 + $0xa0] sm:$0xff]  ;;  %v9367_v38 = vpop.f32.mrf.mxu1 }
 0x5b4   : > { %v4848_v32 = vmul.f32 2.1237322e-06, %v9302_v4  ;;  %5592 = vrcp.f32 %v9341_v51  ;;  %v4691_v0 = vadd.f32 0.0036580483, %v4690_v44  ;;  %v4786_v28 = vadd.f32 0.4994258, %v4785_v59  ;;  %3371 = vmatmul.f32.gmra.mxu0 %v1701_v18  ;;  %3321 = vmatmul.f32.gmra.mxu3 %v1710_v26 }
 0x5b5   : > { %v4864_v46 = vadd.f32 0.112945676, %v4863_v29  ;;  %v9357_v13 = vadd.f32 %v9292_v30, %v4592_v37  ;;  %v4730_v41 = vmul.f32 %v4729_v36, %v9180_v10  ;;  %v4808_v31 = vmul.f32 2.1237322e-06, %v9190_v45 }
 0x5b6   : > { %v4826_v9 = vadd.f32 0.4994258, %v4825_v49  ;;  %v4747_v44 = vmul.f32 %v4746_v63, %v9180_v10  ;;  %v4770_v37 = vmul.f32 %v4769_v14, %v9187_v6  ;;  %v9373_v36 = vmul.f32 0.70710677, %v9367_v38 }
 0x5b7   : > { %10520 = vst [vmem:[#allocation78_spill] sm:$0xff] %v9357_v13  ;;  %v4865_v59 = vmul.f32 %v4864_v46, %v9302_v4  ;;  %v4616_v49 = vmul.f32 %v4615_v43, %v9056_v27  ;;  %v4631_v29 = vsub.f32 1.0, %v4630_v57  ;;  %5594 = vrcp.f32 %v9352_v15 }
 0x5b8   : > { %v4849_v53 = vadd.f32 0.00028619796, %v4848_v32  ;;  %v4654_v60 = vmul.f32 %v4653_v24, %v9110_v47  ;;  %v4787_v40 = vmul.f32 %v4786_v28, %v9187_v6  ;;  %v4886_v14 = vmul.f32 %v9373_v36, %v9373_v36 }
 0x5b9   : > { %v4866_v63 = vadd.f32 0.4994258, %v4865_v59  ;;  %v4692_v46 = vmul.f32 %v4691_v0, %v9135_v16  ;;  %v4731_v18 = vadd.f32 0.0036580483, %v4730_v41  ;;  %v4809_v26 = vadd.f32 0.00028619796, %v4808_v31 }
 0x5ba   : > { %v4827_v19 = vmul.f32 %v4826_v9, %v9190_v45  ;;  %v9383_v52 = vpop.eup %5592  ;;  %v9393_v27 = vadd.f32 1.0, %v4747_v44  ;;  %v4771_v28 = vadd.f32 0.0036580483, %v4770_v37  ;;  %v9396_v57 = vmin.f32 %v4886_v14, 16.0 }
 0x5bb   : > { %v4867_v43 = vmul.f32 %v4866_v63, %v9302_v4  ;;  %v9402_v0 = vadd.f32 1.1283791, %v4616_v49  ;;  %v4632_v41 = vmul.f32 %v9339_v35, %v4631_v29  ;;  %v4850_v31 = vmul.f32 %v4849_v53, %v9302_v4 }
 0x5bc   : > { %v9406_v9 = vadd.f32 1.0, %v4787_v40  ;;  %v4888_v37 = vmul.f32 2.1237322e-06, %v9396_v57  ;;  %v4899_v59 = vmul.f32 3.8918573e-05, %v9396_v57  ;;  %v4670_v32 = vmul.f32 %v9383_v52, %v9341_v51  ;;  %v1712_v40 = vld [vmem:[%s10113_s6 + $0xb0] sm:$0xff] }
 0x5bd   : > { %10523 = vst [vmem:[#allocation79_spill] sm:$0xff] %v9402_v0  ;;  %v9408_v44 = vadd.f32 1.0, %v4867_v43  ;;  %v9412_v63 = vpop.eup %5594  ;;  %v4655_v14 = vadd.f32 0.18741608, %v4654_v60  ;;  %v4810_v49 = vmul.f32 %v4809_v26, %v9190_v45  ;;  %v9417_v50 = vadd.f32 1.0, %v4827_v19  ;;  %3324 = vmatmul.f32.gmra.mxu3 %v1712_v40 }
 0x5be   : > { %v4693_v53 = vadd.f32 0.05243302, %v4692_v46  ;;  %v4732_v29 = vmul.f32 %v4731_v18, %v9180_v10  ;;  %5596 = vrcp.f32 %v9393_v27  ;;  %v4772_v43 = vmul.f32 %v4771_v28, %v9187_v6 }
 0x5bf   : > { %v4851_v60 = vadd.f32 0.0036580483, %v4850_v31  ;;  %5598 = vrcp.f32 %v9408_v44  ;;  %v4889_v25 = vadd.f32 0.00028619796, %v4888_v37  ;;  %v4900_v33 = vadd.f32 0.001143296, %v4899_v59 }
 0x5c0   : > { %v9427_v19 = vadd.f32 %v9339_v35, %v4632_v41  ;;  %vm4635_vm9 = vweird.f32 %v9339_v35  ;;  %v4710_v46 = vmul.f32 %v9412_v63, %v9352_v15  ;;  %5600 = vrcp.f32 %v9406_v9 }
 0x5c1   : > { %v4811_v18 = vadd.f32 0.0036580483, %v4810_v49  ;;  %5602 = vrcp.f32 %v9417_v50  ;;  %v4890_v26 = vmul.f32 %v4889_v25, %v9396_v57  ;;  %v4901_v28 = vmul.f32 %v4900_v33, %v9396_v57  ;;  %v10574_v25 = vld [vmem:[#allocation74_spill] sm:$0xff] }
 0x5c2   : > { %v4656_v31 = vmul.f32 %v4655_v14, %v9110_v47  ;;  %v4671_v37 = vsub.f32 1.0, %v4670_v32  ;;  %v4694_v41 = vmul.f32 %v4693_v53, %v9135_v16  ;;  %v4733_v59 = vadd.f32 0.05243302, %v4732_v29 }
 0x5c3   : > { %vm4634_vm10 = vweird.f32 %v9296_v2  ;;  %v4773_v40 = vadd.f32 0.05243302, %v4772_v43  ;;  %v4852_v61 = vmul.f32 %v4851_v60, %v9302_v4  ;;  %v4902_v17 = vadd.f32 0.014752088, %v4901_v28  ;;  %v1714_v28 = vld [vmem:[%s10113_s6 + $0xc0] sm:$0xff] }
 0x5c4   : > { %v9440_v23 = vpop.eup %5596  ;;  %vm9444_vm11 = vmor %vm4634_vm10, %vm4635_vm9  ;;  %v4680_v32 = vand.u32 2147483648, %v9341_v51  ;;  %v4891_v14 = vadd.f32 0.0036580483, %v4890_v26  ;;  %v4711_v29 = vsub.f32 1.0, %v4710_v46  ;;  %v4812_v43 = vmul.f32 %v4811_v18, %v9190_v45 }
 0x5c5   : > { %v9451_v49 = vpop.eup %5598  ;;  %v4903_v60 = vmul.f32 %v4902_v17, %v9396_v57  ;;  %v9464_v47 = vadd.f32 1.1283791, %v4656_v31  ;;  %v4672_v26 = vmul.f32 %v9383_v52, %v4671_v37  ;;  %v4695_v1 = vadd.f32 0.18741608, %v4694_v41  ;;  %3327 = vmatmul.f32.gmra.mxu3 %v1714_v28  ;;  %v1703_v41 = vld [vmem:[%s10113_s6 + $0x68] sm:$0xff] }
 0x5c6   : > { %v9462_v33 = vpop.eup %5600  ;;  %v4734_v8 = vmul.f32 %v4733_v59, %v9180_v10  ;;  %v4750_v46 = vmul.f32 %v9440_v23, %v9393_v27  ;;  %v4774_v17 = vmul.f32 %v4773_v40, %v9187_v6  ;;  %v4853_v18 = vadd.f32 0.05243302, %v4852_v61  ;;  %3374 = vmatmul.f32.gmra.mxu0 %v1703_v41 }
 0x5c7   : > { %v9468_v53 = vpop.eup %5602  ;;  %v4904_v58 = vadd.f32 0.112945676, %v4903_v60  ;;  %v9474_v62 = vor.u32 1.1754944e-38, %v4680_v32  ;;  %v4870_v31 = vmul.f32 %v9451_v49, %v9408_v44  ;;  %v4892_v37 = vmul.f32 %v4891_v14, %v9396_v57 }
 0x5c8   : > { %v4712_v59 = vmul.f32 %v9412_v63, %v4711_v29  ;;  %v4790_v40 = vmul.f32 %v9462_v33, %v9406_v9  ;;  %v4813_v61 = vadd.f32 0.05243302, %v4812_v43  ;;  %v9487_v32 = vadd.f32 %v9383_v52, %v4672_v26  ;;  %v1716_v43 = vld [vmem:[%s10113_s6 + $0xd0] sm:$0xff] }
 0x5c9   : > { %v4905_v60 = vmul.f32 %v4904_v58, %v9396_v57  ;;  %v4696_v28 = vmul.f32 %v4695_v1, %v9135_v16  ;;  %v4735_v39 = vadd.f32 0.18741608, %v4734_v8  ;;  %v4830_v14 = vmul.f32 %v9468_v53, %v9417_v50 }
 0x5ca   : > { %v4751_v7 = vsub.f32 1.0, %v4750_v46  ;;  %v4775_v5 = vadd.f32 0.18741608, %v4774_v17  ;;  %v4854_v29 = vmul.f32 %v4853_v18, %v9302_v4  ;;  %vm4715_vm14 = vweird.f32 %v9412_v63 }
 0x5cb   : > { %v4906_v0 = vadd.f32 0.4994258, %v4905_v60  ;;  %v4720_v58 = vand.u32 2147483648, %v9352_v15  ;;  %v4871_v26 = vsub.f32 1.0, %v4870_v31  ;;  %v4893_v41 = vadd.f32 0.05243302, %v4892_v37 }
 0x5cc   : > { %v9499_v8 = vadd.f32 %v9412_v63, %v4712_v59  ;;  %v4791_v16 = vsub.f32 1.0, %v4790_v40  ;;  %v4814_v1 = vmul.f32 %v4813_v61, %v9190_v45  ;;  %v9503_v17 = vadd.f32 1.1283791, %v4696_v28  ;;  %v1705_v31 = vld [vmem:[%s10113_s6 + $0x78] sm:$0xff] }
 0x5cd   : > { %v4907_v46 = vmul.f32 %v4906_v0, %v9396_v57  ;;  %vm4714_vm1 = vweird.f32 %v9352_v15  ;;  %v4736_v18 = vmul.f32 %v4735_v39, %v9180_v10  ;;  %v4831_v60 = vsub.f32 1.0, %v4830_v14  ;;  %3330 = vmatmul.f32.gmra.mxu3 %v1716_v43 }
 0x5ce   : > { %v4752_v37 = vmul.f32 %v9440_v23, %v4751_v7  ;;  %v4776_v59 = vmul.f32 %v4775_v5, %v9187_v6  ;;  %v4855_v40 = vadd.f32 0.18741608, %v4854_v29  ;;  %vm9516_vm5 = vmor %vm4714_vm1, %vm4715_vm14  ;;  %v4718_v39 = vand.u32 2147483647, %v9352_v15  ;;  %3377 = vmatmul.f32.gmra.mxu0 %v1705_v31 }
 0x5cf   : > { %v9512_v61 = vadd.f32 1.0, %v4907_v46  ;;  %v9521_v10 = vor.u32 1.1754944e-38, %v4720_v58  ;;  %v4872_v28 = vmul.f32 %v9451_v49, %v4871_v26  ;;  %v4894_v14 = vmul.f32 %v4893_v41, %v9396_v57 }
 0x5d0   : > { %v4792_v5 = vmul.f32 %v9462_v33, %v4791_v16  ;;  %v4815_v7 = vadd.f32 0.18741608, %v4814_v1  ;;  %v9531_v29 = vadd.f32 1.1283791, %v4736_v18  ;;  %v4758_v15 = vand.u32 2147483647, %v9393_v27 }
 0x5d1   : > { %5604 = vrcp.f32 %v9512_v61  ;;  %v4832_v58 = vmul.f32 %v9468_v53, %v4831_v60  ;;  %v9537_v26 = vadd.f32 %v9440_v23, %v4752_v37  ;;  %v9541_v41 = vadd.f32 1.1283791, %v4776_v59  ;;  %v1718_v1 = vld [vmem:[%s10113_s6 + $0xe0] sm:$0xff]  ;;  %v9555_v59 = vpop.f32.mrf.mxu3 }
 0x5d2   : > { %v4856_v16 = vmul.f32 %v4855_v40, %v9302_v4  ;;  %v4873_v46 = vadd.f32 %v9451_v49, %v4872_v28  ;;  %vm4875_vm14 = vweird.f32 %v9451_v49  ;;  %v4895_v18 = vadd.f32 0.18741608, %v4894_v14  ;;  %10528 = vst [vmem:[#allocation80_spill] sm:$0xff] %v9555_v59  ;;  %v1707_v14 = vld [vmem:[%s10113_s6 + $0x88] sm:$0xff] }
 0x5d3   : > { %v4793_v60 = vadd.f32 %v9462_v33, %v4792_v5  ;;  %v4816_v31 = vmul.f32 %v4815_v7, %v9190_v45  ;;  %v4838_v37 = vand.u32 2147483647, %v9417_v50  ;;  %v4880_v4 = vand.u32 2147483648, %v9408_v44 }
 0x5d4   : > { %v4833_v40 = vadd.f32 %v9468_v53, %v4832_v58  ;;  %vm4874_vm6 = vweird.f32 %v9408_v44  ;;  %v4878_v28 = vand.u32 2147483647, %v9408_v44  ;;  %vm4794_vm9 = vweird.f32 %v9406_v9 }
 0x5d5   : > { %3333 = vmatmul.f32.gmra.mxu3 %v1718_v1  ;;  %v4798_v5 = vand.u32 2147483647, %v9406_v9  ;;  %v4840_v7 = vand.u32 2147483648, %v9417_v50  ;;  %v4857_v58 = vadd.f32 1.1283791, %v4856_v16  ;;  %vm9570_vm0 = vmor %vm4874_vm6, %vm4875_vm14  ;;  %vm9574_vm10 = vcmp.eq.f32.partialorder %v4718_v39, 8.507059e+37 }
 0x5d6   : > { %vm9578_vm13 = vcmp.eq.f32.partialorder %v4758_v15, 8.507059e+37  ;;  %vm10535_vm1 = vweird.f32 %v9462_v33  ;;  %vm4834_vm4 = vweird.f32 %v9417_v50  ;;  %v4877_v16 = vsel %vm9570_vm0, %v9451_v49, %v4873_v46  ;;  %3380 = vmatmul.f32.gmra.mxu0 %v1707_v14 }
 0x5d7   : > { %v5605_v45 = vpop.eup %5604  ;;  %vm9584_vm15 = vmor %vm4794_vm9, %vm10535_vm1  ;;  %v4896_v39 = vmul.f32 %v4895_v18, %v9396_v57  ;;  %v4800_v22 = vand.u32 2147483648, %v9406_v9  ;;  %v4817_v13 = vadd.f32 1.1283791, %v4816_v31  ;;  %vm10538_vm6 = vweird.f32 %v9468_v53  ;;  %v1720_v18 = vld [vmem:[%s10113_s6 + $0xf0] sm:$0xff] }
 0x5d8   : > { %v4910_v59 = vmul.f32 %v5605_v45, %v9512_v61  ;;  %v4797_v15 = vsel %vm9584_vm15, %v9462_v33, %v4793_v60  ;;  %vm9600_vm9 = vmor %vm4834_vm4, %vm10538_vm6  ;;  %v4881_v50 = vor.u32 1.1754944e-38, %v4880_v4  ;;  %vm9607_vm0 = vcmp.eq.f32.partialorder %v4838_v37, 8.507059e+37 }
 0x5d9   : > { %v4837_v57 = vsel %vm9600_vm9, %v9468_v53, %v4833_v40  ;;  %vm4879_vm15 = vcmp.eq.f32.partialorder %v4878_v28, 8.507059e+37  ;;  %v4841_v9 = vor.u32 1.1754944e-38, %v4840_v7  ;;  %v4858_v6 = vmul.f32 %v4857_v58, %v9279_v20 }
 0x5da   : > { %v4911_v33 = vsub.f32 1.0, %v4910_v59  ;;  %v4882_v43 = vsel %vm4879_vm15, %v4881_v50, %v4877_v16  ;;  %v4920_v46 = vand.u32 2147483648, %v9512_v61  ;;  %vm10543_vm4 = vweird.f32 %v9440_v23 }
 0x5db   : > { %vm10544_vm14 = vweird.f32 %v9393_v27  ;;  %v4897_v53 = vadd.f32 1.1283791, %v4896_v39  ;;  %vm4915_vm6 = vweird.f32 %v5605_v45  ;;  %v4918_v20 = vand.u32 2147483647, %v9512_v61 }
 0x5dc   : > { %vm9620_vm1 = vmor %vm10544_vm14, %vm10543_vm4  ;;  %v4912_v60 = vmul.f32 %v5605_v45, %v4911_v33  ;;  %vm4799_vm9 = vcmp.eq.f32.partialorder %v4798_v5, 8.507059e+37  ;;  %v4801_v37 = vor.u32 1.1754944e-38, %v4800_v22  ;;  %v4842_v4 = vsel %vm9607_vm0, %v4841_v9, %v4837_v57 }
 0x5dd   : > { %v4757_v31 = vsel %vm9620_vm1, %v9440_v23, %v9537_v26  ;;  %v10547_v59 = vand.u32 2147483647, %v9227_v55  ;;  %v4818_v28 = vmul.f32 %v4817_v13, %v9162_v34  ;;  %v4883_v14 = vmul.f32 %v4882_v43, %v4858_v6  ;;  %v1709_v23 = vld [vmem:[%s10113_s6 + $0x98] sm:$0xff]  ;;  %3336 = vmatmul.f32.gmra.mxu3 %v1720_v18  ;;  %v9647_v34 = vpop.f32.mrf.mxu3  ;;  %v3405_v6 = vld [vmem:[%s10115_s8] sm:$0xff] }
 0x5de   : > { %v4913_v7 = vadd.f32 %v5605_v45, %v4912_v60  ;;  %vm4914_vm4 = vweird.f32 %v9512_v61  ;;  %v10550_v22 = vand.u32 2147483648, %v9393_v27  ;;  %v4778_v5 = vmul.f32 %v9541_v41, %v9142_v48  ;;  %3383 = vmatmul.f32.gmra.mxu0 %v1709_v23 }
 0x5df   : > { %vm9633_vm15 = vcmp.eq.f32.partialorder %v10547_v59, 8.507059e+37  ;;  %v4802_v58 = vsel %vm4799_vm9, %v4801_v37, %v4797_v15  ;;  %vm4916_vm0 = vmor %vm4914_vm4, %vm4915_vm6  ;;  %v4921_v16 = vor.u32 1.1754944e-38, %v4920_v46  ;;  %v10551_v13 = vand.u32 2147483647, %v9166_v21 }
 0x5e0   : > { %v4761_v26 = vor.u32 1.1754944e-38, %v10550_v22  ;;  %vm10554_vm1 = vweird.f32 %v9383_v52  ;;  %vm10555_vm7 = vweird.f32 %v9341_v51  ;;  %v4843_v48 = vmul.f32 %v4842_v4, %v4818_v28  ;;  %v10579_v22 = vld [vmem:[#allocation58_spill] sm:$0xff] }
 0x5e1   : > { %vm9651_vm14 = vcmp.eq.f32.partialorder %v10551_v13, 8.507059e+37  ;;  %vm9659_vm12 = vmor %vm10555_vm7, %vm10554_vm1  ;;  %v4898_v41 = vmul.f32 %v4897_v53, %v9373_v36  ;;  %v4917_v39 = vsel %vm4916_vm0, %v5605_v45, %v4913_v7  ;;  %vm4919_vm6 = vcmp.eq.f32.partialorder %v4918_v20, 8.507059e+37  ;;  %v10578_v7 = vld [vmem:[#allocation79_spill] sm:$0xff] }
 0x5e2   : > { %v4677_v15 = vsel %vm9659_vm12, %v9383_v52, %v9487_v32  ;;  %v10558_v50 = vsel %vm9516_vm5, %v9412_v63, %v9499_v8  ;;  %v4762_v49 = vsel %vm9578_vm13, %v4761_v26, %v4757_v31  ;;  %v4922_v36 = vsel %vm4919_vm6, %v4921_v16, %v4917_v39  ;;  %v10583_v16 = vld [vmem:[#allocation70_spill] sm:$0xff]  ;;  %v10587_v39 = vld [vmem:[#allocation75_spill] sm:$0xff] }
 0x5e3   : > { %v4722_v57 = vsel %vm9574_vm10, %v9521_v10, %v10558_v50  ;;  %v10559_v45 = vand.u32 2147483647, %v9099_v11  ;;  %v4738_v52 = vmul.f32 %v9531_v29, %v9126_v12  ;;  %v4803_v32 = vmul.f32 %v4802_v58, %v4778_v5  ;;  %v10618_v29 = vld [vmem:[#allocation38_spill] sm:$0xff] }
 0x5e4   : > { %v5347_v63 = vclamps-f32 %v4883_v14, 1.0  ;;  %v4923_v8 = vmul.f32 %v4922_v36, %v4898_v41  ;;  %v10562_v0 = vand.u32 2147483647, %v9296_v2  ;;  %v10563_v10 = vand.u32 2147483648, %v9296_v2  ;;  %v10577_v14 = vld [vmem:[#allocation54_spill] sm:$0xff]  ;;  %v10586_v41 = vld [vmem:[#allocation25_spill] sm:$0xff] }
 0x5e5   : > { %vm9680_vm7 = vcmp.eq.f32.partialorder %v10559_v45, 8.507059e+37  ;;  %v10564_v1 = vand.u32 2147483647, %v9341_v51  ;;  %v4698_v9 = vmul.f32 %v9503_v17, %v9087_v56  ;;  %v10565_v12 = vand.u32 2147483647, %v9080_v3  ;;  %5006 = vmatmul.f32.vlgmr.msra.gmra.mxu3 %v3405_v6  ;;  %v10633_v6 = vld [vmem:[#allocation42_spill] sm:$0xff] }
 0x5e6   : > { %vm4639_vm12 = vcmp.eq.f32.partialorder %v10562_v0, 8.507059e+37  ;;  %v4641_v44 = vor.u32 1.1754944e-38, %v10563_v10  ;;  %v4763_v2 = vmul.f32 %v4762_v49, %v4738_v52  ;;  %v5346_v46 = vclamps-f32 %v4843_v48, 1.0  ;;  %v10590_v49 = vld [vmem:[#allocation76_spill] sm:$0xff]  ;;  %v9752_v52 = vpop.f32.mrf.mxu3 }
 0x5e7   : > { %vm4679_vm13 = vcmp.eq.f32.partialorder %v10564_v1, 8.507059e+37  ;;  %vm9699_vm5 = vcmp.eq.f32.partialorder %v10565_v12, 8.507059e+37  ;;  %v5348_v18 = vclamps-f32 %v4923_v8, 1.0  ;;  %v10568_v51 = vand.u32 2147483648, %v9227_v55  ;;  %v10595_v10 = vld [vmem:[#allocation32_spill] sm:$0xff] }
 0x5e8   : > { %v4682_v43 = vsel %vm4679_vm13, %v9474_v62, %v4677_v15  ;;  %v10569_v56 = vsel %vm9444_vm11, %v9339_v35, %v9427_v19  ;;  %v4658_v53 = vmul.f32 %v9464_v47, %v9067_v54  ;;  %v4723_v60 = vmul.f32 %v4722_v57, %v4698_v9  ;;  %v1711_v35 = vld [vmem:[%s10113_s6 + $0xa8] sm:$0xff]  ;;  %v10589_v57 = vld [vmem:[#allocation61_spill] sm:$0xff]  ;;  %v10598_v12 = vld [vmem:[#allocation20_spill] sm:$0xff] }
 0x5e9   : > { %v4601_v30 = vor.u32 1.1754944e-38, %v10568_v51  ;;  %v4642_v17 = vsel %vm4639_vm12, %v4641_v44, %v10569_v56  ;;  %v10570_v20 = vand.u32 2147483647, %v9012_v42  ;;  %v5345_v31 = vclamps-f32 %v4803_v32, 1.0  ;;  %v10575_v47 = vld [vmem:[#allocation78_spill] sm:$0xff]  ;;  %3386 = vmatmul.f32.gmra.mxu0 %v1711_v35  ;;  %v10591_v32 = vld [vmem:[#allocation49_spill] sm:$0xff] }
 0x5ea   : > { %v4956_v37 = vadd.f32 1.0, %v5347_v63  ;;  %v3613_v55 = vmul.f32 0.5, %v9367_v38  ;;  %v4957_v4 = vadd.f32 1.0, %v5348_v18  ;;  %v10573_v19 = vand.u32 2147483648, %v9166_v21  ;;  %v10601_v18 = vld [vmem:[#allocation59_spill] sm:$0xff]  ;;  %v10602_v51 = vld [vmem:[#allocation73_spill] sm:$0xff] }
 0x5eb   : > { %vm9715_vm10 = vcmp.eq.f32.partialorder %v10570_v20, 8.507059e+37  ;;  %v10576_v59 = vsel %vm9389_vm8, %v10574_v25, %v10575_v47  ;;  %v4618_v38 = vmul.f32 %v10578_v7, %v10577_v14  ;;  %v4683_v23 = vmul.f32 %v4682_v43, %v4658_v53  ;;  %v10599_v43 = vld [vmem:[#allocation69_spill] sm:$0xff]  ;;  %v10612_v25 = vld [vmem:[#allocation12_spill] sm:$0xff]  ;;  %v10615_v14 = vld [vmem:[#allocation27_spill] sm:$0xff] }
 0x5ec   : > { %v4561_v54 = vor.u32 1.1754944e-38, %v10573_v19  ;;  %v4602_v28 = vsel %vm9633_vm15, %v4601_v30, %v10576_v59  ;;  %v10580_v26 = vand.u32 2147483647, %v10579_v22  ;;  %v5344_v21 = vclamps-f32 %v4763_v2, 1.0  ;;  %v10603_v53 = vld [vmem:[#allocation53_spill] sm:$0xff]  ;;  %v10609_v19 = vld [vmem:[#allocation71_spill] sm:$0xff] }
 0x5ed   : > { %v4955_v58 = vadd.f32 1.0, %v5346_v46  ;;  %v3612_v24 = vmul.f32 0.5, %v10583_v16  ;;  %v4989_v13 = vmul.f32 %v4957_v4, %v3613_v55  ;;  %v10584_v27 = vand.u32 2147483648, %v9099_v11  ;;  %v10646_v11 = vld [vmem:[#allocation52_spill] sm:$0xff] }
 0x5ee   : > { %vm9736_vm11 = vcmp.eq.f32.partialorder %v10580_v26, 8.507059e+37  ;;  %v10588_v15 = vsel %vm9321_vm2, %v10586_v41, %v10587_v39  ;;  %v4578_v36 = vmul.f32 %v10590_v49, %v10589_v57  ;;  %v4643_v45 = vmul.f32 %v4642_v17, %v4618_v38  ;;  %v3407_v17 = vld [vmem:[%s10115_s8 + $0x10] sm:$0xff]  ;;  %v10623_v39 = vld [vmem:[#allocation40_spill] sm:$0xff] }
 0x5ef   : > { %v4521_v48 = vor.u32 1.1754944e-38, %v10584_v27  ;;  %v4562_v50 = vsel %vm9651_vm14, %v4561_v54, %v10588_v15  ;;  %v10592_v63 = vand.u32 2147483647, %v10591_v32  ;;  %v5343_v8 = vclamps-f32 %v4723_v60, 1.0  ;;  %5055 = vmatpush.msra.mxu0 %v4989_v13  ;;  %v10611_v54 = vld [vmem:[#allocation34_spill] sm:$0xff]  ;;  %5009 = vmatmul.f32.gmra.mxu3 %v3407_v17  ;;  %v10620_v27 = vld [vmem:[#allocation28_spill] sm:$0xff] }
 0x5f0   : > { %v4954_v0 = vadd.f32 1.0, %v5345_v31  ;;  %v3611_v44 = vmul.f32 0.5, %v10595_v10  ;;  %v4988_v1 = vmul.f32 %v4956_v37, %v3612_v24  ;;  %v10596_v61 = vand.u32 2147483648, %v9080_v3  ;;  %v10607_v37 = vld [vmem:[#allocation26_spill] sm:$0xff]  ;;  %v10636_v17 = vld [vmem:[#allocation47_spill] sm:$0xff] }
 0x5f1   : > { %vm9756_vm8 = vcmp.eq.f32.partialorder %v10592_v63, 8.507059e+37  ;;  %v10600_v2 = vsel %vm9274_vm3, %v10598_v12, %v10599_v43  ;;  %v4538_v30 = vmul.f32 %v10602_v51, %v10601_v18  ;;  %v4603_v56 = vmul.f32 %v4602_v28, %v4578_v36  ;;  %v10614_v28 = vld [vmem:[#allocation39_spill] sm:$0xff]  ;;  %v10624_v15 = vld [vmem:[#allocation30_spill] sm:$0xff]  ;;  %v10634_v18 = vld [vmem:[#allocation56_spill] sm:$0xff] }
 0x5f2   : > { %v4481_v9 = vor.u32 1.1754944e-38, %v10596_v61  ;;  %v4522_v46 = vsel %vm9680_vm7, %v4521_v48, %v10600_v2  ;;  %v10604_v60 = vand.u32 2147483647, %v10603_v53  ;;  %v5342_v20 = vclamps-f32 %v4683_v23, 1.0  ;;  %5056 = vmatpush.msra.mxu0 %v4988_v1  ;;  %v10621_v48 = vld [vmem:[#allocation36_spill] sm:$0xff]  ;;  %v10627_v10 = vld [vmem:[#allocation22_spill] sm:$0xff] }
 0x5f3   : > { %v4953_v31 = vadd.f32 1.0, %v5344_v21  ;;  %v3610_v55 = vmul.f32 0.5, %v10607_v37  ;;  %v4987_v33 = vmul.f32 %v4955_v58, %v3611_v44  ;;  %v10608_v4 = vand.u32 2147483648, %v9012_v42  ;;  %v10616_v21 = vld [vmem:[#allocation46_spill] sm:$0xff]  ;;  %v1713_v42 = vld [vmem:[%s10113_s6 + $0xb8] sm:$0xff]  ;;  %v10629_v44 = vld [vmem:[#allocation33_spill] sm:$0xff] }
 0x5f4   : > { %vm9777_vm2 = vcmp.eq.f32.partialorder %v10604_v60, 8.507059e+37  ;;  %vm10610_vm3 = vnez %v10609_v19  ;;  %v4498_v7 = vmul.f32 %v10615_v14, %v10614_v28  ;;  %v4563_v38 = vmul.f32 %v4562_v50, %v4538_v30  ;;  %v10630_v1 = vld [vmem:[#allocation24_spill] sm:$0xff]  ;;  %3389 = vmatmul.f32.gmra.mxu0 %v1713_v42  ;;  %v10638_v60 = vld [vmem:[#allocation37_spill] sm:$0xff]  ;;  %v10641_v37 = vld [vmem:[#allocation62_spill] sm:$0xff]  ;;  %v9835_v19 = vpop.f32.mrf.mxu3 }
 0x5f5   : > { %v4441_v35 = vor.u32 1.1754944e-38, %v10608_v4  ;;  %v10613_v47 = vsel %vm10610_vm3, %v10611_v54, %v10612_v25  ;;  %v5341_v23 = vclamps-f32 %v4643_v45, 1.0  ;;  %v4952_v26 = vadd.f32 1.0, %v5343_v8  ;;  %5057 = vmatpush.msra.mxu0 %v4987_v33  ;;  %v10625_v45 = vld [vmem:[#allocation57_spill] sm:$0xff]  ;;  %v10643_v25 = vld [vmem:[#allocation50_spill] sm:$0xff]  ;;  %v10644_v28 = vld [vmem:[#allocation48_spill] sm:$0xff] }
 0x5f6   : > { %v4482_v59 = vsel %vm9699_vm5, %v4481_v9, %v10613_v47  ;;  %v3609_v58 = vmul.f32 0.5, %v10616_v21  ;;  %v4986_v16 = vmul.f32 %v4954_v0, %v3610_v55  ;;  %v10617_v24 = vand.u32 2147483648, %v10579_v22  ;;  %v10632_v9 = vld [vmem:[#allocation66_spill] sm:$0xff]  ;;  %v10642_v55 = vld [vmem:[#allocation51_spill] sm:$0xff] }
 0x5f7   : > { %vm10619_vm9 = vnez %v10618_v29  ;;  %v4458_v50 = vmul.f32 %v10624_v15, %v10623_v39  ;;  %v4523_v57 = vmul.f32 %v4522_v46, %v4498_v7  ;;  %v5340_v49 = vclamps-f32 %v4603_v56, 1.0  ;;  %v10647_v14 = vld [vmem:[#allocation31_spill] sm:$0xff] }
 0x5f8   : > { %v4401_v13 = vor.u32 1.1754944e-38, %v10617_v24  ;;  %v10622_v40 = vsel %vm10619_vm9, %v10620_v27, %v10621_v48  ;;  %v4951_v36 = vadd.f32 1.0, %v5342_v20  ;;  %v3608_v63 = vmul.f32 0.5, %v10625_v45  ;;  %5058 = vmatpush.msra.mxu0 %v4986_v16  ;;  %v10639_v20 = vld [vmem:[#allocation45_spill] sm:$0xff]  ;;  %v10651_v24 = vld [vmem:[#allocation64_spill] sm:$0xff]  ;;  %v1715_v27 = vld [vmem:[%s10113_s6 + $0xc8] sm:$0xff] }
 0x5f9   : > { %v4442_v41 = vsel %vm9715_vm10, %v4441_v35, %v10622_v40  ;;  %v4985_v8 = vmul.f32 %v4953_v31, %v3609_v58  ;;  %v10626_v22 = vand.u32 2147483648, %v10591_v32  ;;  %vm10628_vm15 = vnez %v10627_v10  ;;  %v3409_v35 = vld [vmem:[%s10115_s8 + $0x20] sm:$0xff]  ;;  %v10652_v48 = vld [vmem:[#allocation55_spill] sm:$0xff] }
 0x5fa   : > { %v10631_v61 = vsel %vm10628_vm15, %v10629_v44, %v10630_v1  ;;  %v4418_v12 = vmul.f32 %v10633_v6, %v10632_v9  ;;  %v4483_v43 = vmul.f32 %v4482_v59, %v4458_v50  ;;  %v5339_v2 = vclamps-f32 %v4563_v38, 1.0  ;;  %5012 = vmatmul.f32.gmra.mxu3 %v3409_v35  ;;  %v10653_v40 = vld [vmem:[#allocation35_spill] sm:$0xff]  ;;  %v10654_v50 = vld [vmem:[#allocation41_spill] sm:$0xff] }
 0x5fb   : > { %v4361_v0 = vor.u32 1.1754944e-38, %v10626_v22  ;;  %v4402_v62 = vsel %vm9736_vm11, %v4401_v13, %v10631_v61  ;;  %v4950_v46 = vadd.f32 1.0, %v5341_v23  ;;  %v3607_v51 = vmul.f32 0.5, %v10634_v18  ;;  %5059 = vmatpush.msra.mxu0 %v4985_v8  ;;  %v10649_v23 = vld [vmem:[#allocation63_spill] sm:$0xff]  ;;  %v10655_v8 = vld [vmem:[#allocation60_spill] sm:$0xff] }
 0x5fc   : > { %v4984_v30 = vmul.f32 %v4952_v26, %v3608_v63  ;;  %v10635_v32 = vand.u32 2147483648, %v10603_v53  ;;  %vm10637_vm4 = vnez %v10636_v17  ;;  %v4378_v33 = vmul.f32 %v10642_v55, %v10641_v37  ;;  %v10650_v26 = vld [vmem:[#allocation29_spill] sm:$0xff]  ;;  %3392 = vmatmul.f32.gmra.mxu0 %v1715_v27  ;;  %v3411_v10 = vld [vmem:[%s10115_s8 + $0x30] sm:$0xff]  ;;  %v10656_v61 = vld [vmem:[#allocation44_spill] sm:$0xff]  ;;  %v9859_v6 = vpop.f32.mrf.mxu3 }
 0x5fd   : > { %v10640_v5 = vsel %vm10637_vm4, %v10638_v60, %v10639_v20  ;;  %v4443_v4 = vmul.f32 %v4442_v41, %v4418_v12  ;;  %v5338_v53 = vclamps-f32 %v4523_v57, 1.0  ;;  %v4949_v54 = vadd.f32 1.0, %v5340_v49  ;;  %v10659_v20 = vld [vmem:[#allocation68_spill] sm:$0xff]  ;;  %v3413_v37 = vld [vmem:[%s10115_s8 + $0x40] sm:$0xff]  ;;  %v10660_v55 = vld [vmem:[#allocation67_spill] sm:$0xff] }
 0x5fe   : > { %v4321_v56 = vor.u32 1.1754944e-38, %v10635_v32  ;;  %v4362_v31 = vsel %vm9756_vm8, %v4361_v0, %v10640_v5  ;;  %v3606_v47 = vmul.f32 0.5, %v10643_v25  ;;  %v4983_v59 = vmul.f32 %v4951_v36, %v3607_v51  ;;  %5060 = vmatpush.msra.mxu0 %v4984_v30  ;;  %v1717_v51 = vld [vmem:[%s10113_s6 + $0xd8] sm:$0xff]  ;;  %v10658_v32 = vld [vmem:[#allocation43_spill] sm:$0xff]  ;;  %v9876_v25 = vpop.f32.mrf.mxu0 }
 0x5ff   : > { %vm10645_vm0 = vnez %v10644_v28  ;;  %v4338_v21 = vmul.f32 %v10650_v26, %v10649_v23  ;;  %v4403_v58 = vmul.f32 %v4402_v62, %v4378_v33  ;;  %v5337_v16 = vclamps-f32 %v4483_v43, 1.0  ;;  %v3408_v26 = vld [vmem:[%s10115_s8 + $0x18] sm:$0xff] }
 0x600   : > { %v10648_v7 = vsel %vm10645_vm0, %v10646_v11, %v10647_v14  ;;  %v4948_v42 = vadd.f32 1.0, %v5339_v2  ;;  %v3605_v13 = vmul.f32 0.5, %v10651_v24  ;;  %v4982_v29 = vmul.f32 %v4950_v46, %v3606_v47  ;;  %5061 = vmatpush.msra.mxu0 %v4983_v59  ;;  %v10657_v2 = vld [vmem:[#allocation65_spill] sm:$0xff]  ;;  %v3415_v47 = vld [vmem:[%s10115_s8 + $0x50] sm:$0xff]  ;;  %v1721_v59 = vld [vmem:[%s10113_s6 + $0xf8] sm:$0xff] }
 0x601   : > { %v4322_v38 = vsel %vm9777_vm2, %v4321_v56, %v10648_v7  ;;  %v4298_v41 = vmul.f32 %v10653_v40, %v10652_v48  ;;  %v4363_v3 = vmul.f32 %v4362_v31, %v4338_v21  ;;  %v5336_v39 = vclamps-f32 %v4443_v4, 1.0  ;;  %v3417_v11 = vld [vmem:[%s10115_s8 + $0x60] sm:$0xff]  ;;  %v3406_v7 = vld [vmem:[%s10115_s8 + $0x8] sm:$0xff] }
 0x602   : > { %v4947_v15 = vadd.f32 1.0, %v5338_v53  ;;  %v3604_v57 = vmul.f32 0.5, %v10654_v50  ;;  %v4981_v49 = vmul.f32 %v4949_v54, %v3605_v13  ;;  %5062 = vmatpush.msra.mxu0 %v4982_v29  ;;  %v5335_v45 = vclamps-f32 %v4403_v58, 1.0  ;;  %5015 = vmatmul.f32.gmra.mxu3 %v3411_v10  ;;  %v1719_v53 = vld [vmem:[%s10113_s6 + $0xe8] sm:$0xff]  ;;  %v3421_v58 = vld [vmem:[%s10115_s8 + $0x80] sm:$0xff]  ;;  %v3423_v13 = vld [vmem:[%s10115_s8 + $0x90] sm:$0xff] }
 0x603   : > { %v4323_v36 = vmul.f32 %v4322_v38, %v4298_v41  ;;  %v4946_v63 = vadd.f32 1.0, %v5337_v16  ;;  %v3603_v22 = vmul.f32 0.5, %v10655_v8  ;;  %v5334_v44 = vclamps-f32 %v4363_v3, 1.0  ;;  %v3419_v38 = vld [vmem:[%s10115_s8 + $0x70] sm:$0xff]  ;;  %v3412_v29 = vld [vmem:[%s10115_s8 + $0x38] sm:$0xff]  ;;  %v3425_v40 = vld [vmem:[%s10115_s8 + $0xa0] sm:$0xff] }
 0x604   : > { %v4980_v0 = vmul.f32 %v4948_v42, %v3604_v57  ;;  %5063 = vmatpush.msra.mxu0 %v4981_v49  ;;  %v4945_v1 = vadd.f32 1.0, %v5336_v39  ;;  %v3602_v62 = vmul.f32 0.5, %v10656_v61  ;;  %v4944_v43 = vadd.f32 1.0, %v5335_v45  ;;  %v9874_v54 = vpop.f32.mrf.mxu3  ;;  %v3410_v42 = vld [vmem:[%s10115_s8 + $0x28] sm:$0xff]  ;;  %v3427_v39 = vld [vmem:[%s10115_s8 + $0xb0] sm:$0xff]  ;;  %v3416_v50 = vld [vmem:[%s10115_s8 + $0x58] sm:$0xff] }
 0x605   : > { %v4979_v9 = vmul.f32 %v4947_v15, %v3603_v22  ;;  %v5333_v12 = vclamps-f32 %v4323_v36, 1.0  ;;  %v3601_v46 = vmul.f32 0.5, %v10657_v2  ;;  %v4943_v30 = vadd.f32 1.0, %v5334_v44  ;;  %3395 = vmatmul.f32.gmra.mxu0 %v1717_v51  ;;  %v3414_v41 = vld [vmem:[%s10115_s8 + $0x48] sm:$0xff]  ;;  %v3429_v49 = vld [vmem:[%s10115_s8 + $0xc0] sm:$0xff] }
 0x606   : > { %5064 = vmatpush.msra.mxu0 %v4980_v0  ;;  %v4978_v18 = vmul.f32 %v4946_v63, %v3602_v62  ;;  %v3600_v56 = vmul.f32 0.5, %v10658_v32  ;;  %v3599_v5 = vmul.f32 0.5, %v10659_v20  ;;  %v3598_v33 = vmul.f32 0.5, %v10660_v55  ;;  %v9889_v14 = vpop.f32.mrf.mxu0  ;;  %v3418_v45 = vld [vmem:[%s10115_s8 + $0x68] sm:$0xff]  ;;  %v3431_v63 = vld [vmem:[%s10115_s8 + $0xd0] sm:$0xff]  ;;  %v3420_v0 = vld [vmem:[%s10115_s8 + $0x78] sm:$0xff] }
 0x607   : > { %v4977_v17 = vmul.f32 %v4945_v1, %v3601_v46  ;;  %v4942_v60 = vadd.f32 1.0, %v5333_v12  ;;  %v3433_v10 = vld [vmem:[%s10115_s8 + $0xe0] sm:$0xff]  ;;  %v3422_v1 = vld [vmem:[%s10115_s8 + $0x88] sm:$0xff]  ;;  %vm10663_vm14 = vcmask 261120  }
 0x608   : > { %5065 = vmatpush.msra.mxu0 %v4979_v9  ;;  %v4976_v31 = vmul.f32 %v4944_v43, %v3600_v56  ;;  %v4975_v4 = vmul.f32 %v4943_v30, %v3599_v5  ;;  %v3435_v9 = vld [vmem:[%s10115_s8 + $0xf0] sm:$0xff]  ;;  %v3424_v43 = vld [vmem:[%s10115_s8 + $0x98] sm:$0xff]  ;;  %v3426_v51 = vld [vmem:[%s10115_s8 + $0xa8] sm:$0xff] }
 0x609   : > { %v4974_v35 = vmul.f32 %v4942_v60, %v3598_v33  ;;  %vm10665_vm1 = vmmov %vm10663_vm14 }
 0x60a   : > { %5066 = vmatpush.msra.mxu0 %v4978_v18  ;;  %5018 = vmatmul.f32.gmra.mxu3 %v3413_v37  ;;  %vm10667_vm6 = vmmov %vm10665_vm1 }
 0x60b   : > { %vm10669_vm7 = vmmov %vm10665_vm1 }
 0x60c   : > { %5067 = vmatpush.msra.mxu0 %v4977_v17  ;;  %v9884_v28 = vpop.f32.mrf.mxu3  ;;  %v3428_v17 = vld [vmem:[%s10115_s8 + $0xb8] sm:$0xff]  ;;  %vm10671_vm12 = vmmov %vm10665_vm1 }
 0x60d   : > { %3398 = vmatmul.f32.gmra.mxu0 %v1719_v53  ;;  %vm10673_vm13 = vmmov %vm10665_vm1 }
 0x60e   : > { %5068 = vmatpush.msra.mxu0 %v4976_v31  ;;  %v9902_v21 = vpop.f32.mrf.mxu0  ;;  %v3430_v31 = vld [vmem:[%s10115_s8 + $0xc8] sm:$0xff]  ;;  %vm10675_vm5 = vmmov %vm10665_vm1 }
 0x60f   : > { %vm10677_vm10 = vmmov %vm10665_vm1 }
 0x610   : > { %5069 = vmatpush.msra.mxu0 %v4975_v4  ;;  %v3432_v4 = vld [vmem:[%s10115_s8 + $0xd8] sm:$0xff]  ;;  %vm10679_vm11 = vmmov %vm10665_vm1 }
 0x611   : > { %vm10681_vm8 = vmmov %vm10665_vm1 }
 0x612   : > { %5070 = vmatpush.msra.mxu0 %v4974_v35  ;;  %5021 = vmatmul.f32.gmra.mxu3 %v3415_v47  ;;  %v3434_v47 = vld [vmem:[%s10115_s8 + $0xe8] sm:$0xff]  ;;  %vm10683_vm2 = vmmov %vm10665_vm1 }
 0x613   : > { %vm10685_vm3 = vmmov %vm10665_vm1 }
 0x614   : > { %v9897_v23 = vpop.f32.mrf.mxu3  ;;  %vm10687_vm9 = vmmov %vm10665_vm1 }
 0x615   : > { %3401 = vmatmul.f32.gmra.mxu0 %v1721_v59  ;;  %vm10689_vm15 = vmmov %vm10665_vm1 }
 0x616   : > { %v9910_v24 = vpop.f32.mrf.mxu0  ;;  %vm10691_vm4 = vmmov %vm10665_vm1 }
 0x617   : > { %vm10693_vm0 = vmmov %vm10665_vm1 }
 0x61a   : > { %5024 = vmatmul.f32.gmra.mxu3 %v3417_v11 }
 0x61c   : > { %v3316_v16 = vpop.f32.mrf.mxu3 }
 0x61d   : > { %5071 = vmatmul.f32.vlgmr.msra.gmra.mxu0 %v3406_v7 }
 0x61e   : > { %v9918_v48 = vpop.f32.mrf.mxu0 }
 0x622   : > { %5027 = vmatmul.f32.gmra.mxu3 %v3419_v38  ;;  %v3436_v38 = vld [vmem:[%s10115_s8 + $0xf8] sm:$0xff] }
 0x624   : > { %v3319_v27 = vpop.f32.mrf.mxu3 }
 0x625   : > { %5074 = vmatmul.f32.gmra.mxu0 %v3408_v26 }
 0x62a   : > { %5030 = vmatmul.f32.gmra.mxu3 %v3421_v58 }
 0x62d   : > { %5077 = vmatmul.f32.gmra.mxu0 %v3410_v42 }
 0x631   : > { %v9929_v15 = vpop.f32.mrf.mxu0 }
 0x632   : > { %5033 = vmatmul.f32.gmra.mxu3 %v3423_v13 }
 0x635   : > { %5080 = vmatmul.f32.gmra.mxu0 %v3412_v29 }
 0x637   : > { %v3322_v3 = vpop.f32.mrf.mxu3 }
 0x63a   : > { %5036 = vmatmul.f32.gmra.mxu3 %v3425_v40  ;;  %v10662_v40 = vld [vmem:[#allocation13_spill] sm:$0xff] }
 0x63d   : > { %5083 = vmatmul.f32.gmra.mxu0 %v3414_v41 }
 0x640   : > { %v3325_v57 = vpop.f32.mrf.mxu3 }
 0x642   : > { %5039 = vmatmul.f32.gmra.mxu3 %v3427_v39 }
 0x643   : > { %v9937_v36 = vpop.f32.mrf.mxu0 }
 0x645   : > { %5086 = vmatmul.f32.gmra.mxu0 %v3416_v50 }
 0x648   : > { %v3328_v8 = vpop.f32.mrf.mxu3 }
 0x64a   : > { %5042 = vmatmul.f32.gmra.mxu3 %v3429_v49  ;;  %v10664_v49 = vld [vmem:[#allocation14_spill] sm:$0xff] }
 0x64b   : > { %v9945_v22 = vpop.f32.mrf.mxu0 }
 0x64d   : > { %5089 = vmatmul.f32.gmra.mxu0 %v3418_v45 }
 0x650   : > { %v3331_v61 = vpop.f32.mrf.mxu3 }
 0x652   : > { %5045 = vmatmul.f32.gmra.mxu3 %v3431_v63  ;;  %v3364_v63 = vadd.f32 %v9902_v21, %v9752_v52  ;;  %v3370_v21 = vadd.f32 %v9918_v48, %v9859_v6  ;;  %v3376_v48 = vadd.f32 %v9937_v36, %v9884_v28  ;;  %v10676_v28 = vld [vmem:[#allocation21_spill] sm:$0xff] }
 0x653   : > { %v3381_v44 = vpop.f32.mrf.mxu0 }
 0x654   : > { %v9956_v62 = vadd.f32 %v3381_v44, %v3316_v16  ;;  %v10661_v16 = vld [vmem:[#allocation80_spill] sm:$0xff] }
 0x655   : > { %5092 = vmatmul.f32.gmra.mxu0 %v3420_v0  ;;  %v3358_v42 = vadd.f32 %v9876_v25, %v10661_v16 }
 0x658   : > { %v3334_v46 = vpop.f32.mrf.mxu3 }
 0x65a   : > { %5048 = vmatmul.f32.gmra.mxu3 %v3433_v10  ;;  %v10666_v10 = vld [vmem:[#allocation15_spill] sm:$0xff] }
 0x65b   : > { %v3384_v12 = vpop.f32.mrf.mxu0 }
 0x65c   : > { %v9964_v2 = vadd.f32 %v3384_v12, %v3319_v27 }
 0x65d   : > { %5095 = vmatmul.f32.gmra.mxu0 %v3422_v1  ;;  %v3367_v1 = vadd.f32 %v9910_v24, %v9835_v19  ;;  %v3373_v24 = vadd.f32 %v9929_v15, %v9874_v54  ;;  %v3379_v15 = vadd.f32 %v9945_v22, %v9897_v23 }
 0x660   : > { %v3337_v32 = vpop.f32.mrf.mxu3 }
 0x662   : > { %5051 = vmatmul.f32.gmra.mxu3 %v3435_v9 }
 0x665   : > { %5098 = vmatmul.f32.gmra.mxu0 %v3424_v43 }
 0x666   : > { %v3387_v18 = vpop.f32.mrf.mxu0 }
 0x667   : > { %v9969_v30 = vadd.f32 %v3387_v18, %v3322_v3  ;;  %v3361_v3 = vadd.f32 %v9889_v14, %v9647_v34 }
 0x668   : > { %v5007_v20 = vpop.f32.mrf.mxu3 }
 0x669   : > { %v5008_v13 = vadd.f32 %v5007_v20, %v3358_v42 }
 0x66d   : > { %5101 = vmatmul.f32.gmra.mxu0 %v3426_v51 }
 0x671   : > { %v3390_v56 = vpop.f32.mrf.mxu0 }
 0x672   : > { %v9974_v60 = vadd.f32 %v3390_v56, %v3325_v57  ;;  %v5010_v33 = vpop.f32.mrf.mxu3  ;;  %v10670_v56 = vld [vmem:[#allocation17_spill] sm:$0xff] }
 0x673   : > { %v5011_v50 = vadd.f32 %v5010_v33, %v3361_v3 }
 0x675   : > { %5104 = vmatmul.f32.gmra.mxu0 %v3428_v17 }
 0x679   : > { %v3393_v5 = vpop.f32.mrf.mxu0 }
 0x67a   : > { %v9979_v37 = vadd.f32 %v3393_v5, %v3328_v8 }
 0x67d   : > { %5107 = vmatmul.f32.gmra.mxu0 %v3430_v31  ;;  %v5013_v11 = vpop.f32.mrf.mxu3 }
 0x67e   : > { %v5014_v34 = vadd.f32 %v5013_v11, %v3364_v63  ;;  %v10674_v11 = vld [vmem:[#allocation19_spill] sm:$0xff] }
 0x682   : > { %v3396_v55 = vpop.f32.mrf.mxu0 }
 0x683   : > { %v9984_v35 = vadd.f32 %v3396_v55, %v3331_v61  ;;  %v10672_v55 = vld [vmem:[#allocation18_spill] sm:$0xff] }
 0x685   : > { %5110 = vmatmul.f32.gmra.mxu0 %v3432_v4  ;;  %v5016_v58 = vpop.f32.mrf.mxu3 }
 0x686   : > { %v5017_v61 = vadd.f32 %v5016_v58, %v3367_v1 }
 0x68a   : > { %v3399_v53 = vpop.f32.mrf.mxu0 }
 0x68b   : > { %v9989_v59 = vadd.f32 %v3399_v53, %v3334_v46  ;;  %v10668_v46 = vld [vmem:[#allocation16_spill] sm:$0xff] }
 0x68d   : > { %5113 = vmatmul.f32.gmra.mxu0 %v3434_v47  ;;  %v5019_v39 = vpop.f32.mrf.mxu3 }
 0x68e   : > { %v5020_v18 = vadd.f32 %v5019_v39, %v3370_v21  ;;  %v10680_v39 = vld [vmem:[#allocation5_spill] sm:$0xff] }
 0x68f   : > { %v10688_v21 = vld [vmem:[#allocation9_spill] sm:$0xff] }
 0x692   : > { %v3402_v7 = vpop.f32.mrf.mxu0 }
 0x693   : > { %v9994_v26 = vadd.f32 %v3402_v7, %v3337_v32 }
 0x695   : > { %5116 = vmatmul.f32.gmra.mxu0 %v3436_v38  ;;  %v5022_v14 = vpop.f32.mrf.mxu3 }
 0x696   : > { %v5023_v20 = vadd.f32 %v5022_v14, %v3373_v24 }
 0x69a   : > { %v5072_v29 = vpop.f32.mrf.mxu0 }
 0x69b   : > { %v5073_v27 = vadd.f32 %v5072_v29, %v5008_v13 }
 0x69d   : > { %v5120_v41 = vadd.f32 %v5073_v27, %v10662_v40  ;;  %v5025_v43 = vpop.f32.mrf.mxu3  ;;  %v10678_v40 = vld [vmem:[#allocation23_spill] sm:$0xff] }
 0x69e   : > { %v5026_v4 = vadd.f32 %v5025_v43, %v3376_v48 }
 0x69f   : > { %5136 = vst.msk [vmem:[%s10004_s14] sm:$0xff] %vm10663_vm14, %v5120_v41 }
 0x6a2   : > { %v5075_v25 = vpop.f32.mrf.mxu0 }
 0x6a3   : > { %v5076_v57 = vadd.f32 %v5075_v25, %v5011_v50 }
 0x6a5   : > { %v5121_v45 = vadd.f32 %v5076_v57, %v10664_v49  ;;  %v5028_v19 = vpop.f32.mrf.mxu3 }
 0x6a6   : > { %v5029_v7 = vadd.f32 %v5028_v19, %v3379_v15 }
 0x6a7   : > { %5137 = vst.msk [vmem:[%s10004_s14 + $0x8] sm:$0xff] %vm10665_vm1, %v5121_v45  ;;  %v10682_v45 = vld [vmem:[#allocation6_spill] sm:$0xff] }
 0x6aa   : > { %v5078_v8 = vpop.f32.mrf.mxu0 }
 0x6ab   : > { %v5079_v0 = vadd.f32 %v5078_v8, %v5014_v34 }
 0x6ad   : > { %v5122_v44 = vadd.f32 %v5079_v0, %v10666_v10  ;;  %v5031_v33 = vpop.f32.mrf.mxu3  ;;  %v10684_v0 = vld [vmem:[#allocation7_spill] sm:$0xff] }
 0x6ae   : > { %v5032_v42 = vadd.f32 %v5031_v33, %v9956_v62 }
 0x6af   : > { %5138 = vst.msk [vmem:[%s10004_s14 + $0x10] sm:$0xff] %vm10667_vm6, %v5122_v44 }
 0x6b2   : > { %v5081_v9 = vpop.f32.mrf.mxu0 }
 0x6b3   : > { %v5082_v12 = vadd.f32 %v5081_v9, %v5017_v61  ;;  %v10686_v9 = vld [vmem:[#allocation8_spill] sm:$0xff] }
 0x6b5   : > { %v5123_v52 = vadd.f32 %v5082_v12, %v10668_v46  ;;  %v5034_v38 = vpop.f32.mrf.mxu3 }
 0x6b6   : > { %v5035_v23 = vadd.f32 %v5034_v38, %v9964_v2 }
 0x6b7   : > { %5139 = vst.msk [vmem:[%s10004_s14 + $0x18] sm:$0xff] %vm10669_vm7, %v5123_v52 }
 0x6ba   : > { %v5084_v51 = vpop.f32.mrf.mxu0 }
 0x6bb   : > { %v5085_v32 = vadd.f32 %v5084_v51, %v5020_v18 }
 0x6bd   : > { %v5124_v17 = vadd.f32 %v5085_v32, %v10670_v56  ;;  %v5037_v27 = vpop.f32.mrf.mxu3  ;;  %v10690_v56 = vld [vmem:[#allocation10_spill] sm:$0xff] }
 0x6be   : > { %v5038_v62 = vadd.f32 %v5037_v27, %v9969_v30 }
 0x6bf   : > { %5140 = vst.msk [vmem:[%s10004_s14 + $0x20] sm:$0xff] %vm10671_vm12, %v5124_v17 }
 0x6c2   : > { %v5087_v5 = vpop.f32.mrf.mxu0 }
 0x6c3   : > { %v5088_v31 = vadd.f32 %v5087_v5, %v5023_v20  ;;  %v10692_v20 = vld [vmem:[#allocation11_spill] sm:$0xff] }
 0x6c5   : > { %v5125_v6 = vadd.f32 %v5088_v31, %v10672_v55  ;;  %v5040_v25 = vpop.f32.mrf.mxu3 }
 0x6c6   : > { %v5041_v2 = vadd.f32 %v5040_v25, %v9974_v60 }
 0x6c7   : > { %5141 = vst.msk [vmem:[%s10004_s14 + $0x28] sm:$0xff] %vm10673_vm13, %v5125_v6 }
 0x6ca   : > { %v5090_v53 = vpop.f32.mrf.mxu0 }
 0x6cb   : > { %v5091_v47 = vadd.f32 %v5090_v53, %v5026_v4 }
 0x6cd   : > { %v5126_v54 = vadd.f32 %v5091_v47, %v10674_v11  ;;  %v5043_v34 = vpop.f32.mrf.mxu3 }
 0x6ce   : > { %v5044_v30 = vadd.f32 %v5043_v34, %v9979_v37 }
 0x6cf   : > { %5142 = vst.msk [vmem:[%s10004_s14 + $0x30] sm:$0xff] %vm10675_vm5, %v5126_v54 }
 0x6d2   : > { %v5093_v58 = vpop.f32.mrf.mxu0 }
 0x6d3   : > { %v5094_v16 = vadd.f32 %v5093_v58, %v5029_v7 }
 0x6d5   : > { %v5127_v36 = vadd.f32 %v5094_v16, %v10676_v28  ;;  %v5046_v44 = vpop.f32.mrf.mxu3 }
 0x6d6   : > { %v5047_v60 = vadd.f32 %v5046_v44, %v9984_v35 }
 0x6d7   : > { %5143 = vst.msk [vmem:[%s10004_s14 + $0x38] sm:$0xff] %vm10677_vm10, %v5127_v36 }
 0x6da   : > { %v5096_v13 = vpop.f32.mrf.mxu0 }
 0x6db   : > { %v5097_v29 = vadd.f32 %v5096_v13, %v5032_v42 }
 0x6dd   : > { %v5128_v41 = vadd.f32 %v5097_v29, %v10678_v40  ;;  %v5049_v52 = vpop.f32.mrf.mxu3 }
 0x6de   : > { %v5050_v37 = vadd.f32 %v5049_v52, %v9989_v59 }
 0x6df   : > { %5144 = vst.msk [vmem:[%s10004_s14 + $0x40] sm:$0xff] %vm10679_vm11, %v5128_v41 }
 0x6e2   : > { %v5099_v22 = vpop.f32.mrf.mxu0 }
 0x6e3   : > { %v5100_v3 = vadd.f32 %v5099_v22, %v5035_v23 }
 0x6e5   : > { %v5129_v50 = vadd.f32 %v5100_v3, %v10680_v39  ;;  %v5052_v19 = vpop.f32.mrf.mxu3 }
 0x6e6   : > { %v5053_v35 = vadd.f32 %v5052_v19, %v9994_v26 }
 0x6e7   : > { %5145 = vst.msk [vmem:[%s10004_s14 + $0x48] sm:$0xff] %vm10681_vm8, %v5129_v50 }
 0x6ea   : > { %v5102_v57 = vpop.f32.mrf.mxu0 }
 0x6eb   : > { %v5103_v49 = vadd.f32 %v5102_v57, %v5038_v62 }
 0x6ed   : > { %v5130_v63 = vadd.f32 %v5103_v49, %v10682_v45 }
 0x6ef   : > { %5146 = vst.msk [vmem:[%s10004_s14 + $0x50] sm:$0xff] %vm10683_vm2, %v5130_v63 }
 0x6f2   : > { %v5105_v14 = vpop.f32.mrf.mxu0 }
 0x6f3   : > { %v5106_v8 = vadd.f32 %v5105_v14, %v5041_v2 }
 0x6f5   : > { %v5131_v10 = vadd.f32 %v5106_v8, %v10684_v0 }
 0x6f7   : > { %5147 = vst.msk [vmem:[%s10004_s14 + $0x58] sm:$0xff] %vm10685_vm3, %v5131_v10 }
 0x6fa   : > { %v5108_v1 = vpop.f32.mrf.mxu0 }
 0x6fb   : > { %v5109_v61 = vadd.f32 %v5108_v1, %v5044_v30 }
 0x6fd   : > { %v5132_v12 = vadd.f32 %v5109_v61, %v10686_v9 }
 0x6ff   : > { %5148 = vst.msk [vmem:[%s10004_s14 + $0x60] sm:$0xff] %vm10687_vm9, %v5132_v12 }
 0x702   : > { %v5111_v43 = vpop.f32.mrf.mxu0 }
 0x703   : > { %v5112_v46 = vadd.f32 %v5111_v43, %v5047_v60 }
 0x705   : > { %v5133_v18 = vadd.f32 %v5112_v46, %v10688_v21 }
 0x707   : > { %5149 = vst.msk [vmem:[%s10004_s14 + $0x68] sm:$0xff] %vm10689_vm15, %v5133_v18 }
 0x70a   : > { %v5114_v51 = vpop.f32.mrf.mxu0 }
 0x70b   : > { %v5115_v32 = vadd.f32 %v5114_v51, %v5050_v37 }
 0x70d   : > { %v5134_v17 = vadd.f32 %v5115_v32, %v10690_v56 }
 0x70f   : > { %5150 = vst.msk [vmem:[%s10004_s14 + $0x70] sm:$0xff] %vm10691_vm4, %v5134_v17 }
 0x712   : > { %v5117_v24 = vpop.f32.mrf.mxu0 }
 0x713   : > { %v5118_v59 = vadd.f32 %v5117_v24, %v5053_v35 }
 0x715   : > { %v5135_v5 = vadd.f32 %v5118_v59, %v10692_v20 }
 0x717   : > { %5151 = vst.msk [vmem:[%s10004_s14 + $0x78] sm:$0xff] %vm10693_vm0, %v5135_v5 }
 0x718   : > { %5635 = shalt.err (!%p5632_p3)
}
 0x719   : > { %s5673_s28 = smov 128   ;;  %s5674_s14 = smov 8  }
 0x71a   : > { %5368 = dma.vmem_to_hbm [thread:$0]  (%p5763_p5), %s5166_s22, 2048, %s5168_s23, %s5153_s13, %s5673_s28, %s5673_s28, %s5674_s14  }
 0x71b PF: > { %p5374_p4 = scmp.ge.s32.totalorder %s5670_s12, 2  ;;  %s5182_s21 = sand.u32 1, %s5658_s30  }
 0x71c   : > { %s5183_s27 = scalar_lea.sflag [#allocation3], %s5182_s21 }
 0x71d   : > { %p5371_p7 = pnand %p5374_p4, %p5767_p6 }
 0x71f   : > { %p5372_p8 = pneg %p5371_p7 }
 0x721   : > { %5653 = dma.done.wait (%p5372_p8), %s5183_s27, 2048  }
 0x722   : > { %5655 = vsyncadd (%p5372_p8), %s5183_s27, 4294965248  ;;  %p19_p9 = scmp.ge.s32.totalorder %s5750_s15, 4   ;;  %s10694_s30 = smov %s5662_s10 }
 0x723   : > { %s10695_s10 = smov %s5666_s11  ;;  %s10696_s11 = smov %s5761_s18 }
 0x724   : > { %s10697_s12 = smov %s5750_s15  ;;  %21 = sbr.rel (!%p19_p9) target bundleno = 3 (0x3), region = 91 }
 0x729   :  { %5189 = vsyncpa [#allocation3], 1 }
 0x72a   :  { %5191 = vsyncpa [#allocation3 + $0x1], 1 }

</bundles_post_ra>
